<compile_context>
chip_gen: v7x
topology: tpu7x:2x2x1
jax: 0.10.0
libtpu: 0.0.40
codegen_flags: <defaults>
</compile_context>

<pallas_src>
import functools

import jax
import jax.numpy as jnp
from jax.experimental import pallas as pl
from jax.experimental.pallas import tpu as pltpu


# ----------------------------- Pallas kernel ---------------------------------
def skeleton_gnn_kernel(adj_ref, x_ref, w1_ref, p1_ref, w2_ref, p2_ref, out_ref,
                        *, n_chunks, chunk):
    """One grid step = frames_per_block frames; channels on sublanes, tokens on lanes.

    adj_ref : (CK, CK)    kron(I_G, A_hat^T), bf16, resident (CK = G*N lanes)
    x_ref   : (C_in, M)   streamed bf16 input block (M = TB*N lanes)
    w*_ref  : (C_out_l, C_in_l)  GCN linear weights, PyTorch [out, in], bf16, resident
    p*_ref  : (C_out_l, 3)       packed f32 columns [bias | gamma | beta], resident
    out_ref : (C_out, M)  streamed, lane-dense f32 output block
    """
    adj = adj_ref[...]          # (CK, CK) bf16
    w1 = w1_ref[...]            # (hid, c_in) bf16
    w2 = w2_ref[...]            # (c_out, hid) bf16
    p1 = p1_ref[...]            # (hid, 3) f32
    p2 = p2_ref[...]            # (c_out, 3) f32

    def gcn_ln_relu(h_bf16, w, p):
        # GCNConv, reassociated: aggregate over the graph first, then project features.
        agg = jnp.dot(h_bf16, adj, preferred_element_type=jnp.float32)          # (C_l,   CK)
        z = jnp.dot(w, agg.astype(jnp.bfloat16), preferred_element_type=jnp.float32)  # (C_l+1, CK)
        z = z + p[:, 0:1]                                                        # bias (after agg, as in PyG)
        # LayerNorm over the feature (sublane) axis, two-pass (centered) variance.
        mu = jnp.mean(z, axis=0, keepdims=True)
        zc = z - mu
        var = jnp.mean(zc * zc, axis=0, keepdims=True)
        z = zc * jax.lax.rsqrt(var + 1e-5)
        z = z * p[:, 1:2] + p[:, 2:3]                                            # gamma, beta
        return jnp.maximum(z, 0.0)                                               # ReLU

    # Both layers fused per lane chunk: inter-layer activation stays in registers.
    for c in range(n_chunks):                       # static trip count, static slices
        off = c * chunk
        xb = x_ref[:, pl.ds(off, chunk)]            # (c_in, CK) bf16
        h = gcn_ln_relu(xb, w1, p1)                 # (hid,  CK) f32
        # TODO(synk): training-mode dropout (pltpu.prng_*) not implemented; eval-mode dropout is identity.
        y = gcn_ln_relu(h.astype(jnp.bfloat16), w2, p2)
        out_ref[:, pl.ds(off, chunk)] = y           # unmasked 256-lane-wide store


# ----------------------------- graph preprocessing (once per graph) -----------
def gcn_norm_adj(edge_index, num_nodes):
    """Dense PyG gcn_norm: A_hat = D^-1/2 (A + I) D^-1/2 with A[dst, src] = 1."""
    src, dst = edge_index[0], edge_index[1]
    a = jnp.zeros((num_nodes, num_nodes), jnp.float32).at[dst, src].add(1.0)
    a = a + jnp.eye(num_nodes, dtype=jnp.float32)
    deg = a.sum(axis=1)
    dinv = jnp.where(deg > 0, 1.0 / jnp.sqrt(deg), 0.0)
    return dinv[:, None] * a * dinv[None, :]


def precompute_adj_block(adj, frames_per_group):
    """Block-diagonal kron(I_G, A_hat^T), fixed small G (independent of the grid block size).

    G=16 -> 256x256 (one v6e/v7x MXU tile); G=8 -> 128x128 (one v5e MXU tile). Built once per
    graph OUTSIDE the jitted forward so it is not re-materialized every call.
    """
    g = frames_per_group
    blk = jnp.kron(jnp.eye(g, dtype=jnp.float32), adj.T)
    return blk.astype(jnp.bfloat16)


# ----------------------------- wrapper ----------------------------------------
@functools.partial(jax.jit,
                   static_argnames=("frames_per_block", "frames_per_group", "node_major"))
def skeleton_gnn_forward(x, adj_blk, params, *, frames_per_block=128, frames_per_group=16,
                         node_major=True):
    """Batched SkeletonGNN forward. x: (B, N, C_in) frames sharing one skeleton graph."""
    w1, b1, g1, be1, w2, b2, g2, be2 = params
    B, N, c_in = x.shape
    hid, c_out = w1.shape[0], w2.shape[0]
    TB, G = frames_per_block, frames_per_group
    assert B % TB == 0, "batch must be a multiple of frames_per_block"
    assert TB % G == 0, "frames_per_block must be a multiple of frames_per_group"
    NB = B // TB                 # grid steps (keep >= 2 on v7x for its two TensorCores)
    M = TB * N                   # lanes per grid step (multiple of 128)
    CK = G * N                   # lanes per in-kernel chunk (128 / 256)
    assert adj_blk.shape == (CK, CK)

    # channels-on-sublanes / tokens-on-lanes layout; matmul operands in bf16.
    x_cm = x.reshape(B * N, c_in).T.astype(jnp.bfloat16)          # (C_in, B*N)
    w1b = w1.astype(jnp.bfloat16)
    w2b = w2.astype(jnp.bfloat16)
    # pack per-layer small params into one f32 slab each: columns = [bias, gamma, beta]
    p1 = jnp.stack([b1, g1, be1], axis=1).astype(jnp.float32)     # (hid, 3)
    p2 = jnp.stack([b2, g2, be2], axis=1).astype(jnp.float32)     # (c_out, 3)

    kernel = functools.partial(skeleton_gnn_kernel, n_chunks=TB // G, chunk=CK)

    out_cm = pl.pallas_call(
        kernel,
        out_shape=jax.ShapeDtypeStruct((c_out, B * N), jnp.float32),
        grid=(NB,),
        in_specs=[
            pl.BlockSpec((CK, CK), lambda i: (0, 0)),             # adj_blk : resident
            pl.BlockSpec((c_in, M), lambda i: (0, i)),            # x       : streamed
            pl.BlockSpec((hid, c_in), lambda i: (0, 0)),          # w1      : resident
            pl.BlockSpec((hid, 3), lambda i: (0, 0)),             # p1      : resident
            pl.BlockSpec((c_out, hid), lambda i: (0, 0)),         # w2      : resident
            pl.BlockSpec((c_out, 3), lambda i: (0, 0)),           # p2      : resident
        ],
        out_specs=pl.BlockSpec((c_out, M), lambda i: (0, i)),
        compiler_params=pltpu.CompilerParams(dimension_semantics=("parallel",)),
    )(adj_blk, x_cm, w1b, p1, w2b, p2)

    if node_major:
        # Matches the PyTorch module's (frame, node, channel) output. Downstream consumers
        # that accept channel-major can pass node_major=False and skip this transpose.
        return out_cm.T.reshape(B, N, c_out)
    return out_cm                                                  # (C_out, B*N)


# ----------------------------- pure-JAX reference ------------------------------
def reference_forward(x, adj, params):
    """Plain-JAX reference with PyTorch/PyG op ordering (node-major layout, f32)."""
    w1, b1, g1, be1, w2, b2, g2, be2 = params

    def layer(h, w, b, g, be):
        h = jnp.einsum("ij,bjc->bic", adj, h @ w.T) + b            # GCNConv: A_hat (h W^T) + bias
        mu = h.mean(-1, keepdims=True)
        var = ((h - mu) ** 2).mean(-1, keepdims=True)
        h = (h - mu) / jnp.sqrt(var + 1e-5) * g + be               # LayerNorm (eps=1e-5)
        return jnp.maximum(h, 0.0)                                 # ReLU

    h = layer(x, w1, b1, g1, be1)
    return layer(h, w2, b2, g2, be2)


# ----------------------------- main --------------------------------------------
if __name__ == "__main__":
    # Skeleton sizes: 16 joints, 4 input features per joint, hidden = out = 32.
    N, C_IN, HID, C_OUT = 16, 4, 32, 32
    B = 256            # 256 frames sharing one skeleton graph
    TB = 128           # frames per grid step -> grid=(2,)  (2 parallel steps for v7x megacore)
    G = 16             # frames per kron group -> 256x256 adj tile (use G=8 on v5e)

    key = jax.random.PRNGKey(0)
    ks = jax.random.split(key, 9)

    # B frames of node features.
    x = jax.random.normal(ks[0], (B, N, C_IN), jnp.float32)

    # Undirected chain skeleton, edge_index [2, E] with both directions.
    fwd = jnp.stack([jnp.arange(N - 1), jnp.arange(1, N)], axis=0)
    edge_index = jnp.concatenate([fwd, fwd[::-1]], axis=1).astype(jnp.int32)

    # Parameters: GCNConv lin weight [out, in], bias [out]; LayerNorm gamma/beta [out].
    w1 = 0.2 * jax.random.normal(ks[1], (HID, C_IN), jnp.float32)
    b1 = 0.1 * jax.random.normal(ks[2], (HID,), jnp.float32)
    g1 = 1.0 + 0.1 * jax.random.normal(ks[3], (HID,), jnp.float32)
    be1 = 0.1 * jax.random.normal(ks[4], (HID,), jnp.float32)
    w2 = 0.2 * jax.random.normal(ks[5], (C_OUT, HID), jnp.float32)
    b2 = 0.1 * jax.random.normal(ks[6], (C_OUT,), jnp.float32)
    g2 = 1.0 + 0.1 * jax.random.normal(ks[7], (C_OUT,), jnp.float32)
    be2 = 0.1 * jax.random.normal(ks[8], (C_OUT,), jnp.float32)
    params = (w1, b1, g1, be1, w2, b2, g2, be2)

    # Graph-constant preprocessing, done once (outside the jitted forward).
    adj = gcn_norm_adj(edge_index, N)
    adj_blk = precompute_adj_block(adj, G)

    out = skeleton_gnn_forward(x, adj_blk, params,
                               frames_per_block=TB, frames_per_group=G, node_major=True)
    out = jax.block_until_ready(out)

    ref = reference_forward(x, adj, params)
    assert out.shape == (B, N, C_OUT)
    # Tolerance accounts for bf16 MXU operands (same single-pass bf16 datapath the review
    # accepted) plus the reassociated / block-diagonal formulation used inside the kernel.
    assert jnp.allclose(out, ref, atol=3e-2, rtol=3e-2), "Pallas output mismatch vs reference"

    print("KERNEL_OK")
</pallas_src>

<mosaic_0001>
module attributes {stable_mosaic.version = 11 : i64} {
  func.func @skeleton_gnn_kernel(%arg0: i32, %arg1: memref<256x256xbf16, #tpu.memory_space<vmem>>, %arg2: memref<4x2048xbf16, #tpu.memory_space<vmem>>, %arg3: memref<32x4xbf16, #tpu.memory_space<vmem>>, %arg4: memref<32x3xf32, #tpu.memory_space<vmem>>, %arg5: memref<32x32xbf16, #tpu.memory_space<vmem>>, %arg6: memref<32x3xf32, #tpu.memory_space<vmem>>, %arg7: memref<32x2048xf32, #tpu.memory_space<vmem>>) attributes {dimension_semantics = [#tpu.dimension_semantics<parallel>], iteration_bounds = array<i64: 2>, scalar_prefetch = 0 : i64, scratch_operands = 0 : i64, tpu.core_type = #tpu.core_type<tc>, window_params = [{pipeline_mode = #tpu.pipeline_mode<synchronous>, transform_indices = @transform_0, window_bounds = array<i64: 256, 256>}, {transform_indices = @transform_1, window_bounds = array<i64: 4, 2048>}, {pipeline_mode = #tpu.pipeline_mode<synchronous>, transform_indices = @transform_2, window_bounds = array<i64: 32, 4>}, {pipeline_mode = #tpu.pipeline_mode<synchronous>, transform_indices = @transform_3, window_bounds = array<i64: 32, 3>}, {pipeline_mode = #tpu.pipeline_mode<synchronous>, transform_indices = @transform_4, window_bounds = array<i64: 32, 32>}, {pipeline_mode = #tpu.pipeline_mode<synchronous>, transform_indices = @transform_5, window_bounds = array<i64: 32, 3>}, {transform_indices = @transform_6, window_bounds = array<i64: 32, 2048>}]} {
    %c0 = arith.constant 0 : index
    %c0_0 = arith.constant 0 : index
    %0 = vector.load %arg1[%c0, %c0_0] : memref<256x256xbf16, #tpu.memory_space<vmem>>, vector<256x256xbf16>
    %c0_1 = arith.constant 0 : index
    %c0_2 = arith.constant 0 : index
    %1 = vector.load %arg3[%c0_1, %c0_2] : memref<32x4xbf16, #tpu.memory_space<vmem>>, vector<32x4xbf16>
    %c0_3 = arith.constant 0 : index
    %c0_4 = arith.constant 0 : index
    %2 = vector.load %arg5[%c0_3, %c0_4] : memref<32x32xbf16, #tpu.memory_space<vmem>>, vector<32x32xbf16>
    %c0_5 = arith.constant 0 : index
    %c0_6 = arith.constant 0 : index
    %3 = vector.load %arg4[%c0_5, %c0_6] : memref<32x3xf32, #tpu.memory_space<vmem>>, vector<32x3xf32>
    %c0_7 = arith.constant 0 : index
    %c0_8 = arith.constant 0 : index
    %4 = vector.load %arg6[%c0_7, %c0_8] : memref<32x3xf32, #tpu.memory_space<vmem>>, vector<32x3xf32>
    %c0_9 = arith.constant 0 : index
    %c0_10 = arith.constant 0 : index
    %5 = vector.load %arg2[%c0_9, %c0_10] : memref<4x2048xbf16, #tpu.memory_space<vmem>>, vector<4x256xbf16>
    %cst = arith.constant dense<0.000000e+00> : vector<4x256xf32>
    %6 = tpu.matmul %5, %0, %cst {dimension_numbers = #tpu.dot_dimension_numbers<[1], [0], [0], [1], [0, 0, 1, 1], [], []>} : vector<4x256xbf16>, vector<256x256xbf16>, vector<4x256xf32> -> vector<4x256xf32>
    %7 = arith.truncf %6 : vector<4x256xf32> to vector<4x256xbf16>
    %cst_11 = arith.constant dense<0.000000e+00> : vector<32x256xf32>
    %8 = tpu.matmul %1, %7, %cst_11 {dimension_numbers = #tpu.dot_dimension_numbers<[1], [0], [0], [1], [0, 0, 1, 1], [], []>} : vector<32x4xbf16>, vector<4x256xbf16>, vector<32x256xf32> -> vector<32x256xf32>
    %9 = vector.extract_strided_slice %3 {offsets = [0, 0], sizes = [32, 1], strides = [1, 1]} : vector<32x3xf32> to vector<32x1xf32>
    %10 = vector.broadcast %9 : vector<32x1xf32> to vector<32x256xf32>
    %11 = arith.addf %8, %10 : vector<32x256xf32>
    %cst_12 = arith.constant dense<0.000000e+00> : vector<256xf32>
    %12 = vector.multi_reduction <add>, %11, %cst_12 [0] : vector<32x256xf32> to vector<256xf32>
    %13 = vector.shape_cast %12 : vector<256xf32> to vector<1x256xf32>
    %cst_13 = arith.constant 3.200000e+01 : f32
    %14 = vector.broadcast %cst_13 : f32 to vector<1x256xf32>
    %15 = arith.divf %13, %14 : vector<1x256xf32>
    %16 = vector.broadcast %15 : vector<1x256xf32> to vector<32x256xf32>
    %17 = arith.subf %11, %16 : vector<32x256xf32>
    %18 = arith.mulf %17, %17 : vector<32x256xf32>
    %cst_14 = arith.constant dense<0.000000e+00> : vector<256xf32>
    %19 = vector.multi_reduction <add>, %18, %cst_14 [0] : vector<32x256xf32> to vector<256xf32>
    %20 = vector.shape_cast %19 : vector<256xf32> to vector<1x256xf32>
    %cst_15 = arith.constant 3.200000e+01 : f32
    %21 = vector.broadcast %cst_15 : f32 to vector<1x256xf32>
    %22 = arith.divf %20, %21 : vector<1x256xf32>
    %cst_16 = arith.constant 9.99999974E-6 : f32
    %23 = vector.broadcast %cst_16 : f32 to vector<1x256xf32>
    %24 = arith.addf %22, %23 : vector<1x256xf32>
    %25 = math.rsqrt %24 : vector<1x256xf32>
    %26 = vector.broadcast %25 : vector<1x256xf32> to vector<32x256xf32>
    %27 = arith.mulf %17, %26 : vector<32x256xf32>
    %28 = vector.extract_strided_slice %3 {offsets = [0, 1], sizes = [32, 1], strides = [1, 1]} : vector<32x3xf32> to vector<32x1xf32>
    %29 = vector.broadcast %28 : vector<32x1xf32> to vector<32x256xf32>
    %30 = arith.mulf %27, %29 : vector<32x256xf32>
    %31 = vector.extract_strided_slice %3 {offsets = [0, 2], sizes = [32, 1], strides = [1, 1]} : vector<32x3xf32> to vector<32x1xf32>
    %32 = vector.broadcast %31 : vector<32x1xf32> to vector<32x256xf32>
    %33 = arith.addf %30, %32 : vector<32x256xf32>
    %cst_17 = arith.constant 0.000000e+00 : f32
    %34 = vector.broadcast %cst_17 : f32 to vector<32x256xf32>
    %35 = arith.maximumf %33, %34 : vector<32x256xf32>
    %36 = arith.truncf %35 : vector<32x256xf32> to vector<32x256xbf16>
    %cst_18 = arith.constant dense<0.000000e+00> : vector<32x256xf32>
    %37 = tpu.matmul %36, %0, %cst_18 {dimension_numbers = #tpu.dot_dimension_numbers<[1], [0], [0], [1], [0, 0, 1, 1], [], []>} : vector<32x256xbf16>, vector<256x256xbf16>, vector<32x256xf32> -> vector<32x256xf32>
    %38 = arith.truncf %37 : vector<32x256xf32> to vector<32x256xbf16>
    %cst_19 = arith.constant dense<0.000000e+00> : vector<32x256xf32>
    %39 = tpu.matmul %2, %38, %cst_19 {dimension_numbers = #tpu.dot_dimension_numbers<[1], [0], [0], [1], [0, 0, 1, 1], [], []>} : vector<32x32xbf16>, vector<32x256xbf16>, vector<32x256xf32> -> vector<32x256xf32>
    %40 = vector.extract_strided_slice %4 {offsets = [0, 0], sizes = [32, 1], strides = [1, 1]} : vector<32x3xf32> to vector<32x1xf32>
    %41 = vector.broadcast %40 : vector<32x1xf32> to vector<32x256xf32>
    %42 = arith.addf %39, %41 : vector<32x256xf32>
    %cst_20 = arith.constant dense<0.000000e+00> : vector<256xf32>
    %43 = vector.multi_reduction <add>, %42, %cst_20 [0] : vector<32x256xf32> to vector<256xf32>
    %44 = vector.shape_cast %43 : vector<256xf32> to vector<1x256xf32>
    %cst_21 = arith.constant 3.200000e+01 : f32
    %45 = vector.broadcast %cst_21 : f32 to vector<1x256xf32>
    %46 = arith.divf %44, %45 : vector<1x256xf32>
    %47 = vector.broadcast %46 : vector<1x256xf32> to vector<32x256xf32>
    %48 = arith.subf %42, %47 : vector<32x256xf32>
    %49 = arith.mulf %48, %48 : vector<32x256xf32>
    %cst_22 = arith.constant dense<0.000000e+00> : vector<256xf32>
    %50 = vector.multi_reduction <add>, %49, %cst_22 [0] : vector<32x256xf32> to vector<256xf32>
    %51 = vector.shape_cast %50 : vector<256xf32> to vector<1x256xf32>
    %cst_23 = arith.constant 3.200000e+01 : f32
    %52 = vector.broadcast %cst_23 : f32 to vector<1x256xf32>
    %53 = arith.divf %51, %52 : vector<1x256xf32>
    %cst_24 = arith.constant 9.99999974E-6 : f32
    %54 = vector.broadcast %cst_24 : f32 to vector<1x256xf32>
    %55 = arith.addf %53, %54 : vector<1x256xf32>
    %56 = math.rsqrt %55 : vector<1x256xf32>
    %57 = vector.broadcast %56 : vector<1x256xf32> to vector<32x256xf32>
    %58 = arith.mulf %48, %57 : vector<32x256xf32>
    %59 = vector.extract_strided_slice %4 {offsets = [0, 1], sizes = [32, 1], strides = [1, 1]} : vector<32x3xf32> to vector<32x1xf32>
    %60 = vector.broadcast %59 : vector<32x1xf32> to vector<32x256xf32>
    %61 = arith.mulf %58, %60 : vector<32x256xf32>
    %62 = vector.extract_strided_slice %4 {offsets = [0, 2], sizes = [32, 1], strides = [1, 1]} : vector<32x3xf32> to vector<32x1xf32>
    %63 = vector.broadcast %62 : vector<32x1xf32> to vector<32x256xf32>
    %64 = arith.addf %61, %63 : vector<32x256xf32>
    %cst_25 = arith.constant 0.000000e+00 : f32
    %65 = vector.broadcast %cst_25 : f32 to vector<32x256xf32>
    %66 = arith.maximumf %64, %65 : vector<32x256xf32>
    %c0_26 = arith.constant 0 : index
    %c0_27 = arith.constant 0 : index
    %67 = vector.load %arg7[%c0_26, %c0_27] : memref<32x2048xf32, #tpu.memory_space<vmem>>, vector<32x256xf32>
    tpu.vector_store %arg7[%c0_26, %c0_27], %66 {strides = array<i32>} : memref<32x2048xf32, #tpu.memory_space<vmem>>, vector<32x256xf32>,
    %c0_28 = arith.constant 0 : index
    %c256 = arith.constant 256 : index
    %68 = vector.load %arg2[%c0_28, %c256] : memref<4x2048xbf16, #tpu.memory_space<vmem>>, vector<4x256xbf16>
    %cst_29 = arith.constant dense<0.000000e+00> : vector<4x256xf32>
    %69 = tpu.matmul %68, %0, %cst_29 {dimension_numbers = #tpu.dot_dimension_numbers<[1], [0], [0], [1], [0, 0, 1, 1], [], []>} : vector<4x256xbf16>, vector<256x256xbf16>, vector<4x256xf32> -> vector<4x256xf32>
    %70 = arith.truncf %69 : vector<4x256xf32> to vector<4x256xbf16>
    %cst_30 = arith.constant dense<0.000000e+00> : vector<32x256xf32>
    %71 = tpu.matmul %1, %70, %cst_30 {dimension_numbers = #tpu.dot_dimension_numbers<[1], [0], [0], [1], [0, 0, 1, 1], [], []>} : vector<32x4xbf16>, vector<4x256xbf16>, vector<32x256xf32> -> vector<32x256xf32>
    %72 = vector.extract_strided_slice %3 {offsets = [0, 0], sizes = [32, 1], strides = [1, 1]} : vector<32x3xf32> to vector<32x1xf32>
    %73 = vector.broadcast %72 : vector<32x1xf32> to vector<32x256xf32>
    %74 = arith.addf %71, %73 : vector<32x256xf32>
    %cst_31 = arith.constant dense<0.000000e+00> : vector<256xf32>
    %75 = vector.multi_reduction <add>, %74, %cst_31 [0] : vector<32x256xf32> to vector<256xf32>
    %76 = vector.shape_cast %75 : vector<256xf32> to vector<1x256xf32>
    %cst_32 = arith.constant 3.200000e+01 : f32
    %77 = vector.broadcast %cst_32 : f32 to vector<1x256xf32>
    %78 = arith.divf %76, %77 : vector<1x256xf32>
    %79 = vector.broadcast %78 : vector<1x256xf32> to vector<32x256xf32>
    %80 = arith.subf %74, %79 : vector<32x256xf32>
    %81 = arith.mulf %80, %80 : vector<32x256xf32>
    %cst_33 = arith.constant dense<0.000000e+00> : vector<256xf32>
    %82 = vector.multi_reduction <add>, %81, %cst_33 [0] : vector<32x256xf32> to vector<256xf32>
    %83 = vector.shape_cast %82 : vector<256xf32> to vector<1x256xf32>
    %cst_34 = arith.constant 3.200000e+01 : f32
    %84 = vector.broadcast %cst_34 : f32 to vector<1x256xf32>
    %85 = arith.divf %83, %84 : vector<1x256xf32>
    %cst_35 = arith.constant 9.99999974E-6 : f32
    %86 = vector.broadcast %cst_35 : f32 to vector<1x256xf32>
    %87 = arith.addf %85, %86 : vector<1x256xf32>
    %88 = math.rsqrt %87 : vector<1x256xf32>
    %89 = vector.broadcast %88 : vector<1x256xf32> to vector<32x256xf32>
    %90 = arith.mulf %80, %89 : vector<32x256xf32>
    %91 = vector.extract_strided_slice %3 {offsets = [0, 1], sizes = [32, 1], strides = [1, 1]} : vector<32x3xf32> to vector<32x1xf32>
    %92 = vector.broadcast %91 : vector<32x1xf32> to vector<32x256xf32>
    %93 = arith.mulf %90, %92 : vector<32x256xf32>
    %94 = vector.extract_strided_slice %3 {offsets = [0, 2], sizes = [32, 1], strides = [1, 1]} : vector<32x3xf32> to vector<32x1xf32>
    %95 = vector.broadcast %94 : vector<32x1xf32> to vector<32x256xf32>
    %96 = arith.addf %93, %95 : vector<32x256xf32>
    %cst_36 = arith.constant 0.000000e+00 : f32
    %97 = vector.broadcast %cst_36 : f32 to vector<32x256xf32>
    %98 = arith.maximumf %96, %97 : vector<32x256xf32>
    %99 = arith.truncf %98 : vector<32x256xf32> to vector<32x256xbf16>
    %cst_37 = arith.constant dense<0.000000e+00> : vector<32x256xf32>
    %100 = tpu.matmul %99, %0, %cst_37 {dimension_numbers = #tpu.dot_dimension_numbers<[1], [0], [0], [1], [0, 0, 1, 1], [], []>} : vector<32x256xbf16>, vector<256x256xbf16>, vector<32x256xf32> -> vector<32x256xf32>
    %101 = arith.truncf %100 : vector<32x256xf32> to vector<32x256xbf16>
    %cst_38 = arith.constant dense<0.000000e+00> : vector<32x256xf32>
    %102 = tpu.matmul %2, %101, %cst_38 {dimension_numbers = #tpu.dot_dimension_numbers<[1], [0], [0], [1], [0, 0, 1, 1], [], []>} : vector<32x32xbf16>, vector<32x256xbf16>, vector<32x256xf32> -> vector<32x256xf32>
    %103 = vector.extract_strided_slice %4 {offsets = [0, 0], sizes = [32, 1], strides = [1, 1]} : vector<32x3xf32> to vector<32x1xf32>
    %104 = vector.broadcast %103 : vector<32x1xf32> to vector<32x256xf32>
    %105 = arith.addf %102, %104 : vector<32x256xf32>
    %cst_39 = arith.constant dense<0.000000e+00> : vector<256xf32>
    %106 = vector.multi_reduction <add>, %105, %cst_39 [0] : vector<32x256xf32> to vector<256xf32>
    %107 = vector.shape_cast %106 : vector<256xf32> to vector<1x256xf32>
    %cst_40 = arith.constant 3.200000e+01 : f32
    %108 = vector.broadcast %cst_40 : f32 to vector<1x256xf32>
    %109 = arith.divf %107, %108 : vector<1x256xf32>
    %110 = vector.broadcast %109 : vector<1x256xf32> to vector<32x256xf32>
    %111 = arith.subf %105, %110 : vector<32x256xf32>
    %112 = arith.mulf %111, %111 : vector<32x256xf32>
    %cst_41 = arith.constant dense<0.000000e+00> : vector<256xf32>
    %113 = vector.multi_reduction <add>, %112, %cst_41 [0] : vector<32x256xf32> to vector<256xf32>
    %114 = vector.shape_cast %113 : vector<256xf32> to vector<1x256xf32>
    %cst_42 = arith.constant 3.200000e+01 : f32
    %115 = vector.broadcast %cst_42 : f32 to vector<1x256xf32>
    %116 = arith.divf %114, %115 : vector<1x256xf32>
    %cst_43 = arith.constant 9.99999974E-6 : f32
    %117 = vector.broadcast %cst_43 : f32 to vector<1x256xf32>
    %118 = arith.addf %116, %117 : vector<1x256xf32>
    %119 = math.rsqrt %118 : vector<1x256xf32>
    %120 = vector.broadcast %119 : vector<1x256xf32> to vector<32x256xf32>
    %121 = arith.mulf %111, %120 : vector<32x256xf32>
    %122 = vector.extract_strided_slice %4 {offsets = [0, 1], sizes = [32, 1], strides = [1, 1]} : vector<32x3xf32> to vector<32x1xf32>
    %123 = vector.broadcast %122 : vector<32x1xf32> to vector<32x256xf32>
    %124 = arith.mulf %121, %123 : vector<32x256xf32>
    %125 = vector.extract_strided_slice %4 {offsets = [0, 2], sizes = [32, 1], strides = [1, 1]} : vector<32x3xf32> to vector<32x1xf32>
    %126 = vector.broadcast %125 : vector<32x1xf32> to vector<32x256xf32>
    %127 = arith.addf %124, %126 : vector<32x256xf32>
    %cst_44 = arith.constant 0.000000e+00 : f32
    %128 = vector.broadcast %cst_44 : f32 to vector<32x256xf32>
    %129 = arith.maximumf %127, %128 : vector<32x256xf32>
    %c0_45 = arith.constant 0 : index
    %c256_46 = arith.constant 256 : index
    %130 = vector.load %arg7[%c0_45, %c256_46] : memref<32x2048xf32, #tpu.memory_space<vmem>>, vector<32x256xf32>
    tpu.vector_store %arg7[%c0_45, %c256_46], %129 {strides = array<i32>} : memref<32x2048xf32, #tpu.memory_space<vmem>>, vector<32x256xf32>,
    %c0_47 = arith.constant 0 : index
    %c512 = arith.constant 512 : index
    %131 = vector.load %arg2[%c0_47, %c512] : memref<4x2048xbf16, #tpu.memory_space<vmem>>, vector<4x256xbf16>
    %cst_48 = arith.constant dense<0.000000e+00> : vector<4x256xf32>
    %132 = tpu.matmul %131, %0, %cst_48 {dimension_numbers = #tpu.dot_dimension_numbers<[1], [0], [0], [1], [0, 0, 1, 1], [], []>} : vector<4x256xbf16>, vector<256x256xbf16>, vector<4x256xf32> -> vector<4x256xf32>
    %133 = arith.truncf %132 : vector<4x256xf32> to vector<4x256xbf16>
    %cst_49 = arith.constant dense<0.000000e+00> : vector<32x256xf32>
    %134 = tpu.matmul %1, %133, %cst_49 {dimension_numbers = #tpu.dot_dimension_numbers<[1], [0], [0], [1], [0, 0, 1, 1], [], []>} : vector<32x4xbf16>, vector<4x256xbf16>, vector<32x256xf32> -> vector<32x256xf32>
    %135 = vector.extract_strided_slice %3 {offsets = [0, 0], sizes = [32, 1], strides = [1, 1]} : vector<32x3xf32> to vector<32x1xf32>
    %136 = vector.broadcast %135 : vector<32x1xf32> to vector<32x256xf32>
    %137 = arith.addf %134, %136 : vector<32x256xf32>
    %cst_50 = arith.constant dense<0.000000e+00> : vector<256xf32>
    %138 = vector.multi_reduction <add>, %137, %cst_50 [0] : vector<32x256xf32> to vector<256xf32>
    %139 = vector.shape_cast %138 : vector<256xf32> to vector<1x256xf32>
    %cst_51 = arith.constant 3.200000e+01 : f32
    %140 = vector.broadcast %cst_51 : f32 to vector<1x256xf32>
    %141 = arith.divf %139, %140 : vector<1x256xf32>
    %142 = vector.broadcast %141 : vector<1x256xf32> to vector<32x256xf32>
    %143 = arith.subf %137, %142 : vector<32x256xf32>
    %144 = arith.mulf %143, %143 : vector<32x256xf32>
    %cst_52 = arith.constant dense<0.000000e+00> : vector<256xf32>
    %145 = vector.multi_reduction <add>, %144, %cst_52 [0] : vector<32x256xf32> to vector<256xf32>
    %146 = vector.shape_cast %145 : vector<256xf32> to vector<1x256xf32>
    %cst_53 = arith.constant 3.200000e+01 : f32
    %147 = vector.broadcast %cst_53 : f32 to vector<1x256xf32>
    %148 = arith.divf %146, %147 : vector<1x256xf32>
    %cst_54 = arith.constant 9.99999974E-6 : f32
    %149 = vector.broadcast %cst_54 : f32 to vector<1x256xf32>
    %150 = arith.addf %148, %149 : vector<1x256xf32>
    %151 = math.rsqrt %150 : vector<1x256xf32>
    %152 = vector.broadcast %151 : vector<1x256xf32> to vector<32x256xf32>
    %153 = arith.mulf %143, %152 : vector<32x256xf32>
    %154 = vector.extract_strided_slice %3 {offsets = [0, 1], sizes = [32, 1], strides = [1, 1]} : vector<32x3xf32> to vector<32x1xf32>
    %155 = vector.broadcast %154 : vector<32x1xf32> to vector<32x256xf32>
    %156 = arith.mulf %153, %155 : vector<32x256xf32>
    %157 = vector.extract_strided_slice %3 {offsets = [0, 2], sizes = [32, 1], strides = [1, 1]} : vector<32x3xf32> to vector<32x1xf32>
    %158 = vector.broadcast %157 : vector<32x1xf32> to vector<32x256xf32>
    %159 = arith.addf %156, %158 : vector<32x256xf32>
    %cst_55 = arith.constant 0.000000e+00 : f32
    %160 = vector.broadcast %cst_55 : f32 to vector<32x256xf32>
    %161 = arith.maximumf %159, %160 : vector<32x256xf32>
    %162 = arith.truncf %161 : vector<32x256xf32> to vector<32x256xbf16>
    %cst_56 = arith.constant dense<0.000000e+00> : vector<32x256xf32>
    %163 = tpu.matmul %162, %0, %cst_56 {dimension_numbers = #tpu.dot_dimension_numbers<[1], [0], [0], [1], [0, 0, 1, 1], [], []>} : vector<32x256xbf16>, vector<256x256xbf16>, vector<32x256xf32> -> vector<32x256xf32>
    %164 = arith.truncf %163 : vector<32x256xf32> to vector<32x256xbf16>
    %cst_57 = arith.constant dense<0.000000e+00> : vector<32x256xf32>
    %165 = tpu.matmul %2, %164, %cst_57 {dimension_numbers = #tpu.dot_dimension_numbers<[1], [0], [0], [1], [0, 0, 1, 1], [], []>} : vector<32x32xbf16>, vector<32x256xbf16>, vector<32x256xf32> -> vector<32x256xf32>
    %166 = vector.extract_strided_slice %4 {offsets = [0, 0], sizes = [32, 1], strides = [1, 1]} : vector<32x3xf32> to vector<32x1xf32>
    %167 = vector.broadcast %166 : vector<32x1xf32> to vector<32x256xf32>
    %168 = arith.addf %165, %167 : vector<32x256xf32>
    %cst_58 = arith.constant dense<0.000000e+00> : vector<256xf32>
    %169 = vector.multi_reduction <add>, %168, %cst_58 [0] : vector<32x256xf32> to vector<256xf32>
    %170 = vector.shape_cast %169 : vector<256xf32> to vector<1x256xf32>
    %cst_59 = arith.constant 3.200000e+01 : f32
    %171 = vector.broadcast %cst_59 : f32 to vector<1x256xf32>
    %172 = arith.divf %170, %171 : vector<1x256xf32>
    %173 = vector.broadcast %172 : vector<1x256xf32> to vector<32x256xf32>
    %174 = arith.subf %168, %173 : vector<32x256xf32>
    %175 = arith.mulf %174, %174 : vector<32x256xf32>
    %cst_60 = arith.constant dense<0.000000e+00> : vector<256xf32>
    %176 = vector.multi_reduction <add>, %175, %cst_60 [0] : vector<32x256xf32> to vector<256xf32>
    %177 = vector.shape_cast %176 : vector<256xf32> to vector<1x256xf32>
    %cst_61 = arith.constant 3.200000e+01 : f32
    %178 = vector.broadcast %cst_61 : f32 to vector<1x256xf32>
    %179 = arith.divf %177, %178 : vector<1x256xf32>
    %cst_62 = arith.constant 9.99999974E-6 : f32
    %180 = vector.broadcast %cst_62 : f32 to vector<1x256xf32>
    %181 = arith.addf %179, %180 : vector<1x256xf32>
    %182 = math.rsqrt %181 : vector<1x256xf32>
    %183 = vector.broadcast %182 : vector<1x256xf32> to vector<32x256xf32>
    %184 = arith.mulf %174, %183 : vector<32x256xf32>
    %185 = vector.extract_strided_slice %4 {offsets = [0, 1], sizes = [32, 1], strides = [1, 1]} : vector<32x3xf32> to vector<32x1xf32>
    %186 = vector.broadcast %185 : vector<32x1xf32> to vector<32x256xf32>
    %187 = arith.mulf %184, %186 : vector<32x256xf32>
    %188 = vector.extract_strided_slice %4 {offsets = [0, 2], sizes = [32, 1], strides = [1, 1]} : vector<32x3xf32> to vector<32x1xf32>
    %189 = vector.broadcast %188 : vector<32x1xf32> to vector<32x256xf32>
    %190 = arith.addf %187, %189 : vector<32x256xf32>
    %cst_63 = arith.constant 0.000000e+00 : f32
    %191 = vector.broadcast %cst_63 : f32 to vector<32x256xf32>
    %192 = arith.maximumf %190, %191 : vector<32x256xf32>
    %c0_64 = arith.constant 0 : index
    %c512_65 = arith.constant 512 : index
    %193 = vector.load %arg7[%c0_64, %c512_65] : memref<32x2048xf32, #tpu.memory_space<vmem>>, vector<32x256xf32>
    tpu.vector_store %arg7[%c0_64, %c512_65], %192 {strides = array<i32>} : memref<32x2048xf32, #tpu.memory_space<vmem>>, vector<32x256xf32>,
    %c0_66 = arith.constant 0 : index
    %c768 = arith.constant 768 : index
    %194 = vector.load %arg2[%c0_66, %c768] : memref<4x2048xbf16, #tpu.memory_space<vmem>>, vector<4x256xbf16>
    %cst_67 = arith.constant dense<0.000000e+00> : vector<4x256xf32>
    %195 = tpu.matmul %194, %0, %cst_67 {dimension_numbers = #tpu.dot_dimension_numbers<[1], [0], [0], [1], [0, 0, 1, 1], [], []>} : vector<4x256xbf16>, vector<256x256xbf16>, vector<4x256xf32> -> vector<4x256xf32>
    %196 = arith.truncf %195 : vector<4x256xf32> to vector<4x256xbf16>
    %cst_68 = arith.constant dense<0.000000e+00> : vector<32x256xf32>
    %197 = tpu.matmul %1, %196, %cst_68 {dimension_numbers = #tpu.dot_dimension_numbers<[1], [0], [0], [1], [0, 0, 1, 1], [], []>} : vector<32x4xbf16>, vector<4x256xbf16>, vector<32x256xf32> -> vector<32x256xf32>
    %198 = vector.extract_strided_slice %3 {offsets = [0, 0], sizes = [32, 1], strides = [1, 1]} : vector<32x3xf32> to vector<32x1xf32>
    %199 = vector.broadcast %198 : vector<32x1xf32> to vector<32x256xf32>
    %200 = arith.addf %197, %199 : vector<32x256xf32>
    %cst_69 = arith.constant dense<0.000000e+00> : vector<256xf32>
    %201 = vector.multi_reduction <add>, %200, %cst_69 [0] : vector<32x256xf32> to vector<256xf32>
    %202 = vector.shape_cast %201 : vector<256xf32> to vector<1x256xf32>
    %cst_70 = arith.constant 3.200000e+01 : f32
    %203 = vector.broadcast %cst_70 : f32 to vector<1x256xf32>
    %204 = arith.divf %202, %203 : vector<1x256xf32>
    %205 = vector.broadcast %204 : vector<1x256xf32> to vector<32x256xf32>
    %206 = arith.subf %200, %205 : vector<32x256xf32>
    %207 = arith.mulf %206, %206 : vector<32x256xf32>
    %cst_71 = arith.constant dense<0.000000e+00> : vector<256xf32>
    %208 = vector.multi_reduction <add>, %207, %cst_71 [0] : vector<32x256xf32> to vector<256xf32>
    %209 = vector.shape_cast %208 : vector<256xf32> to vector<1x256xf32>
    %cst_72 = arith.constant 3.200000e+01 : f32
    %210 = vector.broadcast %cst_72 : f32 to vector<1x256xf32>
    %211 = arith.divf %209, %210 : vector<1x256xf32>
    %cst_73 = arith.constant 9.99999974E-6 : f32
    %212 = vector.broadcast %cst_73 : f32 to vector<1x256xf32>
    %213 = arith.addf %211, %212 : vector<1x256xf32>
    %214 = math.rsqrt %213 : vector<1x256xf32>
    %215 = vector.broadcast %214 : vector<1x256xf32> to vector<32x256xf32>
    %216 = arith.mulf %206, %215 : vector<32x256xf32>
    %217 = vector.extract_strided_slice %3 {offsets = [0, 1], sizes = [32, 1], strides = [1, 1]} : vector<32x3xf32> to vector<32x1xf32>
    %218 = vector.broadcast %217 : vector<32x1xf32> to vector<32x256xf32>
    %219 = arith.mulf %216, %218 : vector<32x256xf32>
    %220 = vector.extract_strided_slice %3 {offsets = [0, 2], sizes = [32, 1], strides = [1, 1]} : vector<32x3xf32> to vector<32x1xf32>
    %221 = vector.broadcast %220 : vector<32x1xf32> to vector<32x256xf32>
    %222 = arith.addf %219, %221 : vector<32x256xf32>
    %cst_74 = arith.constant 0.000000e+00 : f32
    %223 = vector.broadcast %cst_74 : f32 to vector<32x256xf32>
    %224 = arith.maximumf %222, %223 : vector<32x256xf32>
    %225 = arith.truncf %224 : vector<32x256xf32> to vector<32x256xbf16>
    %cst_75 = arith.constant dense<0.000000e+00> : vector<32x256xf32>
    %226 = tpu.matmul %225, %0, %cst_75 {dimension_numbers = #tpu.dot_dimension_numbers<[1], [0], [0], [1], [0, 0, 1, 1], [], []>} : vector<32x256xbf16>, vector<256x256xbf16>, vector<32x256xf32> -> vector<32x256xf32>
    %227 = arith.truncf %226 : vector<32x256xf32> to vector<32x256xbf16>
    %cst_76 = arith.constant dense<0.000000e+00> : vector<32x256xf32>
    %228 = tpu.matmul %2, %227, %cst_76 {dimension_numbers = #tpu.dot_dimension_numbers<[1], [0], [0], [1], [0, 0, 1, 1], [], []>} : vector<32x32xbf16>, vector<32x256xbf16>, vector<32x256xf32> -> vector<32x256xf32>
    %229 = vector.extract_strided_slice %4 {offsets = [0, 0], sizes = [32, 1], strides = [1, 1]} : vector<32x3xf32> to vector<32x1xf32>
    %230 = vector.broadcast %229 : vector<32x1xf32> to vector<32x256xf32>
    %231 = arith.addf %228, %230 : vector<32x256xf32>
    %cst_77 = arith.constant dense<0.000000e+00> : vector<256xf32>
    %232 = vector.multi_reduction <add>, %231, %cst_77 [0] : vector<32x256xf32> to vector<256xf32>
    %233 = vector.shape_cast %232 : vector<256xf32> to vector<1x256xf32>
    %cst_78 = arith.constant 3.200000e+01 : f32
    %234 = vector.broadcast %cst_78 : f32 to vector<1x256xf32>
    %235 = arith.divf %233, %234 : vector<1x256xf32>
    %236 = vector.broadcast %235 : vector<1x256xf32> to vector<32x256xf32>
    %237 = arith.subf %231, %236 : vector<32x256xf32>
    %238 = arith.mulf %237, %237 : vector<32x256xf32>
    %cst_79 = arith.constant dense<0.000000e+00> : vector<256xf32>
    %239 = vector.multi_reduction <add>, %238, %cst_79 [0] : vector<32x256xf32> to vector<256xf32>
    %240 = vector.shape_cast %239 : vector<256xf32> to vector<1x256xf32>
    %cst_80 = arith.constant 3.200000e+01 : f32
    %241 = vector.broadcast %cst_80 : f32 to vector<1x256xf32>
    %242 = arith.divf %240, %241 : vector<1x256xf32>
    %cst_81 = arith.constant 9.99999974E-6 : f32
    %243 = vector.broadcast %cst_81 : f32 to vector<1x256xf32>
    %244 = arith.addf %242, %243 : vector<1x256xf32>
    %245 = math.rsqrt %244 : vector<1x256xf32>
    %246 = vector.broadcast %245 : vector<1x256xf32> to vector<32x256xf32>
    %247 = arith.mulf %237, %246 : vector<32x256xf32>
    %248 = vector.extract_strided_slice %4 {offsets = [0, 1], sizes = [32, 1], strides = [1, 1]} : vector<32x3xf32> to vector<32x1xf32>
    %249 = vector.broadcast %248 : vector<32x1xf32> to vector<32x256xf32>
    %250 = arith.mulf %247, %249 : vector<32x256xf32>
    %251 = vector.extract_strided_slice %4 {offsets = [0, 2], sizes = [32, 1], strides = [1, 1]} : vector<32x3xf32> to vector<32x1xf32>
    %252 = vector.broadcast %251 : vector<32x1xf32> to vector<32x256xf32>
    %253 = arith.addf %250, %252 : vector<32x256xf32>
    %cst_82 = arith.constant 0.000000e+00 : f32
    %254 = vector.broadcast %cst_82 : f32 to vector<32x256xf32>
    %255 = arith.maximumf %253, %254 : vector<32x256xf32>
    %c0_83 = arith.constant 0 : index
    %c768_84 = arith.constant 768 : index
    %256 = vector.load %arg7[%c0_83, %c768_84] : memref<32x2048xf32, #tpu.memory_space<vmem>>, vector<32x256xf32>
    tpu.vector_store %arg7[%c0_83, %c768_84], %255 {strides = array<i32>} : memref<32x2048xf32, #tpu.memory_space<vmem>>, vector<32x256xf32>,
    %c0_85 = arith.constant 0 : index
    %c1024 = arith.constant 1024 : index
    %257 = vector.load %arg2[%c0_85, %c1024] : memref<4x2048xbf16, #tpu.memory_space<vmem>>, vector<4x256xbf16>
    %cst_86 = arith.constant dense<0.000000e+00> : vector<4x256xf32>
    %258 = tpu.matmul %257, %0, %cst_86 {dimension_numbers = #tpu.dot_dimension_numbers<[1], [0], [0], [1], [0, 0, 1, 1], [], []>} : vector<4x256xbf16>, vector<256x256xbf16>, vector<4x256xf32> -> vector<4x256xf32>
    %259 = arith.truncf %258 : vector<4x256xf32> to vector<4x256xbf16>
    %cst_87 = arith.constant dense<0.000000e+00> : vector<32x256xf32>
    %260 = tpu.matmul %1, %259, %cst_87 {dimension_numbers = #tpu.dot_dimension_numbers<[1], [0], [0], [1], [0, 0, 1, 1], [], []>} : vector<32x4xbf16>, vector<4x256xbf16>, vector<32x256xf32> -> vector<32x256xf32>
    %261 = vector.extract_strided_slice %3 {offsets = [0, 0], sizes = [32, 1], strides = [1, 1]} : vector<32x3xf32> to vector<32x1xf32>
    %262 = vector.broadcast %261 : vector<32x1xf32> to vector<32x256xf32>
    %263 = arith.addf %260, %262 : vector<32x256xf32>
    %cst_88 = arith.constant dense<0.000000e+00> : vector<256xf32>
    %264 = vector.multi_reduction <add>, %263, %cst_88 [0] : vector<32x256xf32> to vector<256xf32>
    %265 = vector.shape_cast %264 : vector<256xf32> to vector<1x256xf32>
    %cst_89 = arith.constant 3.200000e+01 : f32
    %266 = vector.broadcast %cst_89 : f32 to vector<1x256xf32>
    %267 = arith.divf %265, %266 : vector<1x256xf32>
    %268 = vector.broadcast %267 : vector<1x256xf32> to vector<32x256xf32>
    %269 = arith.subf %263, %268 : vector<32x256xf32>
    %270 = arith.mulf %269, %269 : vector<32x256xf32>
    %cst_90 = arith.constant dense<0.000000e+00> : vector<256xf32>
    %271 = vector.multi_reduction <add>, %270, %cst_90 [0] : vector<32x256xf32> to vector<256xf32>
    %272 = vector.shape_cast %271 : vector<256xf32> to vector<1x256xf32>
    %cst_91 = arith.constant 3.200000e+01 : f32
    %273 = vector.broadcast %cst_91 : f32 to vector<1x256xf32>
    %274 = arith.divf %272, %273 : vector<1x256xf32>
    %cst_92 = arith.constant 9.99999974E-6 : f32
    %275 = vector.broadcast %cst_92 : f32 to vector<1x256xf32>
    %276 = arith.addf %274, %275 : vector<1x256xf32>
    %277 = math.rsqrt %276 : vector<1x256xf32>
    %278 = vector.broadcast %277 : vector<1x256xf32> to vector<32x256xf32>
    %279 = arith.mulf %269, %278 : vector<32x256xf32>
    %280 = vector.extract_strided_slice %3 {offsets = [0, 1], sizes = [32, 1], strides = [1, 1]} : vector<32x3xf32> to vector<32x1xf32>
    %281 = vector.broadcast %280 : vector<32x1xf32> to vector<32x256xf32>
    %282 = arith.mulf %279, %281 : vector<32x256xf32>
    %283 = vector.extract_strided_slice %3 {offsets = [0, 2], sizes = [32, 1], strides = [1, 1]} : vector<32x3xf32> to vector<32x1xf32>
    %284 = vector.broadcast %283 : vector<32x1xf32> to vector<32x256xf32>
    %285 = arith.addf %282, %284 : vector<32x256xf32>
    %cst_93 = arith.constant 0.000000e+00 : f32
    %286 = vector.broadcast %cst_93 : f32 to vector<32x256xf32>
    %287 = arith.maximumf %285, %286 : vector<32x256xf32>
    %288 = arith.truncf %287 : vector<32x256xf32> to vector<32x256xbf16>
    %cst_94 = arith.constant dense<0.000000e+00> : vector<32x256xf32>
    %289 = tpu.matmul %288, %0, %cst_94 {dimension_numbers = #tpu.dot_dimension_numbers<[1], [0], [0], [1], [0, 0, 1, 1], [], []>} : vector<32x256xbf16>, vector<256x256xbf16>, vector<32x256xf32> -> vector<32x256xf32>
    %290 = arith.truncf %289 : vector<32x256xf32> to vector<32x256xbf16>
    %cst_95 = arith.constant dense<0.000000e+00> : vector<32x256xf32>
    %291 = tpu.matmul %2, %290, %cst_95 {dimension_numbers = #tpu.dot_dimension_numbers<[1], [0], [0], [1], [0, 0, 1, 1], [], []>} : vector<32x32xbf16>, vector<32x256xbf16>, vector<32x256xf32> -> vector<32x256xf32>
    %292 = vector.extract_strided_slice %4 {offsets = [0, 0], sizes = [32, 1], strides = [1, 1]} : vector<32x3xf32> to vector<32x1xf32>
    %293 = vector.broadcast %292 : vector<32x1xf32> to vector<32x256xf32>
    %294 = arith.addf %291, %293 : vector<32x256xf32>
    %cst_96 = arith.constant dense<0.000000e+00> : vector<256xf32>
    %295 = vector.multi_reduction <add>, %294, %cst_96 [0] : vector<32x256xf32> to vector<256xf32>
    %296 = vector.shape_cast %295 : vector<256xf32> to vector<1x256xf32>
    %cst_97 = arith.constant 3.200000e+01 : f32
    %297 = vector.broadcast %cst_97 : f32 to vector<1x256xf32>
    %298 = arith.divf %296, %297 : vector<1x256xf32>
    %299 = vector.broadcast %298 : vector<1x256xf32> to vector<32x256xf32>
    %300 = arith.subf %294, %299 : vector<32x256xf32>
    %301 = arith.mulf %300, %300 : vector<32x256xf32>
    %cst_98 = arith.constant dense<0.000000e+00> : vector<256xf32>
    %302 = vector.multi_reduction <add>, %301, %cst_98 [0] : vector<32x256xf32> to vector<256xf32>
    %303 = vector.shape_cast %302 : vector<256xf32> to vector<1x256xf32>
    %cst_99 = arith.constant 3.200000e+01 : f32
    %304 = vector.broadcast %cst_99 : f32 to vector<1x256xf32>
    %305 = arith.divf %303, %304 : vector<1x256xf32>
    %cst_100 = arith.constant 9.99999974E-6 : f32
    %306 = vector.broadcast %cst_100 : f32 to vector<1x256xf32>
    %307 = arith.addf %305, %306 : vector<1x256xf32>
    %308 = math.rsqrt %307 : vector<1x256xf32>
    %309 = vector.broadcast %308 : vector<1x256xf32> to vector<32x256xf32>
    %310 = arith.mulf %300, %309 : vector<32x256xf32>
    %311 = vector.extract_strided_slice %4 {offsets = [0, 1], sizes = [32, 1], strides = [1, 1]} : vector<32x3xf32> to vector<32x1xf32>
    %312 = vector.broadcast %311 : vector<32x1xf32> to vector<32x256xf32>
    %313 = arith.mulf %310, %312 : vector<32x256xf32>
    %314 = vector.extract_strided_slice %4 {offsets = [0, 2], sizes = [32, 1], strides = [1, 1]} : vector<32x3xf32> to vector<32x1xf32>
    %315 = vector.broadcast %314 : vector<32x1xf32> to vector<32x256xf32>
    %316 = arith.addf %313, %315 : vector<32x256xf32>
    %cst_101 = arith.constant 0.000000e+00 : f32
    %317 = vector.broadcast %cst_101 : f32 to vector<32x256xf32>
    %318 = arith.maximumf %316, %317 : vector<32x256xf32>
    %c0_102 = arith.constant 0 : index
    %c1024_103 = arith.constant 1024 : index
    %319 = vector.load %arg7[%c0_102, %c1024_103] : memref<32x2048xf32, #tpu.memory_space<vmem>>, vector<32x256xf32>
    tpu.vector_store %arg7[%c0_102, %c1024_103], %318 {strides = array<i32>} : memref<32x2048xf32, #tpu.memory_space<vmem>>, vector<32x256xf32>,
    %c0_104 = arith.constant 0 : index
    %c1280 = arith.constant 1280 : index
    %320 = vector.load %arg2[%c0_104, %c1280] : memref<4x2048xbf16, #tpu.memory_space<vmem>>, vector<4x256xbf16>
    %cst_105 = arith.constant dense<0.000000e+00> : vector<4x256xf32>
    %321 = tpu.matmul %320, %0, %cst_105 {dimension_numbers = #tpu.dot_dimension_numbers<[1], [0], [0], [1], [0, 0, 1, 1], [], []>} : vector<4x256xbf16>, vector<256x256xbf16>, vector<4x256xf32> -> vector<4x256xf32>
    %322 = arith.truncf %321 : vector<4x256xf32> to vector<4x256xbf16>
    %cst_106 = arith.constant dense<0.000000e+00> : vector<32x256xf32>
    %323 = tpu.matmul %1, %322, %cst_106 {dimension_numbers = #tpu.dot_dimension_numbers<[1], [0], [0], [1], [0, 0, 1, 1], [], []>} : vector<32x4xbf16>, vector<4x256xbf16>, vector<32x256xf32> -> vector<32x256xf32>
    %324 = vector.extract_strided_slice %3 {offsets = [0, 0], sizes = [32, 1], strides = [1, 1]} : vector<32x3xf32> to vector<32x1xf32>
    %325 = vector.broadcast %324 : vector<32x1xf32> to vector<32x256xf32>
    %326 = arith.addf %323, %325 : vector<32x256xf32>
    %cst_107 = arith.constant dense<0.000000e+00> : vector<256xf32>
    %327 = vector.multi_reduction <add>, %326, %cst_107 [0] : vector<32x256xf32> to vector<256xf32>
    %328 = vector.shape_cast %327 : vector<256xf32> to vector<1x256xf32>
    %cst_108 = arith.constant 3.200000e+01 : f32
    %329 = vector.broadcast %cst_108 : f32 to vector<1x256xf32>
    %330 = arith.divf %328, %329 : vector<1x256xf32>
    %331 = vector.broadcast %330 : vector<1x256xf32> to vector<32x256xf32>
    %332 = arith.subf %326, %331 : vector<32x256xf32>
    %333 = arith.mulf %332, %332 : vector<32x256xf32>
    %cst_109 = arith.constant dense<0.000000e+00> : vector<256xf32>
    %334 = vector.multi_reduction <add>, %333, %cst_109 [0] : vector<32x256xf32> to vector<256xf32>
    %335 = vector.shape_cast %334 : vector<256xf32> to vector<1x256xf32>
    %cst_110 = arith.constant 3.200000e+01 : f32
    %336 = vector.broadcast %cst_110 : f32 to vector<1x256xf32>
    %337 = arith.divf %335, %336 : vector<1x256xf32>
    %cst_111 = arith.constant 9.99999974E-6 : f32
    %338 = vector.broadcast %cst_111 : f32 to vector<1x256xf32>
    %339 = arith.addf %337, %338 : vector<1x256xf32>
    %340 = math.rsqrt %339 : vector<1x256xf32>
    %341 = vector.broadcast %340 : vector<1x256xf32> to vector<32x256xf32>
    %342 = arith.mulf %332, %341 : vector<32x256xf32>
    %343 = vector.extract_strided_slice %3 {offsets = [0, 1], sizes = [32, 1], strides = [1, 1]} : vector<32x3xf32> to vector<32x1xf32>
    %344 = vector.broadcast %343 : vector<32x1xf32> to vector<32x256xf32>
    %345 = arith.mulf %342, %344 : vector<32x256xf32>
    %346 = vector.extract_strided_slice %3 {offsets = [0, 2], sizes = [32, 1], strides = [1, 1]} : vector<32x3xf32> to vector<32x1xf32>
    %347 = vector.broadcast %346 : vector<32x1xf32> to vector<32x256xf32>
    %348 = arith.addf %345, %347 : vector<32x256xf32>
    %cst_112 = arith.constant 0.000000e+00 : f32
    %349 = vector.broadcast %cst_112 : f32 to vector<32x256xf32>
    %350 = arith.maximumf %348, %349 : vector<32x256xf32>
    %351 = arith.truncf %350 : vector<32x256xf32> to vector<32x256xbf16>
    %cst_113 = arith.constant dense<0.000000e+00> : vector<32x256xf32>
    %352 = tpu.matmul %351, %0, %cst_113 {dimension_numbers = #tpu.dot_dimension_numbers<[1], [0], [0], [1], [0, 0, 1, 1], [], []>} : vector<32x256xbf16>, vector<256x256xbf16>, vector<32x256xf32> -> vector<32x256xf32>
    %353 = arith.truncf %352 : vector<32x256xf32> to vector<32x256xbf16>
    %cst_114 = arith.constant dense<0.000000e+00> : vector<32x256xf32>
    %354 = tpu.matmul %2, %353, %cst_114 {dimension_numbers = #tpu.dot_dimension_numbers<[1], [0], [0], [1], [0, 0, 1, 1], [], []>} : vector<32x32xbf16>, vector<32x256xbf16>, vector<32x256xf32> -> vector<32x256xf32>
    %355 = vector.extract_strided_slice %4 {offsets = [0, 0], sizes = [32, 1], strides = [1, 1]} : vector<32x3xf32> to vector<32x1xf32>
    %356 = vector.broadcast %355 : vector<32x1xf32> to vector<32x256xf32>
    %357 = arith.addf %354, %356 : vector<32x256xf32>
    %cst_115 = arith.constant dense<0.000000e+00> : vector<256xf32>
    %358 = vector.multi_reduction <add>, %357, %cst_115 [0] : vector<32x256xf32> to vector<256xf32>
    %359 = vector.shape_cast %358 : vector<256xf32> to vector<1x256xf32>
    %cst_116 = arith.constant 3.200000e+01 : f32
    %360 = vector.broadcast %cst_116 : f32 to vector<1x256xf32>
    %361 = arith.divf %359, %360 : vector<1x256xf32>
    %362 = vector.broadcast %361 : vector<1x256xf32> to vector<32x256xf32>
    %363 = arith.subf %357, %362 : vector<32x256xf32>
    %364 = arith.mulf %363, %363 : vector<32x256xf32>
    %cst_117 = arith.constant dense<0.000000e+00> : vector<256xf32>
    %365 = vector.multi_reduction <add>, %364, %cst_117 [0] : vector<32x256xf32> to vector<256xf32>
    %366 = vector.shape_cast %365 : vector<256xf32> to vector<1x256xf32>
    %cst_118 = arith.constant 3.200000e+01 : f32
    %367 = vector.broadcast %cst_118 : f32 to vector<1x256xf32>
    %368 = arith.divf %366, %367 : vector<1x256xf32>
    %cst_119 = arith.constant 9.99999974E-6 : f32
    %369 = vector.broadcast %cst_119 : f32 to vector<1x256xf32>
    %370 = arith.addf %368, %369 : vector<1x256xf32>
    %371 = math.rsqrt %370 : vector<1x256xf32>
    %372 = vector.broadcast %371 : vector<1x256xf32> to vector<32x256xf32>
    %373 = arith.mulf %363, %372 : vector<32x256xf32>
    %374 = vector.extract_strided_slice %4 {offsets = [0, 1], sizes = [32, 1], strides = [1, 1]} : vector<32x3xf32> to vector<32x1xf32>
    %375 = vector.broadcast %374 : vector<32x1xf32> to vector<32x256xf32>
    %376 = arith.mulf %373, %375 : vector<32x256xf32>
    %377 = vector.extract_strided_slice %4 {offsets = [0, 2], sizes = [32, 1], strides = [1, 1]} : vector<32x3xf32> to vector<32x1xf32>
    %378 = vector.broadcast %377 : vector<32x1xf32> to vector<32x256xf32>
    %379 = arith.addf %376, %378 : vector<32x256xf32>
    %cst_120 = arith.constant 0.000000e+00 : f32
    %380 = vector.broadcast %cst_120 : f32 to vector<32x256xf32>
    %381 = arith.maximumf %379, %380 : vector<32x256xf32>
    %c0_121 = arith.constant 0 : index
    %c1280_122 = arith.constant 1280 : index
    %382 = vector.load %arg7[%c0_121, %c1280_122] : memref<32x2048xf32, #tpu.memory_space<vmem>>, vector<32x256xf32>
    tpu.vector_store %arg7[%c0_121, %c1280_122], %381 {strides = array<i32>} : memref<32x2048xf32, #tpu.memory_space<vmem>>, vector<32x256xf32>,
    %c0_123 = arith.constant 0 : index
    %c1536 = arith.constant 1536 : index
    %383 = vector.load %arg2[%c0_123, %c1536] : memref<4x2048xbf16, #tpu.memory_space<vmem>>, vector<4x256xbf16>
    %cst_124 = arith.constant dense<0.000000e+00> : vector<4x256xf32>
    %384 = tpu.matmul %383, %0, %cst_124 {dimension_numbers = #tpu.dot_dimension_numbers<[1], [0], [0], [1], [0, 0, 1, 1], [], []>} : vector<4x256xbf16>, vector<256x256xbf16>, vector<4x256xf32> -> vector<4x256xf32>
    %385 = arith.truncf %384 : vector<4x256xf32> to vector<4x256xbf16>
    %cst_125 = arith.constant dense<0.000000e+00> : vector<32x256xf32>
    %386 = tpu.matmul %1, %385, %cst_125 {dimension_numbers = #tpu.dot_dimension_numbers<[1], [0], [0], [1], [0, 0, 1, 1], [], []>} : vector<32x4xbf16>, vector<4x256xbf16>, vector<32x256xf32> -> vector<32x256xf32>
    %387 = vector.extract_strided_slice %3 {offsets = [0, 0], sizes = [32, 1], strides = [1, 1]} : vector<32x3xf32> to vector<32x1xf32>
    %388 = vector.broadcast %387 : vector<32x1xf32> to vector<32x256xf32>
    %389 = arith.addf %386, %388 : vector<32x256xf32>
    %cst_126 = arith.constant dense<0.000000e+00> : vector<256xf32>
    %390 = vector.multi_reduction <add>, %389, %cst_126 [0] : vector<32x256xf32> to vector<256xf32>
    %391 = vector.shape_cast %390 : vector<256xf32> to vector<1x256xf32>
    %cst_127 = arith.constant 3.200000e+01 : f32
    %392 = vector.broadcast %cst_127 : f32 to vector<1x256xf32>
    %393 = arith.divf %391, %392 : vector<1x256xf32>
    %394 = vector.broadcast %393 : vector<1x256xf32> to vector<32x256xf32>
    %395 = arith.subf %389, %394 : vector<32x256xf32>
    %396 = arith.mulf %395, %395 : vector<32x256xf32>
    %cst_128 = arith.constant dense<0.000000e+00> : vector<256xf32>
    %397 = vector.multi_reduction <add>, %396, %cst_128 [0] : vector<32x256xf32> to vector<256xf32>
    %398 = vector.shape_cast %397 : vector<256xf32> to vector<1x256xf32>
    %cst_129 = arith.constant 3.200000e+01 : f32
    %399 = vector.broadcast %cst_129 : f32 to vector<1x256xf32>
    %400 = arith.divf %398, %399 : vector<1x256xf32>
    %cst_130 = arith.constant 9.99999974E-6 : f32
    %401 = vector.broadcast %cst_130 : f32 to vector<1x256xf32>
    %402 = arith.addf %400, %401 : vector<1x256xf32>
    %403 = math.rsqrt %402 : vector<1x256xf32>
    %404 = vector.broadcast %403 : vector<1x256xf32> to vector<32x256xf32>
    %405 = arith.mulf %395, %404 : vector<32x256xf32>
    %406 = vector.extract_strided_slice %3 {offsets = [0, 1], sizes = [32, 1], strides = [1, 1]} : vector<32x3xf32> to vector<32x1xf32>
    %407 = vector.broadcast %406 : vector<32x1xf32> to vector<32x256xf32>
    %408 = arith.mulf %405, %407 : vector<32x256xf32>
    %409 = vector.extract_strided_slice %3 {offsets = [0, 2], sizes = [32, 1], strides = [1, 1]} : vector<32x3xf32> to vector<32x1xf32>
    %410 = vector.broadcast %409 : vector<32x1xf32> to vector<32x256xf32>
    %411 = arith.addf %408, %410 : vector<32x256xf32>
    %cst_131 = arith.constant 0.000000e+00 : f32
    %412 = vector.broadcast %cst_131 : f32 to vector<32x256xf32>
    %413 = arith.maximumf %411, %412 : vector<32x256xf32>
    %414 = arith.truncf %413 : vector<32x256xf32> to vector<32x256xbf16>
    %cst_132 = arith.constant dense<0.000000e+00> : vector<32x256xf32>
    %415 = tpu.matmul %414, %0, %cst_132 {dimension_numbers = #tpu.dot_dimension_numbers<[1], [0], [0], [1], [0, 0, 1, 1], [], []>} : vector<32x256xbf16>, vector<256x256xbf16>, vector<32x256xf32> -> vector<32x256xf32>
    %416 = arith.truncf %415 : vector<32x256xf32> to vector<32x256xbf16>
    %cst_133 = arith.constant dense<0.000000e+00> : vector<32x256xf32>
    %417 = tpu.matmul %2, %416, %cst_133 {dimension_numbers = #tpu.dot_dimension_numbers<[1], [0], [0], [1], [0, 0, 1, 1], [], []>} : vector<32x32xbf16>, vector<32x256xbf16>, vector<32x256xf32> -> vector<32x256xf32>
    %418 = vector.extract_strided_slice %4 {offsets = [0, 0], sizes = [32, 1], strides = [1, 1]} : vector<32x3xf32> to vector<32x1xf32>
    %419 = vector.broadcast %418 : vector<32x1xf32> to vector<32x256xf32>
    %420 = arith.addf %417, %419 : vector<32x256xf32>
    %cst_134 = arith.constant dense<0.000000e+00> : vector<256xf32>
    %421 = vector.multi_reduction <add>, %420, %cst_134 [0] : vector<32x256xf32> to vector<256xf32>
    %422 = vector.shape_cast %421 : vector<256xf32> to vector<1x256xf32>
    %cst_135 = arith.constant 3.200000e+01 : f32
    %423 = vector.broadcast %cst_135 : f32 to vector<1x256xf32>
    %424 = arith.divf %422, %423 : vector<1x256xf32>
    %425 = vector.broadcast %424 : vector<1x256xf32> to vector<32x256xf32>
    %426 = arith.subf %420, %425 : vector<32x256xf32>
    %427 = arith.mulf %426, %426 : vector<32x256xf32>
    %cst_136 = arith.constant dense<0.000000e+00> : vector<256xf32>
    %428 = vector.multi_reduction <add>, %427, %cst_136 [0] : vector<32x256xf32> to vector<256xf32>
    %429 = vector.shape_cast %428 : vector<256xf32> to vector<1x256xf32>
    %cst_137 = arith.constant 3.200000e+01 : f32
    %430 = vector.broadcast %cst_137 : f32 to vector<1x256xf32>
    %431 = arith.divf %429, %430 : vector<1x256xf32>
    %cst_138 = arith.constant 9.99999974E-6 : f32
    %432 = vector.broadcast %cst_138 : f32 to vector<1x256xf32>
    %433 = arith.addf %431, %432 : vector<1x256xf32>
    %434 = math.rsqrt %433 : vector<1x256xf32>
    %435 = vector.broadcast %434 : vector<1x256xf32> to vector<32x256xf32>
    %436 = arith.mulf %426, %435 : vector<32x256xf32>
    %437 = vector.extract_strided_slice %4 {offsets = [0, 1], sizes = [32, 1], strides = [1, 1]} : vector<32x3xf32> to vector<32x1xf32>
    %438 = vector.broadcast %437 : vector<32x1xf32> to vector<32x256xf32>
    %439 = arith.mulf %436, %438 : vector<32x256xf32>
    %440 = vector.extract_strided_slice %4 {offsets = [0, 2], sizes = [32, 1], strides = [1, 1]} : vector<32x3xf32> to vector<32x1xf32>
    %441 = vector.broadcast %440 : vector<32x1xf32> to vector<32x256xf32>
    %442 = arith.addf %439, %441 : vector<32x256xf32>
    %cst_139 = arith.constant 0.000000e+00 : f32
    %443 = vector.broadcast %cst_139 : f32 to vector<32x256xf32>
    %444 = arith.maximumf %442, %443 : vector<32x256xf32>
    %c0_140 = arith.constant 0 : index
    %c1536_141 = arith.constant 1536 : index
    %445 = vector.load %arg7[%c0_140, %c1536_141] : memref<32x2048xf32, #tpu.memory_space<vmem>>, vector<32x256xf32>
    tpu.vector_store %arg7[%c0_140, %c1536_141], %444 {strides = array<i32>} : memref<32x2048xf32, #tpu.memory_space<vmem>>, vector<32x256xf32>,
    %c0_142 = arith.constant 0 : index
    %c1792 = arith.constant 1792 : index
    %446 = vector.load %arg2[%c0_142, %c1792] : memref<4x2048xbf16, #tpu.memory_space<vmem>>, vector<4x256xbf16>
    %cst_143 = arith.constant dense<0.000000e+00> : vector<4x256xf32>
    %447 = tpu.matmul %446, %0, %cst_143 {dimension_numbers = #tpu.dot_dimension_numbers<[1], [0], [0], [1], [0, 0, 1, 1], [], []>} : vector<4x256xbf16>, vector<256x256xbf16>, vector<4x256xf32> -> vector<4x256xf32>
    %448 = arith.truncf %447 : vector<4x256xf32> to vector<4x256xbf16>
    %cst_144 = arith.constant dense<0.000000e+00> : vector<32x256xf32>
    %449 = tpu.matmul %1, %448, %cst_144 {dimension_numbers = #tpu.dot_dimension_numbers<[1], [0], [0], [1], [0, 0, 1, 1], [], []>} : vector<32x4xbf16>, vector<4x256xbf16>, vector<32x256xf32> -> vector<32x256xf32>
    %450 = vector.extract_strided_slice %3 {offsets = [0, 0], sizes = [32, 1], strides = [1, 1]} : vector<32x3xf32> to vector<32x1xf32>
    %451 = vector.broadcast %450 : vector<32x1xf32> to vector<32x256xf32>
    %452 = arith.addf %449, %451 : vector<32x256xf32>
    %cst_145 = arith.constant dense<0.000000e+00> : vector<256xf32>
    %453 = vector.multi_reduction <add>, %452, %cst_145 [0] : vector<32x256xf32> to vector<256xf32>
    %454 = vector.shape_cast %453 : vector<256xf32> to vector<1x256xf32>
    %cst_146 = arith.constant 3.200000e+01 : f32
    %455 = vector.broadcast %cst_146 : f32 to vector<1x256xf32>
    %456 = arith.divf %454, %455 : vector<1x256xf32>
    %457 = vector.broadcast %456 : vector<1x256xf32> to vector<32x256xf32>
    %458 = arith.subf %452, %457 : vector<32x256xf32>
    %459 = arith.mulf %458, %458 : vector<32x256xf32>
    %cst_147 = arith.constant dense<0.000000e+00> : vector<256xf32>
    %460 = vector.multi_reduction <add>, %459, %cst_147 [0] : vector<32x256xf32> to vector<256xf32>
    %461 = vector.shape_cast %460 : vector<256xf32> to vector<1x256xf32>
    %cst_148 = arith.constant 3.200000e+01 : f32
    %462 = vector.broadcast %cst_148 : f32 to vector<1x256xf32>
    %463 = arith.divf %461, %462 : vector<1x256xf32>
    %cst_149 = arith.constant 9.99999974E-6 : f32
    %464 = vector.broadcast %cst_149 : f32 to vector<1x256xf32>
    %465 = arith.addf %463, %464 : vector<1x256xf32>
    %466 = math.rsqrt %465 : vector<1x256xf32>
    %467 = vector.broadcast %466 : vector<1x256xf32> to vector<32x256xf32>
    %468 = arith.mulf %458, %467 : vector<32x256xf32>
    %469 = vector.extract_strided_slice %3 {offsets = [0, 1], sizes = [32, 1], strides = [1, 1]} : vector<32x3xf32> to vector<32x1xf32>
    %470 = vector.broadcast %469 : vector<32x1xf32> to vector<32x256xf32>
    %471 = arith.mulf %468, %470 : vector<32x256xf32>
    %472 = vector.extract_strided_slice %3 {offsets = [0, 2], sizes = [32, 1], strides = [1, 1]} : vector<32x3xf32> to vector<32x1xf32>
    %473 = vector.broadcast %472 : vector<32x1xf32> to vector<32x256xf32>
    %474 = arith.addf %471, %473 : vector<32x256xf32>
    %cst_150 = arith.constant 0.000000e+00 : f32
    %475 = vector.broadcast %cst_150 : f32 to vector<32x256xf32>
    %476 = arith.maximumf %474, %475 : vector<32x256xf32>
    %477 = arith.truncf %476 : vector<32x256xf32> to vector<32x256xbf16>
    %cst_151 = arith.constant dense<0.000000e+00> : vector<32x256xf32>
    %478 = tpu.matmul %477, %0, %cst_151 {dimension_numbers = #tpu.dot_dimension_numbers<[1], [0], [0], [1], [0, 0, 1, 1], [], []>} : vector<32x256xbf16>, vector<256x256xbf16>, vector<32x256xf32> -> vector<32x256xf32>
    %479 = arith.truncf %478 : vector<32x256xf32> to vector<32x256xbf16>
    %cst_152 = arith.constant dense<0.000000e+00> : vector<32x256xf32>
    %480 = tpu.matmul %2, %479, %cst_152 {dimension_numbers = #tpu.dot_dimension_numbers<[1], [0], [0], [1], [0, 0, 1, 1], [], []>} : vector<32x32xbf16>, vector<32x256xbf16>, vector<32x256xf32> -> vector<32x256xf32>
    %481 = vector.extract_strided_slice %4 {offsets = [0, 0], sizes = [32, 1], strides = [1, 1]} : vector<32x3xf32> to vector<32x1xf32>
    %482 = vector.broadcast %481 : vector<32x1xf32> to vector<32x256xf32>
    %483 = arith.addf %480, %482 : vector<32x256xf32>
    %cst_153 = arith.constant dense<0.000000e+00> : vector<256xf32>
    %484 = vector.multi_reduction <add>, %483, %cst_153 [0] : vector<32x256xf32> to vector<256xf32>
    %485 = vector.shape_cast %484 : vector<256xf32> to vector<1x256xf32>
    %cst_154 = arith.constant 3.200000e+01 : f32
    %486 = vector.broadcast %cst_154 : f32 to vector<1x256xf32>
    %487 = arith.divf %485, %486 : vector<1x256xf32>
    %488 = vector.broadcast %487 : vector<1x256xf32> to vector<32x256xf32>
    %489 = arith.subf %483, %488 : vector<32x256xf32>
    %490 = arith.mulf %489, %489 : vector<32x256xf32>
    %cst_155 = arith.constant dense<0.000000e+00> : vector<256xf32>
    %491 = vector.multi_reduction <add>, %490, %cst_155 [0] : vector<32x256xf32> to vector<256xf32>
    %492 = vector.shape_cast %491 : vector<256xf32> to vector<1x256xf32>
    %cst_156 = arith.constant 3.200000e+01 : f32
    %493 = vector.broadcast %cst_156 : f32 to vector<1x256xf32>
    %494 = arith.divf %492, %493 : vector<1x256xf32>
    %cst_157 = arith.constant 9.99999974E-6 : f32
    %495 = vector.broadcast %cst_157 : f32 to vector<1x256xf32>
    %496 = arith.addf %494, %495 : vector<1x256xf32>
    %497 = math.rsqrt %496 : vector<1x256xf32>
    %498 = vector.broadcast %497 : vector<1x256xf32> to vector<32x256xf32>
    %499 = arith.mulf %489, %498 : vector<32x256xf32>
    %500 = vector.extract_strided_slice %4 {offsets = [0, 1], sizes = [32, 1], strides = [1, 1]} : vector<32x3xf32> to vector<32x1xf32>
    %501 = vector.broadcast %500 : vector<32x1xf32> to vector<32x256xf32>
    %502 = arith.mulf %499, %501 : vector<32x256xf32>
    %503 = vector.extract_strided_slice %4 {offsets = [0, 2], sizes = [32, 1], strides = [1, 1]} : vector<32x3xf32> to vector<32x1xf32>
    %504 = vector.broadcast %503 : vector<32x1xf32> to vector<32x256xf32>
    %505 = arith.addf %502, %504 : vector<32x256xf32>
    %cst_158 = arith.constant 0.000000e+00 : f32
    %506 = vector.broadcast %cst_158 : f32 to vector<32x256xf32>
    %507 = arith.maximumf %505, %506 : vector<32x256xf32>
    %c0_159 = arith.constant 0 : index
    %c1792_160 = arith.constant 1792 : index
    %508 = vector.load %arg7[%c0_159, %c1792_160] : memref<32x2048xf32, #tpu.memory_space<vmem>>, vector<32x256xf32>
    tpu.vector_store %arg7[%c0_159, %c1792_160], %507 {strides = array<i32>} : memref<32x2048xf32, #tpu.memory_space<vmem>>, vector<32x256xf32>,
    return
  }
  func.func @transform_0(%arg0: i32) -> (i32, i32) {
    %c0_i32 = arith.constant 0 : i32
    %c0_i32_0 = arith.constant 0 : i32
    %c0_i32_1 = arith.constant 0 : i32
    return %c0_i32, %c0_i32_0 : i32, i32
  }
  func.func @transform_1(%arg0: i32) -> (i32, i32) {
    %c0_i32 = arith.constant 0 : i32
    %c0_i32_0 = arith.constant 0 : i32
    return %c0_i32, %arg0 : i32, i32
  }
  func.func @transform_2(%arg0: i32) -> (i32, i32) {
    %c0_i32 = arith.constant 0 : i32
    %c0_i32_0 = arith.constant 0 : i32
    %c0_i32_1 = arith.constant 0 : i32
    return %c0_i32, %c0_i32_0 : i32, i32
  }
  func.func @transform_3(%arg0: i32) -> (i32, i32) {
    %c0_i32 = arith.constant 0 : i32
    %c0_i32_0 = arith.constant 0 : i32
    %c0_i32_1 = arith.constant 0 : i32
    return %c0_i32, %c0_i32_0 : i32, i32
  }
  func.func @transform_4(%arg0: i32) -> (i32, i32) {
    %c0_i32 = arith.constant 0 : i32
    %c0_i32_0 = arith.constant 0 : i32
    %c0_i32_1 = arith.constant 0 : i32
    return %c0_i32, %c0_i32_0 : i32, i32
  }
  func.func @transform_5(%arg0: i32) -> (i32, i32) {
    %c0_i32 = arith.constant 0 : i32
    %c0_i32_0 = arith.constant 0 : i32
    %c0_i32_1 = arith.constant 0 : i32
    return %c0_i32, %c0_i32_0 : i32, i32
  }
  func.func @transform_6(%arg0: i32) -> (i32, i32) {
    %c0_i32 = arith.constant 0 : i32
    %c0_i32_0 = arith.constant 0 : i32
    return %c0_i32, %arg0 : i32, i32
  }
}

</mosaic_0001>

<bundles_post_ra>
// kernel: skeleton_gnn_forward.1
= control target key start
LH: loop header
LB: loop body
LE: loop exit
PB: predicated region body
PF: predicated region fallthrough
CT: control target
= control target key end

     0   :  { %11 = vsyncpa [#allocation3], 0  ;;  %s4663_s21 = smov 0   ;;  %s4665_s22 = smov 0   ;;  %s6565_s0 = inlined_call_operand.hbm [shape: bf16[256,256], index: 0, kind: input, shape index: {}]   ;;  %s6566_s1 = inlined_call_operand.vmem [shape: bf16[4,4096], index: 1, kind: input, shape index: {}]   ;;  %s6567_s2 = inlined_call_operand.vmem [shape: bf16[32,4], index: 2, kind: input, shape index: {}]   ;;  %s6568_s3 = inlined_call_operand.vmem [shape: f32[32,3], index: 3, kind: input, shape index: {}]   ;;  %s6569_s4 = inlined_call_operand.vmem [shape: bf16[32,32], index: 4, kind: input, shape index: {}]   ;;  %s6570_s5 = inlined_call_operand.vmem [shape: f32[32,3], index: 5, kind: input, shape index: {}]   ;;  %s6571_s6 = inlined_call_operand.vmem [shape: f32[32,4096], index: 6, kind: output, shape index: {}]  }
   0x1   :  { %s4667_s23 = smov 0  }
   0x2 LB: > { %s4676_s24 = sadd.s32 4294967295, %s4620_s23   ;;  %s4678_s25 = sadd.s32 1, %s4620_s23   ;;  %s4620_s23 = sphi %s4667_s23, %s7076_s23   ;;  %s4616_s22 = sphi %s4665_s22, %s7075_s22   ;;  %s4612_s21 = sphi %s4663_s21, %s7074_s21  }
   0x3   : > { %s152_s26 = ssub.s32 %s4620_s23, %s4678_s25  ;;  %s155_s27 = sadd.s32 1, %s4616_s22 }
   0x4   : > { %p153_p0 = scmp.eq.s32.totalorder %s152_s26, 0  ;;  %p165_p1 = scmp.ne.s32.totalorder %s4616_s22, %s4612_s21 }
   0x5   : > { %p166_p2 = scmp.eq.s32.totalorder %s4676_s24, 1  ;;  %p4190_p3 = scmp.ge.s32.totalorder %s4620_s23, 1 }
   0x6   : > { %s4686_s28 = scalar_select %p153_p0, %s4616_s22, %s155_s27  }
   0x7   : > { %p4688_p4 = por %p166_p2, %p165_p1  ;;  %p179_p5 = scmp.lt.s32.totalorder %s4620_s23, 3 }
   0x8   : > { %p6572_p6 = scmp.eq.s32.totalorder %s4676_s24, 0  ;;  %s4622_s7 = smov [#allocation2]  }
   0x9   : > { %s6808_s29 = scalar_select %p4688_p4, 1, 0 }
   0xa   : > { %p4693_p7 = pnand %p4190_p3, %p179_p5  ;;  %s191_s8 = sshll.u32 %s4622_s7, 4  ;;  %s192_s8 = int_to_ptr.vmem [resolvable:$true] %s191_s8 }
   0xb   : > { %s4566_s12 = scalar_lea.hbm %s6565_s0, 4096 }
   0xc   : > { %s6809_s30 = scalar_select %p4693_p7, 1, 0 }
   0xd   : > { %p4292_p8 = pneg %p4693_p7  ;;  %p4567_p10 = scmp.ne.s32.totalorder %s6565_s0, %s4566_s12 }
   0xe   : > { %p4573_p0 = scmp.lt.u32.totalorder %s4566_s12, %s6565_s0 }
   0xf   : > { %p4701_p9 = pnand %p6572_p6, %p4292_p8 }
  0x11   : > { %p4568_p11 = pneg %p4701_p9 }
  0x13   : > { %p4569_p12 = pnand %p4568_p11, %p4567_p10 }
  0x15   : > { %p4570_p13 = pneg %p4569_p12 }
  0x17   : > { %p4575_p1 = pnand %p4573_p0, %p4570_p13 }
  0x19   : > { %4578 = shalt.err (!%p4575_p1)
}
  0x1a   : > { %s4579_s17 = scalar_lea.vmem %s192_s8, 4096  ;;  %p4587_p8 = scmp.lt.s32.totalorder %s192_s8, %s192_s8 }
  0x1b   : > { %p4580_p2 = scmp.ne.s32.totalorder %s192_s8, %s4579_s17  ;;  %p4588_p6 = scmp.lt.s32.totalorder %s4579_s17, %s4579_s17 }
  0x1d   : > { %p4582_p3 = pnand %p4580_p2, %p4568_p11  ;;  %p4589_p4 = por %p4588_p6, %p4587_p8 }
  0x1f   : > { %p4583_p5 = pneg %p4582_p3 }
  0x21   : > { %p4590_p7 = pnand %p4589_p4, %p4583_p5 }
  0x23   : > { %4593 = shalt.err (!%p4590_p7)
}
  0x24   : > { %s4623_s18 = smov 128   ;;  %s4624_s19 = smov 8  }
  0x25   : > { %4295 = dma.hbm_to_vmem [thread:$0]  (!%p4701_p9), %s6565_s0, 4096, %s192_s8, [#allocation3], %s4623_s18, %s4623_s18, %s4624_s19  }
  0x26   : > { %p6811_p10 = scmp.ne.s32.totalorder %s6809_s30, 0 }
  0x28   : > { %228 = sbr.rel (%p6811_p10) target bundleno = 6324 (0x18b4), region = 44 }
  0x2f   : > { %p6812_p12 = scmp.eq.s32.totalorder %s4676_s24, 0 }
  0x31   : > { %4607 = dma.done.wait (%p6812_p12), [#allocation3], 4096   ;;  %p6813_p11 = pmov %p6812_p12 }
  0x32   : > { %v4727_v0 = vld [vmem:[#allocation2 + $0x4] ss:$8 sps:$4 sm:$0xff]   ;;  %v4729_v1 = vld [vmem:[#allocation2] ss:$8 sps:$4 sm:$0xff]   ;;  %v4732_v2 = vld [vmem:[#allocation2 + $0x14] ss:$8 sps:$4 sm:$0xff]  }
  0x33   : > { %4609 = vsyncadd (%p6813_p11), [#allocation3], 4294963200  ;;  %485 = vmatprep.subr.bf16.mxu0 %v4727_v0  ;;  %754 = vmatprep.subr.bf16.mxu1 %v4727_v0  ;;  %v4736_v3 = vld [vmem:[#allocation2 + $0x10] ss:$8 sps:$4 sm:$0xff]   ;;  %v4740_v4 = vld [vmem:[#allocation2 + $0x24] ss:$8 sps:$4 sm:$0xff]  }
  0x34   : > { %486 = vmatpush1.bf16.msra.mxu0 %v4729_v1  ;;  %755 = vmatpush1.bf16.msra.mxu1 %v4729_v1  ;;  %s4196_s26 = sshll.u32 %s4676_s24, 4  ;;  %v4745_v5 = vld [vmem:[#allocation2 + $0x20] ss:$8 sps:$4 sm:$0xff]   ;;  %v4749_v6 = vld [vmem:[#allocation2 + $0x34] ss:$8 sps:$4 sm:$0xff]   ;;  %v6574_v34 = vmov 0  }
  0x35   : > { %487 = vmatprep.subr.bf16.mxu0 %v4732_v2  ;;  %756 = vmatprep.subr.bf16.mxu1 %v4732_v2  ;;  %p258_p4 = scmp.lt.s32.totalorder %s4196_s26, 31  ;;  %v4753_v7 = vld [vmem:[#allocation2 + $0x30] ss:$8 sps:$4 sm:$0xff]   ;;  %v4757_v8 = vld [vmem:[#allocation2 + $0x44] ss:$8 sps:$4 sm:$0xff]   ;;  %v6578_v39 = vmov 1  }
  0x36   : > { %v4761_v9 = vld [vmem:[#allocation2 + $0x40] ss:$8 sps:$4 sm:$0xff]   ;;  %v4765_v10 = vld [vmem:[#allocation2 + $0x54] ss:$8 sps:$4 sm:$0xff]   ;;  %v4774_v11 = vld [vmem:[#allocation2 + $0x50] ss:$8 sps:$4 sm:$0xff]   ;;  %4328 = vset.pattern.permute.xlu0 %v6574_v34  ;;  %4329 = vset.pattern.permute.xlu1 %v6574_v34 }
  0x37   : > { %s7078_s26 = smov (!%p258_p4, %s4196_s26), 31  ;;  %v4778_v12 = vld [vmem:[#allocation2 + $0x64] ss:$8 sps:$4 sm:$0xff]   ;;  %v4781_v13 = vld [vmem:[#allocation2 + $0x60] ss:$8 sps:$4 sm:$0xff]   ;;  %v307_v36 = vld [vmem:[%s6568_s3 + $0x10] sm:$0xff] }
  0x38   : > { %488 = vmatpush1.bf16.msra.mxu0 %v4736_v3  ;;  %757 = vmatpush1.bf16.msra.mxu1 %v4736_v3  ;;  %s4197_s27 = sshll.u32 %s7078_s26, 1  ;;  %v4791_v16 = vld [vmem:[#allocation2 + $0x74] ss:$8 sps:$4 sm:$0xff]   ;;  %v4795_v17 = vld [vmem:[#allocation2 + $0x70] ss:$8 sps:$4 sm:$0xff]   ;;  %v305_v35 = vld [vmem:[%s6568_s3] sm:$0xff] }
  0x39   : > { %489 = vmatprep.subr.bf16.mxu0 %v4740_v4  ;;  %758 = vmatprep.subr.bf16.mxu1 %v4740_v4  ;;  %s4771_s8 = scalar_lea.vmem %s6566_s1, %s4197_s27  ;;  %v4799_v18 = vld [vmem:[#allocation2 + $0x84] ss:$8 sps:$4 sm:$0xff]   ;;  %v4803_v19 = vld [vmem:[#allocation2 + $0x80] ss:$8 sps:$4 sm:$0xff]   ;;  %v4807_v20 = vld [vmem:[#allocation2 + $0x94] ss:$8 sps:$4 sm:$0xff]  }
  0x3a   : > { %v4784_v14 = vld.sshfl [vmem:[%s4771_s8] sm:$0x33 pattern:$0x76325410]  ;;  %v4811_v21 = vld [vmem:[#allocation2 + $0x90] ss:$8 sps:$4 sm:$0xff]   ;;  %530 = vperm.xlu0 %4328, %v305_v35   ;;  %540 = vperm.xlu1 %4329, %v307_v36  }
  0x3b   : > { %v322_v15 = vcombine.high %v4784_v14, %v4784_v14  ;;  %v4815_v22 = vld [vmem:[#allocation2 + $0xa4] ss:$8 sps:$4 sm:$0xff]   ;;  %v4819_v23 = vld [vmem:[#allocation2 + $0xa0] ss:$8 sps:$4 sm:$0xff]   ;;  %v4823_v24 = vld [vmem:[#allocation2 + $0xb4] ss:$8 sps:$4 sm:$0xff]  }
  0x3c   : > { %490 = vmatpush1.bf16.msra.mxu0 %v4745_v5  ;;  %759 = vmatpush1.bf16.msra.mxu1 %v4745_v5  ;;  %v4827_v25 = vld [vmem:[#allocation2 + $0xb0] ss:$8 sps:$4 sm:$0xff]   ;;  %v4831_v26 = vld [vmem:[#allocation2 + $0xc4] ss:$8 sps:$4 sm:$0xff]   ;;  %v4835_v27 = vld [vmem:[#allocation2 + $0xc0] ss:$8 sps:$4 sm:$0xff]  }
  0x3d   : > { %491 = vmatprep.subr.bf16.mxu0 %v4749_v6  ;;  %760 = vmatprep.subr.bf16.mxu1 %v4749_v6  ;;  %v4839_v28 = vld [vmem:[#allocation2 + $0xd4] ss:$8 sps:$4 sm:$0xff]   ;;  %v4843_v29 = vld [vmem:[#allocation2 + $0xd0] ss:$8 sps:$4 sm:$0xff]   ;;  %v4847_v30 = vld [vmem:[#allocation2 + $0xe4] ss:$8 sps:$4 sm:$0xff]  }
  0x3e   : > { %517 = vmatprep.mubr.bf16.mxu0 %v322_v15  ;;  %v4851_v31 = vld [vmem:[#allocation2 + $0xe0] ss:$8 sps:$4 sm:$0xff]   ;;  %v4855_v32 = vld [vmem:[#allocation2 + $0xf4] ss:$8 sps:$4 sm:$0xff]   ;;  %v4859_v33 = vld [vmem:[#allocation2 + $0xf0] ss:$8 sps:$4 sm:$0xff]  }
  0x3f   : > { %v306_v37 = vld [vmem:[%s6568_s3 + $0x8] sm:$0xff]  ;;  %v308_v38 = vld [vmem:[%s6568_s3 + $0x18] sm:$0xff]  ;;  %v6576_v40 = vmov 2   ;;  %vm565_vm0 = vcmask 1041408   ;;  %v4896_v48 = vld [vmem:[%s6567_s2] sm:$0xff]   ;;  %vm558_vm1 = vcmask 31744  }
  0x40   : > { %492 = vmatpush1.bf16.msra.mxu0 %v4753_v7  ;;  %761 = vmatpush1.bf16.msra.mxu1 %v4753_v7  ;;  %6814 = vst [vmem:[#allocation6_spill] sm:$0xff] %v4896_v48  ;;  %v4904_v49 = vld [vmem:[%s6567_s2 + $0x8] sm:$0xff]   ;;  %vm841_vm2 = vcmask 261120   ;;  %s254_s16 = sand.u32 1, %s4612_s21   ;;  %p7073_p6 = scmp.ne.s32.totalorder %s6808_s29, 0 }
  0x41   : > { %493 = vmatprep.subr.bf16.mxu0 %v4757_v8  ;;  %762 = vmatprep.subr.bf16.mxu1 %v4757_v8  ;;  %6815 = vst [vmem:[#allocation7_spill] sm:$0xff] %v4904_v49  ;;  %s4195_s21 = sshll.u32 %s254_s16, 9 }
  0x42   : > { %535 = vperm.xlu0 %4328, %v306_v37   ;;  %545 = vperm.xlu1 %4329, %v308_v38   ;;  %s5208_s17 = scalar_lea.vmem [#allocation4], %s4195_s21 }
  0x44   : > { %494 = vmatpush1.bf16.msra.mxu0 %v4761_v9  ;;  %763 = vmatpush1.bf16.msra.mxu1 %v4761_v9 }
  0x45   : > { %495 = vmatprep.subr.bf16.mxu0 %v4765_v10  ;;  %764 = vmatprep.subr.bf16.mxu1 %v4765_v10 }
  0x46   : > { %4331 = vset.pattern.permute.xlu1 %v6578_v39  ;;  %4330 = vset.pattern.permute.xlu0 %v6578_v39 }
  0x47   : > { %699 = vperm.xlu1 %4331, %v306_v37   ;;  %695 = vperm.xlu0 %4330, %v305_v35  }
  0x48   : > { %496 = vmatpush1.bf16.msra.mxu0 %v4774_v11  ;;  %765 = vmatpush1.bf16.msra.mxu1 %v4774_v11 }
  0x49   : > { %497 = vmatprep.subr.bf16.mxu0 %v4778_v12  ;;  %766 = vmatprep.subr.bf16.mxu1 %v4778_v12 }
  0x4b   : > { %4332 = vset.pattern.permute.xlu1 %v6576_v40  ;;  %4333 = vset.pattern.permute.xlu0 %v6576_v40 }
  0x4c   : > { %498 = vmatpush1.bf16.msra.mxu0 %v4781_v13  ;;  %767 = vmatpush1.bf16.msra.mxu1 %v4781_v13 }
  0x4d   : > { %499 = vmatprep.subr.bf16.mxu0 %v4791_v16  ;;  %768 = vmatprep.subr.bf16.mxu1 %v4791_v16 }
  0x4e   : > { %719 = vperm.xlu1 %4332, %v305_v35   ;;  %723 = vperm.xlu0 %4333, %v306_v37  }
  0x50   : > { %500 = vmatpush1.bf16.msra.mxu0 %v4795_v17  ;;  %769 = vmatpush1.bf16.msra.mxu1 %v4795_v17 }
  0x51   : > { %501 = vmatprep.subr.bf16.mxu0 %v4799_v18  ;;  %770 = vmatprep.subr.bf16.mxu1 %v4799_v18 }
  0x52   : > { %4334 = vset.pattern.permute.xlu1 %v6578_v39  ;;  %727 = vperm.xlu0 %4333, %v307_v36  }
  0x53   : > { %703 = vperm.xlu1 %4334, %v307_v36  }
  0x54   : > { %502 = vmatpush1.bf16.msra.mxu0 %v4803_v19  ;;  %771 = vmatpush1.bf16.msra.mxu1 %v4803_v19 }
  0x55   : > { %503 = vmatprep.subr.bf16.mxu0 %v4807_v20  ;;  %772 = vmatprep.subr.bf16.mxu1 %v4807_v20 }
  0x56   : > { %4336 = vset.pattern.permute.xlu0 %v6574_v34 }
  0x57   : > { %707 = vperm.xlu1 %4334, %v308_v38  }
  0x58   : > { %504 = vmatpush1.bf16.msra.mxu0 %v4811_v21  ;;  %773 = vmatpush1.bf16.msra.mxu1 %v4811_v21 }
  0x59   : > { %505 = vmatprep.subr.bf16.mxu0 %v4815_v22  ;;  %774 = vmatprep.subr.bf16.mxu1 %v4815_v22 }
  0x5b   : > { %4335 = vset.pattern.permute.xlu1 %v6576_v40 }
  0x5c   : > { %506 = vmatpush1.bf16.msra.mxu0 %v4819_v23  ;;  %775 = vmatpush1.bf16.msra.mxu1 %v4819_v23 }
  0x5d   : > { %507 = vmatprep.subr.bf16.mxu0 %v4823_v24  ;;  %776 = vmatprep.subr.bf16.mxu1 %v4823_v24 }
  0x5e   : > { %731 = vperm.xlu1 %4335, %v308_v38  }
  0x60   : > { %508 = vmatpush1.bf16.msra.mxu0 %v4827_v25  ;;  %777 = vmatpush1.bf16.msra.mxu1 %v4827_v25 }
  0x61   : > { %509 = vmatprep.subr.bf16.mxu0 %v4831_v26  ;;  %778 = vmatprep.subr.bf16.mxu1 %v4831_v26 }
  0x62   : > { %4337 = vset.pattern.permute.xlu1 %v6574_v34 }
  0x64   : > { %510 = vmatpush1.bf16.msra.mxu0 %v4835_v27  ;;  %779 = vmatpush1.bf16.msra.mxu1 %v4835_v27 }
  0x65   : > { %511 = vmatprep.subr.bf16.mxu0 %v4839_v28  ;;  %780 = vmatprep.subr.bf16.mxu1 %v4839_v28 }
  0x68   : > { %512 = vmatpush1.bf16.msra.mxu0 %v4843_v29  ;;  %781 = vmatpush1.bf16.msra.mxu1 %v4843_v29 }
  0x69   : > { %513 = vmatprep.subr.bf16.mxu0 %v4847_v30  ;;  %782 = vmatprep.subr.bf16.mxu1 %v4847_v30 }
  0x6c   : > { %514 = vmatpush1.bf16.msra.mxu0 %v4851_v31  ;;  %783 = vmatpush1.bf16.msra.mxu1 %v4851_v31 }
  0x6d   : > { %515 = vmatprep.subr.bf16.mxu0 %v4855_v32  ;;  %784 = vmatprep.subr.bf16.mxu1 %v4855_v32 }
  0x70   : > { %516 = vmatpush1.bf16.msra.mxu0 %v4859_v33  ;;  %785 = vmatpush1.bf16.msra.mxu1 %v4859_v33 }
  0x71   : > { %1045 = vmatprep.subr.bf16.mxu1 %v4727_v0 }
  0x73   : > { %518 = vmatmul.mubr.bf16.vlgmr.msra.gmra.mrb[0].mxu0 %v4784_v14 }
  0x74   : > { %604 = vmatprep.mubr.bf16.mxu0 %v6574_v34 }
  0xb9   : > { %v4909_v50 = vpop.permute.xlu0 %530  ;;  %v4916_v59 = vpop.permute.xlu1 %540 }
  0xba   : > { %6816 = vst [vmem:[#allocation8_spill] sm:$0xff] %v4909_v50  ;;  %6818 = vst [vmem:[#allocation10_spill] sm:$0xff] %v4916_v59 }
  0xc1   : > { %v4911_v52 = vpop.permute.xlu0 %535  ;;  %v4920_v35 = vpop.permute.xlu1 %545 }
  0xc2   : > { %6817 = vst [vmem:[#allocation9_spill] sm:$0xff] %v4911_v52  ;;  %6819 = vst [vmem:[#allocation11_spill] sm:$0xff] %v4920_v35 }
 0x146   : > { %v519_v41 = vpop.f32.mrb[0].mxu0 }
 0x147   : > { %v526_v42 = vpack.c.bf16 %v519_v41, %v519_v41  ;;  %v521_v43 = vpop.f32.mrb[1].mxu0 }
 0x148   : > { %v527_v44 = vpack.c.bf16 %v521_v43, %v521_v43  ;;  %v523_v45 = vpop.f32.mrb[2].mxu0 }
 0x149   : > { %v567_v46 = vsel %vm565_vm0, %v526_v42, 0  ;;  %v524_v47 = vpop.f32.mrb[3].mxu0 }
 0x14a   : > { %4233 = vmatprep.subr.msk.bf16.mxu0 %vm565_vm0, %v527_v44 }
 0x14b   : > { %573 = vmatpush1.bf16.msra.mxu0 %v567_v46 }
 0x14e   : > { %4234 = vmatmul.mubr.msk.bf16.vlgmr.msra.gmra.mrb[4].mxu0 %vm558_vm1, %v4896_v48 }
 0x14f   : > { %614 = vmatprep.mubr.bf16.mxu0 %v6574_v34 }
 0x156   : > { %4235 = vmatmul.mubr.msk.bf16.gmra.mrb[8].mxu0 %vm558_vm1, %v4904_v49 }
 0x157   : > { %880 = vmatprep.mubr.bf16.mxu0 %v6574_v34 }
 0x221   : > { %v606_v51 = vpop.f32.mrb[4].mxu0 }
 0x222   : > { %v608_v53 = vpop.f32.mrb[5].mxu0  ;;  %v607_v55 = vadd.f32 %v606_v51, %v4909_v50 }
 0x223   : > { %v610_v54 = vpop.f32.mrb[6].mxu0  ;;  %v609_v58 = vadd.f32 %v608_v53, %v4909_v50 }
 0x224   : > { %v611_v56 = vadd.f32 %v610_v54, %v4911_v52  ;;  %v612_v57 = vpop.f32.mrb[7].mxu0 }
 0x225   : > { %v613_v60 = vadd.f32 %v612_v57, %v4911_v52 }
 0x226   : > { %v625_v61 = vadd.f32 %v611_v56, %v607_v55 }
 0x227   : > { %v634_v62 = vadd.f32 %v613_v60, %v609_v58 }
 0x229   : > { %v616_v63 = vpop.f32.mrb[8].mxu0 }
 0x22a   : > { %v617_v14 = vadd.f32 %v616_v63, %v4916_v59  ;;  %v618_v15 = vpop.f32.mrb[9].mxu0 }
 0x22b   : > { %v619_v36 = vadd.f32 %v618_v15, %v4916_v59  ;;  %v620_v37 = vpop.f32.mrb[10].mxu0 }
 0x22c   : > { %v626_v38 = vadd.f32 %v625_v61, %v617_v14  ;;  %v621_v41 = vadd.f32 %v620_v37, %v4920_v35  ;;  %v622_v42 = vpop.f32.mrb[11].mxu0 }
 0x22d   : > { %v635_v43 = vadd.f32 %v634_v62, %v619_v36  ;;  %v623_v44 = vadd.f32 %v622_v42, %v4920_v35 }
 0x22e   : > { %v627_v45 = vadd.f32 %v626_v38, %v621_v41 }
 0x22f   : > { %v636_v46 = vadd.f32 %v635_v43, %v623_v44 }
 0x230   : > { %v628_v47 = vrot.slane %v627_v45, 4 }
 0x231   : > { %v637_v51 = vrot.slane %v636_v46, 4 }
 0x232   : > { %v629_v53 = vadd.f32 %v628_v47, %v627_v45 }
 0x233   : > { %v638_v54 = vadd.f32 %v637_v51, %v636_v46 }
 0x234   : > { %v630_v57 = vrot.slane %v629_v53, 2 }
 0x235   : > { %v639_v63 = vrot.slane %v638_v54, 2 }
 0x236   : > { %v631_v34 = vadd.f32 %v630_v57, %v629_v53 }
 0x237   : > { %v640_v40 = vadd.f32 %v639_v63, %v638_v54 }
 0x238   : > { %v632_v39 = vrot.slane %v631_v34, 1 }
 0x239   : > { %v641_v15 = vrot.slane %v640_v40, 1 }
 0x23a   : > { %v633_v59 = vadd.f32 %v632_v39, %v631_v34 }
 0x23b   : > { %v642_v61 = vadd.f32 %v641_v15, %v640_v40 }
 0x23c   : > { %v644_v52 = vmul.f32 0.03125, %v633_v59 }
 0x23d   : > { %v645_v37 = vmul.f32 0.03125, %v642_v61 }
 0x23e   : > { %v646_v50 = vsub.f32 %v607_v55, %v644_v52  ;;  %v648_v62 = vsub.f32 %v611_v56, %v644_v52  ;;  %v650_v49 = vsub.f32 %v617_v14, %v644_v52  ;;  %v652_v42 = vsub.f32 %v621_v41, %v644_v52  ;;  %v4925_v41 = vpop.permute.xlu1 %699 }
 0x23f   : > { %v647_v38 = vsub.f32 %v609_v58, %v645_v37  ;;  %v649_v43 = vsub.f32 %v613_v60, %v645_v37  ;;  %v651_v35 = vsub.f32 %v619_v36, %v645_v37  ;;  %v653_v48 = vsub.f32 %v623_v44, %v645_v37  ;;  %6820 = vst [vmem:[#allocation12_spill] sm:$0xff] %v4925_v41 }
 0x240   : > { %v654_v45 = vmul.f32 %v646_v50, %v646_v50  ;;  %v656_v46 = vmul.f32 %v648_v62, %v648_v62  ;;  %v658_v53 = vmul.f32 %v650_v49, %v650_v49  ;;  %v660_v34 = vmul.f32 %v652_v42, %v652_v42 }
 0x241   : > { %v655_v47 = vmul.f32 %v647_v38, %v647_v38  ;;  %v657_v51 = vmul.f32 %v649_v43, %v649_v43  ;;  %v659_v57 = vmul.f32 %v651_v35, %v651_v35  ;;  %v661_v40 = vmul.f32 %v653_v48, %v653_v48 }
 0x242   : > { %v662_v54 = vadd.f32 %v656_v46, %v654_v45 }
 0x243   : > { %v671_v63 = vadd.f32 %v657_v51, %v655_v47  ;;  %v4927_v47 = vpop.permute.xlu1 %719 }
 0x244   : > { %v663_v39 = vadd.f32 %v662_v54, %v658_v53  ;;  %6821 = vst [vmem:[#allocation13_spill] sm:$0xff] %v4927_v47 }
 0x245   : > { %v672_v59 = vadd.f32 %v671_v63, %v659_v57 }
 0x246   : > { %v664_v55 = vadd.f32 %v663_v39, %v660_v34  ;;  %v4931_v39 = vpop.permute.xlu0 %695 }
 0x247   : > { %v673_v56 = vadd.f32 %v672_v59, %v661_v40  ;;  %v4929_v34 = vpop.permute.xlu1 %703  ;;  %6823 = vst [vmem:[#allocation15_spill] sm:$0xff] %v4931_v39 }
 0x248   : > { %v665_v14 = vrot.slane %v664_v55, 4  ;;  %6822 = vst [vmem:[#allocation14_spill] sm:$0xff] %v4929_v34 }
 0x249   : > { %v674_v52 = vrot.slane %v673_v56, 4 }
 0x24a   : > { %v666_v58 = vadd.f32 %v665_v14, %v664_v55  ;;  %v4935_v59 = vpop.permute.xlu0 %723 }
 0x24b   : > { %v675_v60 = vadd.f32 %v674_v52, %v673_v56  ;;  %v4933_v40 = vpop.permute.xlu1 %707  ;;  %6825 = vst [vmem:[#allocation17_spill] sm:$0xff] %v4935_v59 }
 0x24c   : > { %v667_v36 = vrot.slane %v666_v58, 2  ;;  %6824 = vst [vmem:[#allocation16_spill] sm:$0xff] %v4933_v40 }
 0x24d   : > { %v676_v44 = vrot.slane %v675_v60, 2 }
 0x24e   : > { %v668_v15 = vadd.f32 %v667_v36, %v666_v58 }
 0x24f   : > { %v677_v61 = vadd.f32 %v676_v44, %v675_v60  ;;  %v4937_v44 = vpop.permute.xlu1 %731 }
 0x250   : > { %v669_v37 = vrot.slane %v668_v15, 1  ;;  %6826 = vst [vmem:[#allocation18_spill] sm:$0xff] %v4937_v44 }
 0x251   : > { %v678_v45 = vrot.slane %v677_v61, 1 }
 0x252   : > { %v670_v46 = vadd.f32 %v669_v37, %v668_v15  ;;  %v4939_v15 = vpop.permute.xlu0 %727 }
 0x253   : > { %v679_v51 = vadd.f32 %v678_v45, %v677_v61  ;;  %6827 = vst [vmem:[#allocation19_spill] sm:$0xff] %v4939_v15 }
 0x254   : > { %v680_v53 = vmul.f32 0.03125, %v670_v46 }
 0x255   : > { %v681_v54 = vmul.f32 0.03125, %v679_v51 }
 0x256   : > { %v682_v57 = vadd.f32 1e-05, %v680_v53 }
 0x257   : > { %v683_v63 = vadd.f32 1e-05, %v681_v54 }
 0x258   : > { %4394 = vrsqrt.f32 %v682_v57 }
 0x259   : > { %4396 = vrsqrt.f32 %v683_v63 }
 0x262   : > { %v4395_v55 = vpop.eup %4394 }
 0x263   : > { %v4397_v56 = vpop.eup %4396  ;;  %v692_v14 = vmul.f32 %v4395_v55, %v652_v42  ;;  %v686_v52 = vmul.f32 %v4395_v55, %v646_v50  ;;  %v688_v58 = vmul.f32 %v4395_v55, %v648_v62  ;;  %v690_v60 = vmul.f32 %v4395_v55, %v650_v49 }
 0x264   : > { %v693_v36 = vmul.f32 %v4397_v56, %v653_v48  ;;  %v687_v61 = vmul.f32 %v4397_v56, %v647_v38  ;;  %v689_v37 = vmul.f32 %v4397_v56, %v649_v43  ;;  %v691_v45 = vmul.f32 %v4397_v56, %v651_v35 }
 0x265   : > { %v710_v46 = vmul.f32 %v4931_v39, %v686_v52  ;;  %v712_v51 = vmul.f32 %v4925_v41, %v688_v58  ;;  %v714_v53 = vmul.f32 %v4929_v34, %v690_v60  ;;  %v716_v54 = vmul.f32 %v4933_v40, %v692_v14 }
 0x266   : > { %v711_v50 = vmul.f32 %v4931_v39, %v687_v61  ;;  %v713_v49 = vmul.f32 %v4925_v41, %v689_v37  ;;  %v715_v48 = vmul.f32 %v4929_v34, %v691_v45  ;;  %v717_v62 = vmul.f32 %v4933_v40, %v693_v36 }
 0x267   : > { %v734_v42 = vadd.f32 %v4927_v47, %v710_v46  ;;  %v736_v35 = vadd.f32 %v4935_v59, %v712_v51  ;;  %v738_v38 = vadd.f32 %v4939_v15, %v714_v53  ;;  %v740_v43 = vadd.f32 %v4937_v44, %v716_v54 }
 0x268   : > { %v735_v57 = vadd.f32 %v4927_v47, %v711_v50  ;;  %v737_v63 = vadd.f32 %v4935_v59, %v713_v49  ;;  %v739_v55 = vadd.f32 %v4939_v15, %v715_v48  ;;  %v741_v56 = vadd.f32 %v4937_v44, %v717_v62  ;;  %v4240_v50 = vld.sshfl [vmem:[%s4771_s8 + $0x4] sm:$0x33 pattern:$0x76325410]  ;;  %v310_v48 = vld [vmem:[%s6570_s5 + $0x8] sm:$0xff] }
 0x269   : > { %v742_v14 = vmax.f32 %v734_v42, 0.0  ;;  %v744_v52 = vmax.f32 %v736_v35, 0.0  ;;  %v746_v58 = vmax.f32 %v738_v38, 0.0  ;;  %v748_v60 = vmax.f32 %v740_v43, 0.0  ;;  %v309_v62 = vld [vmem:[%s6570_s5] sm:$0xff]  ;;  %818 = vperm.xlu1 %4337, %v310_v48   ;;  %v311_v42 = vld [vmem:[%s6570_s5 + $0x10] sm:$0xff] }
 0x26a   : > { %v743_v36 = vmax.f32 %v735_v57, 0.0  ;;  %v745_v61 = vmax.f32 %v737_v63, 0.0  ;;  %v747_v37 = vmax.f32 %v739_v55, 0.0  ;;  %v749_v45 = vmax.f32 %v741_v56, 0.0  ;;  %813 = vperm.xlu0 %4336, %v309_v62   ;;  %v312_v35 = vld [vmem:[%s6570_s5 + $0x18] sm:$0xff] }
 0x26b   : > { %v750_v46 = vpack.c.bf16 %v744_v52, %v742_v14  ;;  %v752_v51 = vpack.c.bf16 %v748_v60, %v746_v58  ;;  %v1042_v49 = vcombine.high %v4240_v50, %v4240_v50  ;;  %v6828_v38 = vmov 1  }
 0x26c   : > { %v751_v53 = vpack.c.bf16 %v745_v61, %v743_v36  ;;  %v753_v54 = vpack.c.bf16 %v749_v45, %v747_v37  ;;  %v6829_v43 = vmov 2  }
 0x26d   : > { %823 = vperm.xlu1 %4337, %v311_v42  }
 0x26e   : > { %786 = vmatprep.mubr.bf16.mxu1 %v751_v53  ;;  %828 = vperm.xlu0 %4336, %v312_v35   ;;  %v5048_v53 = vld [vmem:[%s6569_s4 + $0x8] sm:$0xff]  }
 0x26f   : > { %787 = vmatmul.mubr.bf16.vlgmr.msra.gmra.mrb[0].mxu1 %v750_v46  ;;  %v5040_v46 = vld [vmem:[%s6569_s4] sm:$0xff]  }
 0x270   : > { %1046 = vmatpush1.bf16.msra.mxu1 %v4729_v1  ;;  %796 = vmatprep.mubr.bf16.mxu1 %v753_v54 }
 0x271   : > { %1047 = vmatprep.subr.bf16.mxu1 %v4732_v2  ;;  %4338 = vset.pattern.permute.xlu1 %v6828_v38 }
 0x272   : > { %4339 = vset.pattern.permute.xlu0 %v6828_v38  ;;  %970 = vperm.xlu1 %4338, %v309_v62   ;;  %v6831_v38 = vld [vmem:[#allocation6_spill] sm:$0xff] }
 0x273   : > { %974 = vperm.xlu0 %4339, %v310_v48  }
 0x274   : > { %1048 = vmatpush1.bf16.msra.mxu1 %v4736_v3 }
 0x275   : > { %1049 = vmatprep.subr.bf16.mxu1 %v4740_v4 }
 0x276   : > { %978 = vperm.xlu1 %4338, %v311_v42  }
 0x277   : > { %797 = vmatmul.mubr.bf16.gmra.mrb[4].mxu1 %v752_v51  ;;  %4340 = vset.pattern.permute.xlu0 %v6829_v43  ;;  %v6830_v51 = vmov 0  }
 0x278   : > { %1050 = vmatpush1.bf16.msra.mxu1 %v4745_v5  ;;  %1077 = vmatprep.mubr.bf16.mxu1 %v1042_v49 }
 0x279   : > { %1051 = vmatprep.subr.bf16.mxu1 %v4749_v6  ;;  %994 = vperm.xlu0 %4340, %v309_v62  }
 0x27a   : > { %982 = vperm.xlu1 %4338, %v312_v35  }
 0x27c   : > { %1052 = vmatpush1.bf16.msra.mxu1 %v4753_v7 }
 0x27d   : > { %1053 = vmatprep.subr.bf16.mxu1 %v4757_v8  ;;  %1006 = vperm.xlu0 %4340, %v312_v35  }
 0x27e   : > { %4341 = vset.pattern.permute.xlu1 %v6829_v43  ;;  %v6832_v43 = vld [vmem:[#allocation7_spill] sm:$0xff] }
 0x27f   : > { %998 = vperm.xlu1 %4341, %v310_v48  }
 0x280   : > { %1054 = vmatpush1.bf16.msra.mxu1 %v4761_v9 }
 0x281   : > { %1055 = vmatprep.subr.bf16.mxu1 %v4765_v10 }
 0x283   : > { %1002 = vperm.xlu1 %4341, %v311_v42  }
 0x284   : > { %1056 = vmatpush1.bf16.msra.mxu1 %v4774_v11 }
 0x285   : > { %1057 = vmatprep.subr.bf16.mxu1 %v4778_v12 }
 0x288   : > { %1058 = vmatpush1.bf16.msra.mxu1 %v4781_v13 }
 0x289   : > { %1059 = vmatprep.subr.bf16.mxu1 %v4791_v16 }
 0x28c   : > { %1060 = vmatpush1.bf16.msra.mxu1 %v4795_v17 }
 0x28d   : > { %1061 = vmatprep.subr.bf16.mxu1 %v4799_v18 }
 0x290   : > { %1062 = vmatpush1.bf16.msra.mxu1 %v4803_v19 }
 0x291   : > { %1063 = vmatprep.subr.bf16.mxu1 %v4807_v20 }
 0x294   : > { %1064 = vmatpush1.bf16.msra.mxu1 %v4811_v21 }
 0x295   : > { %1065 = vmatprep.subr.bf16.mxu1 %v4815_v22 }
 0x298   : > { %1066 = vmatpush1.bf16.msra.mxu1 %v4819_v23 }
 0x299   : > { %1067 = vmatprep.subr.bf16.mxu1 %v4823_v24 }
 0x29c   : > { %1068 = vmatpush1.bf16.msra.mxu1 %v4827_v25 }
 0x29d   : > { %1069 = vmatprep.subr.bf16.mxu1 %v4831_v26 }
 0x2a0   : > { %1070 = vmatpush1.bf16.msra.mxu1 %v4835_v27 }
 0x2a1   : > { %1071 = vmatprep.subr.bf16.mxu1 %v4839_v28 }
 0x2a4   : > { %1072 = vmatpush1.bf16.msra.mxu1 %v4843_v29 }
 0x2a5   : > { %1073 = vmatprep.subr.bf16.mxu1 %v4847_v30 }
 0x2a8   : > { %1074 = vmatpush1.bf16.msra.mxu1 %v4851_v31 }
 0x2a9   : > { %1075 = vmatprep.subr.bf16.mxu1 %v4855_v32 }
 0x2ac   : > { %1076 = vmatpush1.bf16.msra.mxu1 %v4859_v33 }
 0x2ad   : > { %1465 = vmatprep.subr.bf16.mxu1 %v4727_v0 }
 0x2af   : > { %1078 = vmatmul.mubr.bf16.vlgmr.msra.gmra.mrb[8].mxu1 %v4240_v50 }
 0x2b0   : > { %1466 = vmatpush1.bf16.msra.mxu1 %v4729_v1 }
 0x2b1   : > { %1467 = vmatprep.subr.bf16.mxu1 %v4732_v2 }
 0x2b4   : > { %1468 = vmatpush1.bf16.msra.mxu1 %v4736_v3 }
 0x2b5   : > { %1469 = vmatprep.subr.bf16.mxu1 %v4740_v4 }
 0x2b8   : > { %1470 = vmatpush1.bf16.msra.mxu1 %v4745_v5 }
 0x2b9   : > { %1471 = vmatprep.subr.bf16.mxu1 %v4749_v6 }
 0x2bc   : > { %1472 = vmatpush1.bf16.msra.mxu1 %v4753_v7 }
 0x2bd   : > { %1473 = vmatprep.subr.bf16.mxu1 %v4757_v8 }
 0x2c0   : > { %1474 = vmatpush1.bf16.msra.mxu1 %v4761_v9 }
 0x2c1   : > { %1475 = vmatprep.subr.bf16.mxu1 %v4765_v10 }
 0x2c4   : > { %1476 = vmatpush1.bf16.msra.mxu1 %v4774_v11 }
 0x2c5   : > { %1477 = vmatprep.subr.bf16.mxu1 %v4778_v12 }
 0x2c8   : > { %1478 = vmatpush1.bf16.msra.mxu1 %v4781_v13 }
 0x2c9   : > { %1479 = vmatprep.subr.bf16.mxu1 %v4791_v16 }
 0x2cc   : > { %1480 = vmatpush1.bf16.msra.mxu1 %v4795_v17 }
 0x2cd   : > { %1481 = vmatprep.subr.bf16.mxu1 %v4799_v18 }
 0x2d0   : > { %1482 = vmatpush1.bf16.msra.mxu1 %v4803_v19 }
 0x2d1   : > { %1483 = vmatprep.subr.bf16.mxu1 %v4807_v20 }
 0x2d4   : > { %1484 = vmatpush1.bf16.msra.mxu1 %v4811_v21 }
 0x2d5   : > { %1485 = vmatprep.subr.bf16.mxu1 %v4815_v22 }
 0x2d8   : > { %1486 = vmatpush1.bf16.msra.mxu1 %v4819_v23 }
 0x2d9   : > { %1487 = vmatprep.subr.bf16.mxu1 %v4823_v24 }
 0x2dc   : > { %1488 = vmatpush1.bf16.msra.mxu1 %v4827_v25 }
 0x2dd   : > { %1489 = vmatprep.subr.bf16.mxu1 %v4831_v26 }
 0x2e0   : > { %1490 = vmatpush1.bf16.msra.mxu1 %v4835_v27 }
 0x2e1   : > { %1491 = vmatprep.subr.bf16.mxu1 %v4839_v28 }
 0x2e4   : > { %1492 = vmatpush1.bf16.msra.mxu1 %v4843_v29 }
 0x2e5   : > { %1493 = vmatprep.subr.bf16.mxu1 %v4847_v30 }
 0x2e8   : > { %1494 = vmatpush1.bf16.msra.mxu1 %v4851_v31 }
 0x2e9   : > { %1495 = vmatprep.subr.bf16.mxu1 %v4855_v32 }
 0x2ec   : > { %1496 = vmatpush1.bf16.msra.mxu1 %v4859_v33 }
 0x342   : > { %v788_v57 = vpop.f32.mrb[0].mxu1 }
 0x343   : > { %v790_v63 = vpop.f32.mrb[1].mxu1 }
 0x344   : > { %v792_v55 = vpop.f32.mrb[2].mxu1 }
 0x345   : > { %v807_v56 = vpack.c.bf16 %v792_v55, %v788_v57  ;;  %v794_v14 = vpop.f32.mrb[3].mxu1 }
 0x346   : > { %v808_v52 = vpack.c.bf16 %v794_v14, %v790_v63 }
 0x348   : > { %848 = vmatprep.subr.bf16.mxu0 %v808_v52 }
 0x349   : > { %849 = vmatpush1.bf16.msra.mxu0 %v807_v56 }
 0x34a   : > { %v798_v58 = vpop.f32.mrb[4].mxu1 }
 0x34b   : > { %v800_v60 = vpop.f32.mrb[5].mxu1 }
 0x34c   : > { %v802_v36 = vpop.f32.mrb[6].mxu1 }
 0x34d   : > { %v809_v61 = vpack.c.bf16 %v802_v36, %v798_v58  ;;  %v804_v37 = vpop.f32.mrb[7].mxu1 }
 0x34e   : > { %v810_v45 = vpack.c.bf16 %v804_v37, %v800_v60 }
 0x350   : > { %850 = vmatprep.subr.bf16.mxu0 %v810_v45 }
 0x351   : > { %851 = vmatpush1.bf16.msra.mxu0 %v809_v61 }
 0x354   : > { %4238 = vmatmul.mubr.msk.bf16.vlgmr.msra.gmra.mrb[12].mxu0 %vm841_vm2, %v5040_v46 }
 0x355   : > { %890 = vmatprep.mubr.bf16.mxu0 %v6830_v51 }
 0x35c   : > { %4239 = vmatmul.mubr.msk.bf16.gmra.mrb[16].mxu0 %vm841_vm2, %v5048_v53 }
 0x35d   : > { %1126 = vmatprep.mubr.bf16.mxu0 %v6830_v51 }
 0x382   : > { %v1079_v54 = vpop.f32.mrb[8].mxu1 }
 0x383   : > { %v1086_v50 = vpack.c.bf16 %v1079_v54, %v1079_v54  ;;  %v1081_v49 = vpop.f32.mrb[9].mxu1 }
 0x384   : > { %v1087_v48 = vpack.c.bf16 %v1081_v49, %v1081_v49  ;;  %v1083_v62 = vpop.f32.mrb[10].mxu1 }
 0x385   : > { %v1089_v42 = vsel %vm565_vm0, %v1086_v50, 0  ;;  %v1084_v35 = vpop.f32.mrb[11].mxu1 }
 0x386   : > { %4241 = vmatprep.subr.msk.bf16.mxu0 %vm565_vm0, %v1087_v48 }
 0x387   : > { %1095 = vmatpush1.bf16.msra.mxu0 %v1089_v42 }
 0x388   : > { %1243 = vmatprep.subr.bf16.mxu0 %v4727_v0  ;;  %v5092_v0 = vpop.permute.xlu0 %813 }
 0x389   : > { %6833 = vst [vmem:[#allocation6_spill] sm:$0xff] %v5092_v0 }
 0x38a   : > { %4242 = vmatmul.mubr.msk.bf16.vlgmr.msra.gmra.mrb[20].mxu0 %vm558_vm1, %v6831_v38 }
 0x38b   : > { %1136 = vmatprep.mubr.bf16.mxu0 %v6830_v51  ;;  %1244 = vmatpush1.bf16.msra.mxu0 %v4729_v1  ;;  %v5094_v1 = vpop.permute.xlu1 %818 }
 0x38c   : > { %1245 = vmatprep.subr.bf16.mxu0 %v4732_v2  ;;  %6834 = vst [vmem:[#allocation7_spill] sm:$0xff] %v5094_v1 }
 0x38f   : > { %1246 = vmatpush1.bf16.msra.mxu0 %v4736_v3 }
 0x390   : > { %1247 = vmatprep.subr.bf16.mxu0 %v4740_v4 }
 0x392   : > { %4243 = vmatmul.mubr.msk.bf16.gmra.mrb[24].mxu0 %vm558_vm1, %v6832_v43 }
 0x393   : > { %1248 = vmatpush1.bf16.msra.mxu0 %v4745_v5 }
 0x394   : > { %1249 = vmatprep.subr.bf16.mxu0 %v4749_v6 }
 0x397   : > { %1250 = vmatpush1.bf16.msra.mxu0 %v4753_v7 }
 0x398   : > { %1251 = vmatprep.subr.bf16.mxu0 %v4757_v8 }
 0x39b   : > { %1252 = vmatpush1.bf16.msra.mxu0 %v4761_v9 }
 0x39c   : > { %1253 = vmatprep.subr.bf16.mxu0 %v4765_v10 }
 0x39f   : > { %1254 = vmatpush1.bf16.msra.mxu0 %v4774_v11 }
 0x3a0   : > { %1255 = vmatprep.subr.bf16.mxu0 %v4778_v12  ;;  %v5100_v12 = vpop.permute.xlu1 %823 }
 0x3a1   : > { %6835 = vst [vmem:[#allocation20_spill] sm:$0xff] %v5100_v12 }
 0x3a3   : > { %1256 = vmatpush1.bf16.msra.mxu0 %v4781_v13 }
 0x3a4   : > { %1257 = vmatprep.subr.bf16.mxu0 %v4791_v16  ;;  %v5102_v16 = vpop.permute.xlu0 %828 }
 0x3a5   : > { %6836 = vst [vmem:[#allocation21_spill] sm:$0xff] %v5102_v16 }
 0x3a7   : > { %1258 = vmatpush1.bf16.msra.mxu0 %v4795_v17 }
 0x3a8   : > { %1259 = vmatprep.subr.bf16.mxu0 %v4799_v18 }
 0x3ab   : > { %1260 = vmatpush1.bf16.msra.mxu0 %v4803_v19 }
 0x3ac   : > { %1261 = vmatprep.subr.bf16.mxu0 %v4807_v20 }
 0x3af   : > { %1262 = vmatpush1.bf16.msra.mxu0 %v4811_v21 }
 0x3b0   : > { %1263 = vmatprep.subr.bf16.mxu0 %v4815_v22 }
 0x3b3   : > { %1264 = vmatpush1.bf16.msra.mxu0 %v4819_v23 }
 0x3b4   : > { %1265 = vmatprep.subr.bf16.mxu0 %v4823_v24 }
 0x3b7   : > { %1266 = vmatpush1.bf16.msra.mxu0 %v4827_v25 }
 0x3b8   : > { %1267 = vmatprep.subr.bf16.mxu0 %v4831_v26 }
 0x3bb   : > { %1268 = vmatpush1.bf16.msra.mxu0 %v4835_v27 }
 0x3bc   : > { %1269 = vmatprep.subr.bf16.mxu0 %v4839_v28 }
 0x3bf   : > { %1270 = vmatpush1.bf16.msra.mxu0 %v4843_v29  ;;  %v4246_v29 = vld.sshfl [vmem:[%s4771_s8 + $0x8] sm:$0x33 pattern:$0x76325410] }
 0x3c0   : > { %1271 = vmatprep.subr.bf16.mxu0 %v4847_v30 }
 0x3c3   : > { %1272 = vmatpush1.bf16.msra.mxu0 %v4851_v31  ;;  %v1462_v31 = vcombine.high %v4246_v29, %v4246_v29 }
 0x3c4   : > { %1273 = vmatprep.subr.bf16.mxu0 %v4855_v32 }
 0x3c5   : > { %1497 = vmatprep.mubr.bf16.mxu1 %v1462_v31 }
 0x3c6   : > { %1498 = vmatmul.mubr.bf16.vlgmr.msra.gmra.mrb[12].mxu1 %v4246_v29 }
 0x3c7   : > { %1274 = vmatpush1.bf16.msra.mxu0 %v4859_v33  ;;  %1752 = vmatprep.mubr.bf16.mxu1 %v6830_v51 }
 0x427   : > { %v882_v2 = vpop.f32.mrb[12].mxu0 }
 0x428   : > { %v884_v3 = vpop.f32.mrb[13].mxu0  ;;  %v883_v4 = vadd.f32 %v882_v2, %v5092_v0 }
 0x429   : > { %v886_v5 = vpop.f32.mrb[14].mxu0  ;;  %v885_v6 = vadd.f32 %v884_v3, %v5092_v0 }
 0x42a   : > { %v887_v7 = vadd.f32 %v886_v5, %v5094_v1  ;;  %v888_v8 = vpop.f32.mrb[15].mxu0 }
 0x42b   : > { %v889_v9 = vadd.f32 %v888_v8, %v5094_v1 }
 0x42c   : > { %v901_v10 = vadd.f32 %v887_v7, %v883_v4 }
 0x42d   : > { %v910_v11 = vadd.f32 %v889_v9, %v885_v6 }
 0x42f   : > { %v892_v13 = vpop.f32.mrb[16].mxu0 }
 0x430   : > { %v893_v17 = vadd.f32 %v892_v13, %v5100_v12  ;;  %v894_v18 = vpop.f32.mrb[17].mxu0 }
 0x431   : > { %v895_v19 = vadd.f32 %v894_v18, %v5100_v12  ;;  %v896_v20 = vpop.f32.mrb[18].mxu0 }
 0x432   : > { %v902_v21 = vadd.f32 %v901_v10, %v893_v17  ;;  %v897_v22 = vadd.f32 %v896_v20, %v5102_v16  ;;  %v898_v23 = vpop.f32.mrb[19].mxu0 }
 0x433   : > { %v911_v24 = vadd.f32 %v910_v11, %v895_v19  ;;  %v899_v25 = vadd.f32 %v898_v23, %v5102_v16  ;;  %v5142_v23 = vpop.permute.xlu1 %970 }
 0x434   : > { %v903_v26 = vadd.f32 %v902_v21, %v897_v22  ;;  %6837 = vst [vmem:[#allocation22_spill] sm:$0xff] %v5142_v23 }
 0x435   : > { %v912_v27 = vadd.f32 %v911_v24, %v899_v25 }
 0x436   : > { %v904_v28 = vrot.slane %v903_v26, 4 }
 0x437   : > { %v913_v30 = vrot.slane %v912_v27, 4 }
 0x438   : > { %v905_v32 = vadd.f32 %v904_v28, %v903_v26 }
 0x439   : > { %v914_v33 = vadd.f32 %v913_v30, %v912_v27  ;;  %v5144_v30 = vpop.permute.xlu1 %978 }
 0x43a   : > { %v906_v57 = vrot.slane %v905_v32, 2  ;;  %6838 = vst [vmem:[#allocation23_spill] sm:$0xff] %v5144_v30 }
 0x43b   : > { %v915_v63 = vrot.slane %v914_v33, 2 }
 0x43c   : > { %v907_v55 = vadd.f32 %v906_v57, %v905_v32 }
 0x43d   : > { %v916_v56 = vadd.f32 %v915_v63, %v914_v33 }
 0x43e   : > { %v908_v14 = vrot.slane %v907_v55, 1 }
 0x43f   : > { %v917_v52 = vrot.slane %v916_v56, 1 }
 0x440   : > { %v909_v58 = vadd.f32 %v908_v14, %v907_v55  ;;  %v5146_v14 = vpop.permute.xlu1 %982 }
 0x441   : > { %v918_v60 = vadd.f32 %v917_v52, %v916_v56  ;;  %6839 = vst [vmem:[#allocation24_spill] sm:$0xff] %v5146_v14  ;;  %v6840_v52 = vld [vmem:[#allocation8_spill] sm:$0xff] }
 0x442   : > { %v919_v36 = vmul.f32 0.03125, %v909_v58 }
 0x443   : > { %v920_v61 = vmul.f32 0.03125, %v918_v60  ;;  %v6841_v60 = vld [vmem:[#allocation9_spill] sm:$0xff] }
 0x444   : > { %v5110_v37 = vsub.f32 %v883_v4, %v919_v36  ;;  %v5112_v45 = vsub.f32 %v887_v7, %v919_v36  ;;  %v5114_v54 = vsub.f32 %v893_v17, %v919_v36  ;;  %v5116_v50 = vsub.f32 %v897_v22, %v919_v36 }
 0x445   : > { %v5118_v49 = vsub.f32 %v885_v6, %v920_v61  ;;  %v5120_v48 = vsub.f32 %v889_v9, %v920_v61  ;;  %v5122_v62 = vsub.f32 %v895_v19, %v920_v61  ;;  %v5124_v42 = vsub.f32 %v899_v25, %v920_v61 }
 0x446   : > { %v929_v35 = vmul.f32 %v5110_v37, %v5110_v37  ;;  %v931_v38 = vmul.f32 %v5112_v45, %v5112_v45  ;;  %v933_v43 = vmul.f32 %v5114_v54, %v5114_v54  ;;  %v935_v5 = vmul.f32 %v5116_v50, %v5116_v50 }
 0x447   : > { %v930_v2 = vmul.f32 %v5118_v49, %v5118_v49  ;;  %v932_v3 = vmul.f32 %v5120_v48, %v5120_v48  ;;  %v934_v4 = vmul.f32 %v5122_v62, %v5122_v62  ;;  %v936_v7 = vmul.f32 %v5124_v42, %v5124_v42 }
 0x448   : > { %v937_v6 = vadd.f32 %v931_v38, %v929_v35 }
 0x449   : > { %v946_v8 = vadd.f32 %v932_v3, %v930_v2  ;;  %v5164_v3 = vpop.permute.xlu0 %974 }
 0x44a   : > { %v938_v9 = vadd.f32 %v937_v6, %v933_v43  ;;  %6842 = vst [vmem:[#allocation25_spill] sm:$0xff] %v5164_v3  ;;  %v6844_v6 = vld [vmem:[#allocation10_spill] sm:$0xff] }
 0x44b   : > { %v947_v10 = vadd.f32 %v946_v8, %v934_v4 }
 0x44c   : > { %v939_v11 = vadd.f32 %v938_v9, %v935_v5  ;;  %v5166_v5 = vpop.permute.xlu1 %998 }
 0x44d   : > { %v948_v13 = vadd.f32 %v947_v10, %v936_v7  ;;  %6843 = vst [vmem:[#allocation26_spill] sm:$0xff] %v5166_v5 }
 0x44e   : > { %v940_v17 = vrot.slane %v939_v11, 4 }
 0x44f   : > { %v949_v18 = vrot.slane %v948_v13, 4 }
 0x450   : > { %v941_v19 = vadd.f32 %v940_v17, %v939_v11  ;;  %v6845_v17 = vld [vmem:[#allocation11_spill] sm:$0xff] }
 0x451   : > { %v950_v20 = vadd.f32 %v949_v18, %v948_v13 }
 0x452   : > { %v942_v21 = vrot.slane %v941_v19, 2 }
 0x453   : > { %v951_v22 = vrot.slane %v950_v20, 2 }
 0x454   : > { %v943_v24 = vadd.f32 %v942_v21, %v941_v19 }
 0x455   : > { %v952_v25 = vadd.f32 %v951_v22, %v950_v20 }
 0x456   : > { %v944_v26 = vrot.slane %v943_v24, 1 }
 0x457   : > { %v953_v27 = vrot.slane %v952_v25, 1 }
 0x458   : > { %v945_v28 = vadd.f32 %v944_v26, %v943_v24 }
 0x459   : > { %v954_v29 = vadd.f32 %v953_v27, %v952_v25 }
 0x45a   : > { %v955_v31 = vmul.f32 0.03125, %v945_v28 }
 0x45b   : > { %v956_v32 = vmul.f32 0.03125, %v954_v29 }
 0x45c   : > { %v957_v33 = vadd.f32 1e-05, %v955_v31  ;;  %v5187_v31 = vpop.permute.xlu0 %994 }
 0x45d   : > { %v958_v57 = vadd.f32 1e-05, %v956_v32  ;;  %v1128_v63 = vpop.f32.mrb[20].mxu0  ;;  %6846 = vst [vmem:[#allocation27_spill] sm:$0xff] %v5187_v31 }
 0x45e   : > { %4398 = vrsqrt.f32 %v957_v33  ;;  %v1130_v55 = vpop.f32.mrb[21].mxu0  ;;  %v5149_v58 = vadd.f32 %v1128_v63, %v6840_v52 }
 0x45f   : > { %4400 = vrsqrt.f32 %v958_v57  ;;  %v1132_v56 = vpop.f32.mrb[22].mxu0  ;;  %v5155_v35 = vadd.f32 %v1130_v55, %v6840_v52 }
 0x460   : > { %v5152_v36 = vadd.f32 %v1132_v56, %v6841_v60  ;;  %v1134_v61 = vpop.f32.mrb[23].mxu0 }
 0x461   : > { %v5158_v38 = vadd.f32 %v1134_v61, %v6841_v60 }
 0x462   : > { %v1147_v43 = vadd.f32 %v5152_v36, %v5149_v58 }
 0x463   : > { %v1156_v2 = vadd.f32 %v5158_v38, %v5155_v35 }
 0x465   : > { %v1138_v4 = vpop.f32.mrb[24].mxu0 }
 0x466   : > { %v5169_v7 = vadd.f32 %v1138_v4, %v6844_v6  ;;  %v1140_v8 = vpop.f32.mrb[25].mxu0 }
 0x467   : > { %v5172_v9 = vadd.f32 %v1140_v8, %v6844_v6  ;;  %v1142_v10 = vpop.f32.mrb[26].mxu0 }
 0x468   : > { %v4399_v11 = vpop.eup %4398  ;;  %v1148_v13 = vadd.f32 %v1147_v43, %v5169_v7  ;;  %v5176_v18 = vadd.f32 %v1142_v10, %v6845_v17  ;;  %v1144_v19 = vpop.f32.mrb[27].mxu0 }
 0x469   : > { %v4401_v20 = vpop.eup %4400  ;;  %v961_v21 = vmul.f32 %v4399_v11, %v5110_v37  ;;  %v963_v22 = vmul.f32 %v4399_v11, %v5112_v45  ;;  %v965_v24 = vmul.f32 %v4399_v11, %v5114_v54  ;;  %v967_v25 = vmul.f32 %v4399_v11, %v5116_v50  ;;  %v5193_v50 = vpop.permute.xlu1 %1002 }
 0x46a   : > { %v962_v26 = vmul.f32 %v4401_v20, %v5118_v49  ;;  %v964_v27 = vmul.f32 %v4401_v20, %v5120_v48  ;;  %v966_v28 = vmul.f32 %v4401_v20, %v5122_v62  ;;  %v968_v29 = vmul.f32 %v4401_v20, %v5124_v42  ;;  %6847 = vst [vmem:[#allocation28_spill] sm:$0xff] %v5193_v50 }
 0x46b   : > { %v985_v32 = vmul.f32 %v5142_v23, %v961_v21  ;;  %v987_v37 = vmul.f32 %v5164_v3, %v963_v22  ;;  %v1157_v45 = vadd.f32 %v1156_v2, %v5172_v9  ;;  %v1149_v54 = vadd.f32 %v1148_v13, %v5176_v18  ;;  %v5206_v22 = vpop.permute.xlu0 %1006 }
 0x46c   : > { %v986_v49 = vmul.f32 %v5142_v23, %v962_v26  ;;  %v988_v48 = vmul.f32 %v5164_v3, %v964_v27  ;;  %v1145_v62 = vadd.f32 %v1144_v19, %v6845_v17  ;;  %v989_v42 = vmul.f32 %v5144_v30, %v965_v24  ;;  %6848 = vst [vmem:[#allocation29_spill] sm:$0xff] %v5206_v22 }
 0x46d   : > { %v1150_v33 = vrot.slane %v1149_v54, 4  ;;  %v1011_v57 = vadd.f32 %v5166_v5, %v987_v37  ;;  %v1009_v63 = vadd.f32 %v5187_v31, %v985_v32  ;;  %v990_v55 = vmul.f32 %v5144_v30, %v966_v28 }
 0x46e   : > { %v1158_v56 = vadd.f32 %v1157_v45, %v1145_v62  ;;  %v1012_v61 = vadd.f32 %v5166_v5, %v988_v48  ;;  %v1010_v43 = vadd.f32 %v5187_v31, %v986_v49  ;;  %v1013_v2 = vadd.f32 %v5193_v50, %v989_v42 }
 0x46f   : > { %v1151_v4 = vadd.f32 %v1150_v33, %v1149_v54  ;;  %v1019_v8 = vmax.f32 %v1011_v57, 0.0  ;;  %v1017_v10 = vmax.f32 %v1009_v63, 0.0  ;;  %v1014_v11 = vadd.f32 %v5193_v50, %v990_v55 }
 0x470   : > { %v1159_v13 = vrot.slane %v1158_v56, 4  ;;  %v1020_v19 = vmax.f32 %v1012_v61, 0.0  ;;  %v1018_v20 = vmax.f32 %v1010_v43, 0.0  ;;  %v1021_v21 = vmax.f32 %v1013_v2, 0.0 }
 0x471   : > { %v1152_v24 = vrot.slane %v1151_v4, 2  ;;  %1027 = vst [vmem:[%s5208_s17 + $0x80] sm:$0xff] %v1019_v8  ;;  %1025 = vst [vmem:[%s5208_s17] sm:$0xff] %v1017_v10  ;;  %v1022_v26 = vmax.f32 %v1014_v11, 0.0  ;;  %v991_v27 = vmul.f32 %v5146_v14, %v967_v25  ;;  %v992_v28 = vmul.f32 %v5146_v14, %v968_v29 }
 0x472   : > { %v1160_v32 = vadd.f32 %v1159_v13, %v1158_v56  ;;  %1028 = vst [vmem:[%s5208_s17 + $0x88] sm:$0xff] %v1020_v19  ;;  %1026 = vst [vmem:[%s5208_s17 + $0x8] sm:$0xff] %v1018_v20 }
 0x473   : > { %1029 = vst [vmem:[%s5208_s17 + $0x100] sm:$0xff] %v1021_v21  ;;  %v1153_v37 = vadd.f32 %v1152_v24, %v1151_v4  ;;  %1030 = vst [vmem:[%s5208_s17 + $0x108] sm:$0xff] %v1022_v26  ;;  %v1015_v45 = vadd.f32 %v5206_v22, %v991_v27  ;;  %v1016_v54 = vadd.f32 %v5206_v22, %v992_v28 }
 0x474   : > { %v1161_v49 = vrot.slane %v1160_v32, 2 }
 0x475   : > { %v1154_v48 = vrot.slane %v1153_v37, 1  ;;  %v1023_v42 = vmax.f32 %v1015_v45, 0.0  ;;  %v1024_v33 = vmax.f32 %v1016_v54, 0.0 }
 0x476   : > { %v1162_v57 = vadd.f32 %v1161_v49, %v1160_v32 }
 0x477   : > { %v1155_v25 = vadd.f32 %v1154_v48, %v1153_v37  ;;  %1031 = vst [vmem:[%s5208_s17 + $0x180] sm:$0xff] %v1023_v42  ;;  %1032 = vst [vmem:[%s5208_s17 + $0x188] sm:$0xff] %v1024_v33 }
 0x478   : > { %v1163_v29 = vrot.slane %v1162_v57, 1 }
 0x479   : > { %v1165_v63 = vmul.f32 0.03125, %v1155_v25 }
 0x47a   : > { %v1164_v55 = vadd.f32 %v1163_v29, %v1162_v57 }
 0x47b   : > { %v1167_v56 = vsub.f32 %v5149_v58, %v1165_v63  ;;  %v1169_v61 = vsub.f32 %v5152_v36, %v1165_v63  ;;  %v1171_v43 = vsub.f32 %v5169_v7, %v1165_v63  ;;  %v1173_v2 = vsub.f32 %v5176_v18, %v1165_v63 }
 0x47c   : > { %v1166_v4 = vmul.f32 0.03125, %v1164_v55 }
 0x47d   : > { %v1175_v8 = vmul.f32 %v1167_v56, %v1167_v56  ;;  %v1177_v10 = vmul.f32 %v1169_v61, %v1169_v61  ;;  %v1179_v21 = vmul.f32 %v1171_v43, %v1171_v43  ;;  %v1181_v27 = vmul.f32 %v1173_v2, %v1173_v2 }
 0x47e   : > { %v1168_v11 = vsub.f32 %v5155_v35, %v1166_v4  ;;  %v1170_v13 = vsub.f32 %v5158_v38, %v1166_v4  ;;  %v1172_v19 = vsub.f32 %v5172_v9, %v1166_v4  ;;  %v1174_v20 = vsub.f32 %v1145_v62, %v1166_v4 }
 0x47f   : > { %v1183_v24 = vadd.f32 %v1177_v10, %v1175_v8 }
 0x480   : > { %v1176_v26 = vmul.f32 %v1168_v11, %v1168_v11  ;;  %v1178_v58 = vmul.f32 %v1170_v13, %v1170_v13  ;;  %v1180_v28 = vmul.f32 %v1172_v19, %v1172_v19  ;;  %v1182_v18 = vmul.f32 %v1174_v20, %v1174_v20 }
 0x481   : > { %v1184_v36 = vadd.f32 %v1183_v24, %v1179_v21 }
 0x482   : > { %v1192_v7 = vadd.f32 %v1178_v58, %v1176_v26 }
 0x483   : > { %v1185_v32 = vadd.f32 %v1184_v36, %v1181_v27 }
 0x484   : > { %v1193_v37 = vadd.f32 %v1192_v7, %v1180_v28 }
 0x485   : > { %v1186_v45 = vrot.slane %v1185_v32, 4 }
 0x486   : > { %v1194_v54 = vadd.f32 %v1193_v37, %v1182_v18 }
 0x487   : > { %v1187_v49 = vadd.f32 %v1186_v45, %v1185_v32 }
 0x488   : > { %v1195_v35 = vrot.slane %v1194_v54, 4 }
 0x489   : > { %v1188_v48 = vrot.slane %v1187_v49, 2 }
 0x48a   : > { %v1196_v38 = vadd.f32 %v1195_v35, %v1194_v54 }
 0x48b   : > { %v1189_v42 = vadd.f32 %v1188_v48, %v1187_v49 }
 0x48c   : > { %v1197_v9 = vrot.slane %v1196_v38, 2 }
 0x48d   : > { %v1190_v62 = vrot.slane %v1189_v42, 1 }
 0x48e   : > { %v1198_v33 = vadd.f32 %v1197_v9, %v1196_v38 }
 0x48f   : > { %v1191_v57 = vadd.f32 %v1190_v62, %v1189_v42 }
 0x490   : > { %v1199_v25 = vrot.slane %v1198_v33, 1 }
 0x491   : > { %v1201_v29 = vmul.f32 0.03125, %v1191_v57 }
 0x492   : > { %v1200_v63 = vadd.f32 %v1199_v25, %v1198_v33 }
 0x493   : > { %v1203_v55 = vadd.f32 1e-05, %v1201_v29 }
 0x494   : > { %v1202_v4 = vmul.f32 0.03125, %v1200_v63 }
 0x495   : > { %4402 = vrsqrt.f32 %v1203_v55 }
 0x496   : > { %v1204_v8 = vadd.f32 1e-05, %v1202_v4 }
 0x498   : > { %4404 = vrsqrt.f32 %v1204_v8 }
 0x49f   : > { %v4403_v10 = vpop.eup %4402 }
 0x4a0   : > { %v1207_v21 = vmul.f32 %v4403_v10, %v1167_v56  ;;  %v1209_v24 = vmul.f32 %v4403_v10, %v1169_v61  ;;  %v1213_v26 = vmul.f32 %v4403_v10, %v1173_v2  ;;  %v1211_v58 = vmul.f32 %v4403_v10, %v1171_v43 }
 0x4a2   : > { %v4405_v27 = vpop.eup %4404  ;;  %v1221_v36 = vmul.f32 %v1213_v26, %v4933_v40  ;;  %v1215_v28 = vmul.f32 %v1207_v21, %v4931_v39  ;;  %v1217_v7 = vmul.f32 %v1209_v24, %v4925_v41  ;;  %v1219_v32 = vmul.f32 %v1211_v58, %v4929_v34  ;;  %v1499_v21 = vpop.f32.mrb[12].mxu1 }
 0x4a3   : > { %v1214_v18 = vmul.f32 %v4405_v27, %v1174_v20  ;;  %v1208_v37 = vmul.f32 %v4405_v27, %v1168_v11  ;;  %v1210_v45 = vmul.f32 %v4405_v27, %v1170_v13  ;;  %v1212_v54 = vmul.f32 %v4405_v27, %v1172_v19  ;;  %v1501_v24 = vpop.f32.mrb[13].mxu1 }
 0x4a4   : > { %v1223_v49 = vadd.f32 %v1215_v28, %v4927_v47  ;;  %v1225_v56 = vadd.f32 %v1217_v7, %v4935_v59  ;;  %v1227_v61 = vadd.f32 %v1219_v32, %v4939_v15  ;;  %v1229_v43 = vadd.f32 %v1221_v36, %v4937_v44  ;;  %v1503_v26 = vpop.f32.mrb[14].mxu1 }
 0x4a5   : > { %v1222_v2 = vmul.f32 %v1214_v18, %v4933_v40  ;;  %v1216_v35 = vmul.f32 %v1208_v37, %v4931_v39  ;;  %v1218_v48 = vmul.f32 %v1210_v45, %v4925_v41  ;;  %v1220_v38 = vmul.f32 %v1212_v54, %v4929_v34  ;;  %v1504_v58 = vpop.f32.mrb[15].mxu1  ;;  %v5329_v26 = vld [vmem:[#allocation2 + $0xa4] ss:$8 sps:$4 sm:$0xff]  }
 0x4a6   : > { %v1231_v20 = vmax.f32 %v1223_v49, 0.0  ;;  %v1233_v11 = vmax.f32 %v1225_v56, 0.0  ;;  %v1235_v13 = vmax.f32 %v1227_v61, 0.0  ;;  %v1237_v19 = vmax.f32 %v1229_v43, 0.0  ;;  %6869 = vst [vmem:[#allocation50_spill] sm:$0xff] %v5329_v26 }
 0x4a7   : > { %v1224_v42 = vadd.f32 %v1216_v35, %v4927_v47  ;;  %v1226_v9 = vadd.f32 %v1218_v48, %v4935_v59  ;;  %v1228_v62 = vadd.f32 %v1220_v38, %v4939_v15  ;;  %v1230_v33 = vadd.f32 %v1222_v2, %v4937_v44  ;;  %v5251_v48 = vld [vmem:[#allocation2 + $0x4] ss:$8 sps:$4 sm:$0xff]   ;;  %v5332_v58 = vld [vmem:[#allocation2 + $0xa0] ss:$8 sps:$4 sm:$0xff]  }
 0x4a8   : > { %v1239_v57 = vpack.c.bf16 %v1233_v11, %v1231_v20  ;;  %v1241_v25 = vpack.c.bf16 %v1237_v19, %v1235_v13  ;;  %v1506_v43 = vpack.c.bf16 %v1499_v21, %v1499_v21  ;;  %v1507_v2 = vpack.c.bf16 %v1501_v24, %v1501_v24  ;;  %v5260_v38 = vld [vmem:[%s6567_s2] sm:$0xff]   ;;  %v5268_v20 = vld [vmem:[#allocation2 + $0x14] ss:$8 sps:$4 sm:$0xff]   ;;  %v5280_v13 = vld [vmem:[%s6567_s2 + $0x8] sm:$0xff]   ;;  %6870 = vst [vmem:[#allocation51_spill] sm:$0xff] %v5332_v58 }
 0x4a9   : > { %v1232_v29 = vmax.f32 %v1224_v42, 0.0  ;;  %v1234_v63 = vmax.f32 %v1226_v9, 0.0  ;;  %v1236_v55 = vmax.f32 %v1228_v62, 0.0  ;;  %v1238_v4 = vmax.f32 %v1230_v33, 0.0  ;;  %6849 = vst [vmem:[#allocation30_spill] sm:$0xff] %v5260_v38  ;;  %6850 = vst [vmem:[#allocation31_spill] sm:$0xff] %v5268_v20 }
 0x4aa   : > { %v1509_v35 = vsel %vm565_vm0, %v1506_v43, 0  ;;  %v5274_v11 = vld [vmem:[#allocation2 + $0x24] ss:$8 sps:$4 sm:$0xff]   ;;  %6853 = vst [vmem:[#allocation34_spill] sm:$0xff] %v5280_v13  ;;  %v5284_v19 = vld [vmem:[#allocation2 + $0x20] ss:$8 sps:$4 sm:$0xff]  }
 0x4ab   : > { %v1240_v8 = vpack.c.bf16 %v1234_v63, %v1232_v29  ;;  %v1242_v10 = vpack.c.bf16 %v1238_v4, %v1236_v55  ;;  %6852 = vst [vmem:[#allocation33_spill] sm:$0xff] %v5274_v11  ;;  %6854 = vst [vmem:[#allocation35_spill] sm:$0xff] %v5284_v19  ;;  %v5287_v42 = vld [vmem:[#allocation2 + $0x34] ss:$8 sps:$4 sm:$0xff]   ;;  %v5290_v9 = vld [vmem:[#allocation2 + $0x30] ss:$8 sps:$4 sm:$0xff]  }
 0x4ac   : > { %6855 = vst [vmem:[#allocation36_spill] sm:$0xff] %v5287_v42  ;;  %6856 = vst [vmem:[#allocation37_spill] sm:$0xff] %v5290_v9  ;;  %v5293_v62 = vld [vmem:[#allocation2 + $0x44] ss:$8 sps:$4 sm:$0xff]   ;;  %v5296_v33 = vld [vmem:[#allocation2 + $0x40] ss:$8 sps:$4 sm:$0xff]  }
 0x4ad   : > { %1275 = vmatprep.mubr.bf16.mxu0 %v1240_v8  ;;  %6857 = vst [vmem:[#allocation38_spill] sm:$0xff] %v5293_v62  ;;  %6858 = vst [vmem:[#allocation39_spill] sm:$0xff] %v5296_v33  ;;  %v5305_v29 = vld [vmem:[#allocation2 + $0x64] ss:$8 sps:$4 sm:$0xff]   ;;  %v5308_v63 = vld [vmem:[#allocation2 + $0x60] ss:$8 sps:$4 sm:$0xff]  }
 0x4ae   : > { %1276 = vmatmul.mubr.bf16.vlgmr.msra.gmra.mrb[28].mxu0 %v1239_v57  ;;  %v5299_v57 = vld [vmem:[#allocation2 + $0x54] ss:$8 sps:$4 sm:$0xff]   ;;  %6861 = vst [vmem:[#allocation42_spill] sm:$0xff] %v5305_v29  ;;  %6862 = vst [vmem:[#allocation43_spill] sm:$0xff] %v5308_v63  ;;  %v5314_v4 = vld [vmem:[#allocation2 + $0x70] ss:$8 sps:$4 sm:$0xff]  }
 0x4af   : > { %1285 = vmatprep.mubr.bf16.mxu0 %v1242_v10  ;;  %6859 = vst [vmem:[#allocation40_spill] sm:$0xff] %v5299_v57  ;;  %v5311_v55 = vld [vmem:[#allocation2 + $0x74] ss:$8 sps:$4 sm:$0xff]   ;;  %6864 = vst [vmem:[#allocation45_spill] sm:$0xff] %v5314_v4  ;;  %v5317_v8 = vld [vmem:[#allocation2 + $0x84] ss:$8 sps:$4 sm:$0xff]  }
 0x4b0   : > { %6863 = vst [vmem:[#allocation44_spill] sm:$0xff] %v5311_v55  ;;  %6865 = vst [vmem:[#allocation46_spill] sm:$0xff] %v5317_v8  ;;  %v5320_v10 = vld [vmem:[#allocation2 + $0x80] ss:$8 sps:$4 sm:$0xff]   ;;  %v5323_v21 = vld [vmem:[#allocation2 + $0x94] ss:$8 sps:$4 sm:$0xff]  }
 0x4b1   : > { %6866 = vst [vmem:[#allocation47_spill] sm:$0xff] %v5320_v10  ;;  %6867 = vst [vmem:[#allocation48_spill] sm:$0xff] %v5323_v21  ;;  %v5326_v24 = vld [vmem:[#allocation2 + $0x90] ss:$8 sps:$4 sm:$0xff]  }
 0x4b2   : > { %6868 = vst [vmem:[#allocation49_spill] sm:$0xff] %v5326_v24 }
 0x4b6   : > { %1286 = vmatmul.mubr.bf16.gmra.mrb[32].mxu0 %v1241_v25  ;;  %v5302_v25 = vld [vmem:[#allocation2 + $0x50] ss:$8 sps:$4 sm:$0xff]  }
 0x4b7   : > { %1332 = vmatprep.mubr.bf16.mxu0 %v6830_v51  ;;  %6860 = vst [vmem:[#allocation41_spill] sm:$0xff] %v5302_v25 }
 0x581   : > { %v1277_v27 = vpop.f32.mrb[28].mxu0 }
 0x582   : > { %v1279_v36 = vpop.f32.mrb[29].mxu0 }
 0x583   : > { %v1281_v28 = vpop.f32.mrb[30].mxu0 }
 0x584   : > { %v1296_v7 = vpack.c.bf16 %v1281_v28, %v1277_v27  ;;  %v1283_v32 = vpop.f32.mrb[31].mxu0  ;;  %v5335_v27 = vld [vmem:[#allocation2 + $0xb4] ss:$8 sps:$4 sm:$0xff]   ;;  %v5341_v28 = vld [vmem:[#allocation2 + $0xc4] ss:$8 sps:$4 sm:$0xff]  }
 0x585   : > { %v1297_v18 = vpack.c.bf16 %v1283_v32, %v1279_v36  ;;  %6871 = vst [vmem:[#allocation52_spill] sm:$0xff] %v5335_v27  ;;  %v5338_v36 = vld [vmem:[#allocation2 + $0xb0] ss:$8 sps:$4 sm:$0xff]   ;;  %6873 = vst [vmem:[#allocation54_spill] sm:$0xff] %v5341_v28  ;;  %v5347_v32 = vld [vmem:[#allocation2 + $0xd4] ss:$8 sps:$4 sm:$0xff]  }
 0x586   : > { %6872 = vst [vmem:[#allocation53_spill] sm:$0xff] %v5338_v36  ;;  %6875 = vst [vmem:[#allocation56_spill] sm:$0xff] %v5347_v32 }
 0x587   : > { %1300 = vmatprep.subr.bf16.mxu0 %v1297_v18  ;;  %v5350_v18 = vld [vmem:[#allocation2 + $0xd0] ss:$8 sps:$4 sm:$0xff]  }
 0x588   : > { %1301 = vmatpush1.bf16.msra.mxu0 %v1296_v7  ;;  %v5344_v7 = vld [vmem:[#allocation2 + $0xc0] ss:$8 sps:$4 sm:$0xff]   ;;  %6876 = vst [vmem:[#allocation57_spill] sm:$0xff] %v5350_v18 }
 0x589   : > { %v1287_v37 = vpop.f32.mrb[32].mxu0  ;;  %6874 = vst [vmem:[#allocation55_spill] sm:$0xff] %v5344_v7 }
 0x58a   : > { %v1289_v45 = vpop.f32.mrb[33].mxu0 }
 0x58b   : > { %v1291_v54 = vpop.f32.mrb[34].mxu0 }
 0x58c   : > { %v1298_v49 = vpack.c.bf16 %v1291_v54, %v1287_v37  ;;  %v1293_v56 = vpop.f32.mrb[35].mxu0  ;;  %v5353_v37 = vld [vmem:[#allocation2 + $0xe4] ss:$8 sps:$4 sm:$0xff]   ;;  %v5359_v54 = vld [vmem:[#allocation2 + $0xf4] ss:$8 sps:$4 sm:$0xff]  }
 0x58d   : > { %v1299_v61 = vpack.c.bf16 %v1293_v56, %v1289_v45  ;;  %6877 = vst [vmem:[#allocation58_spill] sm:$0xff] %v5353_v37  ;;  %v5356_v45 = vld [vmem:[#allocation2 + $0xe0] ss:$8 sps:$4 sm:$0xff]   ;;  %6879 = vst [vmem:[#allocation60_spill] sm:$0xff] %v5359_v54 }
 0x58e   : > { %6878 = vst [vmem:[#allocation59_spill] sm:$0xff] %v5356_v45 }
 0x58f   : > { %1302 = vmatprep.subr.bf16.mxu0 %v1299_v61 }
 0x590   : > { %1303 = vmatpush1.bf16.msra.mxu0 %v1298_v49  ;;  %v5362_v49 = vld [vmem:[#allocation2 + $0xf0] ss:$8 sps:$4 sm:$0xff]  }
 0x591   : > { %4247 = vmatprep.subr.msk.bf16.mxu0 %vm565_vm0, %v1507_v2  ;;  %6880 = vst [vmem:[#allocation61_spill] sm:$0xff] %v5362_v49 }
 0x593   : > { %4244 = vmatmul.mubr.msk.bf16.vlgmr.msra.gmra.mrb[36].mxu0 %vm841_vm2, %v5040_v46  ;;  %v5265_v46 = vld [vmem:[#allocation2] ss:$8 sps:$4 sm:$0xff]  }
 0x594   : > { %1342 = vmatprep.mubr.bf16.mxu0 %v6830_v51  ;;  %1515 = vmatpush1.bf16.msra.mxu0 %v1509_v35 }
 0x595   : > { %1663 = vmatprep.subr.bf16.mxu0 %v5251_v48 }
 0x59b   : > { %4245 = vmatmul.mubr.msk.bf16.gmra.mrb[40].mxu0 %vm841_vm2, %v5048_v53  ;;  %v5271_v53 = vld [vmem:[#allocation2 + $0x10] ss:$8 sps:$4 sm:$0xff]  }
 0x59c   : > { %1546 = vmatprep.mubr.bf16.mxu0 %v6830_v51  ;;  %6851 = vst [vmem:[#allocation32_spill] sm:$0xff] %v5271_v53 }
 0x5a3   : > { %4248 = vmatmul.mubr.msk.bf16.vlgmr.msra.gmra.mrb[44].mxu0 %vm558_vm1, %v5260_v38 }
 0x5a4   : > { %1556 = vmatprep.mubr.bf16.mxu0 %v6830_v51  ;;  %1664 = vmatpush1.bf16.msra.mxu0 %v5265_v46 }
 0x5a5   : > { %1665 = vmatprep.subr.bf16.mxu0 %v5268_v20 }
 0x5a8   : > { %1666 = vmatpush1.bf16.msra.mxu0 %v5271_v53 }
 0x5a9   : > { %1667 = vmatprep.subr.bf16.mxu0 %v5274_v11 }
 0x5ab   : > { %4249 = vmatmul.mubr.msk.bf16.gmra.mrb[48].mxu0 %vm558_vm1, %v5280_v13 }
 0x5ac   : > { %1668 = vmatpush1.bf16.msra.mxu0 %v5284_v19 }
 0x5ad   : > { %1669 = vmatprep.subr.bf16.mxu0 %v5287_v42 }
 0x5b0   : > { %1670 = vmatpush1.bf16.msra.mxu0 %v5290_v9 }
 0x5b1   : > { %1671 = vmatprep.subr.bf16.mxu0 %v5293_v62 }
 0x5b4   : > { %1672 = vmatpush1.bf16.msra.mxu0 %v5296_v33 }
 0x5b5   : > { %1673 = vmatprep.subr.bf16.mxu0 %v5299_v57 }
 0x5b8   : > { %1674 = vmatpush1.bf16.msra.mxu0 %v5302_v25 }
 0x5b9   : > { %1675 = vmatprep.subr.bf16.mxu0 %v5305_v29 }
 0x5bc   : > { %1676 = vmatpush1.bf16.msra.mxu0 %v5308_v63 }
 0x5bd   : > { %1677 = vmatprep.subr.bf16.mxu0 %v5311_v55 }
 0x5c0   : > { %1678 = vmatpush1.bf16.msra.mxu0 %v5314_v4 }
 0x5c1   : > { %1679 = vmatprep.subr.bf16.mxu0 %v5317_v8 }
 0x5c4   : > { %1680 = vmatpush1.bf16.msra.mxu0 %v5320_v10 }
 0x5c5   : > { %1681 = vmatprep.subr.bf16.mxu0 %v5323_v21 }
 0x5c8   : > { %1682 = vmatpush1.bf16.msra.mxu0 %v5326_v24 }
 0x5c9   : > { %1683 = vmatprep.subr.bf16.mxu0 %v5329_v26 }
 0x5cc   : > { %1684 = vmatpush1.bf16.msra.mxu0 %v5332_v58 }
 0x5cd   : > { %1685 = vmatprep.subr.bf16.mxu0 %v5335_v27 }
 0x5d0   : > { %1686 = vmatpush1.bf16.msra.mxu0 %v5338_v36 }
 0x5d1   : > { %1687 = vmatprep.subr.bf16.mxu0 %v5341_v28 }
 0x5d4   : > { %1688 = vmatpush1.bf16.msra.mxu0 %v5344_v7 }
 0x5d5   : > { %1689 = vmatprep.subr.bf16.mxu0 %v5347_v32 }
 0x5d8   : > { %1690 = vmatpush1.bf16.msra.mxu0 %v5350_v18 }
 0x5d9   : > { %1691 = vmatprep.subr.bf16.mxu0 %v5353_v37 }
 0x5dc   : > { %1692 = vmatpush1.bf16.msra.mxu0 %v5356_v45 }
 0x5dd   : > { %1693 = vmatprep.subr.bf16.mxu0 %v5359_v54 }
 0x5e0   : > { %1694 = vmatpush1.bf16.msra.mxu0 %v5362_v49 }
 0x666   : > { %v1334_v56 = vpop.f32.mrb[36].mxu0 }
 0x667   : > { %v1336_v61 = vpop.f32.mrb[37].mxu0  ;;  %v1335_v2 = vadd.f32 %v1334_v56, %v5092_v0 }
 0x668   : > { %v1338_v43 = vpop.f32.mrb[38].mxu0  ;;  %v1337_v38 = vadd.f32 %v1336_v61, %v5092_v0 }
 0x669   : > { %v1339_v35 = vadd.f32 %v1338_v43, %v5094_v1  ;;  %v1340_v13 = vpop.f32.mrb[39].mxu0 }
 0x66a   : > { %v1341_v45 = vadd.f32 %v1340_v13, %v5094_v1 }
 0x66b   : > { %v1353_v37 = vadd.f32 %v1339_v35, %v1335_v2 }
 0x66c   : > { %v1362_v18 = vadd.f32 %v1341_v45, %v1337_v38 }
 0x66e   : > { %v1344_v32 = vpop.f32.mrb[40].mxu0 }
 0x66f   : > { %v1345_v54 = vadd.f32 %v1344_v32, %v5100_v12  ;;  %v1346_v7 = vpop.f32.mrb[41].mxu0 }
 0x670   : > { %v1347_v49 = vadd.f32 %v1346_v7, %v5100_v12  ;;  %v1348_v28 = vpop.f32.mrb[42].mxu0 }
 0x671   : > { %v1354_v36 = vadd.f32 %v1353_v37, %v1345_v54  ;;  %v1349_v27 = vadd.f32 %v1348_v28, %v5102_v16  ;;  %v1350_v56 = vpop.f32.mrb[43].mxu0 }
 0x672   : > { %v1363_v58 = vadd.f32 %v1362_v18, %v1347_v49  ;;  %v1351_v43 = vadd.f32 %v1350_v56, %v5102_v16 }
 0x673   : > { %v1355_v26 = vadd.f32 %v1354_v36, %v1349_v27 }
 0x674   : > { %v1364_v61 = vadd.f32 %v1363_v58, %v1351_v43 }
 0x675   : > { %v1356_v0 = vrot.slane %v1355_v26, 4 }
 0x676   : > { %v1365_v13 = vrot.slane %v1364_v61, 4  ;;  %v1548_v1 = vpop.f32.mrb[44].mxu0 }
 0x677   : > { %v1357_v24 = vadd.f32 %v1356_v0, %v1355_v26  ;;  %v1550_v21 = vpop.f32.mrb[45].mxu0  ;;  %v5374_v7 = vadd.f32 %v1548_v1, %v6840_v52 }
 0x678   : > { %v1366_v10 = vadd.f32 %v1365_v13, %v1364_v61  ;;  %v1552_v32 = vpop.f32.mrb[46].mxu0  ;;  %v5380_v56 = vadd.f32 %v1550_v21, %v6840_v52 }
 0x679   : > { %v1358_v8 = vrot.slane %v1357_v24, 2  ;;  %v5377_v37 = vadd.f32 %v1552_v32, %v6841_v60  ;;  %v1554_v28 = vpop.f32.mrb[47].mxu0 }
 0x67a   : > { %v1367_v18 = vrot.slane %v1366_v10, 2  ;;  %v5383_v58 = vadd.f32 %v1554_v28, %v6841_v60 }
 0x67b   : > { %v1359_v36 = vadd.f32 %v1358_v8, %v1357_v24  ;;  %v1567_v0 = vadd.f32 %v5377_v37, %v5374_v7 }
 0x67c   : > { %v1368_v26 = vadd.f32 %v1367_v18, %v1366_v10  ;;  %v1576_v1 = vadd.f32 %v5383_v58, %v5380_v56 }
 0x67d   : > { %v1360_v61 = vrot.slane %v1359_v36, 1 }
 0x67e   : > { %v1369_v13 = vrot.slane %v1368_v26, 1  ;;  %v1558_v32 = vpop.f32.mrb[48].mxu0 }
 0x67f   : > { %v1361_v16 = vadd.f32 %v1360_v61, %v1359_v36  ;;  %v5390_v12 = vadd.f32 %v1558_v32, %v6844_v6  ;;  %v1560_v21 = vpop.f32.mrb[49].mxu0 }
 0x680   : > { %v1370_v52 = vadd.f32 %v1369_v13, %v1368_v26  ;;  %v5393_v28 = vadd.f32 %v1560_v21, %v6844_v6  ;;  %v1562_v8 = vpop.f32.mrb[50].mxu0 }
 0x681   : > { %v1371_v24 = vmul.f32 0.03125, %v1361_v16  ;;  %v1568_v60 = vadd.f32 %v1567_v0, %v5390_v12  ;;  %v1564_v10 = vpop.f32.mrb[51].mxu0  ;;  %v1563_v55 = vadd.f32 %v1562_v8, %v6845_v17 }
 0x682   : > { %v1372_v18 = vmul.f32 0.03125, %v1370_v52  ;;  %v1577_v4 = vadd.f32 %v1576_v1, %v5393_v28  ;;  %v5399_v36 = vadd.f32 %v1564_v10, %v6845_v17 }
 0x683   : > { %v5401_v61 = vsub.f32 %v1335_v2, %v1371_v24  ;;  %v5403_v32 = vsub.f32 %v1339_v35, %v1371_v24  ;;  %v5405_v26 = vsub.f32 %v1345_v54, %v1371_v24  ;;  %v5407_v13 = vsub.f32 %v1349_v27, %v1371_v24 }
 0x684   : > { %v5409_v16 = vsub.f32 %v1337_v38, %v1372_v18  ;;  %v5411_v0 = vsub.f32 %v1341_v45, %v1372_v18  ;;  %v5413_v52 = vsub.f32 %v1347_v49, %v1372_v18  ;;  %v5415_v1 = vsub.f32 %v1351_v43, %v1372_v18 }
 0x685   : > { %v1381_v21 = vmul.f32 %v5401_v61, %v5401_v61  ;;  %v1383_v2 = vmul.f32 %v5403_v32, %v5403_v32  ;;  %v1385_v38 = vmul.f32 %v5405_v26, %v5405_v26  ;;  %v1569_v49 = vadd.f32 %v1568_v60, %v1563_v55 }
 0x686   : > { %v1382_v54 = vmul.f32 %v5409_v16, %v5409_v16  ;;  %v1384_v27 = vmul.f32 %v5411_v0, %v5411_v0  ;;  %v1578_v35 = vadd.f32 %v1577_v4, %v5399_v36  ;;  %v1386_v43 = vmul.f32 %v5413_v52, %v5413_v52 }
 0x687   : > { %v1389_v45 = vadd.f32 %v1383_v2, %v1381_v21  ;;  %v1387_v24 = vmul.f32 %v5407_v13, %v5407_v13  ;;  %v1570_v18 = vrot.slane %v1569_v49, 4  ;;  %v1388_v6 = vmul.f32 %v5415_v1, %v5415_v1 }
 0x688   : > { %v1398_v8 = vadd.f32 %v1384_v27, %v1382_v54  ;;  %v1579_v17 = vrot.slane %v1578_v35, 4 }
 0x689   : > { %v1390_v10 = vadd.f32 %v1389_v45, %v1385_v38  ;;  %v1571_v25 = vadd.f32 %v1570_v18, %v1569_v49 }
 0x68a   : > { %v1399_v63 = vadd.f32 %v1398_v8, %v1386_v43  ;;  %v1580_v21 = vadd.f32 %v1579_v17, %v1578_v35 }
 0x68b   : > { %v1391_v29 = vadd.f32 %v1390_v10, %v1387_v24  ;;  %v1572_v4 = vrot.slane %v1571_v25, 2 }
 0x68c   : > { %v1400_v60 = vadd.f32 %v1399_v63, %v1388_v6  ;;  %v1581_v57 = vrot.slane %v1580_v21, 2 }
 0x68d   : > { %v1392_v2 = vrot.slane %v1391_v29, 4  ;;  %v1573_v54 = vadd.f32 %v1572_v4, %v1571_v25 }
 0x68e   : > { %v1401_v33 = vrot.slane %v1400_v60, 4  ;;  %v1582_v27 = vadd.f32 %v1581_v57, %v1580_v21 }
 0x68f   : > { %v1393_v62 = vadd.f32 %v1392_v2, %v1391_v29  ;;  %v1574_v38 = vrot.slane %v1573_v54, 1 }
 0x690   : > { %v1402_v9 = vadd.f32 %v1401_v33, %v1400_v60  ;;  %v1583_v45 = vrot.slane %v1582_v27, 1 }
 0x691   : > { %v1394_v42 = vrot.slane %v1393_v62, 2  ;;  %v1575_v53 = vadd.f32 %v1574_v38, %v1573_v54 }
 0x692   : > { %v1403_v19 = vrot.slane %v1402_v9, 2  ;;  %v1584_v20 = vadd.f32 %v1583_v45, %v1582_v27 }
 0x693   : > { %v1395_v11 = vadd.f32 %v1394_v42, %v1393_v62  ;;  %v1585_v49 = vmul.f32 0.03125, %v1575_v53 }
 0x694   : > { %v1404_v43 = vadd.f32 %v1403_v19, %v1402_v9  ;;  %v1586_v17 = vmul.f32 0.03125, %v1584_v20 }
 0x695   : > { %v1396_v8 = vrot.slane %v1395_v11, 1  ;;  %v5435_v35 = vsub.f32 %v5374_v7, %v1585_v49  ;;  %v5438_v25 = vsub.f32 %v5377_v37, %v1585_v49  ;;  %v5441_v33 = vsub.f32 %v5390_v12, %v1585_v49 }
 0x696   : > { %v1405_v6 = vrot.slane %v1404_v43, 1  ;;  %v5443_v29 = vsub.f32 %v1563_v55, %v1585_v49  ;;  %v5446_v42 = vsub.f32 %v5380_v56, %v1586_v17  ;;  %v5449_v53 = vsub.f32 %v5383_v58, %v1586_v17 }
 0x697   : > { %v1397_v63 = vadd.f32 %v1396_v8, %v1395_v11  ;;  %v1595_v11 = vmul.f32 %v5435_v35, %v5435_v35  ;;  %v1597_v19 = vmul.f32 %v5438_v25, %v5438_v25  ;;  %v1599_v12 = vmul.f32 %v5441_v33, %v5441_v33 }
 0x698   : > { %v1406_v57 = vadd.f32 %v1405_v6, %v1404_v43  ;;  %v5458_v62 = vsub.f32 %v5393_v28, %v1586_v17  ;;  %v5461_v55 = vsub.f32 %v5399_v36, %v1586_v17  ;;  %v1596_v56 = vmul.f32 %v5446_v42, %v5446_v42 }
 0x699   : > { %v1407_v20 = vmul.f32 0.03125, %v1397_v63  ;;  %v1603_v37 = vadd.f32 %v1597_v19, %v1595_v11  ;;  %v1598_v58 = vmul.f32 %v5449_v53, %v5449_v53  ;;  %v1601_v10 = vmul.f32 %v5443_v29, %v5443_v29 }
 0x69a   : > { %v1408_v9 = vmul.f32 0.03125, %v1406_v57  ;;  %v1600_v28 = vmul.f32 %v5458_v62, %v5458_v62  ;;  %v1602_v60 = vmul.f32 %v5461_v55, %v5461_v55 }
 0x69b   : > { %v1409_v7 = vadd.f32 1e-05, %v1407_v20  ;;  %v1604_v18 = vadd.f32 %v1603_v37, %v1599_v12  ;;  %v1612_v21 = vadd.f32 %v1598_v58, %v1596_v56 }
 0x69c   : > { %v1410_v24 = vadd.f32 1e-05, %v1408_v9 }
 0x69d   : > { %4406 = vrsqrt.f32 %v1409_v7  ;;  %v1605_v36 = vadd.f32 %v1604_v18, %v1601_v10  ;;  %v1613_v2 = vadd.f32 %v1612_v21, %v1600_v28 }
 0x69e   : > { %4408 = vrsqrt.f32 %v1410_v24 }
 0x69f   : > { %v1606_v4 = vrot.slane %v1605_v36, 4  ;;  %v1614_v54 = vadd.f32 %v1613_v2, %v1602_v60 }
 0x6a1   : > { %v1607_v27 = vadd.f32 %v1606_v4, %v1605_v36  ;;  %v1615_v38 = vrot.slane %v1614_v54, 4 }
 0x6a3   : > { %v1608_v45 = vrot.slane %v1607_v27, 2  ;;  %v1616_v43 = vadd.f32 %v1615_v38, %v1614_v54 }
 0x6a5   : > { %v1609_v49 = vadd.f32 %v1608_v45, %v1607_v27  ;;  %v1617_v17 = vrot.slane %v1616_v43, 2 }
 0x6a7   : > { %v4407_v8 = vpop.eup %4406 }
 0x6a8   : > { %v4409_v6 = vpop.eup %4408  ;;  %v1413_v63 = vmul.f32 %v4407_v8, %v5401_v61  ;;  %v1415_v57 = vmul.f32 %v4407_v8, %v5403_v32  ;;  %v1417_v20 = vmul.f32 %v4407_v8, %v5405_v26  ;;  %v1419_v11 = vmul.f32 %v4407_v8, %v5407_v13 }
 0x6a9   : > { %v1414_v19 = vmul.f32 %v4409_v6, %v5409_v16  ;;  %v1416_v9 = vmul.f32 %v4409_v6, %v5411_v0  ;;  %v1418_v12 = vmul.f32 %v4409_v6, %v5413_v52  ;;  %v1420_v7 = vmul.f32 %v4409_v6, %v5415_v1 }
 0x6aa   : > { %v1421_v37 = vmul.f32 %v1413_v63, %v5142_v23  ;;  %v1423_v56 = vmul.f32 %v1415_v57, %v5164_v3  ;;  %v1425_v61 = vmul.f32 %v1417_v20, %v5144_v30  ;;  %v1427_v32 = vmul.f32 %v1419_v11, %v5146_v14 }
 0x6ab   : > { %v1422_v26 = vmul.f32 %v1414_v19, %v5142_v23  ;;  %v1424_v13 = vmul.f32 %v1416_v9, %v5164_v3  ;;  %v1426_v16 = vmul.f32 %v1418_v12, %v5144_v30  ;;  %v1428_v0 = vmul.f32 %v1420_v7, %v5146_v14 }
 0x6ac   : > { %v1429_v52 = vadd.f32 %v1421_v37, %v5187_v31  ;;  %v1431_v1 = vadd.f32 %v1423_v56, %v5166_v5  ;;  %v1433_v58 = vadd.f32 %v1425_v61, %v5193_v50  ;;  %v1435_v24 = vadd.f32 %v1427_v32, %v5206_v22 }
 0x6ad   : > { %v1430_v10 = vadd.f32 %v1422_v26, %v5187_v31  ;;  %v1432_v18 = vadd.f32 %v1424_v13, %v5166_v5  ;;  %v1434_v28 = vadd.f32 %v1426_v16, %v5193_v50  ;;  %v1436_v21 = vadd.f32 %v1428_v0, %v5206_v22 }
 0x6ae   : > { %v1437_v36 = vmax.f32 %v1429_v52, 0.0  ;;  %v1439_v60 = vmax.f32 %v1431_v1, 0.0  ;;  %v1441_v2 = vmax.f32 %v1433_v58, 0.0  ;;  %v1443_v4 = vmax.f32 %v1435_v24, 0.0 }
 0x6af   : > { %v1438_v54 = vmax.f32 %v1430_v10, 0.0  ;;  %v1440_v27 = vmax.f32 %v1432_v18, 0.0  ;;  %v1442_v38 = vmax.f32 %v1434_v28, 0.0  ;;  %v1444_v45 = vmax.f32 %v1436_v21, 0.0 }
 0x6b0   : > { %1445 = vst [vmem:[%s5208_s17 + $0x10] sm:$0xff] %v1437_v36  ;;  %1447 = vst [vmem:[%s5208_s17 + $0x90] sm:$0xff] %v1439_v60  ;;  %v1610_v8 = vrot.slane %v1609_v49, 1  ;;  %v1618_v6 = vadd.f32 %v1617_v17, %v1616_v43 }
 0x6b1   : > { %1449 = vst [vmem:[%s5208_s17 + $0x110] sm:$0xff] %v1441_v2  ;;  %1451 = vst [vmem:[%s5208_s17 + $0x190] sm:$0xff] %v1443_v4 }
 0x6b2   : > { %1446 = vst [vmem:[%s5208_s17 + $0x18] sm:$0xff] %v1438_v54  ;;  %1448 = vst [vmem:[%s5208_s17 + $0x98] sm:$0xff] %v1440_v27  ;;  %v1611_v63 = vadd.f32 %v1610_v8, %v1609_v49  ;;  %v1619_v57 = vrot.slane %v1618_v6, 1 }
 0x6b3   : > { %1450 = vst [vmem:[%s5208_s17 + $0x118] sm:$0xff] %v1442_v38  ;;  %1452 = vst [vmem:[%s5208_s17 + $0x198] sm:$0xff] %v1444_v45 }
 0x6b4   : > { %v1621_v20 = vmul.f32 0.03125, %v1611_v63  ;;  %v1620_v11 = vadd.f32 %v1619_v57, %v1618_v6 }
 0x6b6   : > { %v1623_v19 = vadd.f32 1e-05, %v1621_v20  ;;  %v1622_v9 = vmul.f32 0.03125, %v1620_v11 }
 0x6b8   : > { %4410 = vrsqrt.f32 %v1623_v19  ;;  %v1624_v12 = vadd.f32 1e-05, %v1622_v9 }
 0x6ba   : > { %4412 = vrsqrt.f32 %v1624_v12 }
 0x6c2   : > { %v4411_v7 = vpop.eup %4410 }
 0x6c3   : > { %v1627_v37 = vmul.f32 %v4411_v7, %v5435_v35  ;;  %v1629_v56 = vmul.f32 %v4411_v7, %v5438_v25  ;;  %v1633_v43 = vmul.f32 %v4411_v7, %v5443_v29  ;;  %v1631_v17 = vmul.f32 %v4411_v7, %v5441_v33 }
 0x6c4   : > { %v4413_v61 = vpop.eup %4412 }
 0x6c5   : > { %v1641_v49 = vmul.f32 %v1633_v43, %v4933_v40  ;;  %v1634_v32 = vmul.f32 %v4413_v61, %v5461_v55  ;;  %v1628_v26 = vmul.f32 %v4413_v61, %v5446_v42  ;;  %v1630_v13 = vmul.f32 %v4413_v61, %v5449_v53 }
 0x6c6   : > { %v1635_v16 = vmul.f32 %v1627_v37, %v4931_v39  ;;  %v1637_v0 = vmul.f32 %v1629_v56, %v4925_v41  ;;  %v1632_v35 = vmul.f32 %v4413_v61, %v5458_v62  ;;  %v1639_v25 = vmul.f32 %v1631_v17, %v4929_v34  ;;  %v5534_v61 = vld [vmem:[%s6569_s4] sm:$0xff]  }
 0x6c7   : > { %v1642_v29 = vmul.f32 %v1634_v32, %v4933_v40  ;;  %v1636_v33 = vmul.f32 %v1628_v26, %v4931_v39  ;;  %v1638_v52 = vmul.f32 %v1630_v13, %v4925_v41  ;;  %v1649_v55 = vadd.f32 %v1641_v49, %v4937_v44  ;;  %6881 = vst [vmem:[#allocation62_spill] sm:$0xff] %v5534_v61  ;;  %v6882_v49 = vld [vmem:[#allocation31_spill] sm:$0xff]  ;;  %v6883_v26 = vld [vmem:[#allocation32_spill] sm:$0xff] }
 0x6c8   : > { %v1643_v42 = vadd.f32 %v1635_v16, %v4927_v47  ;;  %v1645_v53 = vadd.f32 %v1637_v0, %v4935_v59  ;;  %v1640_v1 = vmul.f32 %v1632_v35, %v4929_v34  ;;  %v1647_v58 = vadd.f32 %v1639_v25, %v4939_v15  ;;  %v4252_v32 = vld.sshfl [vmem:[%s4771_s8 + $0xc] sm:$0x33 pattern:$0x76325410]  ;;  %v6884_v16 = vld [vmem:[#allocation33_spill] sm:$0xff]  ;;  %v6887_v25 = vld [vmem:[#allocation36_spill] sm:$0xff] }
 0x6c9   : > { %v1644_v62 = vadd.f32 %v1636_v33, %v4927_v47  ;;  %v1646_v24 = vadd.f32 %v1638_v52, %v4935_v59  ;;  %v1650_v10 = vadd.f32 %v1642_v29, %v4937_v44  ;;  %v1657_v18 = vmax.f32 %v1649_v55, 0.0  ;;  %v5547_v0 = vld [vmem:[%s6569_s4 + $0x8] sm:$0xff]   ;;  %v6888_v29 = vld [vmem:[#allocation37_spill] sm:$0xff]  ;;  %v6889_v33 = vld [vmem:[#allocation38_spill] sm:$0xff] }
 0x6ca   : > { %v1651_v28 = vmax.f32 %v1643_v42, 0.0  ;;  %v1653_v21 = vmax.f32 %v1645_v53, 0.0  ;;  %v1648_v36 = vadd.f32 %v1640_v1, %v4939_v15  ;;  %v1655_v60 = vmax.f32 %v1647_v58, 0.0  ;;  %6885 = vst [vmem:[#allocation31_spill] sm:$0xff] %v5547_v0  ;;  %v6886_v35 = vld [vmem:[#allocation35_spill] sm:$0xff]  ;;  %v6891_v55 = vld [vmem:[#allocation40_spill] sm:$0xff] }
 0x6cb   : > { %v1652_v2 = vmax.f32 %v1644_v62, 0.0  ;;  %v1654_v4 = vmax.f32 %v1646_v24, 0.0  ;;  %v1658_v54 = vmax.f32 %v1650_v10, 0.0  ;;  %v1882_v13 = vcombine.high %v4252_v32, %v4252_v32  ;;  %v6890_v52 = vld [vmem:[#allocation39_spill] sm:$0xff]  ;;  %v6892_v42 = vld [vmem:[#allocation41_spill] sm:$0xff]  ;;  %v6893_v53 = vld [vmem:[#allocation42_spill] sm:$0xff] }
 0x6cc   : > { %v1659_v27 = vpack.c.bf16 %v1653_v21, %v1651_v28  ;;  %v1656_v38 = vmax.f32 %v1648_v36, 0.0  ;;  %v1661_v45 = vpack.c.bf16 %v1657_v18, %v1655_v60  ;;  %v6894_v1 = vld [vmem:[#allocation43_spill] sm:$0xff]  ;;  %v6895_v58 = vld [vmem:[#allocation44_spill] sm:$0xff]  ;;  %v6896_v62 = vld [vmem:[#allocation45_spill] sm:$0xff] }
 0x6cd   : > { %v1660_v8 = vpack.c.bf16 %v1654_v4, %v1652_v2  ;;  %v6897_v24 = vld [vmem:[#allocation46_spill] sm:$0xff]  ;;  %v6898_v10 = vld [vmem:[#allocation47_spill] sm:$0xff]  ;;  %v6899_v18 = vld [vmem:[#allocation48_spill] sm:$0xff] }
 0x6ce   : > { %v1662_v6 = vpack.c.bf16 %v1658_v54, %v1656_v38  ;;  %v6900_v28 = vld [vmem:[#allocation49_spill] sm:$0xff]  ;;  %v6901_v21 = vld [vmem:[#allocation50_spill] sm:$0xff]  ;;  %v6902_v36 = vld [vmem:[#allocation51_spill] sm:$0xff] }
 0x6cf   : > { %1695 = vmatprep.mubr.bf16.mxu0 %v1660_v8  ;;  %v6903_v60 = vld [vmem:[#allocation52_spill] sm:$0xff]  ;;  %v6904_v2 = vld [vmem:[#allocation53_spill] sm:$0xff]  ;;  %v6905_v4 = vld [vmem:[#allocation54_spill] sm:$0xff] }
 0x6d0   : > { %1696 = vmatmul.mubr.bf16.vlgmr.msra.gmra.mrb[52].mxu0 %v1659_v27  ;;  %v6906_v54 = vld [vmem:[#allocation55_spill] sm:$0xff]  ;;  %v6907_v27 = vld [vmem:[#allocation56_spill] sm:$0xff]  ;;  %v6908_v38 = vld [vmem:[#allocation57_spill] sm:$0xff] }
 0x6d1   : > { %1705 = vmatprep.mubr.bf16.mxu0 %v1662_v6  ;;  %v6910_v8 = vld [vmem:[#allocation59_spill] sm:$0xff]  ;;  %v6911_v6 = vld [vmem:[#allocation60_spill] sm:$0xff] }
 0x6d8   : > { %1706 = vmatmul.mubr.bf16.gmra.mrb[56].mxu0 %v1661_v45  ;;  %v6909_v45 = vld [vmem:[#allocation58_spill] sm:$0xff] }
 0x6d9   : > { %1966 = vmatprep.mubr.bf16.mxu0 %v6830_v51 }
 0x7a3   : > { %v1697_v63 = vpop.f32.mrb[52].mxu0 }
 0x7a4   : > { %v1699_v57 = vpop.f32.mrb[53].mxu0 }
 0x7a5   : > { %v1701_v20 = vpop.f32.mrb[54].mxu0 }
 0x7a6   : > { %v1716_v11 = vpack.c.bf16 %v1701_v20, %v1697_v63  ;;  %v1703_v19 = vpop.f32.mrb[55].mxu0  ;;  %v6912_v63 = vld [vmem:[#allocation61_spill] sm:$0xff]  ;;  %v6913_v20 = vld [vmem:[#allocation6_spill] sm:$0xff] }
 0x7a7   : > { %v1717_v9 = vpack.c.bf16 %v1703_v19, %v1699_v57 }
 0x7a9   : > { %1720 = vmatprep.subr.bf16.mxu1 %v1717_v9 }
 0x7aa   : > { %1721 = vmatpush1.bf16.msra.mxu1 %v1716_v11 }
 0x7ab   : > { %v1707_v12 = vpop.f32.mrb[56].mxu0 }
 0x7ac   : > { %v1709_v7 = vpop.f32.mrb[57].mxu0 }
 0x7ad   : > { %v1711_v37 = vpop.f32.mrb[58].mxu0 }
 0x7ae   : > { %v1718_v56 = vpack.c.bf16 %v1711_v37, %v1707_v12  ;;  %v1713_v43 = vpop.f32.mrb[59].mxu0  ;;  %v6914_v12 = vld [vmem:[#allocation7_spill] sm:$0xff] }
 0x7af   : > { %v1719_v17 = vpack.c.bf16 %v1713_v43, %v1709_v7 }
 0x7b1   : > { %1722 = vmatprep.subr.bf16.mxu1 %v1719_v17 }
 0x7b2   : > { %1723 = vmatpush1.bf16.msra.mxu1 %v1718_v56 }
 0x7b3   : > { %1885 = vmatprep.subr.bf16.mxu1 %v5251_v48 }
 0x7b5   : > { %4250 = vmatmul.mubr.msk.bf16.vlgmr.msra.gmra.mrb[16].mxu1 %vm841_vm2, %v5534_v61  ;;  %v6915_v61 = vld [vmem:[#allocation20_spill] sm:$0xff] }
 0x7b6   : > { %1886 = vmatpush1.bf16.msra.mxu1 %v5265_v46  ;;  %1762 = vmatprep.mubr.bf16.mxu1 %v6830_v51 }
 0x7b7   : > { %1887 = vmatprep.subr.bf16.mxu1 %v6882_v49 }
 0x7ba   : > { %1888 = vmatpush1.bf16.msra.mxu1 %v6883_v26 }
 0x7bb   : > { %1889 = vmatprep.subr.bf16.mxu1 %v6884_v16 }
 0x7bd   : > { %4251 = vmatmul.mubr.msk.bf16.gmra.mrb[20].mxu1 %vm841_vm2, %v5547_v0 }
 0x7be   : > { %1890 = vmatpush1.bf16.msra.mxu1 %v6886_v35  ;;  %1917 = vmatprep.mubr.bf16.mxu1 %v1882_v13 }
 0x7bf   : > { %1891 = vmatprep.subr.bf16.mxu1 %v6887_v25 }
 0x7c2   : > { %1892 = vmatpush1.bf16.msra.mxu1 %v6888_v29 }
 0x7c3   : > { %1893 = vmatprep.subr.bf16.mxu1 %v6889_v33 }
 0x7c6   : > { %1894 = vmatpush1.bf16.msra.mxu1 %v6890_v52 }
 0x7c7   : > { %1895 = vmatprep.subr.bf16.mxu1 %v6891_v55 }
 0x7ca   : > { %1896 = vmatpush1.bf16.msra.mxu1 %v6892_v42 }
 0x7cb   : > { %1897 = vmatprep.subr.bf16.mxu1 %v6893_v53 }
 0x7ce   : > { %1898 = vmatpush1.bf16.msra.mxu1 %v6894_v1 }
 0x7cf   : > { %1899 = vmatprep.subr.bf16.mxu1 %v6895_v58 }
 0x7d2   : > { %1900 = vmatpush1.bf16.msra.mxu1 %v6896_v62 }
 0x7d3   : > { %1901 = vmatprep.subr.bf16.mxu1 %v6897_v24 }
 0x7d6   : > { %1902 = vmatpush1.bf16.msra.mxu1 %v6898_v10 }
 0x7d7   : > { %1903 = vmatprep.subr.bf16.mxu1 %v6899_v18 }
 0x7da   : > { %1904 = vmatpush1.bf16.msra.mxu1 %v6900_v28 }
 0x7db   : > { %1905 = vmatprep.subr.bf16.mxu1 %v6901_v21 }
 0x7de   : > { %1906 = vmatpush1.bf16.msra.mxu1 %v6902_v36 }
 0x7df   : > { %1907 = vmatprep.subr.bf16.mxu1 %v6903_v60 }
 0x7e2   : > { %1908 = vmatpush1.bf16.msra.mxu1 %v6904_v2 }
 0x7e3   : > { %1909 = vmatprep.subr.bf16.mxu1 %v6905_v4 }
 0x7e6   : > { %1910 = vmatpush1.bf16.msra.mxu1 %v6906_v54 }
 0x7e7   : > { %1911 = vmatprep.subr.bf16.mxu1 %v6907_v27 }
 0x7ea   : > { %1912 = vmatpush1.bf16.msra.mxu1 %v6908_v38 }
 0x7eb   : > { %1913 = vmatprep.subr.bf16.mxu1 %v6909_v45 }
 0x7ee   : > { %1914 = vmatpush1.bf16.msra.mxu1 %v6910_v8 }
 0x7ef   : > { %1915 = vmatprep.subr.bf16.mxu1 %v6911_v6 }
 0x7f2   : > { %1916 = vmatpush1.bf16.msra.mxu1 %v6912_v63 }
 0x7f5   : > { %1918 = vmatmul.mubr.bf16.vlgmr.msra.gmra.mrb[24].mxu1 %v4252_v32 }
 0x7f6   : > { %2172 = vmatprep.mubr.bf16.mxu1 %v6830_v51 }
 0x888   : > { %v1754_v57 = vpop.f32.mrb[16].mxu1 }
 0x889   : > { %v1755_v11 = vadd.f32 %v1754_v57, %v6913_v20  ;;  %v1756_v19 = vpop.f32.mrb[17].mxu1  ;;  %v6916_v57 = vld [vmem:[#allocation21_spill] sm:$0xff] }
 0x88a   : > { %v1758_v9 = vpop.f32.mrb[18].mxu1  ;;  %v1757_v56 = vadd.f32 %v1756_v19, %v6913_v20 }
 0x88b   : > { %v1759_v7 = vadd.f32 %v1758_v9, %v6914_v12  ;;  %v1760_v37 = vpop.f32.mrb[19].mxu1 }
 0x88c   : > { %v1761_v43 = vadd.f32 %v1760_v37, %v6914_v12 }
 0x88d   : > { %v1773_v17 = vadd.f32 %v1759_v7, %v1755_v11 }
 0x88e   : > { %v1782_v13 = vadd.f32 %v1761_v43, %v1757_v56 }
 0x890   : > { %v1764_v0 = vpop.f32.mrb[20].mxu1 }
 0x891   : > { %v1765_v44 = vadd.f32 %v1764_v0, %v6915_v61  ;;  %v1766_v32 = vpop.f32.mrb[21].mxu1 }
 0x892   : > { %v1767_v15 = vadd.f32 %v1766_v32, %v6915_v61  ;;  %v1768_v59 = vpop.f32.mrb[22].mxu1 }
 0x893   : > { %v1774_v47 = vadd.f32 %v1773_v17, %v1765_v44  ;;  %v1769_v34 = vadd.f32 %v1768_v59, %v6916_v57  ;;  %v1770_v41 = vpop.f32.mrb[23].mxu1 }
 0x894   : > { %v1783_v39 = vadd.f32 %v1782_v13, %v1767_v15  ;;  %v1771_v9 = vadd.f32 %v1770_v41, %v6916_v57 }
 0x895   : > { %v1775_v40 = vadd.f32 %v1774_v47, %v1769_v34 }
 0x896   : > { %v1784_v19 = vadd.f32 %v1783_v39, %v1771_v9 }
 0x897   : > { %v1776_v20 = vrot.slane %v1775_v40, 4 }
 0x898   : > { %v1785_v37 = vrot.slane %v1784_v19, 4 }
 0x899   : > { %v1777_v12 = vadd.f32 %v1776_v20, %v1775_v40 }
 0x89a   : > { %v1786_v63 = vadd.f32 %v1785_v37, %v1784_v19 }
 0x89b   : > { %v1778_v6 = vrot.slane %v1777_v12, 2 }
 0x89c   : > { %v1787_v8 = vrot.slane %v1786_v63, 2 }
 0x89d   : > { %v1779_v0 = vadd.f32 %v1778_v6, %v1777_v12 }
 0x89e   : > { %v1788_v45 = vadd.f32 %v1787_v8, %v1786_v63 }
 0x89f   : > { %v1780_v38 = vrot.slane %v1779_v0, 1 }
 0x8a0   : > { %v1789_v32 = vrot.slane %v1788_v45, 1 }
 0x8a1   : > { %v1781_v61 = vadd.f32 %v1780_v38, %v1779_v0 }
 0x8a2   : > { %v1790_v17 = vadd.f32 %v1789_v32, %v1788_v45 }
 0x8a3   : > { %v1791_v27 = vmul.f32 0.03125, %v1781_v61 }
 0x8a4   : > { %v1792_v59 = vmul.f32 0.03125, %v1790_v17 }
 0x8a5   : > { %v1793_v54 = vsub.f32 %v1755_v11, %v1791_v27  ;;  %v1795_v13 = vsub.f32 %v1759_v7, %v1791_v27  ;;  %v1797_v4 = vsub.f32 %v1765_v44, %v1791_v27  ;;  %v1799_v41 = vsub.f32 %v1769_v34, %v1791_v27 }
 0x8a6   : > { %v1794_v47 = vsub.f32 %v1757_v56, %v1792_v59  ;;  %v1796_v39 = vsub.f32 %v1761_v43, %v1792_v59  ;;  %v1798_v57 = vsub.f32 %v1767_v15, %v1792_v59  ;;  %v1800_v2 = vsub.f32 %v1771_v9, %v1792_v59 }
 0x8a7   : > { %v1801_v40 = vmul.f32 %v1793_v54, %v1793_v54  ;;  %v1803_v20 = vmul.f32 %v1795_v13, %v1795_v13  ;;  %v1805_v6 = vmul.f32 %v1797_v4, %v1797_v4  ;;  %v1807_v38 = vmul.f32 %v1799_v41, %v1799_v41 }
 0x8a8   : > { %v1802_v19 = vmul.f32 %v1794_v47, %v1794_v47  ;;  %v1804_v37 = vmul.f32 %v1796_v39, %v1796_v39  ;;  %v1806_v63 = vmul.f32 %v1798_v57, %v1798_v57  ;;  %v1808_v61 = vmul.f32 %v1800_v2, %v1800_v2 }
 0x8a9   : > { %v1809_v8 = vadd.f32 %v1803_v20, %v1801_v40 }
 0x8aa   : > { %v1818_v12 = vadd.f32 %v1804_v37, %v1802_v19 }
 0x8ab   : > { %v1810_v45 = vadd.f32 %v1809_v8, %v1805_v6 }
 0x8ac   : > { %v1819_v0 = vadd.f32 %v1818_v12, %v1806_v63 }
 0x8ad   : > { %v1811_v11 = vadd.f32 %v1810_v45, %v1807_v38 }
 0x8ae   : > { %v1820_v7 = vadd.f32 %v1819_v0, %v1808_v61 }
 0x8af   : > { %v1812_v44 = vrot.slane %v1811_v11, 4 }
 0x8b0   : > { %v1821_v34 = vrot.slane %v1820_v7, 4 }
 0x8b1   : > { %v1813_v27 = vadd.f32 %v1812_v44, %v1811_v11 }
 0x8b2   : > { %v1822_v56 = vadd.f32 %v1821_v34, %v1820_v7 }
 0x8b3   : > { %v1814_v15 = vrot.slane %v1813_v27, 2 }
 0x8b4   : > { %v1823_v43 = vrot.slane %v1822_v56, 2 }
 0x8b5   : > { %v1815_v9 = vadd.f32 %v1814_v15, %v1813_v27 }
 0x8b6   : > { %v1824_v32 = vadd.f32 %v1823_v43, %v1822_v56 }
 0x8b7   : > { %v1816_v17 = vrot.slane %v1815_v9, 1 }
 0x8b8   : > { %v1825_v59 = vrot.slane %v1824_v32, 1 }
 0x8b9   : > { %v1817_v60 = vadd.f32 %v1816_v17, %v1815_v9 }
 0x8ba   : > { %v1826_v40 = vadd.f32 %v1825_v59, %v1824_v32 }
 0x8bb   : > { %v1827_v20 = vmul.f32 0.03125, %v1817_v60 }
 0x8bc   : > { %v1828_v19 = vmul.f32 0.03125, %v1826_v40 }
 0x8bd   : > { %v1829_v37 = vadd.f32 1e-05, %v1827_v20 }
 0x8be   : > { %v1830_v6 = vadd.f32 1e-05, %v1828_v19 }
 0x8bf   : > { %4414 = vrsqrt.f32 %v1829_v37 }
 0x8c0   : > { %4416 = vrsqrt.f32 %v1830_v6 }
 0x8c8   : > { %v1919_v8 = vpop.f32.mrb[24].mxu1 }
 0x8c9   : > { %v4415_v63 = vpop.eup %4414  ;;  %v1926_v12 = vpack.c.bf16 %v1919_v8, %v1919_v8  ;;  %v1921_v38 = vpop.f32.mrb[25].mxu1 }
 0x8ca   : > { %v4417_v45 = vpop.eup %4416  ;;  %v1833_v61 = vmul.f32 %v4415_v63, %v1793_v54  ;;  %v1835_v0 = vmul.f32 %v4415_v63, %v1795_v13  ;;  %v1837_v11 = vmul.f32 %v4415_v63, %v1797_v4  ;;  %v1839_v7 = vmul.f32 %v4415_v63, %v1799_v41  ;;  %v1923_v44 = vpop.f32.mrb[26].mxu1 }
 0x8cb   : > { %v1834_v34 = vmul.f32 %v4417_v45, %v1794_v47  ;;  %v1836_v27 = vmul.f32 %v4417_v45, %v1796_v39  ;;  %v1838_v56 = vmul.f32 %v4417_v45, %v1798_v57  ;;  %v1840_v15 = vmul.f32 %v4417_v45, %v1800_v2  ;;  %v1924_v60 = vpop.f32.mrb[27].mxu1 }
 0x8cc   : > { %v1841_v43 = vmul.f32 %v1833_v61, %v5142_v23  ;;  %v1843_v9 = vmul.f32 %v1835_v0, %v5164_v3  ;;  %v1845_v32 = vmul.f32 %v1837_v11, %v5144_v30  ;;  %v1847_v17 = vmul.f32 %v1839_v7, %v5146_v14 }
 0x8cd   : > { %v1842_v59 = vmul.f32 %v1834_v34, %v5142_v23  ;;  %v1844_v54 = vmul.f32 %v1836_v27, %v5164_v3  ;;  %v1846_v4 = vmul.f32 %v1838_v56, %v5144_v30  ;;  %v1848_v13 = vmul.f32 %v1840_v15, %v5146_v14  ;;  %v6917_v34 = vld [vmem:[#allocation30_spill] sm:$0xff] }
 0x8ce   : > { %v1849_v57 = vadd.f32 %v1841_v43, %v5187_v31  ;;  %v1851_v2 = vadd.f32 %v1843_v9, %v5166_v5  ;;  %v1853_v41 = vadd.f32 %v1845_v32, %v5193_v50  ;;  %v1855_v47 = vadd.f32 %v1847_v17, %v5206_v22  ;;  %v6931_v27 = vld [vmem:[#allocation10_spill] sm:$0xff]  ;;  %v6932_v32 = vld [vmem:[#allocation11_spill] sm:$0xff] }
 0x8cf   : > { %v1850_v39 = vadd.f32 %v1842_v59, %v5187_v31  ;;  %v1852_v40 = vadd.f32 %v1844_v54, %v5166_v5  ;;  %v1854_v20 = vadd.f32 %v1846_v4, %v5193_v50  ;;  %v1856_v19 = vadd.f32 %v1848_v13, %v5206_v22 }
 0x8d0   : > { %v1857_v37 = vmax.f32 %v1849_v57, 0.0  ;;  %v1859_v6 = vmax.f32 %v1851_v2, 0.0  ;;  %v1861_v8 = vmax.f32 %v1853_v41, 0.0  ;;  %v1863_v63 = vmax.f32 %v1855_v47, 0.0 }
 0x8d1   : > { %v1858_v45 = vmax.f32 %v1850_v39, 0.0  ;;  %v1860_v61 = vmax.f32 %v1852_v40, 0.0  ;;  %v1862_v0 = vmax.f32 %v1854_v20, 0.0  ;;  %v1864_v11 = vmax.f32 %v1856_v19, 0.0 }
 0x8d2   : > { %1865 = vst [vmem:[%s5208_s17 + $0x20] sm:$0xff] %v1857_v37  ;;  %1867 = vst [vmem:[%s5208_s17 + $0xa0] sm:$0xff] %v1859_v6  ;;  %v1929_v7 = vsel %vm565_vm0, %v1926_v12, 0  ;;  %v1927_v44 = vpack.c.bf16 %v1921_v38, %v1921_v38  ;;  %v6918_v12 = vld [vmem:[#allocation34_spill] sm:$0xff] }
 0x8d3   : > { %1869 = vst [vmem:[%s5208_s17 + $0x120] sm:$0xff] %v1861_v8  ;;  %1871 = vst [vmem:[%s5208_s17 + $0x1a0] sm:$0xff] %v1863_v63 }
 0x8d4   : > { %1866 = vst [vmem:[%s5208_s17 + $0x28] sm:$0xff] %v1858_v45  ;;  %1868 = vst [vmem:[%s5208_s17 + $0xa8] sm:$0xff] %v1860_v61  ;;  %4253 = vmatprep.subr.msk.bf16.mxu0 %vm565_vm0, %v1927_v44 }
 0x8d5   : > { %1870 = vst [vmem:[%s5208_s17 + $0x128] sm:$0xff] %v1862_v0  ;;  %1872 = vst [vmem:[%s5208_s17 + $0x1a8] sm:$0xff] %v1864_v11  ;;  %1935 = vmatpush1.bf16.msra.mxu0 %v1929_v7 }
 0x8d6   : > { %2083 = vmatprep.subr.bf16.mxu0 %v5251_v48  ;;  %v6919_v48 = vld [vmem:[#allocation52_spill] sm:$0xff] }
 0x8d8   : > { %4254 = vmatmul.mubr.msk.bf16.vlgmr.msra.gmra.mrb[60].mxu0 %vm558_vm1, %v6917_v34 }
 0x8d9   : > { %1976 = vmatprep.mubr.bf16.mxu0 %v6830_v51  ;;  %2084 = vmatpush1.bf16.msra.mxu0 %v5265_v46  ;;  %v6920_v46 = vld [vmem:[#allocation53_spill] sm:$0xff] }
 0x8da   : > { %2085 = vmatprep.subr.bf16.mxu0 %v6882_v49  ;;  %v6921_v49 = vld [vmem:[#allocation54_spill] sm:$0xff] }
 0x8dd   : > { %2086 = vmatpush1.bf16.msra.mxu0 %v6883_v26  ;;  %v6922_v26 = vld [vmem:[#allocation55_spill] sm:$0xff] }
 0x8de   : > { %2087 = vmatprep.subr.bf16.mxu0 %v6884_v16  ;;  %v6923_v16 = vld [vmem:[#allocation56_spill] sm:$0xff] }
 0x8e0   : > { %4255 = vmatmul.mubr.msk.bf16.gmra.mrb[64].mxu0 %vm558_vm1, %v6918_v12 }
 0x8e1   : > { %2088 = vmatpush1.bf16.msra.mxu0 %v6886_v35  ;;  %v6924_v35 = vld [vmem:[#allocation57_spill] sm:$0xff] }
 0x8e2   : > { %2089 = vmatprep.subr.bf16.mxu0 %v6887_v25  ;;  %v6925_v25 = vld [vmem:[#allocation58_spill] sm:$0xff] }
 0x8e5   : > { %2090 = vmatpush1.bf16.msra.mxu0 %v6888_v29  ;;  %v6926_v29 = vld [vmem:[#allocation59_spill] sm:$0xff] }
 0x8e6   : > { %2091 = vmatprep.subr.bf16.mxu0 %v6889_v33  ;;  %v6927_v33 = vld [vmem:[#allocation60_spill] sm:$0xff] }
 0x8e9   : > { %2092 = vmatpush1.bf16.msra.mxu0 %v6890_v52  ;;  %v6928_v52 = vld [vmem:[#allocation61_spill] sm:$0xff] }
 0x8ea   : > { %2093 = vmatprep.subr.bf16.mxu0 %v6891_v55 }
 0x8ed   : > { %2094 = vmatpush1.bf16.msra.mxu0 %v6892_v42 }
 0x8ee   : > { %2095 = vmatprep.subr.bf16.mxu0 %v6893_v53 }
 0x8f1   : > { %2096 = vmatpush1.bf16.msra.mxu0 %v6894_v1  ;;  %v6929_v1 = vld [vmem:[#allocation8_spill] sm:$0xff] }
 0x8f2   : > { %2097 = vmatprep.subr.bf16.mxu0 %v6895_v58 }
 0x8f5   : > { %2098 = vmatpush1.bf16.msra.mxu0 %v6896_v62  ;;  %v6930_v62 = vld [vmem:[#allocation9_spill] sm:$0xff] }
 0x8f6   : > { %2099 = vmatprep.subr.bf16.mxu0 %v6897_v24 }
 0x8f9   : > { %2100 = vmatpush1.bf16.msra.mxu0 %v6898_v10 }
 0x8fa   : > { %2101 = vmatprep.subr.bf16.mxu0 %v6899_v18 }
 0x8fd   : > { %2102 = vmatpush1.bf16.msra.mxu0 %v6900_v28 }
 0x8fe   : > { %2103 = vmatprep.subr.bf16.mxu0 %v6901_v21 }
 0x901   : > { %2104 = vmatpush1.bf16.msra.mxu0 %v6902_v36 }
 0x902   : > { %2105 = vmatprep.subr.bf16.mxu0 %v6919_v48 }
 0x905   : > { %2106 = vmatpush1.bf16.msra.mxu0 %v6920_v46 }
 0x906   : > { %2107 = vmatprep.subr.bf16.mxu0 %v6921_v49 }
 0x909   : > { %2108 = vmatpush1.bf16.msra.mxu0 %v6922_v26 }
 0x90a   : > { %2109 = vmatprep.subr.bf16.mxu0 %v6923_v16 }
 0x90d   : > { %2110 = vmatpush1.bf16.msra.mxu0 %v6924_v35 }
 0x90e   : > { %2111 = vmatprep.subr.bf16.mxu0 %v6925_v25 }
 0x911   : > { %2112 = vmatpush1.bf16.msra.mxu0 %v6926_v29 }
 0x912   : > { %2113 = vmatprep.subr.bf16.mxu0 %v6927_v33 }
 0x915   : > { %2114 = vmatpush1.bf16.msra.mxu0 %v6928_v52 }
 0x9ab   : > { %v1968_v55 = vpop.f32.mrb[60].mxu0 }
 0x9ac   : > { %v1970_v42 = vpop.f32.mrb[61].mxu0  ;;  %v1969_v58 = vadd.f32 %v1968_v55, %v6929_v1 }
 0x9ad   : > { %v1972_v53 = vpop.f32.mrb[62].mxu0  ;;  %v1971_v18 = vadd.f32 %v1970_v42, %v6929_v1 }
 0x9ae   : > { %v1973_v24 = vadd.f32 %v1972_v53, %v6930_v62  ;;  %v1974_v10 = vpop.f32.mrb[63].mxu0 }
 0x9af   : > { %v1975_v28 = vadd.f32 %v1974_v10, %v6930_v62 }
 0x9b0   : > { %v1987_v21 = vadd.f32 %v1973_v24, %v1969_v58 }
 0x9b1   : > { %v1996_v36 = vadd.f32 %v1975_v28, %v1971_v18 }
 0x9b3   : > { %v1978_v38 = vpop.f32.mrb[64].mxu0 }
 0x9b4   : > { %v1979_v56 = vadd.f32 %v1978_v38, %v6931_v27  ;;  %v1980_v15 = vpop.f32.mrb[65].mxu0 }
 0x9b5   : > { %v1981_v60 = vadd.f32 %v1980_v15, %v6931_v27  ;;  %v1982_v43 = vpop.f32.mrb[66].mxu0 }
 0x9b6   : > { %v1988_v9 = vadd.f32 %v1987_v21, %v1979_v56  ;;  %v1983_v17 = vadd.f32 %v1982_v43, %v6932_v32  ;;  %v1984_v59 = vpop.f32.mrb[67].mxu0 }
 0x9b7   : > { %v1997_v54 = vadd.f32 %v1996_v36, %v1981_v60  ;;  %v1985_v4 = vadd.f32 %v1984_v59, %v6932_v32 }
 0x9b8   : > { %v1989_v13 = vadd.f32 %v1988_v9, %v1983_v17 }
 0x9b9   : > { %v1998_v57 = vadd.f32 %v1997_v54, %v1985_v4 }
 0x9ba   : > { %v1990_v2 = vrot.slane %v1989_v13, 4 }
 0x9bb   : > { %v1999_v41 = vrot.slane %v1998_v57, 4 }
 0x9bc   : > { %v1991_v47 = vadd.f32 %v1990_v2, %v1989_v13 }
 0x9bd   : > { %v2000_v39 = vadd.f32 %v1999_v41, %v1998_v57 }
 0x9be   : > { %v1992_v40 = vrot.slane %v1991_v47, 2 }
 0x9bf   : > { %v2001_v20 = vrot.slane %v2000_v39, 2 }
 0x9c0   : > { %v1993_v19 = vadd.f32 %v1992_v40, %v1991_v47 }
 0x9c1   : > { %v2002_v37 = vadd.f32 %v2001_v20, %v2000_v39 }
 0x9c2   : > { %v1994_v6 = vrot.slane %v1993_v19, 1 }
 0x9c3   : > { %v2003_v8 = vrot.slane %v2002_v37, 1 }
 0x9c4   : > { %v1995_v63 = vadd.f32 %v1994_v6, %v1993_v19 }
 0x9c5   : > { %v2004_v45 = vadd.f32 %v2003_v8, %v2002_v37 }
 0x9c6   : > { %v2005_v61 = vmul.f32 0.03125, %v1995_v63 }
 0x9c7   : > { %v2006_v0 = vmul.f32 0.03125, %v2004_v45  ;;  %v6933_v45 = vld [vmem:[#allocation16_spill] sm:$0xff] }
 0x9c8   : > { %v2007_v11 = vsub.f32 %v1969_v58, %v2005_v61  ;;  %v2009_v7 = vsub.f32 %v1973_v24, %v2005_v61  ;;  %v2011_v44 = vsub.f32 %v1979_v56, %v2005_v61  ;;  %v2013_v34 = vsub.f32 %v1983_v17, %v2005_v61 }
 0x9c9   : > { %v2008_v12 = vsub.f32 %v1971_v18, %v2006_v0  ;;  %v2010_v48 = vsub.f32 %v1975_v28, %v2006_v0  ;;  %v2012_v46 = vsub.f32 %v1981_v60, %v2006_v0  ;;  %v2014_v49 = vsub.f32 %v1985_v4, %v2006_v0  ;;  %v6934_v0 = vld [vmem:[#allocation15_spill] sm:$0xff] }
 0x9ca   : > { %v2015_v26 = vmul.f32 %v2007_v11, %v2007_v11  ;;  %v2017_v16 = vmul.f32 %v2009_v7, %v2009_v7  ;;  %v2019_v29 = vmul.f32 %v2011_v44, %v2011_v44  ;;  %v2021_v42 = vmul.f32 %v2013_v34, %v2013_v34 }
 0x9cb   : > { %v2016_v35 = vmul.f32 %v2008_v12, %v2008_v12  ;;  %v2018_v25 = vmul.f32 %v2010_v48, %v2010_v48  ;;  %v2020_v52 = vmul.f32 %v2012_v46, %v2012_v46  ;;  %v2022_v10 = vmul.f32 %v2014_v49, %v2014_v49 }
 0x9cc   : > { %v2023_v33 = vadd.f32 %v2017_v16, %v2015_v26  ;;  %v6935_v16 = vld [vmem:[#allocation12_spill] sm:$0xff] }
 0x9cd   : > { %v2032_v55 = vadd.f32 %v2018_v25, %v2016_v35  ;;  %v6936_v25 = vld [vmem:[#allocation14_spill] sm:$0xff] }
 0x9ce   : > { %v2024_v53 = vadd.f32 %v2023_v33, %v2019_v29 }
 0x9cf   : > { %v2033_v21 = vadd.f32 %v2032_v55, %v2020_v52  ;;  %v6940_v55 = vld [vmem:[#allocation18_spill] sm:$0xff] }
 0x9d0   : > { %v2025_v58 = vadd.f32 %v2024_v53, %v2021_v42 }
 0x9d1   : > { %v2034_v24 = vadd.f32 %v2033_v21, %v2022_v10 }
 0x9d2   : > { %v2026_v36 = vrot.slane %v2025_v58, 4 }
 0x9d3   : > { %v2035_v38 = vrot.slane %v2034_v24, 4 }
 0x9d4   : > { %v2027_v18 = vadd.f32 %v2026_v36, %v2025_v58 }
 0x9d5   : > { %v2036_v28 = vadd.f32 %v2035_v38, %v2034_v24 }
 0x9d6   : > { %v2028_v56 = vrot.slane %v2027_v18, 2 }
 0x9d7   : > { %v2037_v15 = vrot.slane %v2036_v28, 2 }
 0x9d8   : > { %v2029_v60 = vadd.f32 %v2028_v56, %v2027_v18 }
 0x9d9   : > { %v2038_v43 = vadd.f32 %v2037_v15, %v2036_v28 }
 0x9da   : > { %v2030_v9 = vrot.slane %v2029_v60, 1 }
 0x9db   : > { %v2039_v17 = vrot.slane %v2038_v43, 1 }
 0x9dc   : > { %v2031_v59 = vadd.f32 %v2030_v9, %v2029_v60 }
 0x9dd   : > { %v2040_v54 = vadd.f32 %v2039_v17, %v2038_v43 }
 0x9de   : > { %v2041_v4 = vmul.f32 0.03125, %v2031_v59 }
 0x9df   : > { %v2042_v13 = vmul.f32 0.03125, %v2040_v54 }
 0x9e0   : > { %v2043_v57 = vadd.f32 1e-05, %v2041_v4 }
 0x9e1   : > { %v2044_v2 = vadd.f32 1e-05, %v2042_v13 }
 0x9e2   : > { %4418 = vrsqrt.f32 %v2043_v57 }
 0x9e3   : > { %4420 = vrsqrt.f32 %v2044_v2 }
 0x9ec   : > { %v4419_v41 = vpop.eup %4418 }
 0x9ed   : > { %v4421_v47 = vpop.eup %4420  ;;  %v2047_v39 = vmul.f32 %v4419_v41, %v2007_v11  ;;  %v2049_v40 = vmul.f32 %v4419_v41, %v2009_v7  ;;  %v2053_v20 = vmul.f32 %v4419_v41, %v2013_v34  ;;  %v2051_v19 = vmul.f32 %v4419_v41, %v2011_v44  ;;  %v6937_v44 = vld [vmem:[#allocation13_spill] sm:$0xff] }
 0x9ee   : > { %v2054_v37 = vmul.f32 %v4421_v47, %v2014_v49  ;;  %v2048_v6 = vmul.f32 %v4421_v47, %v2008_v12  ;;  %v2050_v8 = vmul.f32 %v4421_v47, %v2010_v48  ;;  %v2052_v63 = vmul.f32 %v4421_v47, %v2012_v46  ;;  %v6938_v12 = vld [vmem:[#allocation17_spill] sm:$0xff]  ;;  %v6939_v46 = vld [vmem:[#allocation19_spill] sm:$0xff] }
 0x9ef   : > { %v2061_v61 = vmul.f32 %v2053_v20, %v6933_v45  ;;  %v2055_v26 = vmul.f32 %v2047_v39, %v6934_v0  ;;  %v2057_v35 = vmul.f32 %v2049_v40, %v6935_v16  ;;  %v2059_v29 = vmul.f32 %v2051_v19, %v6936_v25 }
 0x9f0   : > { %v2062_v33 = vmul.f32 %v2054_v37, %v6933_v45  ;;  %v2056_v52 = vmul.f32 %v2048_v6, %v6934_v0  ;;  %v2058_v11 = vmul.f32 %v2050_v8, %v6935_v16  ;;  %v2060_v7 = vmul.f32 %v2052_v63, %v6936_v25  ;;  %v5675_v6 = vld [vmem:[#allocation2 + $0x4] ss:$8 sps:$4 sm:$0xff]   ;;  %v5680_v63 = vld [vmem:[#allocation2] ss:$8 sps:$4 sm:$0xff]  }
 0x9f1   : > { %v2063_v34 = vadd.f32 %v2055_v26, %v6937_v44  ;;  %v2065_v48 = vadd.f32 %v2057_v35, %v6938_v12  ;;  %v2067_v49 = vadd.f32 %v2059_v29, %v6939_v46  ;;  %v2069_v42 = vadd.f32 %v2061_v61, %v6940_v55  ;;  %v6941_v8 = vld [vmem:[#allocation62_spill] sm:$0xff]  ;;  %v5684_v61 = vld [vmem:[#allocation2 + $0x14] ss:$8 sps:$4 sm:$0xff]   ;;  %v5688_v35 = vld [vmem:[#allocation2 + $0x10] ss:$8 sps:$4 sm:$0xff]  }
 0x9f2   : > { %v2064_v53 = vadd.f32 %v2056_v52, %v6937_v44  ;;  %v2066_v10 = vadd.f32 %v2058_v11, %v6938_v12  ;;  %v2068_v21 = vadd.f32 %v2060_v7, %v6939_v46  ;;  %v2070_v58 = vadd.f32 %v2062_v33, %v6940_v55  ;;  %v4258_v26 = vld.sshfl [vmem:[%s4771_s8 + $0x10] sm:$0x33 pattern:$0x76325410]  ;;  %v5691_v33 = vld [vmem:[#allocation2 + $0x24] ss:$8 sps:$4 sm:$0xff]  }
 0x9f3   : > { %v2071_v24 = vmax.f32 %v2063_v34, 0.0  ;;  %v2073_v36 = vmax.f32 %v2065_v48, 0.0  ;;  %v2075_v38 = vmax.f32 %v2067_v49, 0.0  ;;  %v2077_v18 = vmax.f32 %v2069_v42, 0.0  ;;  %v6942_v52 = vld [vmem:[#allocation31_spill] sm:$0xff]  ;;  %v6955_v44 = vld [vmem:[#allocation20_spill] sm:$0xff] }
 0x9f4   : > { %v2072_v28 = vmax.f32 %v2064_v53, 0.0  ;;  %v2074_v56 = vmax.f32 %v2066_v10, 0.0  ;;  %v2076_v15 = vmax.f32 %v2068_v21, 0.0  ;;  %v2078_v60 = vmax.f32 %v2070_v58, 0.0  ;;  %v5696_v11 = vld [vmem:[#allocation2 + $0x20] ss:$8 sps:$4 sm:$0xff]  }
 0x9f5   : > { %v2079_v43 = vpack.c.bf16 %v2073_v36, %v2071_v24  ;;  %v2081_v9 = vpack.c.bf16 %v2077_v18, %v2075_v38  ;;  %v2302_v29 = vcombine.high %v4258_v26, %v4258_v26  ;;  %v5699_v7 = vld [vmem:[#allocation2 + $0x34] ss:$8 sps:$4 sm:$0xff]   ;;  %v5702_v34 = vld [vmem:[#allocation2 + $0x30] ss:$8 sps:$4 sm:$0xff]   ;;  %v5705_v48 = vld [vmem:[#allocation2 + $0x44] ss:$8 sps:$4 sm:$0xff]  }
 0x9f6   : > { %v2080_v17 = vpack.c.bf16 %v2074_v56, %v2072_v28  ;;  %v2082_v59 = vpack.c.bf16 %v2078_v60, %v2076_v15  ;;  %v5708_v49 = vld [vmem:[#allocation2 + $0x40] ss:$8 sps:$4 sm:$0xff]   ;;  %v5711_v42 = vld [vmem:[#allocation2 + $0x54] ss:$8 sps:$4 sm:$0xff]   ;;  %v5714_v53 = vld [vmem:[#allocation2 + $0x50] ss:$8 sps:$4 sm:$0xff]  }
 0x9f7   : > { %v5717_v10 = vld [vmem:[#allocation2 + $0x64] ss:$8 sps:$4 sm:$0xff]   ;;  %v5720_v21 = vld [vmem:[#allocation2 + $0x60] ss:$8 sps:$4 sm:$0xff]   ;;  %v5723_v58 = vld [vmem:[#allocation2 + $0x74] ss:$8 sps:$4 sm:$0xff]  }
 0x9f8   : > { %2115 = vmatprep.mubr.bf16.mxu0 %v2080_v17  ;;  %v5726_v24 = vld [vmem:[#allocation2 + $0x70] ss:$8 sps:$4 sm:$0xff]   ;;  %v5729_v36 = vld [vmem:[#allocation2 + $0x84] ss:$8 sps:$4 sm:$0xff]   ;;  %v5732_v38 = vld [vmem:[#allocation2 + $0x80] ss:$8 sps:$4 sm:$0xff]  }
 0x9f9   : > { %2116 = vmatmul.mubr.bf16.vlgmr.msra.gmra.mrb[68].mxu0 %v2079_v43  ;;  %v5735_v18 = vld [vmem:[#allocation2 + $0x94] ss:$8 sps:$4 sm:$0xff]   ;;  %v5738_v28 = vld [vmem:[#allocation2 + $0x90] ss:$8 sps:$4 sm:$0xff]   ;;  %v5741_v56 = vld [vmem:[#allocation2 + $0xa4] ss:$8 sps:$4 sm:$0xff]  }
 0x9fa   : > { %2125 = vmatprep.mubr.bf16.mxu0 %v2082_v59  ;;  %v5744_v15 = vld [vmem:[#allocation2 + $0xa0] ss:$8 sps:$4 sm:$0xff]   ;;  %v5747_v60 = vld [vmem:[#allocation2 + $0xb4] ss:$8 sps:$4 sm:$0xff]   ;;  %v5750_v43 = vld [vmem:[#allocation2 + $0xb0] ss:$8 sps:$4 sm:$0xff]  }
 0x9fb   : > { %6943 = vst [vmem:[#allocation32_spill] sm:$0xff] %v5747_v60  ;;  %6944 = vst [vmem:[#allocation33_spill] sm:$0xff] %v5750_v43  ;;  %v5756_v17 = vld [vmem:[#allocation2 + $0xc0] ss:$8 sps:$4 sm:$0xff]   ;;  %v5759_v59 = vld [vmem:[#allocation2 + $0xd4] ss:$8 sps:$4 sm:$0xff]  }
 0x9fc   : > { %6946 = vst [vmem:[#allocation36_spill] sm:$0xff] %v5756_v17  ;;  %6947 = vst [vmem:[#allocation37_spill] sm:$0xff] %v5759_v59 }
 0xa01   : > { %2126 = vmatmul.mubr.bf16.gmra.mrb[72].mxu0 %v2081_v9  ;;  %v5753_v9 = vld [vmem:[#allocation2 + $0xc4] ss:$8 sps:$4 sm:$0xff]  }
 0xa02   : > { %2386 = vmatprep.mubr.bf16.mxu0 %v6830_v51  ;;  %6945 = vst [vmem:[#allocation35_spill] sm:$0xff] %v5753_v9 }
 0xacc   : > { %v2117_v54 = vpop.f32.mrb[68].mxu0 }
 0xacd   : > { %v2119_v4 = vpop.f32.mrb[69].mxu0 }
 0xace   : > { %v2121_v13 = vpop.f32.mrb[70].mxu0 }
 0xacf   : > { %v2136_v57 = vpack.c.bf16 %v2121_v13, %v2117_v54  ;;  %v2123_v2 = vpop.f32.mrb[71].mxu0  ;;  %v5762_v54 = vld [vmem:[#allocation2 + $0xd0] ss:$8 sps:$4 sm:$0xff]   ;;  %v5768_v13 = vld [vmem:[#allocation2 + $0xe0] ss:$8 sps:$4 sm:$0xff]  }
 0xad0   : > { %v2137_v41 = vpack.c.bf16 %v2123_v2, %v2119_v4  ;;  %6948 = vst [vmem:[#allocation38_spill] sm:$0xff] %v5762_v54  ;;  %v5765_v4 = vld [vmem:[#allocation2 + $0xe4] ss:$8 sps:$4 sm:$0xff]   ;;  %6950 = vst [vmem:[#allocation40_spill] sm:$0xff] %v5768_v13  ;;  %v5774_v2 = vld [vmem:[#allocation2 + $0xf0] ss:$8 sps:$4 sm:$0xff]  }
 0xad1   : > { %6949 = vst [vmem:[#allocation39_spill] sm:$0xff] %v5765_v4  ;;  %6952 = vst [vmem:[#allocation42_spill] sm:$0xff] %v5774_v2 }
 0xad2   : > { %2140 = vmatprep.subr.bf16.mxu1 %v2137_v41 }
 0xad3   : > { %2141 = vmatpush1.bf16.msra.mxu1 %v2136_v57  ;;  %v5771_v57 = vld [vmem:[#allocation2 + $0xf4] ss:$8 sps:$4 sm:$0xff]  }
 0xad4   : > { %v2127_v47 = vpop.f32.mrb[72].mxu0  ;;  %6951 = vst [vmem:[#allocation41_spill] sm:$0xff] %v5771_v57 }
 0xad5   : > { %v2129_v39 = vpop.f32.mrb[73].mxu0 }
 0xad6   : > { %v2131_v40 = vpop.f32.mrb[74].mxu0 }
 0xad7   : > { %v2138_v20 = vpack.c.bf16 %v2131_v40, %v2127_v47  ;;  %v2133_v19 = vpop.f32.mrb[75].mxu0  ;;  %v6953_v47 = vld [vmem:[#allocation6_spill] sm:$0xff] }
 0xad8   : > { %v2139_v37 = vpack.c.bf16 %v2133_v19, %v2129_v39  ;;  %v6954_v19 = vld [vmem:[#allocation7_spill] sm:$0xff] }
 0xada   : > { %2142 = vmatprep.subr.bf16.mxu1 %v2139_v37 }
 0xadb   : > { %2143 = vmatpush1.bf16.msra.mxu1 %v2138_v20 }
 0xadc   : > { %2305 = vmatprep.subr.bf16.mxu1 %v5675_v6 }
 0xade   : > { %4256 = vmatmul.mubr.msk.bf16.vlgmr.msra.gmra.mrb[28].mxu1 %vm841_vm2, %v6941_v8 }
 0xadf   : > { %2306 = vmatpush1.bf16.msra.mxu1 %v5680_v63  ;;  %2182 = vmatprep.mubr.bf16.mxu1 %v6830_v51 }
 0xae0   : > { %2307 = vmatprep.subr.bf16.mxu1 %v5684_v61 }
 0xae3   : > { %2308 = vmatpush1.bf16.msra.mxu1 %v5688_v35 }
 0xae4   : > { %2309 = vmatprep.subr.bf16.mxu1 %v5691_v33 }
 0xae6   : > { %4257 = vmatmul.mubr.msk.bf16.gmra.mrb[32].mxu1 %vm841_vm2, %v6942_v52 }
 0xae7   : > { %2310 = vmatpush1.bf16.msra.mxu1 %v5696_v11  ;;  %2337 = vmatprep.mubr.bf16.mxu1 %v2302_v29 }
 0xae8   : > { %2311 = vmatprep.subr.bf16.mxu1 %v5699_v7 }
 0xaeb   : > { %2312 = vmatpush1.bf16.msra.mxu1 %v5702_v34 }
 0xaec   : > { %2313 = vmatprep.subr.bf16.mxu1 %v5705_v48 }
 0xaef   : > { %2314 = vmatpush1.bf16.msra.mxu1 %v5708_v49 }
 0xaf0   : > { %2315 = vmatprep.subr.bf16.mxu1 %v5711_v42 }
 0xaf3   : > { %2316 = vmatpush1.bf16.msra.mxu1 %v5714_v53 }
 0xaf4   : > { %2317 = vmatprep.subr.bf16.mxu1 %v5717_v10 }
 0xaf7   : > { %2318 = vmatpush1.bf16.msra.mxu1 %v5720_v21 }
 0xaf8   : > { %2319 = vmatprep.subr.bf16.mxu1 %v5723_v58 }
 0xafb   : > { %2320 = vmatpush1.bf16.msra.mxu1 %v5726_v24 }
 0xafc   : > { %2321 = vmatprep.subr.bf16.mxu1 %v5729_v36 }
 0xaff   : > { %2322 = vmatpush1.bf16.msra.mxu1 %v5732_v38 }
 0xb00   : > { %2323 = vmatprep.subr.bf16.mxu1 %v5735_v18 }
 0xb03   : > { %2324 = vmatpush1.bf16.msra.mxu1 %v5738_v28 }
 0xb04   : > { %2325 = vmatprep.subr.bf16.mxu1 %v5741_v56 }
 0xb07   : > { %2326 = vmatpush1.bf16.msra.mxu1 %v5744_v15 }
 0xb08   : > { %2327 = vmatprep.subr.bf16.mxu1 %v5747_v60 }
 0xb0b   : > { %2328 = vmatpush1.bf16.msra.mxu1 %v5750_v43 }
 0xb0c   : > { %2329 = vmatprep.subr.bf16.mxu1 %v5753_v9 }
 0xb0f   : > { %2330 = vmatpush1.bf16.msra.mxu1 %v5756_v17 }
 0xb10   : > { %2331 = vmatprep.subr.bf16.mxu1 %v5759_v59 }
 0xb13   : > { %2332 = vmatpush1.bf16.msra.mxu1 %v5762_v54 }
 0xb14   : > { %2333 = vmatprep.subr.bf16.mxu1 %v5765_v4 }
 0xb17   : > { %2334 = vmatpush1.bf16.msra.mxu1 %v5768_v13 }
 0xb18   : > { %2335 = vmatprep.subr.bf16.mxu1 %v5771_v57 }
 0xb1b   : > { %2336 = vmatpush1.bf16.msra.mxu1 %v5774_v2 }
 0xb1e   : > { %2338 = vmatmul.mubr.bf16.vlgmr.msra.gmra.mrb[36].mxu1 %v4258_v26 }
 0xb1f   : > { %2592 = vmatprep.mubr.bf16.mxu1 %v6830_v51 }
 0xbb1   : > { %v2174_v41 = vpop.f32.mrb[28].mxu1 }
 0xbb2   : > { %v2175_v39 = vadd.f32 %v2174_v41, %v6953_v47  ;;  %v2176_v40 = vpop.f32.mrb[29].mxu1  ;;  %v6956_v41 = vld [vmem:[#allocation21_spill] sm:$0xff] }
 0xbb3   : > { %v2178_v20 = vpop.f32.mrb[30].mxu1  ;;  %v2177_v29 = vadd.f32 %v2176_v40, %v6953_v47 }
 0xbb4   : > { %v2179_v37 = vadd.f32 %v2178_v20, %v6954_v19  ;;  %v2180_v8 = vpop.f32.mrb[31].mxu1 }
 0xbb5   : > { %v2181_v52 = vadd.f32 %v2180_v8, %v6954_v19 }
 0xbb6   : > { %v2193_v55 = vadd.f32 %v2179_v37, %v2175_v39 }
 0xbb7   : > { %v2202_v46 = vadd.f32 %v2181_v52, %v2177_v29 }
 0xbb9   : > { %v2184_v12 = vpop.f32.mrb[32].mxu1 }
 0xbba   : > { %v2185_v25 = vadd.f32 %v2184_v12, %v6955_v44  ;;  %v2186_v26 = vpop.f32.mrb[33].mxu1 }
 0xbbb   : > { %v2187_v16 = vadd.f32 %v2186_v26, %v6955_v44  ;;  %v2188_v0 = vpop.f32.mrb[34].mxu1 }
 0xbbc   : > { %v2194_v45 = vadd.f32 %v2193_v55, %v2185_v25  ;;  %v2189_v32 = vadd.f32 %v2188_v0, %v6956_v41  ;;  %v2190_v27 = vpop.f32.mrb[35].mxu1 }
 0xbbd   : > { %v2203_v62 = vadd.f32 %v2202_v46, %v2187_v16  ;;  %v2191_v20 = vadd.f32 %v2190_v27, %v6956_v41 }
 0xbbe   : > { %v2195_v1 = vadd.f32 %v2194_v45, %v2189_v32 }
 0xbbf   : > { %v2204_v40 = vadd.f32 %v2203_v62, %v2191_v20 }
 0xbc0   : > { %v2196_v47 = vrot.slane %v2195_v1, 4 }
 0xbc1   : > { %v2205_v8 = vrot.slane %v2204_v40, 4 }
 0xbc2   : > { %v2197_v19 = vadd.f32 %v2196_v47, %v2195_v1 }
 0xbc3   : > { %v2206_v2 = vadd.f32 %v2205_v8, %v2204_v40 }
 0xbc4   : > { %v2198_v57 = vrot.slane %v2197_v19, 2 }
 0xbc5   : > { %v2207_v13 = vrot.slane %v2206_v2, 2 }
 0xbc6   : > { %v2199_v12 = vadd.f32 %v2198_v57, %v2197_v19 }
 0xbc7   : > { %v2208_v4 = vadd.f32 %v2207_v13, %v2206_v2 }
 0xbc8   : > { %v2200_v54 = vrot.slane %v2199_v12, 1 }
 0xbc9   : > { %v2209_v26 = vrot.slane %v2208_v4, 1 }
 0xbca   : > { %v2201_v44 = vadd.f32 %v2200_v54, %v2199_v12 }
 0xbcb   : > { %v2210_v55 = vadd.f32 %v2209_v26, %v2208_v4 }
 0xbcc   : > { %v2211_v59 = vmul.f32 0.03125, %v2201_v44 }
 0xbcd   : > { %v2212_v0 = vmul.f32 0.03125, %v2210_v55 }
 0xbce   : > { %v2213_v17 = vsub.f32 %v2175_v39, %v2211_v59  ;;  %v2215_v46 = vsub.f32 %v2179_v37, %v2211_v59  ;;  %v2217_v9 = vsub.f32 %v2185_v25, %v2211_v59  ;;  %v2219_v27 = vsub.f32 %v2189_v32, %v2211_v59 }
 0xbcf   : > { %v2214_v45 = vsub.f32 %v2177_v29, %v2212_v0  ;;  %v2216_v62 = vsub.f32 %v2181_v52, %v2212_v0  ;;  %v2218_v41 = vsub.f32 %v2187_v16, %v2212_v0  ;;  %v2220_v43 = vsub.f32 %v2191_v20, %v2212_v0 }
 0xbd0   : > { %v2221_v1 = vmul.f32 %v2213_v17, %v2213_v17  ;;  %v2223_v47 = vmul.f32 %v2215_v46, %v2215_v46  ;;  %v2225_v57 = vmul.f32 %v2217_v9, %v2217_v9  ;;  %v2227_v54 = vmul.f32 %v2219_v27, %v2219_v27 }
 0xbd1   : > { %v2222_v40 = vmul.f32 %v2214_v45, %v2214_v45  ;;  %v2224_v8 = vmul.f32 %v2216_v62, %v2216_v62  ;;  %v2226_v2 = vmul.f32 %v2218_v41, %v2218_v41  ;;  %v2228_v44 = vmul.f32 %v2220_v43, %v2220_v43 }
 0xbd2   : > { %v2229_v13 = vadd.f32 %v2223_v47, %v2221_v1 }
 0xbd3   : > { %v2238_v19 = vadd.f32 %v2224_v8, %v2222_v40 }
 0xbd4   : > { %v2230_v4 = vadd.f32 %v2229_v13, %v2225_v57 }
 0xbd5   : > { %v2239_v12 = vadd.f32 %v2238_v19, %v2226_v2 }
 0xbd6   : > { %v2231_v39 = vadd.f32 %v2230_v4, %v2227_v54 }
 0xbd7   : > { %v2240_v37 = vadd.f32 %v2239_v12, %v2228_v44 }
 0xbd8   : > { %v2232_v25 = vrot.slane %v2231_v39, 4 }
 0xbd9   : > { %v2241_v32 = vrot.slane %v2240_v37, 4 }
 0xbda   : > { %v2233_v59 = vadd.f32 %v2232_v25, %v2231_v39 }
 0xbdb   : > { %v2242_v29 = vadd.f32 %v2241_v32, %v2240_v37 }
 0xbdc   : > { %v2234_v16 = vrot.slane %v2233_v59, 2 }
 0xbdd   : > { %v2243_v52 = vrot.slane %v2242_v29, 2 }
 0xbde   : > { %v2235_v20 = vadd.f32 %v2234_v16, %v2233_v59 }
 0xbdf   : > { %v2244_v26 = vadd.f32 %v2243_v52, %v2242_v29 }
 0xbe0   : > { %v2236_v55 = vrot.slane %v2235_v20, 1 }
 0xbe1   : > { %v2245_v0 = vrot.slane %v2244_v26, 1 }
 0xbe2   : > { %v2237_v60 = vadd.f32 %v2236_v55, %v2235_v20 }
 0xbe3   : > { %v2246_v1 = vadd.f32 %v2245_v0, %v2244_v26 }
 0xbe4   : > { %v2247_v47 = vmul.f32 0.03125, %v2237_v60 }
 0xbe5   : > { %v2248_v40 = vmul.f32 0.03125, %v2246_v1 }
 0xbe6   : > { %v2249_v8 = vadd.f32 1e-05, %v2247_v47 }
 0xbe7   : > { %v2250_v57 = vadd.f32 1e-05, %v2248_v40 }
 0xbe8   : > { %4422 = vrsqrt.f32 %v2249_v8 }
 0xbe9   : > { %4424 = vrsqrt.f32 %v2250_v57 }
 0xbf1   : > { %v2339_v13 = vpop.f32.mrb[36].mxu1 }
 0xbf2   : > { %v4423_v2 = vpop.eup %4422  ;;  %v2346_v19 = vpack.c.bf16 %v2339_v13, %v2339_v13  ;;  %v2341_v54 = vpop.f32.mrb[37].mxu1 }
 0xbf3   : > { %v4425_v4 = vpop.eup %4424  ;;  %v2253_v44 = vmul.f32 %v4423_v2, %v2213_v17  ;;  %v2255_v12 = vmul.f32 %v4423_v2, %v2215_v46  ;;  %v2257_v39 = vmul.f32 %v4423_v2, %v2217_v9  ;;  %v2259_v37 = vmul.f32 %v4423_v2, %v2219_v27  ;;  %v2343_v25 = vpop.f32.mrb[38].mxu1 }
 0xbf4   : > { %v2254_v32 = vmul.f32 %v4425_v4, %v2214_v45  ;;  %v2256_v59 = vmul.f32 %v4425_v4, %v2216_v62  ;;  %v2258_v29 = vmul.f32 %v4425_v4, %v2218_v41  ;;  %v2260_v16 = vmul.f32 %v4425_v4, %v2220_v43  ;;  %v2344_v60 = vpop.f32.mrb[39].mxu1 }
 0xbf5   : > { %v2261_v52 = vmul.f32 %v2253_v44, %v5142_v23  ;;  %v2263_v20 = vmul.f32 %v2255_v12, %v5164_v3  ;;  %v2265_v26 = vmul.f32 %v2257_v39, %v5144_v30  ;;  %v2267_v55 = vmul.f32 %v2259_v37, %v5146_v14  ;;  %v6963_v60 = vld [vmem:[#allocation37_spill] sm:$0xff] }
 0xbf6   : > { %v2262_v0 = vmul.f32 %v2254_v32, %v5142_v23  ;;  %v2264_v17 = vmul.f32 %v2256_v59, %v5164_v3  ;;  %v2266_v9 = vmul.f32 %v2258_v29, %v5144_v30  ;;  %v2268_v46 = vmul.f32 %v2260_v16, %v5146_v14  ;;  %v5816_v32 = vld [vmem:[%s6567_s2] sm:$0xff]   ;;  %v6960_v59 = vld [vmem:[#allocation33_spill] sm:$0xff]  ;;  %v6961_v29 = vld [vmem:[#allocation35_spill] sm:$0xff] }
 0xbf7   : > { %v2269_v41 = vadd.f32 %v2261_v52, %v5187_v31  ;;  %v2271_v43 = vadd.f32 %v2263_v20, %v5166_v5  ;;  %v2273_v27 = vadd.f32 %v2265_v26, %v5193_v50  ;;  %v2275_v45 = vadd.f32 %v2267_v55, %v5206_v22  ;;  %6957 = vst [vmem:[#allocation43_spill] sm:$0xff] %v5816_v32  ;;  %v6962_v16 = vld [vmem:[#allocation36_spill] sm:$0xff]  ;;  %v6964_v52 = vld [vmem:[#allocation38_spill] sm:$0xff]  ;;  %v6965_v20 = vld [vmem:[#allocation39_spill] sm:$0xff] }
 0xbf8   : > { %v2270_v62 = vadd.f32 %v2262_v0, %v5187_v31  ;;  %v2272_v1 = vadd.f32 %v2264_v17, %v5166_v5  ;;  %v2274_v47 = vadd.f32 %v2266_v9, %v5193_v50  ;;  %v2276_v40 = vadd.f32 %v2268_v46, %v5206_v22  ;;  %v6966_v26 = vld [vmem:[#allocation40_spill] sm:$0xff]  ;;  %v6967_v55 = vld [vmem:[#allocation41_spill] sm:$0xff]  ;;  %v6968_v0 = vld [vmem:[#allocation42_spill] sm:$0xff] }
 0xbf9   : > { %v2277_v8 = vmax.f32 %v2269_v41, 0.0  ;;  %v2279_v57 = vmax.f32 %v2271_v43, 0.0  ;;  %v2281_v13 = vmax.f32 %v2273_v27, 0.0  ;;  %v2283_v2 = vmax.f32 %v2275_v45, 0.0  ;;  %v6969_v41 = vld [vmem:[#allocation8_spill] sm:$0xff]  ;;  %v6970_v27 = vld [vmem:[#allocation9_spill] sm:$0xff] }
 0xbfa   : > { %v2278_v4 = vmax.f32 %v2270_v62, 0.0  ;;  %v2280_v44 = vmax.f32 %v2272_v1, 0.0  ;;  %v2282_v12 = vmax.f32 %v2274_v47, 0.0  ;;  %v2284_v39 = vmax.f32 %v2276_v40, 0.0 }
 0xbfb   : > { %2285 = vst [vmem:[%s5208_s17 + $0x30] sm:$0xff] %v2277_v8  ;;  %2287 = vst [vmem:[%s5208_s17 + $0xb0] sm:$0xff] %v2279_v57  ;;  %v2349_v37 = vsel %vm565_vm0, %v2346_v19, 0  ;;  %v2347_v25 = vpack.c.bf16 %v2341_v54, %v2341_v54  ;;  %v5828_v19 = vld [vmem:[%s6567_s2 + $0x8] sm:$0xff]   ;;  %v6959_v54 = vld [vmem:[#allocation32_spill] sm:$0xff] }
 0xbfc   : > { %2289 = vst [vmem:[%s5208_s17 + $0x130] sm:$0xff] %v2281_v13  ;;  %2291 = vst [vmem:[%s5208_s17 + $0x1b0] sm:$0xff] %v2283_v2  ;;  %v6971_v13 = vld [vmem:[#allocation10_spill] sm:$0xff] }
 0xbfd   : > { %2286 = vst [vmem:[%s5208_s17 + $0x38] sm:$0xff] %v2278_v4  ;;  %2288 = vst [vmem:[%s5208_s17 + $0xb8] sm:$0xff] %v2280_v44  ;;  %4259 = vmatprep.subr.msk.bf16.mxu0 %vm565_vm0, %v2347_v25 }
 0xbfe   : > { %2290 = vst [vmem:[%s5208_s17 + $0x138] sm:$0xff] %v2282_v12  ;;  %2292 = vst [vmem:[%s5208_s17 + $0x1b8] sm:$0xff] %v2284_v39  ;;  %2355 = vmatpush1.bf16.msra.mxu0 %v2349_v37  ;;  %v6972_v37 = vld [vmem:[#allocation11_spill] sm:$0xff] }
 0xbff   : > { %2503 = vmatprep.subr.bf16.mxu0 %v5675_v6  ;;  %6958 = vst [vmem:[#allocation44_spill] sm:$0xff] %v5828_v19 }
 0xc01   : > { %4260 = vmatmul.mubr.msk.bf16.vlgmr.msra.gmra.mrb[76].mxu0 %vm558_vm1, %v5816_v32 }
 0xc02   : > { %2396 = vmatprep.mubr.bf16.mxu0 %v6830_v51  ;;  %2504 = vmatpush1.bf16.msra.mxu0 %v5680_v63 }
 0xc03   : > { %2505 = vmatprep.subr.bf16.mxu0 %v5684_v61 }
 0xc06   : > { %2506 = vmatpush1.bf16.msra.mxu0 %v5688_v35 }
 0xc07   : > { %2507 = vmatprep.subr.bf16.mxu0 %v5691_v33 }
 0xc09   : > { %4261 = vmatmul.mubr.msk.bf16.gmra.mrb[80].mxu0 %vm558_vm1, %v5828_v19 }
 0xc0a   : > { %2508 = vmatpush1.bf16.msra.mxu0 %v5696_v11 }
 0xc0b   : > { %2509 = vmatprep.subr.bf16.mxu0 %v5699_v7 }
 0xc0e   : > { %2510 = vmatpush1.bf16.msra.mxu0 %v5702_v34 }
 0xc0f   : > { %2511 = vmatprep.subr.bf16.mxu0 %v5705_v48 }
 0xc12   : > { %2512 = vmatpush1.bf16.msra.mxu0 %v5708_v49 }
 0xc13   : > { %2513 = vmatprep.subr.bf16.mxu0 %v5711_v42 }
 0xc16   : > { %2514 = vmatpush1.bf16.msra.mxu0 %v5714_v53 }
 0xc17   : > { %2515 = vmatprep.subr.bf16.mxu0 %v5717_v10 }
 0xc1a   : > { %2516 = vmatpush1.bf16.msra.mxu0 %v5720_v21 }
 0xc1b   : > { %2517 = vmatprep.subr.bf16.mxu0 %v5723_v58 }
 0xc1e   : > { %2518 = vmatpush1.bf16.msra.mxu0 %v5726_v24 }
 0xc1f   : > { %2519 = vmatprep.subr.bf16.mxu0 %v5729_v36 }
 0xc22   : > { %2520 = vmatpush1.bf16.msra.mxu0 %v5732_v38 }
 0xc23   : > { %2521 = vmatprep.subr.bf16.mxu0 %v5735_v18 }
 0xc26   : > { %2522 = vmatpush1.bf16.msra.mxu0 %v5738_v28 }
 0xc27   : > { %2523 = vmatprep.subr.bf16.mxu0 %v5741_v56 }
 0xc2a   : > { %2524 = vmatpush1.bf16.msra.mxu0 %v5744_v15 }
 0xc2b   : > { %2525 = vmatprep.subr.bf16.mxu0 %v6959_v54 }
 0xc2e   : > { %2526 = vmatpush1.bf16.msra.mxu0 %v6960_v59 }
 0xc2f   : > { %2527 = vmatprep.subr.bf16.mxu0 %v6961_v29 }
 0xc32   : > { %2528 = vmatpush1.bf16.msra.mxu0 %v6962_v16 }
 0xc33   : > { %2529 = vmatprep.subr.bf16.mxu0 %v6963_v60 }
 0xc36   : > { %2530 = vmatpush1.bf16.msra.mxu0 %v6964_v52 }
 0xc37   : > { %2531 = vmatprep.subr.bf16.mxu0 %v6965_v20 }
 0xc3a   : > { %2532 = vmatpush1.bf16.msra.mxu0 %v6966_v26 }
 0xc3b   : > { %2533 = vmatprep.subr.bf16.mxu0 %v6967_v55 }
 0xc3e   : > { %2534 = vmatpush1.bf16.msra.mxu0 %v6968_v0 }
 0xcd4   : > { %v2388_v17 = vpop.f32.mrb[76].mxu0 }
 0xcd5   : > { %v2390_v9 = vpop.f32.mrb[77].mxu0  ;;  %v2389_v43 = vadd.f32 %v2388_v17, %v6969_v41 }
 0xcd6   : > { %v2392_v46 = vpop.f32.mrb[78].mxu0  ;;  %v2391_v1 = vadd.f32 %v2390_v9, %v6969_v41 }
 0xcd7   : > { %v2393_v45 = vadd.f32 %v2392_v46, %v6970_v27  ;;  %v2394_v62 = vpop.f32.mrb[79].mxu0 }
 0xcd8   : > { %v2395_v47 = vadd.f32 %v2394_v62, %v6970_v27 }
 0xcd9   : > { %v2407_v40 = vadd.f32 %v2393_v45, %v2389_v43 }
 0xcda   : > { %v2416_v8 = vadd.f32 %v2395_v47, %v2391_v1 }
 0xcdc   : > { %v2398_v57 = vpop.f32.mrb[80].mxu0 }
 0xcdd   : > { %v2399_v2 = vadd.f32 %v2398_v57, %v6971_v13  ;;  %v2400_v4 = vpop.f32.mrb[81].mxu0 }
 0xcde   : > { %v2401_v44 = vadd.f32 %v2400_v4, %v6971_v13  ;;  %v2402_v12 = vpop.f32.mrb[82].mxu0 }
 0xcdf   : > { %v2408_v39 = vadd.f32 %v2407_v40, %v2399_v2  ;;  %v2403_v25 = vadd.f32 %v2402_v12, %v6972_v37  ;;  %v2404_v17 = vpop.f32.mrb[83].mxu0 }
 0xce0   : > { %v2417_v19 = vadd.f32 %v2416_v8, %v2401_v44  ;;  %v2405_v46 = vadd.f32 %v2404_v17, %v6972_v37 }
 0xce1   : > { %v2409_v32 = vadd.f32 %v2408_v39, %v2403_v25 }
 0xce2   : > { %v2418_v9 = vadd.f32 %v2417_v19, %v2405_v46 }
 0xce3   : > { %v2410_v41 = vrot.slane %v2409_v32, 4 }
 0xce4   : > { %v2419_v62 = vrot.slane %v2418_v9, 4 }
 0xce5   : > { %v2411_v27 = vadd.f32 %v2410_v41, %v2409_v32 }
 0xce6   : > { %v2420_v22 = vadd.f32 %v2419_v62, %v2418_v9 }
 0xce7   : > { %v2412_v50 = vrot.slane %v2411_v27, 2 }
 0xce8   : > { %v2421_v5 = vrot.slane %v2420_v22, 2 }
 0xce9   : > { %v2413_v57 = vadd.f32 %v2412_v50, %v2411_v27 }
 0xcea   : > { %v2422_v31 = vadd.f32 %v2421_v5, %v2420_v22 }
 0xceb   : > { %v2414_v14 = vrot.slane %v2413_v57, 1 }
 0xcec   : > { %v2423_v4 = vrot.slane %v2422_v31, 1 }
 0xced   : > { %v2415_v13 = vadd.f32 %v2414_v14, %v2413_v57 }
 0xcee   : > { %v2424_v40 = vadd.f32 %v2423_v4, %v2422_v31 }
 0xcef   : > { %v2425_v30 = vmul.f32 0.03125, %v2415_v13 }
 0xcf0   : > { %v2426_v12 = vmul.f32 0.03125, %v2424_v40 }
 0xcf1   : > { %v2427_v3 = vsub.f32 %v2389_v43, %v2425_v30  ;;  %v2429_v8 = vsub.f32 %v2393_v45, %v2425_v30  ;;  %v2431_v23 = vsub.f32 %v2399_v2, %v2425_v30  ;;  %v2433_v17 = vsub.f32 %v2403_v25, %v2425_v30 }
 0xcf2   : > { %v2428_v39 = vsub.f32 %v2391_v1, %v2426_v12  ;;  %v2430_v19 = vsub.f32 %v2395_v47, %v2426_v12  ;;  %v2432_v37 = vsub.f32 %v2401_v44, %v2426_v12  ;;  %v2434_v0 = vsub.f32 %v2405_v46, %v2426_v12 }
 0xcf3   : > { %v2435_v32 = vmul.f32 %v2427_v3, %v2427_v3  ;;  %v2437_v41 = vmul.f32 %v2429_v8, %v2429_v8  ;;  %v2439_v50 = vmul.f32 %v2431_v23, %v2431_v23  ;;  %v2441_v14 = vmul.f32 %v2433_v17, %v2433_v17 }
 0xcf4   : > { %v2436_v9 = vmul.f32 %v2428_v39, %v2428_v39  ;;  %v2438_v62 = vmul.f32 %v2430_v19, %v2430_v19  ;;  %v2440_v22 = vmul.f32 %v2432_v37, %v2432_v37  ;;  %v2442_v13 = vmul.f32 %v2434_v0, %v2434_v0 }
 0xcf5   : > { %v2443_v5 = vadd.f32 %v2437_v41, %v2435_v32 }
 0xcf6   : > { %v2452_v27 = vadd.f32 %v2438_v62, %v2436_v9 }
 0xcf7   : > { %v2444_v31 = vadd.f32 %v2443_v5, %v2439_v50 }
 0xcf8   : > { %v2453_v57 = vadd.f32 %v2452_v27, %v2440_v22 }
 0xcf9   : > { %v2445_v43 = vadd.f32 %v2444_v31, %v2441_v14 }
 0xcfa   : > { %v2454_v45 = vadd.f32 %v2453_v57, %v2442_v13 }
 0xcfb   : > { %v2446_v2 = vrot.slane %v2445_v43, 4 }
 0xcfc   : > { %v2455_v30 = vrot.slane %v2454_v45, 4 }
 0xcfd   : > { %v2447_v1 = vadd.f32 %v2446_v2, %v2445_v43 }
 0xcfe   : > { %v2456_v47 = vadd.f32 %v2455_v30, %v2454_v45  ;;  %v6973_v30 = vld [vmem:[#allocation16_spill] sm:$0xff] }
 0xcff   : > { %v2448_v44 = vrot.slane %v2447_v1, 2 }
 0xd00   : > { %v2457_v25 = vrot.slane %v2456_v47, 2 }
 0xd01   : > { %v2449_v46 = vadd.f32 %v2448_v44, %v2447_v1 }
 0xd02   : > { %v2458_v4 = vadd.f32 %v2457_v25, %v2456_v47  ;;  %v6974_v47 = vld [vmem:[#allocation15_spill] sm:$0xff] }
 0xd03   : > { %v2450_v40 = vrot.slane %v2449_v46, 1 }
 0xd04   : > { %v2459_v12 = vrot.slane %v2458_v4, 1 }
 0xd05   : > { %v2451_v55 = vadd.f32 %v2450_v40, %v2449_v46  ;;  %v6976_v46 = vld [vmem:[#allocation14_spill] sm:$0xff] }
 0xd06   : > { %v2460_v32 = vadd.f32 %v2459_v12, %v2458_v4 }
 0xd07   : > { %v2461_v41 = vmul.f32 0.03125, %v2451_v55  ;;  %v6975_v55 = vld [vmem:[#allocation12_spill] sm:$0xff] }
 0xd08   : > { %v2462_v9 = vmul.f32 0.03125, %v2460_v32  ;;  %v6980_v32 = vld [vmem:[#allocation18_spill] sm:$0xff] }
 0xd09   : > { %v2463_v62 = vadd.f32 1e-05, %v2461_v41 }
 0xd0a   : > { %v2464_v50 = vadd.f32 1e-05, %v2462_v9 }
 0xd0b   : > { %4426 = vrsqrt.f32 %v2463_v62 }
 0xd0c   : > { %4428 = vrsqrt.f32 %v2464_v50 }
 0xd15   : > { %v4427_v5 = vpop.eup %4426 }
 0xd16   : > { %v4429_v22 = vpop.eup %4428  ;;  %v2467_v27 = vmul.f32 %v4427_v5, %v2427_v3  ;;  %v2469_v14 = vmul.f32 %v4427_v5, %v2429_v8  ;;  %v2473_v31 = vmul.f32 %v4427_v5, %v2433_v17  ;;  %v2471_v13 = vmul.f32 %v4427_v5, %v2431_v23  ;;  %v6978_v17 = vld [vmem:[#allocation17_spill] sm:$0xff] }
 0xd17   : > { %v2474_v57 = vmul.f32 %v4429_v22, %v2434_v0  ;;  %v2468_v43 = vmul.f32 %v4429_v22, %v2428_v39  ;;  %v2470_v45 = vmul.f32 %v4429_v22, %v2430_v19  ;;  %v2472_v2 = vmul.f32 %v4429_v22, %v2432_v37  ;;  %v6977_v0 = vld [vmem:[#allocation13_spill] sm:$0xff]  ;;  %v6979_v39 = vld [vmem:[#allocation19_spill] sm:$0xff] }
 0xd18   : > { %v2481_v1 = vmul.f32 %v2473_v31, %v6973_v30  ;;  %v2475_v44 = vmul.f32 %v2467_v27, %v6974_v47  ;;  %v2477_v25 = vmul.f32 %v2469_v14, %v6975_v55  ;;  %v2479_v4 = vmul.f32 %v2471_v13, %v6976_v46 }
 0xd19   : > { %v2482_v40 = vmul.f32 %v2474_v57, %v6973_v30  ;;  %v2476_v12 = vmul.f32 %v2468_v43, %v6974_v47  ;;  %v2478_v3 = vmul.f32 %v2470_v45, %v6975_v55  ;;  %v2480_v23 = vmul.f32 %v2472_v2, %v6976_v46 }
 0xd1a   : > { %v2483_v8 = vadd.f32 %v2475_v44, %v6977_v0  ;;  %v2485_v37 = vadd.f32 %v2477_v25, %v6978_v17  ;;  %v2487_v19 = vadd.f32 %v2479_v4, %v6979_v39  ;;  %v2489_v41 = vadd.f32 %v2481_v1, %v6980_v32 }
 0xd1b   : > { %v2484_v9 = vadd.f32 %v2476_v12, %v6977_v0  ;;  %v2486_v62 = vadd.f32 %v2478_v3, %v6978_v17  ;;  %v2488_v50 = vadd.f32 %v2480_v23, %v6979_v39  ;;  %v2490_v5 = vadd.f32 %v2482_v40, %v6980_v32 }
 0xd1c   : > { %v2491_v22 = vmax.f32 %v2483_v8, 0.0  ;;  %v2493_v27 = vmax.f32 %v2485_v37, 0.0  ;;  %v2495_v14 = vmax.f32 %v2487_v19, 0.0  ;;  %v2497_v31 = vmax.f32 %v2489_v41, 0.0 }
 0xd1d   : > { %v2492_v13 = vmax.f32 %v2484_v9, 0.0  ;;  %v2494_v57 = vmax.f32 %v2486_v62, 0.0  ;;  %v2496_v43 = vmax.f32 %v2488_v50, 0.0  ;;  %v2498_v45 = vmax.f32 %v2490_v5, 0.0  ;;  %v5888_v5 = vld [vmem:[%s6569_s4] sm:$0xff]  }
 0xd1e   : > { %v2499_v2 = vpack.c.bf16 %v2493_v27, %v2491_v22  ;;  %v2501_v44 = vpack.c.bf16 %v2497_v31, %v2495_v14  ;;  %6981 = vst [vmem:[#allocation45_spill] sm:$0xff] %v5888_v5  ;;  %v4264_v22 = vld.sshfl [vmem:[%s4771_s8 + $0x14] sm:$0x33 pattern:$0x76325410]  ;;  %v5901_v14 = vld [vmem:[%s6569_s4 + $0x8] sm:$0xff]  }
 0xd1f   : > { %v2500_v25 = vpack.c.bf16 %v2494_v57, %v2492_v13  ;;  %v2502_v1 = vpack.c.bf16 %v2498_v45, %v2496_v43  ;;  %v2722_v27 = vcombine.high %v4264_v22, %v4264_v22  ;;  %6982 = vst [vmem:[#allocation46_spill] sm:$0xff] %v5901_v14  ;;  %v6983_v31 = vld [vmem:[#allocation41_spill] sm:$0xff]  ;;  %v6984_v13 = vld [vmem:[#allocation42_spill] sm:$0xff] }
 0xd20   : > { %v6985_v43 = vld [vmem:[#allocation6_spill] sm:$0xff] }
 0xd21   : > { %2535 = vmatprep.mubr.bf16.mxu0 %v2500_v25  ;;  %v6986_v25 = vld [vmem:[#allocation7_spill] sm:$0xff] }
 0xd22   : > { %2536 = vmatmul.mubr.bf16.vlgmr.msra.gmra.mrb[84].mxu0 %v2499_v2 }
 0xd23   : > { %2545 = vmatprep.mubr.bf16.mxu0 %v2502_v1 }
 0xd2a   : > { %2546 = vmatmul.mubr.bf16.gmra.mrb[88].mxu0 %v2501_v44 }
 0xd2b   : > { %2806 = vmatprep.mubr.bf16.mxu0 %v6830_v51 }
 0xdf5   : > { %v2537_v4 = vpop.f32.mrb[84].mxu0 }
 0xdf6   : > { %v2539_v40 = vpop.f32.mrb[85].mxu0 }
 0xdf7   : > { %v2541_v12 = vpop.f32.mrb[86].mxu0 }
 0xdf8   : > { %v2556_v3 = vpack.c.bf16 %v2541_v12, %v2537_v4  ;;  %v2543_v23 = vpop.f32.mrb[87].mxu0 }
 0xdf9   : > { %v2557_v8 = vpack.c.bf16 %v2543_v23, %v2539_v40 }
 0xdfb   : > { %2560 = vmatprep.subr.bf16.mxu1 %v2557_v8 }
 0xdfc   : > { %2561 = vmatpush1.bf16.msra.mxu1 %v2556_v3 }
 0xdfd   : > { %v2547_v37 = vpop.f32.mrb[88].mxu0 }
 0xdfe   : > { %v2549_v19 = vpop.f32.mrb[89].mxu0 }
 0xdff   : > { %v2551_v41 = vpop.f32.mrb[90].mxu0 }
 0xe00   : > { %v2558_v9 = vpack.c.bf16 %v2551_v41, %v2547_v37  ;;  %v2553_v62 = vpop.f32.mrb[91].mxu0  ;;  %v6987_v37 = vld [vmem:[#allocation20_spill] sm:$0xff] }
 0xe01   : > { %v2559_v50 = vpack.c.bf16 %v2553_v62, %v2549_v19 }
 0xe03   : > { %2562 = vmatprep.subr.bf16.mxu1 %v2559_v50 }
 0xe04   : > { %2563 = vmatpush1.bf16.msra.mxu1 %v2558_v9 }
 0xe05   : > { %2725 = vmatprep.subr.bf16.mxu1 %v5675_v6 }
 0xe07   : > { %4262 = vmatmul.mubr.msk.bf16.vlgmr.msra.gmra.mrb[40].mxu1 %vm841_vm2, %v5888_v5 }
 0xe08   : > { %2726 = vmatpush1.bf16.msra.mxu1 %v5680_v63  ;;  %2602 = vmatprep.mubr.bf16.mxu1 %v6830_v51 }
 0xe09   : > { %2727 = vmatprep.subr.bf16.mxu1 %v5684_v61 }
 0xe0c   : > { %2728 = vmatpush1.bf16.msra.mxu1 %v5688_v35 }
 0xe0d   : > { %2729 = vmatprep.subr.bf16.mxu1 %v5691_v33 }
 0xe0f   : > { %4263 = vmatmul.mubr.msk.bf16.gmra.mrb[44].mxu1 %vm841_vm2, %v5901_v14 }
 0xe10   : > { %2730 = vmatpush1.bf16.msra.mxu1 %v5696_v11  ;;  %2757 = vmatprep.mubr.bf16.mxu1 %v2722_v27 }
 0xe11   : > { %2731 = vmatprep.subr.bf16.mxu1 %v5699_v7 }
 0xe14   : > { %2732 = vmatpush1.bf16.msra.mxu1 %v5702_v34 }
 0xe15   : > { %2733 = vmatprep.subr.bf16.mxu1 %v5705_v48 }
 0xe18   : > { %2734 = vmatpush1.bf16.msra.mxu1 %v5708_v49 }
 0xe19   : > { %2735 = vmatprep.subr.bf16.mxu1 %v5711_v42 }
 0xe1c   : > { %2736 = vmatpush1.bf16.msra.mxu1 %v5714_v53 }
 0xe1d   : > { %2737 = vmatprep.subr.bf16.mxu1 %v5717_v10 }
 0xe20   : > { %2738 = vmatpush1.bf16.msra.mxu1 %v5720_v21 }
 0xe21   : > { %2739 = vmatprep.subr.bf16.mxu1 %v5723_v58 }
 0xe24   : > { %2740 = vmatpush1.bf16.msra.mxu1 %v5726_v24 }
 0xe25   : > { %2741 = vmatprep.subr.bf16.mxu1 %v5729_v36 }
 0xe28   : > { %2742 = vmatpush1.bf16.msra.mxu1 %v5732_v38 }
 0xe29   : > { %2743 = vmatprep.subr.bf16.mxu1 %v5735_v18 }
 0xe2c   : > { %2744 = vmatpush1.bf16.msra.mxu1 %v5738_v28 }
 0xe2d   : > { %2745 = vmatprep.subr.bf16.mxu1 %v5741_v56 }
 0xe30   : > { %2746 = vmatpush1.bf16.msra.mxu1 %v5744_v15 }
 0xe31   : > { %2747 = vmatprep.subr.bf16.mxu1 %v6959_v54 }
 0xe34   : > { %2748 = vmatpush1.bf16.msra.mxu1 %v6960_v59 }
 0xe35   : > { %2749 = vmatprep.subr.bf16.mxu1 %v6961_v29 }
 0xe38   : > { %2750 = vmatpush1.bf16.msra.mxu1 %v6962_v16 }
 0xe39   : > { %2751 = vmatprep.subr.bf16.mxu1 %v6963_v60 }
 0xe3c   : > { %2752 = vmatpush1.bf16.msra.mxu1 %v6964_v52 }
 0xe3d   : > { %2753 = vmatprep.subr.bf16.mxu1 %v6965_v20 }
 0xe40   : > { %2754 = vmatpush1.bf16.msra.mxu1 %v6966_v26 }
 0xe41   : > { %2755 = vmatprep.subr.bf16.mxu1 %v6983_v31 }
 0xe44   : > { %2756 = vmatpush1.bf16.msra.mxu1 %v6984_v13 }
 0xe47   : > { %2758 = vmatmul.mubr.bf16.vlgmr.msra.gmra.mrb[48].mxu1 %v4264_v22  ;;  %v6988_v22 = vld [vmem:[#allocation21_spill] sm:$0xff] }
 0xe48   : > { %3012 = vmatprep.mubr.bf16.mxu1 %v6830_v51 }
 0xeda   : > { %v2594_v57 = vpop.f32.mrb[40].mxu1 }
 0xedb   : > { %v2595_v45 = vadd.f32 %v2594_v57, %v6985_v43  ;;  %v2596_v2 = vpop.f32.mrb[41].mxu1 }
 0xedc   : > { %v2598_v44 = vpop.f32.mrb[42].mxu1  ;;  %v2597_v40 = vadd.f32 %v2596_v2, %v6985_v43 }
 0xedd   : > { %v2599_v1 = vadd.f32 %v2598_v44, %v6986_v25  ;;  %v2600_v4 = vpop.f32.mrb[43].mxu1 }
 0xede   : > { %v2601_v12 = vadd.f32 %v2600_v4, %v6986_v25 }
 0xedf   : > { %v2613_v3 = vadd.f32 %v2599_v1, %v2595_v45 }
 0xee0   : > { %v2622_v23 = vadd.f32 %v2601_v12, %v2597_v40 }
 0xee2   : > { %v2604_v8 = vpop.f32.mrb[44].mxu1 }
 0xee3   : > { %v2605_v19 = vadd.f32 %v2604_v8, %v6987_v37  ;;  %v2606_v41 = vpop.f32.mrb[45].mxu1 }
 0xee4   : > { %v2607_v9 = vadd.f32 %v2606_v41, %v6987_v37  ;;  %v2608_v62 = vpop.f32.mrb[46].mxu1 }
 0xee5   : > { %v2614_v50 = vadd.f32 %v2613_v3, %v2605_v19  ;;  %v2609_v27 = vadd.f32 %v2608_v62, %v6988_v22  ;;  %v2610_v57 = vpop.f32.mrb[47].mxu1 }
 0xee6   : > { %v2623_v14 = vadd.f32 %v2622_v23, %v2607_v9  ;;  %v2611_v44 = vadd.f32 %v2610_v57, %v6988_v22 }
 0xee7   : > { %v2615_v5 = vadd.f32 %v2614_v50, %v2609_v27 }
 0xee8   : > { %v2624_v2 = vadd.f32 %v2623_v14, %v2611_v44 }
 0xee9   : > { %v2616_v43 = vrot.slane %v2615_v5, 4 }
 0xeea   : > { %v2625_v4 = vrot.slane %v2624_v2, 4 }
 0xeeb   : > { %v2617_v25 = vadd.f32 %v2616_v43, %v2615_v5 }
 0xeec   : > { %v2626_v32 = vadd.f32 %v2625_v4, %v2624_v2 }
 0xeed   : > { %v2618_v39 = vrot.slane %v2617_v25, 2 }
 0xeee   : > { %v2627_v17 = vrot.slane %v2626_v32, 2 }
 0xeef   : > { %v2619_v8 = vadd.f32 %v2618_v39, %v2617_v25 }
 0xef0   : > { %v2628_v0 = vadd.f32 %v2627_v17, %v2626_v32 }
 0xef1   : > { %v2620_v46 = vrot.slane %v2619_v8, 1 }
 0xef2   : > { %v2629_v41 = vrot.slane %v2628_v0, 1 }
 0xef3   : > { %v2621_v37 = vadd.f32 %v2620_v46, %v2619_v8 }
 0xef4   : > { %v2630_v3 = vadd.f32 %v2629_v41, %v2628_v0 }
 0xef5   : > { %v2631_v55 = vmul.f32 0.03125, %v2621_v37 }
 0xef6   : > { %v2632_v62 = vmul.f32 0.03125, %v2630_v3 }
 0xef7   : > { %v2633_v47 = vsub.f32 %v2595_v45, %v2631_v55  ;;  %v2635_v23 = vsub.f32 %v2599_v1, %v2631_v55  ;;  %v2637_v30 = vsub.f32 %v2605_v19, %v2631_v55  ;;  %v2639_v57 = vsub.f32 %v2609_v27, %v2631_v55 }
 0xef8   : > { %v2634_v50 = vsub.f32 %v2597_v40, %v2632_v62  ;;  %v2636_v14 = vsub.f32 %v2601_v12, %v2632_v62  ;;  %v2638_v22 = vsub.f32 %v2607_v9, %v2632_v62  ;;  %v2640_v13 = vsub.f32 %v2611_v44, %v2632_v62 }
 0xef9   : > { %v2641_v5 = vmul.f32 %v2633_v47, %v2633_v47  ;;  %v2643_v43 = vmul.f32 %v2635_v23, %v2635_v23  ;;  %v2645_v39 = vmul.f32 %v2637_v30, %v2637_v30  ;;  %v2647_v46 = vmul.f32 %v2639_v57, %v2639_v57 }
 0xefa   : > { %v2642_v2 = vmul.f32 %v2634_v50, %v2634_v50  ;;  %v2644_v4 = vmul.f32 %v2636_v14, %v2636_v14  ;;  %v2646_v32 = vmul.f32 %v2638_v22, %v2638_v22  ;;  %v2648_v37 = vmul.f32 %v2640_v13, %v2640_v13 }
 0xefb   : > { %v2649_v17 = vadd.f32 %v2643_v43, %v2641_v5 }
 0xefc   : > { %v2658_v25 = vadd.f32 %v2644_v4, %v2642_v2 }
 0xefd   : > { %v2650_v0 = vadd.f32 %v2649_v17, %v2645_v39 }
 0xefe   : > { %v2659_v8 = vadd.f32 %v2658_v25, %v2646_v32 }
 0xeff   : > { %v2651_v45 = vadd.f32 %v2650_v0, %v2647_v46 }
 0xf00   : > { %v2660_v1 = vadd.f32 %v2659_v8, %v2648_v37 }
 0xf01   : > { %v2652_v19 = vrot.slane %v2651_v45, 4 }
 0xf02   : > { %v2661_v55 = vrot.slane %v2660_v1, 4 }
 0xf03   : > { %v2653_v40 = vadd.f32 %v2652_v19, %v2651_v45 }
 0xf04   : > { %v2662_v12 = vadd.f32 %v2661_v55, %v2660_v1 }
 0xf05   : > { %v2654_v9 = vrot.slane %v2653_v40, 2 }
 0xf06   : > { %v2663_v27 = vrot.slane %v2662_v12, 2 }
 0xf07   : > { %v2655_v44 = vadd.f32 %v2654_v9, %v2653_v40 }
 0xf08   : > { %v2664_v41 = vadd.f32 %v2663_v27, %v2662_v12  ;;  %v6989_v27 = vld [vmem:[#allocation22_spill] sm:$0xff] }
 0xf09   : > { %v2656_v3 = vrot.slane %v2655_v44, 1 }
 0xf0a   : > { %v2665_v62 = vrot.slane %v2664_v41, 1 }
 0xf0b   : > { %v2657_v31 = vadd.f32 %v2656_v3, %v2655_v44 }
 0xf0c   : > { %v2666_v5 = vadd.f32 %v2665_v62, %v2664_v41  ;;  %v6990_v41 = vld [vmem:[#allocation25_spill] sm:$0xff]  ;;  %v6991_v62 = vld [vmem:[#allocation23_spill] sm:$0xff] }
 0xf0d   : > { %v2667_v43 = vmul.f32 0.03125, %v2657_v31 }
 0xf0e   : > { %v2668_v2 = vmul.f32 0.03125, %v2666_v5 }
 0xf0f   : > { %v2669_v4 = vadd.f32 1e-05, %v2667_v43  ;;  %v6992_v43 = vld [vmem:[#allocation24_spill] sm:$0xff] }
 0xf10   : > { %v2670_v39 = vadd.f32 1e-05, %v2668_v2 }
 0xf11   : > { %4430 = vrsqrt.f32 %v2669_v4 }
 0xf12   : > { %4432 = vrsqrt.f32 %v2670_v39 }
 0xf1a   : > { %v2759_v17 = vpop.f32.mrb[48].mxu1 }
 0xf1b   : > { %v4431_v32 = vpop.eup %4430  ;;  %v2766_v25 = vpack.c.bf16 %v2759_v17, %v2759_v17  ;;  %v2761_v46 = vpop.f32.mrb[49].mxu1  ;;  %v6996_v17 = vld [vmem:[#allocation29_spill] sm:$0xff] }
 0xf1c   : > { %v4433_v0 = vpop.eup %4432  ;;  %v2673_v37 = vmul.f32 %v4431_v32, %v2633_v47  ;;  %v2675_v8 = vmul.f32 %v4431_v32, %v2635_v23  ;;  %v2677_v45 = vmul.f32 %v4431_v32, %v2637_v30  ;;  %v2679_v1 = vmul.f32 %v4431_v32, %v2639_v57  ;;  %v2763_v19 = vpop.f32.mrb[50].mxu1  ;;  %v6993_v57 = vld [vmem:[#allocation27_spill] sm:$0xff] }
 0xf1d   : > { %v2674_v55 = vmul.f32 %v4433_v0, %v2634_v50  ;;  %v2676_v40 = vmul.f32 %v4433_v0, %v2636_v14  ;;  %v2678_v12 = vmul.f32 %v4433_v0, %v2638_v22  ;;  %v2680_v9 = vmul.f32 %v4433_v0, %v2640_v13  ;;  %v2764_v31 = vpop.f32.mrb[51].mxu1  ;;  %v6994_v13 = vld [vmem:[#allocation26_spill] sm:$0xff]  ;;  %v6995_v14 = vld [vmem:[#allocation28_spill] sm:$0xff] }
 0xf1e   : > { %v2681_v44 = vmul.f32 %v2673_v37, %v6989_v27  ;;  %v2683_v3 = vmul.f32 %v2675_v8, %v6990_v41  ;;  %v2685_v5 = vmul.f32 %v2677_v45, %v6991_v62  ;;  %v2687_v2 = vmul.f32 %v2679_v1, %v6992_v43 }
 0xf1f   : > { %v2682_v4 = vmul.f32 %v2674_v55, %v6989_v27  ;;  %v2684_v47 = vmul.f32 %v2676_v40, %v6990_v41  ;;  %v2686_v30 = vmul.f32 %v2678_v12, %v6991_v62  ;;  %v2688_v23 = vmul.f32 %v2680_v9, %v6992_v43 }
 0xf20   : > { %v2689_v22 = vadd.f32 %v2681_v44, %v6993_v57  ;;  %v2691_v50 = vadd.f32 %v2683_v3, %v6994_v13  ;;  %v2693_v39 = vadd.f32 %v2685_v5, %v6995_v14  ;;  %v2695_v32 = vadd.f32 %v2687_v2, %v6996_v17  ;;  %v6997_v2 = vld [vmem:[#allocation43_spill] sm:$0xff] }
 0xf21   : > { %v2690_v0 = vadd.f32 %v2682_v4, %v6993_v57  ;;  %v2692_v37 = vadd.f32 %v2684_v47, %v6994_v13  ;;  %v2694_v8 = vadd.f32 %v2686_v30, %v6995_v14  ;;  %v2696_v45 = vadd.f32 %v2688_v23, %v6996_v17 }
 0xf22   : > { %v2697_v1 = vmax.f32 %v2689_v22, 0.0  ;;  %v2699_v19 = vmax.f32 %v2691_v50, 0.0  ;;  %v2701_v55 = vmax.f32 %v2693_v39, 0.0  ;;  %v2703_v40 = vmax.f32 %v2695_v32, 0.0 }
 0xf23   : > { %v2698_v12 = vmax.f32 %v2690_v0, 0.0  ;;  %v2700_v9 = vmax.f32 %v2692_v37, 0.0  ;;  %v2702_v31 = vmax.f32 %v2694_v8, 0.0  ;;  %v2704_v44 = vmax.f32 %v2696_v45, 0.0 }
 0xf24   : > { %2705 = vst [vmem:[%s5208_s17 + $0x40] sm:$0xff] %v2697_v1  ;;  %2707 = vst [vmem:[%s5208_s17 + $0xc0] sm:$0xff] %v2699_v19  ;;  %v2769_v3 = vsel %vm565_vm0, %v2766_v25, 0  ;;  %v2767_v5 = vpack.c.bf16 %v2761_v46, %v2761_v46  ;;  %v6998_v25 = vld [vmem:[#allocation44_spill] sm:$0xff] }
 0xf25   : > { %2709 = vst [vmem:[%s5208_s17 + $0x140] sm:$0xff] %v2701_v55  ;;  %2711 = vst [vmem:[%s5208_s17 + $0x1c0] sm:$0xff] %v2703_v40 }
 0xf26   : > { %2706 = vst [vmem:[%s5208_s17 + $0x48] sm:$0xff] %v2698_v12  ;;  %2708 = vst [vmem:[%s5208_s17 + $0xc8] sm:$0xff] %v2700_v9  ;;  %4265 = vmatprep.subr.msk.bf16.mxu0 %vm565_vm0, %v2767_v5 }
 0xf27   : > { %2710 = vst [vmem:[%s5208_s17 + $0x148] sm:$0xff] %v2702_v31  ;;  %2712 = vst [vmem:[%s5208_s17 + $0x1c8] sm:$0xff] %v2704_v44  ;;  %2775 = vmatpush1.bf16.msra.mxu0 %v2769_v3 }
 0xf28   : > { %2923 = vmatprep.subr.bf16.mxu0 %v5675_v6  ;;  %v6999_v6 = vld [vmem:[#allocation41_spill] sm:$0xff] }
 0xf2a   : > { %4266 = vmatmul.mubr.msk.bf16.vlgmr.msra.gmra.mrb[92].mxu0 %vm558_vm1, %v6997_v2 }
 0xf2b   : > { %2816 = vmatprep.mubr.bf16.mxu0 %v6830_v51  ;;  %2924 = vmatpush1.bf16.msra.mxu0 %v5680_v63  ;;  %v7000_v63 = vld [vmem:[#allocation42_spill] sm:$0xff] }
 0xf2c   : > { %2925 = vmatprep.subr.bf16.mxu0 %v5684_v61 }
 0xf2f   : > { %2926 = vmatpush1.bf16.msra.mxu0 %v5688_v35 }
 0xf30   : > { %2927 = vmatprep.subr.bf16.mxu0 %v5691_v33 }
 0xf32   : > { %4267 = vmatmul.mubr.msk.bf16.gmra.mrb[96].mxu0 %vm558_vm1, %v6998_v25 }
 0xf33   : > { %2928 = vmatpush1.bf16.msra.mxu0 %v5696_v11  ;;  %v7001_v11 = vld [vmem:[#allocation8_spill] sm:$0xff] }
 0xf34   : > { %2929 = vmatprep.subr.bf16.mxu0 %v5699_v7 }
 0xf37   : > { %2930 = vmatpush1.bf16.msra.mxu0 %v5702_v34  ;;  %v7002_v34 = vld [vmem:[#allocation9_spill] sm:$0xff] }
 0xf38   : > { %2931 = vmatprep.subr.bf16.mxu0 %v5705_v48 }
 0xf3b   : > { %2932 = vmatpush1.bf16.msra.mxu0 %v5708_v49 }
 0xf3c   : > { %2933 = vmatprep.subr.bf16.mxu0 %v5711_v42 }
 0xf3f   : > { %2934 = vmatpush1.bf16.msra.mxu0 %v5714_v53 }
 0xf40   : > { %2935 = vmatprep.subr.bf16.mxu0 %v5717_v10 }
 0xf43   : > { %2936 = vmatpush1.bf16.msra.mxu0 %v5720_v21 }
 0xf44   : > { %2937 = vmatprep.subr.bf16.mxu0 %v5723_v58 }
 0xf47   : > { %2938 = vmatpush1.bf16.msra.mxu0 %v5726_v24  ;;  %v7003_v24 = vld [vmem:[#allocation10_spill] sm:$0xff] }
 0xf48   : > { %2939 = vmatprep.subr.bf16.mxu0 %v5729_v36 }
 0xf4b   : > { %2940 = vmatpush1.bf16.msra.mxu0 %v5732_v38 }
 0xf4c   : > { %2941 = vmatprep.subr.bf16.mxu0 %v5735_v18 }
 0xf4f   : > { %2942 = vmatpush1.bf16.msra.mxu0 %v5738_v28 }
 0xf50   : > { %2943 = vmatprep.subr.bf16.mxu0 %v5741_v56 }
 0xf53   : > { %2944 = vmatpush1.bf16.msra.mxu0 %v5744_v15  ;;  %v7004_v15 = vld [vmem:[#allocation11_spill] sm:$0xff] }
 0xf54   : > { %2945 = vmatprep.subr.bf16.mxu0 %v6959_v54 }
 0xf57   : > { %2946 = vmatpush1.bf16.msra.mxu0 %v6960_v59 }
 0xf58   : > { %2947 = vmatprep.subr.bf16.mxu0 %v6961_v29 }
 0xf5b   : > { %2948 = vmatpush1.bf16.msra.mxu0 %v6962_v16 }
 0xf5c   : > { %2949 = vmatprep.subr.bf16.mxu0 %v6963_v60 }
 0xf5f   : > { %2950 = vmatpush1.bf16.msra.mxu0 %v6964_v52 }
 0xf60   : > { %2951 = vmatprep.subr.bf16.mxu0 %v6965_v20 }
 0xf63   : > { %2952 = vmatpush1.bf16.msra.mxu0 %v6966_v26 }
 0xf64   : > { %2953 = vmatprep.subr.bf16.mxu0 %v6999_v6 }
 0xf67   : > { %2954 = vmatpush1.bf16.msra.mxu0 %v7000_v63 }
 0xffd   : > { %v2808_v61 = vpop.f32.mrb[92].mxu0 }
 0xffe   : > { %v2810_v35 = vpop.f32.mrb[93].mxu0  ;;  %v2809_v7 = vadd.f32 %v2808_v61, %v7001_v11 }
 0xfff   : > { %v2812_v33 = vpop.f32.mrb[94].mxu0  ;;  %v2811_v42 = vadd.f32 %v2810_v35, %v7001_v11 }
0x1000   : > { %v2813_v48 = vadd.f32 %v2812_v33, %v7002_v34  ;;  %v2814_v49 = vpop.f32.mrb[95].mxu0 }
0x1001   : > { %v2815_v53 = vadd.f32 %v2814_v49, %v7002_v34 }
0x1002   : > { %v2827_v10 = vadd.f32 %v2813_v48, %v2809_v7 }
0x1003   : > { %v2836_v21 = vadd.f32 %v2815_v53, %v2811_v42 }
0x1005   : > { %v2818_v58 = vpop.f32.mrb[96].mxu0 }
0x1006   : > { %v2819_v36 = vadd.f32 %v2818_v58, %v7003_v24  ;;  %v2820_v38 = vpop.f32.mrb[97].mxu0 }
0x1007   : > { %v2821_v18 = vadd.f32 %v2820_v38, %v7003_v24  ;;  %v2822_v28 = vpop.f32.mrb[98].mxu0 }
0x1008   : > { %v2828_v56 = vadd.f32 %v2827_v10, %v2819_v36  ;;  %v2823_v54 = vadd.f32 %v2822_v28, %v7004_v15  ;;  %v2824_v59 = vpop.f32.mrb[99].mxu0 }
0x1009   : > { %v2837_v29 = vadd.f32 %v2836_v21, %v2821_v18  ;;  %v2825_v16 = vadd.f32 %v2824_v59, %v7004_v15 }
0x100a   : > { %v2829_v60 = vadd.f32 %v2828_v56, %v2823_v54 }
0x100b   : > { %v2838_v52 = vadd.f32 %v2837_v29, %v2825_v16 }
0x100c   : > { %v2830_v20 = vrot.slane %v2829_v60, 4 }
0x100d   : > { %v2839_v26 = vrot.slane %v2838_v52, 4 }
0x100e   : > { %v2831_v46 = vadd.f32 %v2830_v20, %v2829_v60 }
0x100f   : > { %v2840_v4 = vadd.f32 %v2839_v26, %v2838_v52 }
0x1010   : > { %v2832_v47 = vrot.slane %v2831_v46, 2 }
0x1011   : > { %v2841_v30 = vrot.slane %v2840_v4, 2 }
0x1012   : > { %v2833_v23 = vadd.f32 %v2832_v47, %v2831_v46 }
0x1013   : > { %v2842_v22 = vadd.f32 %v2841_v30, %v2840_v4 }
0x1014   : > { %v2834_v50 = vrot.slane %v2833_v23, 1 }
0x1015   : > { %v2843_v39 = vrot.slane %v2842_v22, 1 }
0x1016   : > { %v2835_v32 = vadd.f32 %v2834_v50, %v2833_v23 }
0x1017   : > { %v2844_v0 = vadd.f32 %v2843_v39, %v2842_v22 }
0x1018   : > { %v2845_v37 = vmul.f32 0.03125, %v2835_v32 }
0x1019   : > { %v2846_v8 = vmul.f32 0.03125, %v2844_v0  ;;  %v7005_v0 = vld [vmem:[#allocation16_spill] sm:$0xff] }
0x101a   : > { %v2847_v45 = vsub.f32 %v2809_v7, %v2845_v37  ;;  %v2849_v1 = vsub.f32 %v2813_v48, %v2845_v37  ;;  %v2851_v19 = vsub.f32 %v2819_v36, %v2845_v37  ;;  %v2853_v55 = vsub.f32 %v2823_v54, %v2845_v37 }
0x101b   : > { %v2848_v40 = vsub.f32 %v2811_v42, %v2846_v8  ;;  %v2850_v12 = vsub.f32 %v2815_v53, %v2846_v8  ;;  %v2852_v9 = vsub.f32 %v2821_v18, %v2846_v8  ;;  %v2854_v31 = vsub.f32 %v2825_v16, %v2846_v8  ;;  %v7006_v8 = vld [vmem:[#allocation15_spill] sm:$0xff] }
0x101c   : > { %v2855_v44 = vmul.f32 %v2847_v45, %v2847_v45  ;;  %v2857_v3 = vmul.f32 %v2849_v1, %v2849_v1  ;;  %v2859_v25 = vmul.f32 %v2851_v19, %v2851_v19  ;;  %v2861_v35 = vmul.f32 %v2853_v55, %v2853_v55 }
0x101d   : > { %v2856_v5 = vmul.f32 %v2848_v40, %v2848_v40  ;;  %v2858_v2 = vmul.f32 %v2850_v12, %v2850_v12  ;;  %v2860_v63 = vmul.f32 %v2852_v9, %v2852_v9  ;;  %v2862_v49 = vmul.f32 %v2854_v31, %v2854_v31 }
0x101e   : > { %v2863_v6 = vadd.f32 %v2857_v3, %v2855_v44  ;;  %v7007_v3 = vld [vmem:[#allocation12_spill] sm:$0xff] }
0x101f   : > { %v2872_v61 = vadd.f32 %v2858_v2, %v2856_v5  ;;  %v7008_v2 = vld [vmem:[#allocation14_spill] sm:$0xff] }
0x1020   : > { %v2864_v33 = vadd.f32 %v2863_v6, %v2859_v25 }
0x1021   : > { %v2873_v10 = vadd.f32 %v2872_v61, %v2860_v63  ;;  %v7012_v61 = vld [vmem:[#allocation18_spill] sm:$0xff] }
0x1022   : > { %v2865_v7 = vadd.f32 %v2864_v33, %v2861_v35 }
0x1023   : > { %v2874_v48 = vadd.f32 %v2873_v10, %v2862_v49 }
0x1024   : > { %v2866_v21 = vrot.slane %v2865_v7, 4 }
0x1025   : > { %v2875_v58 = vrot.slane %v2874_v48, 4 }
0x1026   : > { %v2867_v42 = vadd.f32 %v2866_v21, %v2865_v7 }
0x1027   : > { %v2876_v53 = vadd.f32 %v2875_v58, %v2874_v48 }
0x1028   : > { %v2868_v36 = vrot.slane %v2867_v42, 2 }
0x1029   : > { %v2877_v38 = vrot.slane %v2876_v53, 2 }
0x102a   : > { %v2869_v18 = vadd.f32 %v2868_v36, %v2867_v42 }
0x102b   : > { %v2878_v28 = vadd.f32 %v2877_v38, %v2876_v53 }
0x102c   : > { %v2870_v56 = vrot.slane %v2869_v18, 1 }
0x102d   : > { %v2879_v54 = vrot.slane %v2878_v28, 1 }
0x102e   : > { %v2871_v59 = vadd.f32 %v2870_v56, %v2869_v18 }
0x102f   : > { %v2880_v29 = vadd.f32 %v2879_v54, %v2878_v28 }
0x1030   : > { %v2881_v16 = vmul.f32 0.03125, %v2871_v59 }
0x1031   : > { %v2882_v60 = vmul.f32 0.03125, %v2880_v29 }
0x1032   : > { %v2883_v52 = vadd.f32 1e-05, %v2881_v16 }
0x1033   : > { %v2884_v20 = vadd.f32 1e-05, %v2882_v60 }
0x1034   : > { %4434 = vrsqrt.f32 %v2883_v52 }
0x1035   : > { %4436 = vrsqrt.f32 %v2884_v20 }
0x103e   : > { %v4435_v26 = vpop.eup %4434 }
0x103f   : > { %v4437_v46 = vpop.eup %4436  ;;  %v2887_v4 = vmul.f32 %v4435_v26, %v2847_v45  ;;  %v2889_v47 = vmul.f32 %v4435_v26, %v2849_v1  ;;  %v2893_v30 = vmul.f32 %v4435_v26, %v2853_v55  ;;  %v2891_v23 = vmul.f32 %v4435_v26, %v2851_v19  ;;  %v7009_v19 = vld [vmem:[#allocation13_spill] sm:$0xff] }
0x1040   : > { %v2894_v22 = vmul.f32 %v4437_v46, %v2854_v31  ;;  %v2888_v50 = vmul.f32 %v4437_v46, %v2848_v40  ;;  %v2890_v39 = vmul.f32 %v4437_v46, %v2850_v12  ;;  %v2892_v32 = vmul.f32 %v4437_v46, %v2852_v9  ;;  %v7010_v40 = vld [vmem:[#allocation17_spill] sm:$0xff]  ;;  %v7011_v9 = vld [vmem:[#allocation19_spill] sm:$0xff] }
0x1041   : > { %v2901_v37 = vmul.f32 %v2893_v30, %v7005_v0  ;;  %v2895_v44 = vmul.f32 %v2887_v4, %v7006_v8  ;;  %v2897_v5 = vmul.f32 %v2889_v47, %v7007_v3  ;;  %v2899_v25 = vmul.f32 %v2891_v23, %v7008_v2 }
0x1042   : > { %v2902_v6 = vmul.f32 %v2894_v22, %v7005_v0  ;;  %v2896_v63 = vmul.f32 %v2888_v50, %v7006_v8  ;;  %v2898_v45 = vmul.f32 %v2890_v39, %v7007_v3  ;;  %v2900_v1 = vmul.f32 %v2892_v32, %v7008_v2  ;;  %v6029_v50 = vld [vmem:[#allocation2 + $0x4] ss:$8 sps:$4 sm:$0xff]   ;;  %v7013_v39 = vld [vmem:[#allocation45_spill] sm:$0xff]  ;;  %v6034_v32 = vld [vmem:[#allocation2] ss:$8 sps:$4 sm:$0xff]  }
0x1043   : > { %v2903_v55 = vadd.f32 %v2895_v44, %v7009_v19  ;;  %v2905_v12 = vadd.f32 %v2897_v5, %v7010_v40  ;;  %v2907_v31 = vadd.f32 %v2899_v25, %v7011_v9  ;;  %v2909_v35 = vadd.f32 %v2901_v37, %v7012_v61  ;;  %v6038_v37 = vld [vmem:[#allocation2 + $0x14] ss:$8 sps:$4 sm:$0xff]   ;;  %v4270_v44 = vld.sshfl [vmem:[%s4771_s8 + $0x18] sm:$0x33 pattern:$0x76325410] }
0x1044   : > { %v2904_v33 = vadd.f32 %v2896_v63, %v7009_v19  ;;  %v2906_v49 = vadd.f32 %v2898_v45, %v7010_v40  ;;  %v2908_v10 = vadd.f32 %v2900_v1, %v7011_v9  ;;  %v2910_v7 = vadd.f32 %v2902_v6, %v7012_v61  ;;  %v6042_v5 = vld [vmem:[#allocation2 + $0x10] ss:$8 sps:$4 sm:$0xff]   ;;  %v6045_v6 = vld [vmem:[#allocation2 + $0x24] ss:$8 sps:$4 sm:$0xff]   ;;  %v6050_v45 = vld [vmem:[#allocation2 + $0x20] ss:$8 sps:$4 sm:$0xff]  }
0x1045   : > { %v2911_v48 = vmax.f32 %v2903_v55, 0.0  ;;  %v2913_v21 = vmax.f32 %v2905_v12, 0.0  ;;  %v2915_v58 = vmax.f32 %v2907_v31, 0.0  ;;  %v2917_v42 = vmax.f32 %v2909_v35, 0.0  ;;  %v7014_v63 = vld [vmem:[#allocation46_spill] sm:$0xff]  ;;  %v7027_v19 = vld [vmem:[#allocation20_spill] sm:$0xff] }
0x1046   : > { %v2912_v53 = vmax.f32 %v2904_v33, 0.0  ;;  %v2914_v36 = vmax.f32 %v2906_v49, 0.0  ;;  %v2916_v38 = vmax.f32 %v2908_v10, 0.0  ;;  %v2918_v18 = vmax.f32 %v2910_v7, 0.0  ;;  %v6053_v1 = vld [vmem:[#allocation2 + $0x34] ss:$8 sps:$4 sm:$0xff]  }
0x1047   : > { %v2919_v28 = vpack.c.bf16 %v2913_v21, %v2911_v48  ;;  %v2921_v56 = vpack.c.bf16 %v2917_v42, %v2915_v58  ;;  %v3142_v25 = vcombine.high %v4270_v44, %v4270_v44  ;;  %v6056_v55 = vld [vmem:[#allocation2 + $0x30] ss:$8 sps:$4 sm:$0xff]   ;;  %v6059_v12 = vld [vmem:[#allocation2 + $0x44] ss:$8 sps:$4 sm:$0xff]   ;;  %v6062_v31 = vld [vmem:[#allocation2 + $0x40] ss:$8 sps:$4 sm:$0xff]  }
0x1048   : > { %v2920_v54 = vpack.c.bf16 %v2914_v36, %v2912_v53  ;;  %v2922_v59 = vpack.c.bf16 %v2918_v18, %v2916_v38  ;;  %v6065_v35 = vld [vmem:[#allocation2 + $0x54] ss:$8 sps:$4 sm:$0xff]   ;;  %v6068_v33 = vld [vmem:[#allocation2 + $0x50] ss:$8 sps:$4 sm:$0xff]   ;;  %v6071_v49 = vld [vmem:[#allocation2 + $0x64] ss:$8 sps:$4 sm:$0xff]  }
0x1049   : > { %v6074_v10 = vld [vmem:[#allocation2 + $0x60] ss:$8 sps:$4 sm:$0xff]   ;;  %v6077_v7 = vld [vmem:[#allocation2 + $0x74] ss:$8 sps:$4 sm:$0xff]   ;;  %v6080_v48 = vld [vmem:[#allocation2 + $0x70] ss:$8 sps:$4 sm:$0xff]  }
0x104a   : > { %2955 = vmatprep.mubr.bf16.mxu0 %v2920_v54  ;;  %v6083_v21 = vld [vmem:[#allocation2 + $0x84] ss:$8 sps:$4 sm:$0xff]   ;;  %v6086_v58 = vld [vmem:[#allocation2 + $0x80] ss:$8 sps:$4 sm:$0xff]   ;;  %v6089_v42 = vld [vmem:[#allocation2 + $0x94] ss:$8 sps:$4 sm:$0xff]  }
0x104b   : > { %2956 = vmatmul.mubr.bf16.vlgmr.msra.gmra.mrb[100].mxu0 %v2919_v28  ;;  %v6092_v53 = vld [vmem:[#allocation2 + $0x90] ss:$8 sps:$4 sm:$0xff]   ;;  %v6095_v36 = vld [vmem:[#allocation2 + $0xa4] ss:$8 sps:$4 sm:$0xff]   ;;  %v6098_v38 = vld [vmem:[#allocation2 + $0xa0] ss:$8 sps:$4 sm:$0xff]  }
0x104c   : > { %2965 = vmatprep.mubr.bf16.mxu0 %v2922_v59  ;;  %v6101_v18 = vld [vmem:[#allocation2 + $0xb4] ss:$8 sps:$4 sm:$0xff]   ;;  %v6104_v28 = vld [vmem:[#allocation2 + $0xb0] ss:$8 sps:$4 sm:$0xff]   ;;  %v6110_v54 = vld [vmem:[#allocation2 + $0xc0] ss:$8 sps:$4 sm:$0xff]  }
0x104d   : > { %7015 = vst [vmem:[#allocation47_spill] sm:$0xff] %v6101_v18  ;;  %7016 = vst [vmem:[#allocation48_spill] sm:$0xff] %v6104_v28  ;;  %v6113_v59 = vld [vmem:[#allocation2 + $0xd4] ss:$8 sps:$4 sm:$0xff]  }
0x104e   : > { %7018 = vst [vmem:[#allocation50_spill] sm:$0xff] %v6110_v54  ;;  %7019 = vst [vmem:[#allocation51_spill] sm:$0xff] %v6113_v59 }
0x1053   : > { %2966 = vmatmul.mubr.bf16.gmra.mrb[104].mxu0 %v2921_v56  ;;  %v6107_v56 = vld [vmem:[#allocation2 + $0xc4] ss:$8 sps:$4 sm:$0xff]  }
0x1054   : > { %3226 = vmatprep.mubr.bf16.mxu0 %v6830_v51  ;;  %7017 = vst [vmem:[#allocation49_spill] sm:$0xff] %v6107_v56 }
0x111e   : > { %v2957_v29 = vpop.f32.mrb[100].mxu0 }
0x111f   : > { %v2959_v16 = vpop.f32.mrb[101].mxu0 }
0x1120   : > { %v2961_v60 = vpop.f32.mrb[102].mxu0 }
0x1121   : > { %v2976_v52 = vpack.c.bf16 %v2961_v60, %v2957_v29  ;;  %v2963_v20 = vpop.f32.mrb[103].mxu0  ;;  %v6116_v29 = vld [vmem:[#allocation2 + $0xd0] ss:$8 sps:$4 sm:$0xff]   ;;  %v6122_v60 = vld [vmem:[#allocation2 + $0xe0] ss:$8 sps:$4 sm:$0xff]  }
0x1122   : > { %v2977_v26 = vpack.c.bf16 %v2963_v20, %v2959_v16  ;;  %7020 = vst [vmem:[#allocation30_spill] sm:$0xff] %v6116_v29  ;;  %v6119_v16 = vld [vmem:[#allocation2 + $0xe4] ss:$8 sps:$4 sm:$0xff]   ;;  %7022 = vst [vmem:[#allocation52_spill] sm:$0xff] %v6122_v60  ;;  %v6128_v20 = vld [vmem:[#allocation2 + $0xf0] ss:$8 sps:$4 sm:$0xff]  }
0x1123   : > { %7021 = vst [vmem:[#allocation34_spill] sm:$0xff] %v6119_v16  ;;  %7024 = vst [vmem:[#allocation54_spill] sm:$0xff] %v6128_v20 }
0x1124   : > { %2980 = vmatprep.subr.bf16.mxu1 %v2977_v26 }
0x1125   : > { %2981 = vmatpush1.bf16.msra.mxu1 %v2976_v52  ;;  %v6125_v52 = vld [vmem:[#allocation2 + $0xf4] ss:$8 sps:$4 sm:$0xff]  }
0x1126   : > { %v2967_v46 = vpop.f32.mrb[104].mxu0  ;;  %7023 = vst [vmem:[#allocation53_spill] sm:$0xff] %v6125_v52 }
0x1127   : > { %v2969_v4 = vpop.f32.mrb[105].mxu0 }
0x1128   : > { %v2971_v47 = vpop.f32.mrb[106].mxu0 }
0x1129   : > { %v2978_v30 = vpack.c.bf16 %v2971_v47, %v2967_v46  ;;  %v2973_v23 = vpop.f32.mrb[107].mxu0  ;;  %v7025_v46 = vld [vmem:[#allocation6_spill] sm:$0xff] }
0x112a   : > { %v2979_v22 = vpack.c.bf16 %v2973_v23, %v2969_v4  ;;  %v7026_v23 = vld [vmem:[#allocation7_spill] sm:$0xff] }
0x112c   : > { %2982 = vmatprep.subr.bf16.mxu1 %v2979_v22 }
0x112d   : > { %2983 = vmatpush1.bf16.msra.mxu1 %v2978_v30 }
0x112e   : > { %3145 = vmatprep.subr.bf16.mxu1 %v6029_v50 }
0x1130   : > { %4268 = vmatmul.mubr.msk.bf16.vlgmr.msra.gmra.mrb[52].mxu1 %vm841_vm2, %v7013_v39 }
0x1131   : > { %3146 = vmatpush1.bf16.msra.mxu1 %v6034_v32  ;;  %3022 = vmatprep.mubr.bf16.mxu1 %v6830_v51 }
0x1132   : > { %3147 = vmatprep.subr.bf16.mxu1 %v6038_v37 }
0x1135   : > { %3148 = vmatpush1.bf16.msra.mxu1 %v6042_v5 }
0x1136   : > { %3149 = vmatprep.subr.bf16.mxu1 %v6045_v6 }
0x1138   : > { %4269 = vmatmul.mubr.msk.bf16.gmra.mrb[56].mxu1 %vm841_vm2, %v7014_v63 }
0x1139   : > { %3150 = vmatpush1.bf16.msra.mxu1 %v6050_v45  ;;  %3177 = vmatprep.mubr.bf16.mxu1 %v3142_v25 }
0x113a   : > { %3151 = vmatprep.subr.bf16.mxu1 %v6053_v1 }
0x113d   : > { %3152 = vmatpush1.bf16.msra.mxu1 %v6056_v55 }
0x113e   : > { %3153 = vmatprep.subr.bf16.mxu1 %v6059_v12 }
0x1141   : > { %3154 = vmatpush1.bf16.msra.mxu1 %v6062_v31 }
0x1142   : > { %3155 = vmatprep.subr.bf16.mxu1 %v6065_v35 }
0x1145   : > { %3156 = vmatpush1.bf16.msra.mxu1 %v6068_v33 }
0x1146   : > { %3157 = vmatprep.subr.bf16.mxu1 %v6071_v49 }
0x1149   : > { %3158 = vmatpush1.bf16.msra.mxu1 %v6074_v10 }
0x114a   : > { %3159 = vmatprep.subr.bf16.mxu1 %v6077_v7 }
0x114d   : > { %3160 = vmatpush1.bf16.msra.mxu1 %v6080_v48 }
0x114e   : > { %3161 = vmatprep.subr.bf16.mxu1 %v6083_v21 }
0x1151   : > { %3162 = vmatpush1.bf16.msra.mxu1 %v6086_v58 }
0x1152   : > { %3163 = vmatprep.subr.bf16.mxu1 %v6089_v42 }
0x1155   : > { %3164 = vmatpush1.bf16.msra.mxu1 %v6092_v53 }
0x1156   : > { %3165 = vmatprep.subr.bf16.mxu1 %v6095_v36 }
0x1159   : > { %3166 = vmatpush1.bf16.msra.mxu1 %v6098_v38 }
0x115a   : > { %3167 = vmatprep.subr.bf16.mxu1 %v6101_v18 }
0x115d   : > { %3168 = vmatpush1.bf16.msra.mxu1 %v6104_v28 }
0x115e   : > { %3169 = vmatprep.subr.bf16.mxu1 %v6107_v56 }
0x1161   : > { %3170 = vmatpush1.bf16.msra.mxu1 %v6110_v54 }
0x1162   : > { %3171 = vmatprep.subr.bf16.mxu1 %v6113_v59 }
0x1165   : > { %3172 = vmatpush1.bf16.msra.mxu1 %v6116_v29 }
0x1166   : > { %3173 = vmatprep.subr.bf16.mxu1 %v6119_v16 }
0x1169   : > { %3174 = vmatpush1.bf16.msra.mxu1 %v6122_v60 }
0x116a   : > { %3175 = vmatprep.subr.bf16.mxu1 %v6125_v52 }
0x116d   : > { %3176 = vmatpush1.bf16.msra.mxu1 %v6128_v20 }
0x1170   : > { %3178 = vmatmul.mubr.bf16.vlgmr.msra.gmra.mrb[60].mxu1 %v4270_v44 }
0x1171   : > { %3432 = vmatprep.mubr.bf16.mxu1 %v6830_v51 }
0x1203   : > { %v3014_v26 = vpop.f32.mrb[52].mxu1 }
0x1204   : > { %v3015_v4 = vadd.f32 %v3014_v26, %v7025_v46  ;;  %v3016_v47 = vpop.f32.mrb[53].mxu1  ;;  %v7028_v26 = vld [vmem:[#allocation21_spill] sm:$0xff] }
0x1205   : > { %v3018_v30 = vpop.f32.mrb[54].mxu1  ;;  %v3017_v25 = vadd.f32 %v3016_v47, %v7025_v46 }
0x1206   : > { %v3019_v22 = vadd.f32 %v3018_v30, %v7026_v23  ;;  %v3020_v39 = vpop.f32.mrb[55].mxu1 }
0x1207   : > { %v3021_v63 = vadd.f32 %v3020_v39, %v7026_v23 }
0x1208   : > { %v3033_v61 = vadd.f32 %v3019_v22, %v3015_v4 }
0x1209   : > { %v3042_v9 = vadd.f32 %v3021_v63, %v3017_v25 }
0x120b   : > { %v3024_v40 = vpop.f32.mrb[56].mxu1 }
0x120c   : > { %v3025_v2 = vadd.f32 %v3024_v40, %v7027_v19  ;;  %v3026_v44 = vpop.f32.mrb[57].mxu1 }
0x120d   : > { %v3027_v3 = vadd.f32 %v3026_v44, %v7027_v19  ;;  %v3028_v8 = vpop.f32.mrb[58].mxu1 }
0x120e   : > { %v3034_v0 = vadd.f32 %v3033_v61, %v3025_v2  ;;  %v3029_v15 = vadd.f32 %v3028_v8, %v7028_v26  ;;  %v3030_v24 = vpop.f32.mrb[59].mxu1 }
0x120f   : > { %v3043_v34 = vadd.f32 %v3042_v9, %v3027_v3  ;;  %v3031_v30 = vadd.f32 %v3030_v24, %v7028_v26 }
0x1210   : > { %v3035_v11 = vadd.f32 %v3034_v0, %v3029_v15 }
0x1211   : > { %v3044_v47 = vadd.f32 %v3043_v34, %v3031_v30 }
0x1212   : > { %v3036_v46 = vrot.slane %v3035_v11, 4 }
0x1213   : > { %v3045_v39 = vrot.slane %v3044_v47, 4 }
0x1214   : > { %v3037_v23 = vadd.f32 %v3036_v46, %v3035_v11 }
0x1215   : > { %v3046_v20 = vadd.f32 %v3045_v39, %v3044_v47 }
0x1216   : > { %v3038_v52 = vrot.slane %v3037_v23, 2 }
0x1217   : > { %v3047_v60 = vrot.slane %v3046_v20, 2 }
0x1218   : > { %v3039_v40 = vadd.f32 %v3038_v52, %v3037_v23 }
0x1219   : > { %v3048_v16 = vadd.f32 %v3047_v60, %v3046_v20 }
0x121a   : > { %v3040_v29 = vrot.slane %v3039_v40, 1 }
0x121b   : > { %v3049_v44 = vrot.slane %v3048_v16, 1 }
0x121c   : > { %v3041_v19 = vadd.f32 %v3040_v29, %v3039_v40 }
0x121d   : > { %v3050_v61 = vadd.f32 %v3049_v44, %v3048_v16 }
0x121e   : > { %v3051_v59 = vmul.f32 0.03125, %v3041_v19 }
0x121f   : > { %v3052_v8 = vmul.f32 0.03125, %v3050_v61 }
0x1220   : > { %v3053_v54 = vsub.f32 %v3015_v4, %v3051_v59  ;;  %v3055_v9 = vsub.f32 %v3019_v22, %v3051_v59  ;;  %v3057_v56 = vsub.f32 %v3025_v2, %v3051_v59  ;;  %v3059_v24 = vsub.f32 %v3029_v15, %v3051_v59 }
0x1221   : > { %v3054_v0 = vsub.f32 %v3017_v25, %v3052_v8  ;;  %v3056_v34 = vsub.f32 %v3021_v63, %v3052_v8  ;;  %v3058_v26 = vsub.f32 %v3027_v3, %v3052_v8  ;;  %v3060_v28 = vsub.f32 %v3031_v30, %v3052_v8 }
0x1222   : > { %v3061_v11 = vmul.f32 %v3053_v54, %v3053_v54  ;;  %v3063_v46 = vmul.f32 %v3055_v9, %v3055_v9  ;;  %v3065_v52 = vmul.f32 %v3057_v56, %v3057_v56  ;;  %v3067_v29 = vmul.f32 %v3059_v24, %v3059_v24 }
0x1223   : > { %v3062_v47 = vmul.f32 %v3054_v0, %v3054_v0  ;;  %v3064_v39 = vmul.f32 %v3056_v34, %v3056_v34  ;;  %v3066_v20 = vmul.f32 %v3058_v26, %v3058_v26  ;;  %v3068_v19 = vmul.f32 %v3060_v28, %v3060_v28 }
0x1224   : > { %v3069_v60 = vadd.f32 %v3063_v46, %v3061_v11 }
0x1225   : > { %v3078_v23 = vadd.f32 %v3064_v39, %v3062_v47 }
0x1226   : > { %v3070_v16 = vadd.f32 %v3069_v60, %v3065_v52 }
0x1227   : > { %v3079_v40 = vadd.f32 %v3078_v23, %v3066_v20 }
0x1228   : > { %v3071_v4 = vadd.f32 %v3070_v16, %v3067_v29 }
0x1229   : > { %v3080_v22 = vadd.f32 %v3079_v40, %v3068_v19 }
0x122a   : > { %v3072_v2 = vrot.slane %v3071_v4, 4 }
0x122b   : > { %v3081_v15 = vrot.slane %v3080_v22, 4 }
0x122c   : > { %v3073_v59 = vadd.f32 %v3072_v2, %v3071_v4 }
0x122d   : > { %v3082_v25 = vadd.f32 %v3081_v15, %v3080_v22 }
0x122e   : > { %v3074_v3 = vrot.slane %v3073_v59, 2 }
0x122f   : > { %v3083_v63 = vrot.slane %v3082_v25, 2 }
0x1230   : > { %v3075_v30 = vadd.f32 %v3074_v3, %v3073_v59 }
0x1231   : > { %v3084_v44 = vadd.f32 %v3083_v63, %v3082_v25 }
0x1232   : > { %v3076_v61 = vrot.slane %v3075_v30, 1 }
0x1233   : > { %v3085_v8 = vrot.slane %v3084_v44, 1 }
0x1234   : > { %v3077_v18 = vadd.f32 %v3076_v61, %v3075_v30 }
0x1235   : > { %v3086_v11 = vadd.f32 %v3085_v8, %v3084_v44 }
0x1236   : > { %v3087_v46 = vmul.f32 0.03125, %v3077_v18 }
0x1237   : > { %v3088_v47 = vmul.f32 0.03125, %v3086_v11 }
0x1238   : > { %v3089_v39 = vadd.f32 1e-05, %v3087_v46 }
0x1239   : > { %v3090_v52 = vadd.f32 1e-05, %v3088_v47 }
0x123a   : > { %4438 = vrsqrt.f32 %v3089_v39 }
0x123b   : > { %4440 = vrsqrt.f32 %v3090_v52 }
0x1243   : > { %v3179_v60 = vpop.f32.mrb[60].mxu1 }
0x1244   : > { %v4439_v20 = vpop.eup %4438  ;;  %v3186_v23 = vpack.c.bf16 %v3179_v60, %v3179_v60  ;;  %v3181_v29 = vpop.f32.mrb[61].mxu1 }
0x1245   : > { %v4441_v16 = vpop.eup %4440  ;;  %v3093_v19 = vmul.f32 %v4439_v20, %v3053_v54  ;;  %v3095_v40 = vmul.f32 %v4439_v20, %v3055_v9  ;;  %v3097_v4 = vmul.f32 %v4439_v20, %v3057_v56  ;;  %v3099_v22 = vmul.f32 %v4439_v20, %v3059_v24  ;;  %v3183_v2 = vpop.f32.mrb[62].mxu1 }
0x1246   : > { %v3094_v15 = vmul.f32 %v4441_v16, %v3054_v0  ;;  %v3096_v59 = vmul.f32 %v4441_v16, %v3056_v34  ;;  %v3098_v25 = vmul.f32 %v4441_v16, %v3058_v26  ;;  %v3100_v3 = vmul.f32 %v4441_v16, %v3060_v28  ;;  %v3184_v18 = vpop.f32.mrb[63].mxu1 }
0x1247   : > { %v3101_v63 = vmul.f32 %v3093_v19, %v6989_v27  ;;  %v3103_v30 = vmul.f32 %v3095_v40, %v6990_v41  ;;  %v3105_v44 = vmul.f32 %v3097_v4, %v6991_v62  ;;  %v3107_v61 = vmul.f32 %v3099_v22, %v6992_v43  ;;  %v7035_v18 = vld [vmem:[#allocation51_spill] sm:$0xff] }
0x1248   : > { %v3102_v8 = vmul.f32 %v3094_v15, %v6989_v27  ;;  %v3104_v54 = vmul.f32 %v3096_v59, %v6990_v41  ;;  %v3106_v56 = vmul.f32 %v3098_v25, %v6991_v62  ;;  %v3108_v9 = vmul.f32 %v3100_v3, %v6992_v43  ;;  %v6170_v15 = vld [vmem:[%s6567_s2] sm:$0xff]   ;;  %v7032_v59 = vld [vmem:[#allocation48_spill] sm:$0xff]  ;;  %v7033_v25 = vld [vmem:[#allocation49_spill] sm:$0xff] }
0x1249   : > { %v3109_v26 = vadd.f32 %v3101_v63, %v6993_v57  ;;  %v3111_v28 = vadd.f32 %v3103_v30, %v6994_v13  ;;  %v3113_v24 = vadd.f32 %v3105_v44, %v6995_v14  ;;  %v3115_v0 = vadd.f32 %v3107_v61, %v6996_v17  ;;  %7029 = vst [vmem:[#allocation55_spill] sm:$0xff] %v6170_v15  ;;  %v7034_v3 = vld [vmem:[#allocation50_spill] sm:$0xff]  ;;  %v7038_v44 = vld [vmem:[#allocation52_spill] sm:$0xff]  ;;  %v7039_v61 = vld [vmem:[#allocation53_spill] sm:$0xff] }
0x124a   : > { %v3110_v34 = vadd.f32 %v3102_v8, %v6993_v57  ;;  %v3112_v11 = vadd.f32 %v3104_v54, %v6994_v13  ;;  %v3114_v46 = vadd.f32 %v3106_v56, %v6995_v14  ;;  %v3116_v47 = vadd.f32 %v3108_v9, %v6996_v17  ;;  %v7036_v63 = vld [vmem:[#allocation30_spill] sm:$0xff] }
0x124b   : > { %v3117_v39 = vmax.f32 %v3109_v26, 0.0  ;;  %v3119_v52 = vmax.f32 %v3111_v28, 0.0  ;;  %v3121_v60 = vmax.f32 %v3113_v24, 0.0  ;;  %v3123_v20 = vmax.f32 %v3115_v0, 0.0  ;;  %v7037_v30 = vld [vmem:[#allocation34_spill] sm:$0xff]  ;;  %v7041_v26 = vld [vmem:[#allocation8_spill] sm:$0xff] }
0x124c   : > { %v3118_v16 = vmax.f32 %v3110_v34, 0.0  ;;  %v3120_v19 = vmax.f32 %v3112_v11, 0.0  ;;  %v3122_v40 = vmax.f32 %v3114_v46, 0.0  ;;  %v3124_v4 = vmax.f32 %v3116_v47, 0.0  ;;  %v7040_v8 = vld [vmem:[#allocation54_spill] sm:$0xff]  ;;  %v7042_v24 = vld [vmem:[#allocation9_spill] sm:$0xff] }
0x124d   : > { %3125 = vst [vmem:[%s5208_s17 + $0x50] sm:$0xff] %v3117_v39  ;;  %3127 = vst [vmem:[%s5208_s17 + $0xd0] sm:$0xff] %v3119_v52  ;;  %v3189_v22 = vsel %vm565_vm0, %v3186_v23, 0  ;;  %v3187_v2 = vpack.c.bf16 %v3181_v29, %v3181_v29  ;;  %v6182_v23 = vld [vmem:[%s6567_s2 + $0x8] sm:$0xff]  }
0x124e   : > { %3129 = vst [vmem:[%s5208_s17 + $0x150] sm:$0xff] %v3121_v60  ;;  %3131 = vst [vmem:[%s5208_s17 + $0x1d0] sm:$0xff] %v3123_v20  ;;  %v7031_v29 = vld [vmem:[#allocation47_spill] sm:$0xff]  ;;  %v7043_v60 = vld [vmem:[#allocation10_spill] sm:$0xff] }
0x124f   : > { %3126 = vst [vmem:[%s5208_s17 + $0x58] sm:$0xff] %v3118_v16  ;;  %3128 = vst [vmem:[%s5208_s17 + $0xd8] sm:$0xff] %v3120_v19  ;;  %4271 = vmatprep.subr.msk.bf16.mxu0 %vm565_vm0, %v3187_v2 }
0x1250   : > { %3130 = vst [vmem:[%s5208_s17 + $0x158] sm:$0xff] %v3122_v40  ;;  %3132 = vst [vmem:[%s5208_s17 + $0x1d8] sm:$0xff] %v3124_v4  ;;  %3195 = vmatpush1.bf16.msra.mxu0 %v3189_v22  ;;  %v7044_v22 = vld [vmem:[#allocation11_spill] sm:$0xff] }
0x1251   : > { %3343 = vmatprep.subr.bf16.mxu0 %v6029_v50  ;;  %7030 = vst [vmem:[#allocation56_spill] sm:$0xff] %v6182_v23 }
0x1253   : > { %4272 = vmatmul.mubr.msk.bf16.vlgmr.msra.gmra.mrb[108].mxu0 %vm558_vm1, %v6170_v15 }
0x1254   : > { %3236 = vmatprep.mubr.bf16.mxu0 %v6830_v51  ;;  %3344 = vmatpush1.bf16.msra.mxu0 %v6034_v32 }
0x1255   : > { %3345 = vmatprep.subr.bf16.mxu0 %v6038_v37 }
0x1258   : > { %3346 = vmatpush1.bf16.msra.mxu0 %v6042_v5 }
0x1259   : > { %3347 = vmatprep.subr.bf16.mxu0 %v6045_v6 }
0x125b   : > { %4273 = vmatmul.mubr.msk.bf16.gmra.mrb[112].mxu0 %vm558_vm1, %v6182_v23 }
0x125c   : > { %3348 = vmatpush1.bf16.msra.mxu0 %v6050_v45 }
0x125d   : > { %3349 = vmatprep.subr.bf16.mxu0 %v6053_v1 }
0x1260   : > { %3350 = vmatpush1.bf16.msra.mxu0 %v6056_v55 }
0x1261   : > { %3351 = vmatprep.subr.bf16.mxu0 %v6059_v12 }
0x1264   : > { %3352 = vmatpush1.bf16.msra.mxu0 %v6062_v31 }
0x1265   : > { %3353 = vmatprep.subr.bf16.mxu0 %v6065_v35 }
0x1268   : > { %3354 = vmatpush1.bf16.msra.mxu0 %v6068_v33 }
0x1269   : > { %3355 = vmatprep.subr.bf16.mxu0 %v6071_v49 }
0x126c   : > { %3356 = vmatpush1.bf16.msra.mxu0 %v6074_v10 }
0x126d   : > { %3357 = vmatprep.subr.bf16.mxu0 %v6077_v7 }
0x1270   : > { %3358 = vmatpush1.bf16.msra.mxu0 %v6080_v48 }
0x1271   : > { %3359 = vmatprep.subr.bf16.mxu0 %v6083_v21 }
0x1274   : > { %3360 = vmatpush1.bf16.msra.mxu0 %v6086_v58 }
0x1275   : > { %3361 = vmatprep.subr.bf16.mxu0 %v6089_v42 }
0x1278   : > { %3362 = vmatpush1.bf16.msra.mxu0 %v6092_v53 }
0x1279   : > { %3363 = vmatprep.subr.bf16.mxu0 %v6095_v36 }
0x127c   : > { %3364 = vmatpush1.bf16.msra.mxu0 %v6098_v38 }
0x127d   : > { %3365 = vmatprep.subr.bf16.mxu0 %v7031_v29 }
0x1280   : > { %3366 = vmatpush1.bf16.msra.mxu0 %v7032_v59 }
0x1281   : > { %3367 = vmatprep.subr.bf16.mxu0 %v7033_v25 }
0x1284   : > { %3368 = vmatpush1.bf16.msra.mxu0 %v7034_v3 }
0x1285   : > { %3369 = vmatprep.subr.bf16.mxu0 %v7035_v18 }
0x1288   : > { %3370 = vmatpush1.bf16.msra.mxu0 %v7036_v63 }
0x1289   : > { %3371 = vmatprep.subr.bf16.mxu0 %v7037_v30 }
0x128c   : > { %3372 = vmatpush1.bf16.msra.mxu0 %v7038_v44 }
0x128d   : > { %3373 = vmatprep.subr.bf16.mxu0 %v7039_v61 }
0x1290   : > { %3374 = vmatpush1.bf16.msra.mxu0 %v7040_v8 }
0x1326   : > { %v3228_v54 = vpop.f32.mrb[108].mxu0 }
0x1327   : > { %v3230_v56 = vpop.f32.mrb[109].mxu0  ;;  %v3229_v28 = vadd.f32 %v3228_v54, %v7041_v26 }
0x1328   : > { %v3232_v9 = vpop.f32.mrb[110].mxu0  ;;  %v3231_v11 = vadd.f32 %v3230_v56, %v7041_v26 }
0x1329   : > { %v3233_v0 = vadd.f32 %v3232_v9, %v7042_v24  ;;  %v3234_v34 = vpop.f32.mrb[111].mxu0 }
0x132a   : > { %v3235_v46 = vadd.f32 %v3234_v34, %v7042_v24 }
0x132b   : > { %v3247_v47 = vadd.f32 %v3233_v0, %v3229_v28 }
0x132c   : > { %v3256_v39 = vadd.f32 %v3235_v46, %v3231_v11 }
0x132e   : > { %v3238_v52 = vpop.f32.mrb[112].mxu0 }
0x132f   : > { %v3239_v20 = vadd.f32 %v3238_v52, %v7043_v60  ;;  %v3240_v16 = vpop.f32.mrb[113].mxu0 }
0x1330   : > { %v3241_v19 = vadd.f32 %v3240_v16, %v7043_v60  ;;  %v3242_v40 = vpop.f32.mrb[114].mxu0 }
0x1331   : > { %v3248_v4 = vadd.f32 %v3247_v47, %v3239_v20  ;;  %v3243_v2 = vadd.f32 %v3242_v40, %v7044_v22  ;;  %v3244_v54 = vpop.f32.mrb[115].mxu0 }
0x1332   : > { %v3257_v23 = vadd.f32 %v3256_v39, %v3241_v19  ;;  %v3245_v9 = vadd.f32 %v3244_v54, %v7044_v22 }
0x1333   : > { %v3249_v15 = vadd.f32 %v3248_v4, %v3243_v2 }
0x1334   : > { %v3258_v56 = vadd.f32 %v3257_v23, %v3245_v9 }
0x1335   : > { %v3250_v26 = vrot.slane %v3249_v15, 4 }
0x1336   : > { %v3259_v34 = vrot.slane %v3258_v56, 4 }
0x1337   : > { %v3251_v24 = vadd.f32 %v3250_v26, %v3249_v15 }
0x1338   : > { %v3260_v17 = vadd.f32 %v3259_v34, %v3258_v56 }
0x1339   : > { %v3252_v14 = vrot.slane %v3251_v24, 2 }
0x133a   : > { %v3261_v13 = vrot.slane %v3260_v17, 2 }
0x133b   : > { %v3253_v52 = vadd.f32 %v3252_v14, %v3251_v24 }
0x133c   : > { %v3262_v57 = vadd.f32 %v3261_v13, %v3260_v17 }
0x133d   : > { %v3254_v43 = vrot.slane %v3253_v52, 1 }
0x133e   : > { %v3263_v16 = vrot.slane %v3262_v57, 1 }
0x133f   : > { %v3255_v60 = vadd.f32 %v3254_v43, %v3253_v52 }
0x1340   : > { %v3264_v47 = vadd.f32 %v3263_v16, %v3262_v57 }
0x1341   : > { %v3265_v62 = vmul.f32 0.03125, %v3255_v60 }
0x1342   : > { %v3266_v40 = vmul.f32 0.03125, %v3264_v47 }
0x1343   : > { %v3267_v41 = vsub.f32 %v3229_v28, %v3265_v62  ;;  %v3269_v39 = vsub.f32 %v3233_v0, %v3265_v62  ;;  %v3271_v27 = vsub.f32 %v3239_v20, %v3265_v62  ;;  %v3273_v54 = vsub.f32 %v3243_v2, %v3265_v62 }
0x1344   : > { %v3268_v4 = vsub.f32 %v3231_v11, %v3266_v40  ;;  %v3270_v23 = vsub.f32 %v3235_v46, %v3266_v40  ;;  %v3272_v22 = vsub.f32 %v3241_v19, %v3266_v40  ;;  %v3274_v8 = vsub.f32 %v3245_v9, %v3266_v40 }
0x1345   : > { %v3275_v15 = vmul.f32 %v3267_v41, %v3267_v41  ;;  %v3277_v26 = vmul.f32 %v3269_v39, %v3269_v39  ;;  %v3279_v14 = vmul.f32 %v3271_v27, %v3271_v27  ;;  %v3281_v43 = vmul.f32 %v3273_v54, %v3273_v54 }
0x1346   : > { %v3276_v56 = vmul.f32 %v3268_v4, %v3268_v4  ;;  %v3278_v34 = vmul.f32 %v3270_v23, %v3270_v23  ;;  %v3280_v17 = vmul.f32 %v3272_v22, %v3272_v22  ;;  %v3282_v60 = vmul.f32 %v3274_v8, %v3274_v8 }
0x1347   : > { %v3283_v13 = vadd.f32 %v3277_v26, %v3275_v15 }
0x1348   : > { %v3292_v24 = vadd.f32 %v3278_v34, %v3276_v56 }
0x1349   : > { %v3284_v57 = vadd.f32 %v3283_v13, %v3279_v14 }
0x134a   : > { %v3293_v52 = vadd.f32 %v3292_v24, %v3280_v17 }
0x134b   : > { %v3285_v28 = vadd.f32 %v3284_v57, %v3281_v43 }
0x134c   : > { %v3294_v0 = vadd.f32 %v3293_v52, %v3282_v60 }
0x134d   : > { %v3286_v20 = vrot.slane %v3285_v28, 4 }
0x134e   : > { %v3295_v62 = vrot.slane %v3294_v0, 4 }
0x134f   : > { %v3287_v11 = vadd.f32 %v3286_v20, %v3285_v28 }
0x1350   : > { %v3296_v46 = vadd.f32 %v3295_v62, %v3294_v0  ;;  %v7045_v62 = vld [vmem:[#allocation16_spill] sm:$0xff] }
0x1351   : > { %v3288_v19 = vrot.slane %v3287_v11, 2 }
0x1352   : > { %v3297_v2 = vrot.slane %v3296_v46, 2 }
0x1353   : > { %v3289_v9 = vadd.f32 %v3288_v19, %v3287_v11 }
0x1354   : > { %v3298_v16 = vadd.f32 %v3297_v2, %v3296_v46  ;;  %v7046_v46 = vld [vmem:[#allocation15_spill] sm:$0xff] }
0x1355   : > { %v3290_v47 = vrot.slane %v3289_v9, 1 }
0x1356   : > { %v3299_v40 = vrot.slane %v3298_v16, 1 }
0x1357   : > { %v3291_v61 = vadd.f32 %v3290_v47, %v3289_v9  ;;  %v7048_v9 = vld [vmem:[#allocation14_spill] sm:$0xff] }
0x1358   : > { %v3300_v15 = vadd.f32 %v3299_v40, %v3298_v16 }
0x1359   : > { %v3301_v26 = vmul.f32 0.03125, %v3291_v61  ;;  %v7047_v61 = vld [vmem:[#allocation12_spill] sm:$0xff] }
0x135a   : > { %v3302_v56 = vmul.f32 0.03125, %v3300_v15  ;;  %v7052_v15 = vld [vmem:[#allocation18_spill] sm:$0xff] }
0x135b   : > { %v3303_v34 = vadd.f32 1e-05, %v3301_v26 }
0x135c   : > { %v3304_v14 = vadd.f32 1e-05, %v3302_v56 }
0x135d   : > { %4442 = vrsqrt.f32 %v3303_v34 }
0x135e   : > { %4444 = vrsqrt.f32 %v3304_v14 }
0x1367   : > { %v4443_v13 = vpop.eup %4442 }
0x1368   : > { %v4445_v17 = vpop.eup %4444  ;;  %v3307_v24 = vmul.f32 %v4443_v13, %v3267_v41  ;;  %v3309_v43 = vmul.f32 %v4443_v13, %v3269_v39  ;;  %v3313_v57 = vmul.f32 %v4443_v13, %v3273_v54  ;;  %v3311_v60 = vmul.f32 %v4443_v13, %v3271_v27  ;;  %v7050_v54 = vld [vmem:[#allocation17_spill] sm:$0xff] }
0x1369   : > { %v3314_v52 = vmul.f32 %v4445_v17, %v3274_v8  ;;  %v3308_v28 = vmul.f32 %v4445_v17, %v3268_v4  ;;  %v3310_v0 = vmul.f32 %v4445_v17, %v3270_v23  ;;  %v3312_v20 = vmul.f32 %v4445_v17, %v3272_v22  ;;  %v7049_v8 = vld [vmem:[#allocation13_spill] sm:$0xff]  ;;  %v7051_v4 = vld [vmem:[#allocation19_spill] sm:$0xff] }
0x136a   : > { %v3321_v11 = vmul.f32 %v3313_v57, %v7045_v62  ;;  %v3315_v19 = vmul.f32 %v3307_v24, %v7046_v46  ;;  %v3317_v2 = vmul.f32 %v3309_v43, %v7047_v61  ;;  %v3319_v16 = vmul.f32 %v3311_v60, %v7048_v9 }
0x136b   : > { %v3322_v47 = vmul.f32 %v3314_v52, %v7045_v62  ;;  %v3316_v40 = vmul.f32 %v3308_v28, %v7046_v46  ;;  %v3318_v41 = vmul.f32 %v3310_v0, %v7047_v61  ;;  %v3320_v27 = vmul.f32 %v3312_v20, %v7048_v9 }
0x136c   : > { %v3323_v39 = vadd.f32 %v3315_v19, %v7049_v8  ;;  %v3325_v22 = vadd.f32 %v3317_v2, %v7050_v54  ;;  %v3327_v23 = vadd.f32 %v3319_v16, %v7051_v4  ;;  %v3329_v26 = vadd.f32 %v3321_v11, %v7052_v15 }
0x136d   : > { %v3324_v56 = vadd.f32 %v3316_v40, %v7049_v8  ;;  %v3326_v34 = vadd.f32 %v3318_v41, %v7050_v54  ;;  %v3328_v14 = vadd.f32 %v3320_v27, %v7051_v4  ;;  %v3330_v13 = vadd.f32 %v3322_v47, %v7052_v15 }
0x136e   : > { %v3331_v17 = vmax.f32 %v3323_v39, 0.0  ;;  %v3333_v24 = vmax.f32 %v3325_v22, 0.0  ;;  %v3335_v43 = vmax.f32 %v3327_v23, 0.0  ;;  %v3337_v57 = vmax.f32 %v3329_v26, 0.0 }
0x136f   : > { %v3332_v60 = vmax.f32 %v3324_v56, 0.0  ;;  %v3334_v52 = vmax.f32 %v3326_v34, 0.0  ;;  %v3336_v28 = vmax.f32 %v3328_v14, 0.0  ;;  %v3338_v0 = vmax.f32 %v3330_v13, 0.0  ;;  %v6242_v13 = vld [vmem:[%s6569_s4] sm:$0xff]  }
0x1370   : > { %v3339_v20 = vpack.c.bf16 %v3333_v24, %v3331_v17  ;;  %v3341_v19 = vpack.c.bf16 %v3337_v57, %v3335_v43  ;;  %v4276_v17 = vld.sshfl [vmem:[%s4771_s8 + $0x1c] sm:$0x33 pattern:$0x76325410]  ;;  %v6255_v43 = vld [vmem:[%s6569_s4 + $0x8] sm:$0xff]   ;;  %s4287_s8 = sshll.u32 (%p7073_p6), %s4676_s24, 7 }
0x1371   : > { %v3340_v2 = vpack.c.bf16 %v3334_v52, %v3332_v60  ;;  %v3342_v11 = vpack.c.bf16 %v3338_v0, %v3336_v28  ;;  %v3562_v24 = vcombine.high %v4276_v17, %v4276_v17  ;;  %v7053_v57 = vld [vmem:[#allocation53_spill] sm:$0xff]  ;;  %v7054_v60 = vld [vmem:[#allocation54_spill] sm:$0xff]  ;;  %s6428_s10 = scalar_lea.vmem (%p7073_p6), %s6571_s6, %s4287_s8 }
0x1373   : > { %3375 = vmatprep.mubr.bf16.mxu0 %v3340_v2 }
0x1374   : > { %3376 = vmatmul.mubr.bf16.vlgmr.msra.gmra.mrb[116].mxu0 %v3339_v20 }
0x1375   : > { %3385 = vmatprep.mubr.bf16.mxu0 %v3342_v11 }
0x137c   : > { %3386 = vmatmul.mubr.bf16.gmra.mrb[120].mxu0 %v3341_v19 }
0x137d   : > { %3646 = vmatprep.mubr.bf16.mxu0 %v6830_v51 }
0x1447   : > { %v3377_v16 = vpop.f32.mrb[116].mxu0 }
0x1448   : > { %v3379_v47 = vpop.f32.mrb[117].mxu0 }
0x1449   : > { %v3381_v40 = vpop.f32.mrb[118].mxu0 }
0x144a   : > { %v3396_v41 = vpack.c.bf16 %v3381_v40, %v3377_v16  ;;  %v3383_v27 = vpop.f32.mrb[119].mxu0 }
0x144b   : > { %v3397_v39 = vpack.c.bf16 %v3383_v27, %v3379_v47 }
0x144d   : > { %3400 = vmatprep.subr.bf16.mxu1 %v3397_v39 }
0x144e   : > { %3401 = vmatpush1.bf16.msra.mxu1 %v3396_v41 }
0x144f   : > { %v3387_v22 = vpop.f32.mrb[120].mxu0 }
0x1450   : > { %v3389_v23 = vpop.f32.mrb[121].mxu0 }
0x1451   : > { %v3391_v26 = vpop.f32.mrb[122].mxu0 }
0x1452   : > { %v3398_v56 = vpack.c.bf16 %v3391_v26, %v3387_v22  ;;  %v3393_v34 = vpop.f32.mrb[123].mxu0 }
0x1453   : > { %v3399_v14 = vpack.c.bf16 %v3393_v34, %v3389_v23 }
0x1455   : > { %3402 = vmatprep.subr.bf16.mxu1 %v3399_v14 }
0x1456   : > { %3403 = vmatpush1.bf16.msra.mxu1 %v3398_v56 }
0x1457   : > { %3565 = vmatprep.subr.bf16.mxu1 %v6029_v50 }
0x1459   : > { %4274 = vmatmul.mubr.msk.bf16.vlgmr.msra.gmra.mrb[64].mxu1 %vm841_vm2, %v6242_v13 }
0x145a   : > { %3566 = vmatpush1.bf16.msra.mxu1 %v6034_v32  ;;  %3442 = vmatprep.mubr.bf16.mxu1 %v6830_v51 }
0x145b   : > { %3567 = vmatprep.subr.bf16.mxu1 %v6038_v37 }
0x145e   : > { %3568 = vmatpush1.bf16.msra.mxu1 %v6042_v5 }
0x145f   : > { %3569 = vmatprep.subr.bf16.mxu1 %v6045_v6 }
0x1461   : > { %4275 = vmatmul.mubr.msk.bf16.gmra.mrb[68].mxu1 %vm841_vm2, %v6255_v43 }
0x1462   : > { %3570 = vmatpush1.bf16.msra.mxu1 %v6050_v45  ;;  %3597 = vmatprep.mubr.bf16.mxu1 %v3562_v24 }
0x1463   : > { %3571 = vmatprep.subr.bf16.mxu1 %v6053_v1 }
0x1466   : > { %3572 = vmatpush1.bf16.msra.mxu1 %v6056_v55 }
0x1467   : > { %3573 = vmatprep.subr.bf16.mxu1 %v6059_v12 }
0x146a   : > { %3574 = vmatpush1.bf16.msra.mxu1 %v6062_v31 }
0x146b   : > { %3575 = vmatprep.subr.bf16.mxu1 %v6065_v35 }
0x146e   : > { %3576 = vmatpush1.bf16.msra.mxu1 %v6068_v33 }
0x146f   : > { %3577 = vmatprep.subr.bf16.mxu1 %v6071_v49 }
0x1472   : > { %3578 = vmatpush1.bf16.msra.mxu1 %v6074_v10 }
0x1473   : > { %3579 = vmatprep.subr.bf16.mxu1 %v6077_v7 }
0x1476   : > { %3580 = vmatpush1.bf16.msra.mxu1 %v6080_v48 }
0x1477   : > { %3581 = vmatprep.subr.bf16.mxu1 %v6083_v21 }
0x147a   : > { %3582 = vmatpush1.bf16.msra.mxu1 %v6086_v58 }
0x147b   : > { %3583 = vmatprep.subr.bf16.mxu1 %v6089_v42 }
0x147e   : > { %3584 = vmatpush1.bf16.msra.mxu1 %v6092_v53 }
0x147f   : > { %3585 = vmatprep.subr.bf16.mxu1 %v6095_v36 }
0x1482   : > { %3586 = vmatpush1.bf16.msra.mxu1 %v6098_v38 }
0x1483   : > { %3587 = vmatprep.subr.bf16.mxu1 %v7031_v29 }
0x1486   : > { %3588 = vmatpush1.bf16.msra.mxu1 %v7032_v59 }
0x1487   : > { %3589 = vmatprep.subr.bf16.mxu1 %v7033_v25 }
0x148a   : > { %3590 = vmatpush1.bf16.msra.mxu1 %v7034_v3 }
0x148b   : > { %3591 = vmatprep.subr.bf16.mxu1 %v7035_v18 }
0x148e   : > { %3592 = vmatpush1.bf16.msra.mxu1 %v7036_v63 }
0x148f   : > { %3593 = vmatprep.subr.bf16.mxu1 %v7037_v30 }
0x1492   : > { %3594 = vmatpush1.bf16.msra.mxu1 %v7038_v44 }
0x1493   : > { %3595 = vmatprep.subr.bf16.mxu1 %v7053_v57 }
0x1496   : > { %3596 = vmatpush1.bf16.msra.mxu1 %v7054_v60 }
0x1497   : > { %3763 = vmatprep.subr.bf16.mxu1 %v6029_v50 }
0x1499   : > { %3598 = vmatmul.mubr.bf16.vlgmr.msra.gmra.mrb[72].mxu1 %v4276_v17 }
0x149a   : > { %3764 = vmatpush1.bf16.msra.mxu1 %v6034_v32  ;;  %v7055_v32 = vld [vmem:[#allocation6_spill] sm:$0xff] }
0x149b   : > { %3765 = vmatprep.subr.bf16.mxu1 %v6038_v37 }
0x149e   : > { %3766 = vmatpush1.bf16.msra.mxu1 %v6042_v5 }
0x149f   : > { %3767 = vmatprep.subr.bf16.mxu1 %v6045_v6 }
0x14a2   : > { %3768 = vmatpush1.bf16.msra.mxu1 %v6050_v45  ;;  %v7056_v45 = vld [vmem:[#allocation7_spill] sm:$0xff] }
0x14a3   : > { %3769 = vmatprep.subr.bf16.mxu1 %v6053_v1 }
0x14a6   : > { %3770 = vmatpush1.bf16.msra.mxu1 %v6056_v55 }
0x14a7   : > { %3771 = vmatprep.subr.bf16.mxu1 %v6059_v12 }
0x14aa   : > { %3772 = vmatpush1.bf16.msra.mxu1 %v6062_v31 }
0x14ab   : > { %3773 = vmatprep.subr.bf16.mxu1 %v6065_v35 }
0x14ae   : > { %3774 = vmatpush1.bf16.msra.mxu1 %v6068_v33 }
0x14af   : > { %3775 = vmatprep.subr.bf16.mxu1 %v6071_v49 }
0x14b2   : > { %3776 = vmatpush1.bf16.msra.mxu1 %v6074_v10  ;;  %v7057_v10 = vld [vmem:[#allocation20_spill] sm:$0xff] }
0x14b3   : > { %3777 = vmatprep.subr.bf16.mxu1 %v6077_v7 }
0x14b6   : > { %3778 = vmatpush1.bf16.msra.mxu1 %v6080_v48 }
0x14b7   : > { %3779 = vmatprep.subr.bf16.mxu1 %v6083_v21 }
0x14ba   : > { %3780 = vmatpush1.bf16.msra.mxu1 %v6086_v58 }
0x14bb   : > { %3781 = vmatprep.subr.bf16.mxu1 %v6089_v42 }
0x14be   : > { %3782 = vmatpush1.bf16.msra.mxu1 %v6092_v53  ;;  %v7058_v53 = vld [vmem:[#allocation21_spill] sm:$0xff] }
0x14bf   : > { %3783 = vmatprep.subr.bf16.mxu1 %v6095_v36 }
0x14c2   : > { %3784 = vmatpush1.bf16.msra.mxu1 %v6098_v38 }
0x14c3   : > { %3785 = vmatprep.subr.bf16.mxu1 %v7031_v29 }
0x14c6   : > { %3786 = vmatpush1.bf16.msra.mxu1 %v7032_v59 }
0x14c7   : > { %3787 = vmatprep.subr.bf16.mxu1 %v7033_v25 }
0x14ca   : > { %3788 = vmatpush1.bf16.msra.mxu1 %v7034_v3 }
0x14cb   : > { %3789 = vmatprep.subr.bf16.mxu1 %v7035_v18 }
0x14ce   : > { %3790 = vmatpush1.bf16.msra.mxu1 %v7036_v63 }
0x14cf   : > { %3791 = vmatprep.subr.bf16.mxu1 %v7037_v30 }
0x14d2   : > { %3792 = vmatpush1.bf16.msra.mxu1 %v7038_v44 }
0x14d3   : > { %3793 = vmatprep.subr.bf16.mxu1 %v7053_v57 }
0x14d6   : > { %3794 = vmatpush1.bf16.msra.mxu1 %v7054_v60 }
0x152c   : > { %v3434_v50 = vpop.f32.mrb[64].mxu1 }
0x152d   : > { %v3435_v37 = vadd.f32 %v3434_v50, %v7055_v32  ;;  %v3436_v5 = vpop.f32.mrb[65].mxu1 }
0x152e   : > { %v3438_v6 = vpop.f32.mrb[66].mxu1  ;;  %v3437_v12 = vadd.f32 %v3436_v5, %v7055_v32 }
0x152f   : > { %v3439_v1 = vadd.f32 %v3438_v6, %v7056_v45  ;;  %v3440_v55 = vpop.f32.mrb[67].mxu1 }
0x1530   : > { %v3441_v31 = vadd.f32 %v3440_v55, %v7056_v45 }
0x1531   : > { %v3453_v35 = vadd.f32 %v3439_v1, %v3435_v37 }
0x1532   : > { %v3462_v33 = vadd.f32 %v3441_v31, %v3437_v12 }
0x1534   : > { %v3444_v49 = vpop.f32.mrb[68].mxu1 }
0x1535   : > { %v3445_v7 = vadd.f32 %v3444_v49, %v7057_v10  ;;  %v3446_v48 = vpop.f32.mrb[69].mxu1 }
0x1536   : > { %v3447_v21 = vadd.f32 %v3446_v48, %v7057_v10  ;;  %v3448_v58 = vpop.f32.mrb[70].mxu1 }
0x1537   : > { %v3454_v42 = vadd.f32 %v3453_v35, %v3445_v7  ;;  %v3449_v36 = vadd.f32 %v3448_v58, %v7058_v53  ;;  %v3450_v38 = vpop.f32.mrb[71].mxu1 }
0x1538   : > { %v3463_v29 = vadd.f32 %v3462_v33, %v3447_v21  ;;  %v3451_v59 = vadd.f32 %v3450_v38, %v7058_v53 }
0x1539   : > { %v3455_v25 = vadd.f32 %v3454_v42, %v3449_v36 }
0x153a   : > { %v3464_v3 = vadd.f32 %v3463_v29, %v3451_v59 }
0x153b   : > { %v3456_v18 = vrot.slane %v3455_v25, 4 }
0x153c   : > { %v3465_v63 = vrot.slane %v3464_v3, 4 }
0x153d   : > { %v3457_v30 = vadd.f32 %v3456_v18, %v3455_v25 }
0x153e   : > { %v3466_v44 = vadd.f32 %v3465_v63, %v3464_v3 }
0x153f   : > { %v3458_v52 = vrot.slane %v3457_v30, 2 }
0x1540   : > { %v3467_v28 = vrot.slane %v3466_v44, 2 }
0x1541   : > { %v3459_v0 = vadd.f32 %v3458_v52, %v3457_v30 }
0x1542   : > { %v3468_v20 = vadd.f32 %v3467_v28, %v3466_v44 }
0x1543   : > { %v3460_v19 = vrot.slane %v3459_v0, 1 }
0x1544   : > { %v3469_v2 = vrot.slane %v3468_v20, 1 }
0x1545   : > { %v3461_v11 = vadd.f32 %v3460_v19, %v3459_v0 }
0x1546   : > { %v3470_v16 = vadd.f32 %v3469_v2, %v3468_v20 }
0x1547   : > { %v3471_v47 = vmul.f32 0.03125, %v3461_v11 }
0x1548   : > { %v3472_v40 = vmul.f32 0.03125, %v3470_v16 }
0x1549   : > { %v3473_v41 = vsub.f32 %v3435_v37, %v3471_v47  ;;  %v3475_v27 = vsub.f32 %v3439_v1, %v3471_v47  ;;  %v3477_v39 = vsub.f32 %v3445_v7, %v3471_v47  ;;  %v3479_v22 = vsub.f32 %v3449_v36, %v3471_v47 }
0x154a   : > { %v3474_v23 = vsub.f32 %v3437_v12, %v3472_v40  ;;  %v3476_v26 = vsub.f32 %v3441_v31, %v3472_v40  ;;  %v3478_v56 = vsub.f32 %v3447_v21, %v3472_v40  ;;  %v3480_v34 = vsub.f32 %v3451_v59, %v3472_v40 }
0x154b   : > { %v3481_v14 = vmul.f32 %v3473_v41, %v3473_v41  ;;  %v3483_v17 = vmul.f32 %v3475_v27, %v3475_v27  ;;  %v3485_v60 = vmul.f32 %v3477_v39, %v3477_v39  ;;  %v3487_v55 = vmul.f32 %v3479_v22, %v3479_v22 }
0x154c   : > { %v3482_v24 = vmul.f32 %v3474_v23, %v3474_v23  ;;  %v3484_v57 = vmul.f32 %v3476_v26, %v3476_v26  ;;  %v3486_v5 = vmul.f32 %v3478_v56, %v3478_v56  ;;  %v3488_v33 = vmul.f32 %v3480_v34, %v3480_v34 }
0x154d   : > { %v3489_v50 = vadd.f32 %v3483_v17, %v3481_v14 }
0x154e   : > { %v3498_v6 = vadd.f32 %v3484_v57, %v3482_v24 }
0x154f   : > { %v3490_v35 = vadd.f32 %v3489_v50, %v3485_v60  ;;  %v7059_v60 = vld [vmem:[#allocation22_spill] sm:$0xff] }
0x1550   : > { %v3499_v49 = vadd.f32 %v3498_v6, %v3486_v5  ;;  %v7060_v5 = vld [vmem:[#allocation25_spill] sm:$0xff] }
0x1551   : > { %v3491_v37 = vadd.f32 %v3490_v35, %v3487_v55  ;;  %v7061_v55 = vld [vmem:[#allocation23_spill] sm:$0xff] }
0x1552   : > { %v3500_v1 = vadd.f32 %v3499_v49, %v3488_v33  ;;  %v7062_v33 = vld [vmem:[#allocation24_spill] sm:$0xff] }
0x1553   : > { %v3492_v7 = vrot.slane %v3491_v37, 4 }
0x1554   : > { %v3501_v48 = vrot.slane %v3500_v1, 4 }
0x1555   : > { %v3493_v12 = vadd.f32 %v3492_v7, %v3491_v37  ;;  %v7066_v7 = vld [vmem:[#allocation29_spill] sm:$0xff] }
0x1556   : > { %v3502_v31 = vadd.f32 %v3501_v48, %v3500_v1 }
0x1557   : > { %v3494_v21 = vrot.slane %v3493_v12, 2 }
0x1558   : > { %v3503_v58 = vrot.slane %v3502_v31, 2 }
0x1559   : > { %v3495_v42 = vadd.f32 %v3494_v21, %v3493_v12 }
0x155a   : > { %v3504_v36 = vadd.f32 %v3503_v58, %v3502_v31 }
0x155b   : > { %v3496_v38 = vrot.slane %v3495_v42, 1 }
0x155c   : > { %v3505_v29 = vrot.slane %v3504_v36, 1 }
0x155d   : > { %v3497_v59 = vadd.f32 %v3496_v38, %v3495_v42 }
0x155e   : > { %v3506_v25 = vadd.f32 %v3505_v29, %v3504_v36 }
0x155f   : > { %v3507_v3 = vmul.f32 0.03125, %v3497_v59 }
0x1560   : > { %v3508_v18 = vmul.f32 0.03125, %v3506_v25 }
0x1561   : > { %v3509_v63 = vadd.f32 1e-05, %v3507_v3 }
0x1562   : > { %v3510_v30 = vadd.f32 1e-05, %v3508_v18 }
0x1563   : > { %4446 = vrsqrt.f32 %v3509_v63 }
0x1564   : > { %4448 = vrsqrt.f32 %v3510_v30 }
0x156c   : > { %v3599_v44 = vpop.f32.mrb[72].mxu1 }
0x156d   : > { %v4447_v52 = vpop.eup %4446  ;;  %v3606_v28 = vpack.c.bf16 %v3599_v44, %v3599_v44  ;;  %v3601_v0 = vpop.f32.mrb[73].mxu1  ;;  %v7067_v44 = vld [vmem:[#allocation55_spill] sm:$0xff] }
0x156e   : > { %v4449_v20 = vpop.eup %4448  ;;  %v3513_v19 = vmul.f32 %v4447_v52, %v3473_v41  ;;  %v3515_v2 = vmul.f32 %v4447_v52, %v3475_v27  ;;  %v3517_v11 = vmul.f32 %v4447_v52, %v3477_v39  ;;  %v3519_v16 = vmul.f32 %v4447_v52, %v3479_v22  ;;  %v3603_v47 = vpop.f32.mrb[74].mxu1  ;;  %v7063_v22 = vld [vmem:[#allocation27_spill] sm:$0xff]  ;;  %v7068_v52 = vld [vmem:[#allocation56_spill] sm:$0xff] }
0x156f   : > { %v3514_v40 = vmul.f32 %v4449_v20, %v3474_v23  ;;  %v3516_v14 = vmul.f32 %v4449_v20, %v3476_v26  ;;  %v3518_v17 = vmul.f32 %v4449_v20, %v3478_v56  ;;  %v3520_v24 = vmul.f32 %v4449_v20, %v3480_v34  ;;  %v3604_v57 = vpop.f32.mrb[75].mxu1  ;;  %v7064_v26 = vld [vmem:[#allocation26_spill] sm:$0xff]  ;;  %v7065_v34 = vld [vmem:[#allocation28_spill] sm:$0xff] }
0x1570   : > { %v3521_v50 = vmul.f32 %v3513_v19, %v7059_v60  ;;  %v3523_v6 = vmul.f32 %v3515_v2, %v7060_v5  ;;  %v3525_v35 = vmul.f32 %v3517_v11, %v7061_v55  ;;  %v3527_v49 = vmul.f32 %v3519_v16, %v7062_v33  ;;  %v7069_v19 = vld [vmem:[#allocation8_spill] sm:$0xff]  ;;  %v7070_v11 = vld [vmem:[#allocation9_spill] sm:$0xff] }
0x1571   : > { %v3522_v37 = vmul.f32 %v3514_v40, %v7059_v60  ;;  %v3524_v41 = vmul.f32 %v3516_v14, %v7060_v5  ;;  %v3526_v27 = vmul.f32 %v3518_v17, %v7061_v55  ;;  %v3528_v39 = vmul.f32 %v3520_v24, %v7062_v33 }
0x1572   : > { %v3529_v23 = vadd.f32 %v3521_v50, %v7063_v22  ;;  %v3531_v56 = vadd.f32 %v3523_v6, %v7064_v26  ;;  %v3533_v1 = vadd.f32 %v3525_v35, %v7065_v34  ;;  %v3535_v48 = vadd.f32 %v3527_v49, %v7066_v7  ;;  %v7071_v50 = vld [vmem:[#allocation10_spill] sm:$0xff] }
0x1573   : > { %v3530_v12 = vadd.f32 %v3522_v37, %v7063_v22  ;;  %v3532_v31 = vadd.f32 %v3524_v41, %v7064_v26  ;;  %v3534_v21 = vadd.f32 %v3526_v27, %v7065_v34  ;;  %v3536_v58 = vadd.f32 %v3528_v39, %v7066_v7  ;;  %v7072_v27 = vld [vmem:[#allocation11_spill] sm:$0xff] }
0x1574   : > { %v3537_v42 = vmax.f32 %v3529_v23, 0.0  ;;  %v3539_v36 = vmax.f32 %v3531_v56, 0.0  ;;  %v3541_v38 = vmax.f32 %v3533_v1, 0.0  ;;  %v3543_v29 = vmax.f32 %v3535_v48, 0.0 }
0x1575   : > { %v3538_v59 = vmax.f32 %v3530_v12, 0.0  ;;  %v3540_v25 = vmax.f32 %v3532_v31, 0.0  ;;  %v3542_v3 = vmax.f32 %v3534_v21, 0.0  ;;  %v3544_v18 = vmax.f32 %v3536_v58, 0.0 }
0x1576   : > { %3545 = vst [vmem:[%s5208_s17 + $0x60] sm:$0xff] %v3537_v42  ;;  %3547 = vst [vmem:[%s5208_s17 + $0xe0] sm:$0xff] %v3539_v36  ;;  %v3609_v63 = vsel %vm565_vm0, %v3606_v28, 0  ;;  %v3607_v30 = vpack.c.bf16 %v3601_v0, %v3601_v0 }
0x1577   : > { %3549 = vst [vmem:[%s5208_s17 + $0x160] sm:$0xff] %v3541_v38  ;;  %3551 = vst [vmem:[%s5208_s17 + $0x1e0] sm:$0xff] %v3543_v29 }
0x1578   : > { %3546 = vst [vmem:[%s5208_s17 + $0x68] sm:$0xff] %v3538_v59  ;;  %3548 = vst [vmem:[%s5208_s17 + $0xe8] sm:$0xff] %v3540_v25  ;;  %4277 = vmatprep.subr.msk.bf16.mxu0 %vm565_vm0, %v3607_v30 }
0x1579   : > { %3550 = vst [vmem:[%s5208_s17 + $0x168] sm:$0xff] %v3542_v3  ;;  %3552 = vst [vmem:[%s5208_s17 + $0x1e8] sm:$0xff] %v3544_v18  ;;  %3615 = vmatpush1.bf16.msra.mxu0 %v3609_v63 }
0x157c   : > { %4278 = vmatmul.mubr.msk.bf16.vlgmr.msra.gmra.mrb[124].mxu0 %vm558_vm1, %v7067_v44 }
0x157d   : > { %3656 = vmatprep.mubr.bf16.mxu0 %v6830_v51 }
0x1584   : > { %4279 = vmatmul.mubr.msk.bf16.gmra.mrb[128].mxu0 %vm558_vm1, %v7068_v52 }
0x1585   : > { %3852 = vmatprep.mubr.bf16.mxu0 %v6830_v51 }
0x164f   : > { %v3648_v20 = vpop.f32.mrb[124].mxu0 }
0x1650   : > { %v3650_v28 = vpop.f32.mrb[125].mxu0  ;;  %v3649_v2 = vadd.f32 %v3648_v20, %v7069_v19 }
0x1651   : > { %v3652_v0 = vpop.f32.mrb[126].mxu0  ;;  %v3651_v40 = vadd.f32 %v3650_v28, %v7069_v19 }
0x1652   : > { %v3653_v16 = vadd.f32 %v3652_v0, %v7070_v11  ;;  %v3654_v47 = vpop.f32.mrb[127].mxu0 }
0x1653   : > { %v3655_v14 = vadd.f32 %v3654_v47, %v7070_v11 }
0x1654   : > { %v3667_v17 = vadd.f32 %v3653_v16, %v3649_v2 }
0x1655   : > { %v3676_v24 = vadd.f32 %v3655_v14, %v3651_v40 }
0x1657   : > { %v3658_v57 = vpop.f32.mrb[128].mxu0 }
0x1658   : > { %v3659_v6 = vadd.f32 %v3658_v57, %v7071_v50  ;;  %v3660_v35 = vpop.f32.mrb[129].mxu0 }
0x1659   : > { %v3661_v49 = vadd.f32 %v3660_v35, %v7071_v50  ;;  %v3662_v37 = vpop.f32.mrb[130].mxu0 }
0x165a   : > { %v3668_v41 = vadd.f32 %v3667_v17, %v3659_v6  ;;  %v3663_v39 = vadd.f32 %v3662_v37, %v7072_v27  ;;  %v3664_v23 = vpop.f32.mrb[131].mxu0 }
0x165b   : > { %v3677_v56 = vadd.f32 %v3676_v24, %v3661_v49  ;;  %v3665_v1 = vadd.f32 %v3664_v23, %v7072_v27 }
0x165c   : > { %v3669_v48 = vadd.f32 %v3668_v41, %v3663_v39 }
0x165d   : > { %v3678_v12 = vadd.f32 %v3677_v56, %v3665_v1 }
0x165e   : > { %v3670_v31 = vrot.slane %v3669_v48, 4 }
0x165f   : > { %v3679_v21 = vrot.slane %v3678_v12, 4 }
0x1660   : > { %v3671_v58 = vadd.f32 %v3670_v31, %v3669_v48 }
0x1661   : > { %v3680_v42 = vadd.f32 %v3679_v21, %v3678_v12 }
0x1662   : > { %v3672_v36 = vrot.slane %v3671_v58, 2 }
0x1663   : > { %v3681_v38 = vrot.slane %v3680_v42, 2 }
0x1664   : > { %v3673_v29 = vadd.f32 %v3672_v36, %v3671_v58 }
0x1665   : > { %v3682_v59 = vadd.f32 %v3681_v38, %v3680_v42 }
0x1666   : > { %v3674_v25 = vrot.slane %v3673_v29, 1 }
0x1667   : > { %v3683_v3 = vrot.slane %v3682_v59, 1 }
0x1668   : > { %v3675_v18 = vadd.f32 %v3674_v25, %v3673_v29 }
0x1669   : > { %v3684_v63 = vadd.f32 %v3683_v3, %v3682_v59 }
0x166a   : > { %v3685_v30 = vmul.f32 0.03125, %v3675_v18 }
0x166b   : > { %v3686_v44 = vmul.f32 0.03125, %v3684_v63 }
0x166c   : > { %v3687_v52 = vsub.f32 %v3649_v2, %v3685_v30  ;;  %v3689_v20 = vsub.f32 %v3653_v16, %v3685_v30  ;;  %v3691_v28 = vsub.f32 %v3659_v6, %v3685_v30  ;;  %v3693_v0 = vsub.f32 %v3663_v39, %v3685_v30 }
0x166d   : > { %v3688_v19 = vsub.f32 %v3651_v40, %v3686_v44  ;;  %v3690_v11 = vsub.f32 %v3655_v14, %v3686_v44  ;;  %v3692_v47 = vsub.f32 %v3661_v49, %v3686_v44  ;;  %v3694_v17 = vsub.f32 %v3665_v1, %v3686_v44 }
0x166e   : > { %v3695_v24 = vmul.f32 %v3687_v52, %v3687_v52  ;;  %v3697_v57 = vmul.f32 %v3689_v20, %v3689_v20  ;;  %v3699_v37 = vmul.f32 %v3691_v28, %v3691_v28  ;;  %v3701_v56 = vmul.f32 %v3693_v0, %v3693_v0 }
0x166f   : > { %v3696_v50 = vmul.f32 %v3688_v19, %v3688_v19  ;;  %v3698_v35 = vmul.f32 %v3690_v11, %v3690_v11  ;;  %v3700_v27 = vmul.f32 %v3692_v47, %v3692_v47  ;;  %v3702_v12 = vmul.f32 %v3694_v17, %v3694_v17 }
0x1670   : > { %v3703_v41 = vadd.f32 %v3697_v57, %v3695_v24 }
0x1671   : > { %v3712_v23 = vadd.f32 %v3698_v35, %v3696_v50 }
0x1672   : > { %v3704_v48 = vadd.f32 %v3703_v41, %v3699_v37 }
0x1673   : > { %v3713_v31 = vadd.f32 %v3712_v23, %v3700_v27 }
0x1674   : > { %v3705_v2 = vadd.f32 %v3704_v48, %v3701_v56 }
0x1675   : > { %v3714_v16 = vadd.f32 %v3713_v31, %v3702_v12 }
0x1676   : > { %v3706_v6 = vrot.slane %v3705_v2, 4 }
0x1677   : > { %v3715_v39 = vrot.slane %v3714_v16, 4 }
0x1678   : > { %v3707_v40 = vadd.f32 %v3706_v6, %v3705_v2 }
0x1679   : > { %v3716_v14 = vadd.f32 %v3715_v39, %v3714_v16 }
0x167a   : > { %v3708_v49 = vrot.slane %v3707_v40, 2 }
0x167b   : > { %v3717_v1 = vrot.slane %v3716_v14, 2 }
0x167c   : > { %v3709_v21 = vadd.f32 %v3708_v49, %v3707_v40 }
0x167d   : > { %v3718_v58 = vadd.f32 %v3717_v1, %v3716_v14 }
0x167e   : > { %v3710_v42 = vrot.slane %v3709_v21, 1 }
0x167f   : > { %v3719_v36 = vrot.slane %v3718_v58, 1 }
0x1680   : > { %v3711_v38 = vadd.f32 %v3710_v42, %v3709_v21 }
0x1681   : > { %v3720_v29 = vadd.f32 %v3719_v36, %v3718_v58 }
0x1682   : > { %v3721_v59 = vmul.f32 0.03125, %v3711_v38 }
0x1683   : > { %v3722_v25 = vmul.f32 0.03125, %v3720_v29 }
0x1684   : > { %v3723_v3 = vadd.f32 1e-05, %v3721_v59 }
0x1685   : > { %v3724_v18 = vadd.f32 1e-05, %v3722_v25 }
0x1686   : > { %4450 = vrsqrt.f32 %v3723_v3 }
0x1687   : > { %4452 = vrsqrt.f32 %v3724_v18 }
0x1690   : > { %v4451_v63 = vpop.eup %4450 }
0x1691   : > { %v4453_v30 = vpop.eup %4452  ;;  %v3733_v44 = vmul.f32 %v4451_v63, %v3693_v0  ;;  %v3727_v24 = vmul.f32 %v4451_v63, %v3687_v52  ;;  %v3729_v57 = vmul.f32 %v4451_v63, %v3689_v20  ;;  %v3731_v50 = vmul.f32 %v4451_v63, %v3691_v28 }
0x1692   : > { %v3734_v35 = vmul.f32 %v4453_v30, %v3694_v17  ;;  %v3728_v37 = vmul.f32 %v4453_v30, %v3688_v19  ;;  %v3730_v41 = vmul.f32 %v4453_v30, %v3690_v11  ;;  %v3732_v27 = vmul.f32 %v4453_v30, %v3692_v47 }
0x1693   : > { %v3741_v23 = vmul.f32 %v3733_v44, %v7045_v62  ;;  %v3735_v56 = vmul.f32 %v3727_v24, %v7046_v46  ;;  %v3737_v48 = vmul.f32 %v3729_v57, %v7047_v61  ;;  %v3739_v12 = vmul.f32 %v3731_v50, %v7048_v9 }
0x1694   : > { %v3742_v31 = vmul.f32 %v3734_v35, %v7045_v62  ;;  %v3736_v2 = vmul.f32 %v3728_v37, %v7046_v46  ;;  %v3738_v52 = vmul.f32 %v3730_v41, %v7047_v61  ;;  %v3740_v20 = vmul.f32 %v3732_v27, %v7048_v9 }
0x1695   : > { %v3743_v28 = vadd.f32 %v3735_v56, %v7049_v8  ;;  %v3745_v0 = vadd.f32 %v3737_v48, %v7050_v54  ;;  %v3747_v19 = vadd.f32 %v3739_v12, %v7051_v4  ;;  %v3749_v11 = vadd.f32 %v3741_v23, %v7052_v15 }
0x1696   : > { %v3744_v47 = vadd.f32 %v3736_v2, %v7049_v8  ;;  %v3746_v17 = vadd.f32 %v3738_v52, %v7050_v54  ;;  %v3748_v62 = vadd.f32 %v3740_v20, %v7051_v4  ;;  %v3750_v46 = vadd.f32 %v3742_v31, %v7052_v15 }
0x1697   : > { %v3751_v16 = vmax.f32 %v3743_v28, 0.0  ;;  %v3753_v61 = vmax.f32 %v3745_v0, 0.0  ;;  %v3755_v6 = vmax.f32 %v3747_v19, 0.0  ;;  %v3757_v9 = vmax.f32 %v3749_v11, 0.0 }
0x1698   : > { %v3752_v39 = vmax.f32 %v3744_v47, 0.0  ;;  %v3754_v40 = vmax.f32 %v3746_v17, 0.0  ;;  %v3756_v14 = vmax.f32 %v3748_v62, 0.0  ;;  %v3758_v49 = vmax.f32 %v3750_v46, 0.0 }
0x1699   : > { %v3759_v1 = vpack.c.bf16 %v3753_v61, %v3751_v16  ;;  %v3761_v21 = vpack.c.bf16 %v3757_v9, %v3755_v6 }
0x169a   : > { %v3760_v58 = vpack.c.bf16 %v3754_v40, %v3752_v39  ;;  %v3762_v42 = vpack.c.bf16 %v3758_v49, %v3756_v14 }
0x169c   : > { %3795 = vmatprep.mubr.bf16.mxu1 %v3760_v58 }
0x169d   : > { %3796 = vmatmul.mubr.bf16.vlgmr.msra.gmra.mrb[76].mxu1 %v3759_v1 }
0x169e   : > { %3805 = vmatprep.mubr.bf16.mxu1 %v3762_v42 }
0x16a5   : > { %3806 = vmatmul.mubr.bf16.gmra.mrb[80].mxu1 %v3761_v21 }
0x1770   : > { %v3797_v8 = vpop.f32.mrb[76].mxu1 }
0x1771   : > { %v3799_v54 = vpop.f32.mrb[77].mxu1 }
0x1772   : > { %v3801_v4 = vpop.f32.mrb[78].mxu1 }
0x1773   : > { %v3816_v15 = vpack.c.bf16 %v3801_v4, %v3797_v8  ;;  %v3803_v36 = vpop.f32.mrb[79].mxu1 }
0x1774   : > { %v3817_v38 = vpack.c.bf16 %v3803_v36, %v3799_v54 }
0x1776   : > { %3820 = vmatprep.subr.bf16.mxu0 %v3817_v38 }
0x1777   : > { %3821 = vmatpush1.bf16.msra.mxu0 %v3816_v15 }
0x1778   : > { %v3807_v29 = vpop.f32.mrb[80].mxu1 }
0x1779   : > { %v3809_v59 = vpop.f32.mrb[81].mxu1 }
0x177a   : > { %v3811_v25 = vpop.f32.mrb[82].mxu1 }
0x177b   : > { %v3818_v3 = vpack.c.bf16 %v3811_v25, %v3807_v29  ;;  %v3813_v18 = vpop.f32.mrb[83].mxu1 }
0x177c   : > { %v3819_v63 = vpack.c.bf16 %v3813_v18, %v3809_v59 }
0x177e   : > { %3822 = vmatprep.subr.bf16.mxu0 %v3819_v63 }
0x177f   : > { %3823 = vmatpush1.bf16.msra.mxu0 %v3818_v3 }
0x1782   : > { %4280 = vmatmul.mubr.msk.bf16.vlgmr.msra.gmra.mrb[132].mxu0 %vm841_vm2, %v6242_v13 }
0x1783   : > { %3862 = vmatprep.mubr.bf16.mxu0 %v6830_v51 }
0x178a   : > { %4281 = vmatmul.mubr.msk.bf16.gmra.mrb[136].mxu0 %vm841_vm2, %v6255_v43 }
0x1855   : > { %v3854_v30 = vpop.f32.mrb[132].mxu0 }
0x1856   : > { %v3856_v44 = vpop.f32.mrb[133].mxu0  ;;  %v3855_v57 = vadd.f32 %v3854_v30, %v7055_v32 }
0x1857   : > { %v3858_v24 = vpop.f32.mrb[134].mxu0  ;;  %v3857_v37 = vadd.f32 %v3856_v44, %v7055_v32 }
0x1858   : > { %v3859_v50 = vadd.f32 %v3858_v24, %v7056_v45  ;;  %v3860_v35 = vpop.f32.mrb[135].mxu0 }
0x1859   : > { %v3861_v41 = vadd.f32 %v3860_v35, %v7056_v45 }
0x185a   : > { %v3873_v27 = vadd.f32 %v3859_v50, %v3855_v57 }
0x185b   : > { %v3882_v23 = vadd.f32 %v3861_v41, %v3857_v37 }
0x185d   : > { %v3864_v13 = vpop.f32.mrb[136].mxu0 }
0x185e   : > { %v3865_v51 = vadd.f32 %v3864_v13, %v7057_v10  ;;  %v3866_v56 = vpop.f32.mrb[137].mxu0 }
0x185f   : > { %v3867_v43 = vadd.f32 %v3866_v56, %v7057_v10  ;;  %v3868_v48 = vpop.f32.mrb[138].mxu0 }
0x1860   : > { %v3874_v12 = vadd.f32 %v3873_v27, %v3865_v51  ;;  %v3869_v31 = vadd.f32 %v3868_v48, %v7058_v53  ;;  %v3870_v2 = vpop.f32.mrb[139].mxu0 }
0x1861   : > { %v3883_v52 = vadd.f32 %v3882_v23, %v3867_v43  ;;  %v3871_v20 = vadd.f32 %v3870_v2, %v7058_v53 }
0x1862   : > { %v3875_v28 = vadd.f32 %v3874_v12, %v3869_v31 }
0x1863   : > { %v3884_v32 = vadd.f32 %v3883_v52, %v3871_v20 }
0x1864   : > { %v3876_v0 = vrot.slane %v3875_v28, 4 }
0x1865   : > { %v3885_v45 = vrot.slane %v3884_v32, 4 }
0x1866   : > { %v3877_v19 = vadd.f32 %v3876_v0, %v3875_v28 }
0x1867   : > { %v3886_v11 = vadd.f32 %v3885_v45, %v3884_v32 }
0x1868   : > { %v3878_v47 = vrot.slane %v3877_v19, 2 }
0x1869   : > { %v3887_v17 = vrot.slane %v3886_v11, 2 }
0x186a   : > { %v3879_v62 = vadd.f32 %v3878_v47, %v3877_v19 }
0x186b   : > { %v3888_v46 = vadd.f32 %v3887_v17, %v3886_v11 }
0x186c   : > { %v3880_v16 = vrot.slane %v3879_v62, 1 }
0x186d   : > { %v3889_v10 = vrot.slane %v3888_v46, 1 }
0x186e   : > { %v3881_v61 = vadd.f32 %v3880_v16, %v3879_v62 }
0x186f   : > { %v3890_v6 = vadd.f32 %v3889_v10, %v3888_v46 }
0x1870   : > { %v3891_v9 = vmul.f32 0.03125, %v3881_v61 }
0x1871   : > { %v3892_v39 = vmul.f32 0.03125, %v3890_v6 }
0x1872   : > { %v3893_v40 = vsub.f32 %v3855_v57, %v3891_v9  ;;  %v3895_v14 = vsub.f32 %v3859_v50, %v3891_v9  ;;  %v3897_v49 = vsub.f32 %v3865_v51, %v3891_v9  ;;  %v3899_v53 = vsub.f32 %v3869_v31, %v3891_v9 }
0x1873   : > { %v3894_v1 = vsub.f32 %v3857_v37, %v3892_v39  ;;  %v3896_v21 = vsub.f32 %v3861_v41, %v3892_v39  ;;  %v3898_v58 = vsub.f32 %v3867_v43, %v3892_v39  ;;  %v3900_v42 = vsub.f32 %v3871_v20, %v3892_v39 }
0x1874   : > { %v3901_v8 = vmul.f32 %v3893_v40, %v3893_v40  ;;  %v3903_v54 = vmul.f32 %v3895_v14, %v3895_v14  ;;  %v3905_v36 = vmul.f32 %v3897_v49, %v3897_v49  ;;  %v3907_v25 = vmul.f32 %v3899_v53, %v3899_v53 }
0x1875   : > { %v3902_v4 = vmul.f32 %v3894_v1, %v3894_v1  ;;  %v3904_v15 = vmul.f32 %v3896_v21, %v3896_v21  ;;  %v3906_v29 = vmul.f32 %v3898_v58, %v3898_v58  ;;  %v3908_v18 = vmul.f32 %v3900_v42, %v3900_v42 }
0x1876   : > { %v3909_v38 = vadd.f32 %v3903_v54, %v3901_v8 }
0x1877   : > { %v3918_v59 = vadd.f32 %v3904_v15, %v3902_v4 }
0x1878   : > { %v3910_v3 = vadd.f32 %v3909_v38, %v3905_v36  ;;  %v4003_v36 = vld [vmem:[%s5208_s17 + $0x20] sm:$0xff] (%p7073_p6)  ;;  %v4005_v38 = vld [vmem:[%s5208_s17 + $0x28] sm:$0xff] (%p7073_p6) }
0x1879   : > { %v3919_v63 = vadd.f32 %v3918_v59, %v3906_v29  ;;  %4004 = vst [vmem:[%s6428_s10 + $0x20] sm:$0xff] (%p7073_p6), %v4003_v36  ;;  %4006 = vst [vmem:[%s6428_s10 + $0x28] sm:$0xff] (%p7073_p6), %v4005_v38  ;;  %v4007_v29 = vld [vmem:[%s5208_s17 + $0x30] sm:$0xff] (%p7073_p6)  ;;  %v4009_v59 = vld [vmem:[%s5208_s17 + $0x38] sm:$0xff] (%p7073_p6) }
0x187a   : > { %v3911_v30 = vadd.f32 %v3910_v3, %v3907_v25  ;;  %v4011_v25 = vld [vmem:[%s5208_s17 + $0x40] sm:$0xff] (%p7073_p6)  ;;  %4008 = vst [vmem:[%s6428_s10 + $0x30] sm:$0xff] (%p7073_p6), %v4007_v29  ;;  %4010 = vst [vmem:[%s6428_s10 + $0x38] sm:$0xff] (%p7073_p6), %v4009_v59  ;;  %v4013_v3 = vld [vmem:[%s5208_s17 + $0x48] sm:$0xff] (%p7073_p6) }
0x187b   : > { %v3920_v44 = vadd.f32 %v3919_v63, %v3908_v18  ;;  %4012 = vst [vmem:[%s6428_s10 + $0x40] sm:$0xff] (%p7073_p6), %v4011_v25  ;;  %v4015_v18 = vld [vmem:[%s5208_s17 + $0x50] sm:$0xff] (%p7073_p6)  ;;  %v4017_v63 = vld [vmem:[%s5208_s17 + $0x58] sm:$0xff] (%p7073_p6)  ;;  %4014 = vst [vmem:[%s6428_s10 + $0x48] sm:$0xff] (%p7073_p6), %v4013_v3 }
0x187c   : > { %v3912_v24 = vrot.slane %v3911_v30, 4  ;;  %4016 = vst [vmem:[%s6428_s10 + $0x50] sm:$0xff] (%p7073_p6), %v4015_v18  ;;  %4018 = vst [vmem:[%s6428_s10 + $0x58] sm:$0xff] (%p7073_p6), %v4017_v63 }
0x187d   : > { %v3921_v57 = vrot.slane %v3920_v44, 4 }
0x187e   : > { %v3913_v50 = vadd.f32 %v3912_v24, %v3911_v30  ;;  %v4019_v30 = vld [vmem:[%s5208_s17 + $0x60] sm:$0xff] (%p7073_p6) }
0x187f   : > { %v3922_v35 = vadd.f32 %v3921_v57, %v3920_v44  ;;  %v4021_v44 = vld [vmem:[%s5208_s17 + $0x68] sm:$0xff] (%p7073_p6)  ;;  %4020 = vst [vmem:[%s6428_s10 + $0x60] sm:$0xff] (%p7073_p6), %v4019_v30 }
0x1880   : > { %v3914_v37 = vrot.slane %v3913_v50, 2  ;;  %4022 = vst [vmem:[%s6428_s10 + $0x68] sm:$0xff] (%p7073_p6), %v4021_v44 }
0x1881   : > { %v3923_v41 = vrot.slane %v3922_v35, 2 }
0x1882   : > { %v3915_v27 = vadd.f32 %v3914_v37, %v3913_v50  ;;  %v4027_v50 = vld [vmem:[%s5208_s17 + $0x80] sm:$0xff] (%p7073_p6)  ;;  %v4031_v37 = vld [vmem:[%s5208_s17 + $0x90] sm:$0xff] (%p7073_p6) }
0x1883   : > { %v3924_v23 = vadd.f32 %v3923_v41, %v3922_v35  ;;  %v4029_v35 = vld [vmem:[%s5208_s17 + $0x88] sm:$0xff] (%p7073_p6)  ;;  %4028 = vst [vmem:[%s6428_s10 + $0x100] sm:$0xff] (%p7073_p6), %v4027_v50  ;;  %v4033_v41 = vld [vmem:[%s5208_s17 + $0x98] sm:$0xff] (%p7073_p6)  ;;  %4032 = vst [vmem:[%s6428_s10 + $0x110] sm:$0xff] (%p7073_p6), %v4031_v37 }
0x1884   : > { %v3916_v13 = vrot.slane %v3915_v27, 1  ;;  %4030 = vst [vmem:[%s6428_s10 + $0x108] sm:$0xff] (%p7073_p6), %v4029_v35  ;;  %4034 = vst [vmem:[%s6428_s10 + $0x118] sm:$0xff] (%p7073_p6), %v4033_v41 }
0x1885   : > { %v3925_v51 = vrot.slane %v3924_v23, 1 }
0x1886   : > { %v3917_v56 = vadd.f32 %v3916_v13, %v3915_v27  ;;  %v4035_v27 = vld [vmem:[%s5208_s17 + $0xa0] sm:$0xff] (%p7073_p6)  ;;  %v4039_v13 = vld [vmem:[%s5208_s17 + $0xb0] sm:$0xff] (%p7073_p6) }
0x1887   : > { %v3926_v43 = vadd.f32 %v3925_v51, %v3924_v23  ;;  %4036 = vst [vmem:[%s6428_s10 + $0x120] sm:$0xff] (%p7073_p6), %v4035_v27  ;;  %v4037_v23 = vld [vmem:[%s5208_s17 + $0xa8] sm:$0xff] (%p7073_p6)  ;;  %v4041_v51 = vld [vmem:[%s5208_s17 + $0xb8] sm:$0xff] (%p7073_p6)  ;;  %4040 = vst [vmem:[%s6428_s10 + $0x130] sm:$0xff] (%p7073_p6), %v4039_v13 }
0x1888   : > { %v3927_v48 = vmul.f32 0.03125, %v3917_v56  ;;  %4038 = vst [vmem:[%s6428_s10 + $0x128] sm:$0xff] (%p7073_p6), %v4037_v23  ;;  %4042 = vst [vmem:[%s6428_s10 + $0x138] sm:$0xff] (%p7073_p6), %v4041_v51  ;;  %v4043_v56 = vld [vmem:[%s5208_s17 + $0xc0] sm:$0xff] (%p7073_p6) }
0x1889   : > { %v3928_v12 = vmul.f32 0.03125, %v3926_v43  ;;  %v4045_v43 = vld [vmem:[%s5208_s17 + $0xc8] sm:$0xff] (%p7073_p6)  ;;  %4044 = vst [vmem:[%s6428_s10 + $0x140] sm:$0xff] (%p7073_p6), %v4043_v56 }
0x188a   : > { %v3929_v31 = vadd.f32 1e-05, %v3927_v48  ;;  %v4047_v48 = vld [vmem:[%s5208_s17 + $0xd0] sm:$0xff] (%p7073_p6)  ;;  %4046 = vst [vmem:[%s6428_s10 + $0x148] sm:$0xff] (%p7073_p6), %v4045_v43 }
0x188b   : > { %v3930_v2 = vadd.f32 1e-05, %v3928_v12  ;;  %4048 = vst [vmem:[%s6428_s10 + $0x150] sm:$0xff] (%p7073_p6), %v4047_v48  ;;  %v4049_v12 = vld [vmem:[%s5208_s17 + $0xd8] sm:$0xff] (%p7073_p6) }
0x188c   : > { %4454 = vrsqrt.f32 %v3929_v31  ;;  %v4051_v31 = vld [vmem:[%s5208_s17 + $0xe0] sm:$0xff] (%p7073_p6)  ;;  %4050 = vst [vmem:[%s6428_s10 + $0x158] sm:$0xff] (%p7073_p6), %v4049_v12 }
0x188d   : > { %4456 = vrsqrt.f32 %v3930_v2  ;;  %v4053_v2 = vld [vmem:[%s5208_s17 + $0xe8] sm:$0xff] (%p7073_p6)  ;;  %4052 = vst [vmem:[%s6428_s10 + $0x160] sm:$0xff] (%p7073_p6), %v4051_v31 }
0x188e   : > { %4054 = vst [vmem:[%s6428_s10 + $0x168] sm:$0xff] (%p7073_p6), %v4053_v2 }
0x1896   : > { %v4455_v52 = vpop.eup %4454 }
0x1897   : > { %v4457_v20 = vpop.eup %4456  ;;  %v3933_v28 = vmul.f32 %v4455_v52, %v3893_v40  ;;  %v3935_v32 = vmul.f32 %v4455_v52, %v3895_v14  ;;  %v3937_v0 = vmul.f32 %v4455_v52, %v3897_v49  ;;  %v3939_v45 = vmul.f32 %v4455_v52, %v3899_v53 }
0x1898   : > { %v3934_v19 = vmul.f32 %v4457_v20, %v3894_v1  ;;  %v3936_v11 = vmul.f32 %v4457_v20, %v3896_v21  ;;  %v3938_v47 = vmul.f32 %v4457_v20, %v3898_v58  ;;  %v3940_v17 = vmul.f32 %v4457_v20, %v3900_v42 }
0x1899   : > { %v3941_v62 = vmul.f32 %v3933_v28, %v7059_v60  ;;  %v3943_v46 = vmul.f32 %v3935_v32, %v7060_v5  ;;  %v3945_v16 = vmul.f32 %v3937_v0, %v7061_v55  ;;  %v3947_v10 = vmul.f32 %v3939_v45, %v7062_v33  ;;  %v4059_v28 = vld [vmem:[%s5208_s17 + $0x100] sm:$0xff] (%p7073_p6)  ;;  %v4061_v32 = vld [vmem:[%s5208_s17 + $0x108] sm:$0xff] (%p7073_p6)  ;;  %v4063_v0 = vld [vmem:[%s5208_s17 + $0x110] sm:$0xff] (%p7073_p6) }
0x189a   : > { %v3942_v61 = vmul.f32 %v3934_v19, %v7059_v60  ;;  %v3944_v6 = vmul.f32 %v3936_v11, %v7060_v5  ;;  %v3946_v9 = vmul.f32 %v3938_v47, %v7061_v55  ;;  %v3948_v39 = vmul.f32 %v3940_v17, %v7062_v33  ;;  %4060 = vst [vmem:[%s6428_s10 + $0x200] sm:$0xff] (%p7073_p6), %v4059_v28  ;;  %v4065_v45 = vld [vmem:[%s5208_s17 + $0x118] sm:$0xff] (%p7073_p6)  ;;  %v4067_v19 = vld [vmem:[%s5208_s17 + $0x120] sm:$0xff] (%p7073_p6)  ;;  %v4069_v11 = vld [vmem:[%s5208_s17 + $0x128] sm:$0xff] (%p7073_p6) }
0x189b   : > { %v3949_v40 = vadd.f32 %v3941_v62, %v7063_v22  ;;  %v3951_v14 = vadd.f32 %v3943_v46, %v7064_v26  ;;  %v3953_v49 = vadd.f32 %v3945_v16, %v7065_v34  ;;  %v3955_v53 = vadd.f32 %v3947_v10, %v7066_v7  ;;  %4062 = vst [vmem:[%s6428_s10 + $0x208] sm:$0xff] (%p7073_p6), %v4061_v32  ;;  %v4071_v47 = vld [vmem:[%s5208_s17 + $0x130] sm:$0xff] (%p7073_p6)  ;;  %v4073_v17 = vld [vmem:[%s5208_s17 + $0x138] sm:$0xff] (%p7073_p6)  ;;  %v4075_v62 = vld [vmem:[%s5208_s17 + $0x140] sm:$0xff] (%p7073_p6) }
0x189c   : > { %v3950_v60 = vadd.f32 %v3942_v61, %v7063_v22  ;;  %v3952_v5 = vadd.f32 %v3944_v6, %v7064_v26  ;;  %v3954_v55 = vadd.f32 %v3946_v9, %v7065_v34  ;;  %v3956_v33 = vadd.f32 %v3948_v39, %v7066_v7  ;;  %3979 = sbr.rel (!%p7073_p6) target bundleno = 6324 (0x18b4), region = 52  ;;  %v3995_v22 = vld [vmem:[%s5208_s17] sm:$0xff] (%p7073_p6)  ;;  %v3997_v26 = vld [vmem:[%s5208_s17 + $0x8] sm:$0xff] (%p7073_p6)  ;;  %v3999_v34 = vld [vmem:[%s5208_s17 + $0x10] sm:$0xff] (%p7073_p6)  ;;  %4064 = vst [vmem:[%s6428_s10 + $0x210] sm:$0xff] (%p7073_p6), %v4063_v0 }
0x189d   : > { %v3957_v1 = vmax.f32 %v3949_v40, 0.0  ;;  %v3959_v21 = vmax.f32 %v3951_v14, 0.0  ;;  %v3961_v58 = vmax.f32 %v3953_v49, 0.0  ;;  %v3963_v42 = vmax.f32 %v3955_v53, 0.0  ;;  %v4001_v7 = vld [vmem:[%s5208_s17 + $0x18] sm:$0xff] (%p7073_p6)  ;;  %3996 = vst [vmem:[%s6428_s10] sm:$0xff] (%p7073_p6), %v3995_v22  ;;  %3998 = vst [vmem:[%s6428_s10 + $0x8] sm:$0xff] (%p7073_p6), %v3997_v26 }
0x189e   : > { %v3958_v8 = vmax.f32 %v3950_v60, 0.0  ;;  %v3960_v54 = vmax.f32 %v3952_v5, 0.0  ;;  %v3962_v4 = vmax.f32 %v3954_v55, 0.0  ;;  %v3964_v15 = vmax.f32 %v3956_v33, 0.0  ;;  %4000 = vst [vmem:[%s6428_s10 + $0x10] sm:$0xff] (%p7073_p6), %v3999_v34  ;;  %4002 = vst [vmem:[%s6428_s10 + $0x18] sm:$0xff] (%p7073_p6), %v4001_v7 }
0x189f   : > { %3965 = vst [vmem:[%s5208_s17 + $0x70] sm:$0xff] %v3957_v1  ;;  %3967 = vst [vmem:[%s5208_s17 + $0xf0] sm:$0xff] %v3959_v21  ;;  %v4077_v46 = vld [vmem:[%s5208_s17 + $0x148] sm:$0xff] (%p7073_p6)  ;;  %v4079_v16 = vld [vmem:[%s5208_s17 + $0x150] sm:$0xff] (%p7073_p6) }
0x18a0   : > { %3969 = vst [vmem:[%s5208_s17 + $0x170] sm:$0xff] %v3961_v58  ;;  %3971 = vst [vmem:[%s5208_s17 + $0x1f0] sm:$0xff] %v3963_v42  ;;  %v4081_v10 = vld [vmem:[%s5208_s17 + $0x158] sm:$0xff] (%p7073_p6)  ;;  %v4083_v61 = vld [vmem:[%s5208_s17 + $0x160] sm:$0xff] (%p7073_p6) }
0x18a1   : > { %3966 = vst [vmem:[%s5208_s17 + $0x78] sm:$0xff] %v3958_v8  ;;  %3968 = vst [vmem:[%s5208_s17 + $0xf8] sm:$0xff] %v3960_v54  ;;  %v4085_v6 = vld [vmem:[%s5208_s17 + $0x168] sm:$0xff] (%p7073_p6)  ;;  %v4091_v40 = vld [vmem:[%s5208_s17 + $0x180] sm:$0xff] (%p7073_p6) }
0x18a2   : > { %3970 = vst [vmem:[%s5208_s17 + $0x178] sm:$0xff] %v3962_v4  ;;  %3972 = vst [vmem:[%s5208_s17 + $0x1f8] sm:$0xff] %v3964_v15  ;;  %v4093_v14 = vld [vmem:[%s5208_s17 + $0x188] sm:$0xff] (%p7073_p6)  ;;  %v4095_v49 = vld [vmem:[%s5208_s17 + $0x190] sm:$0xff] (%p7073_p6) }
0x18a3   : > { %4066 = vst [vmem:[%s6428_s10 + $0x218] sm:$0xff] %v4065_v45  ;;  %4068 = vst [vmem:[%s6428_s10 + $0x220] sm:$0xff] %v4067_v19  ;;  %v4097_v53 = vld [vmem:[%s5208_s17 + $0x198] sm:$0xff]  ;;  %v4099_v60 = vld [vmem:[%s5208_s17 + $0x1a0] sm:$0xff] }
0x18a4   : > { %4070 = vst [vmem:[%s6428_s10 + $0x228] sm:$0xff] %v4069_v11  ;;  %4072 = vst [vmem:[%s6428_s10 + $0x230] sm:$0xff] %v4071_v47  ;;  %v4101_v5 = vld [vmem:[%s5208_s17 + $0x1a8] sm:$0xff]  ;;  %v4103_v55 = vld [vmem:[%s5208_s17 + $0x1b0] sm:$0xff] }
0x18a5   : > { %4074 = vst [vmem:[%s6428_s10 + $0x238] sm:$0xff] %v4073_v17  ;;  %4076 = vst [vmem:[%s6428_s10 + $0x240] sm:$0xff] %v4075_v62  ;;  %v4105_v33 = vld [vmem:[%s5208_s17 + $0x1b8] sm:$0xff]  ;;  %v4107_v1 = vld [vmem:[%s5208_s17 + $0x1c0] sm:$0xff] }
0x18a6   : > { %v4023_v24 = vld [vmem:[%s5208_s17 + $0x70] sm:$0xff]  ;;  %4078 = vst [vmem:[%s6428_s10 + $0x248] sm:$0xff] %v4077_v46  ;;  %4080 = vst [vmem:[%s6428_s10 + $0x250] sm:$0xff] %v4079_v16  ;;  %v4109_v21 = vld [vmem:[%s5208_s17 + $0x1c8] sm:$0xff] }
0x18a7   : > { %4024 = vst [vmem:[%s6428_s10 + $0x70] sm:$0xff] %v4023_v24  ;;  %v4055_v52 = vld [vmem:[%s5208_s17 + $0xf0] sm:$0xff]  ;;  %4082 = vst [vmem:[%s6428_s10 + $0x258] sm:$0xff] %v4081_v10  ;;  %v4113_v42 = vld [vmem:[%s5208_s17 + $0x1d8] sm:$0xff] }
0x18a8   : > { %v4025_v57 = vld [vmem:[%s5208_s17 + $0x78] sm:$0xff]  ;;  %4056 = vst [vmem:[%s6428_s10 + $0x170] sm:$0xff] %v4055_v52  ;;  %4084 = vst [vmem:[%s6428_s10 + $0x260] sm:$0xff] %v4083_v61  ;;  %v4087_v9 = vld [vmem:[%s5208_s17 + $0x170] sm:$0xff] }
0x18a9   : > { %4026 = vst [vmem:[%s6428_s10 + $0x78] sm:$0xff] %v4025_v57  ;;  %v4057_v20 = vld [vmem:[%s5208_s17 + $0xf8] sm:$0xff]  ;;  %4086 = vst [vmem:[%s6428_s10 + $0x268] sm:$0xff] %v4085_v6  ;;  %v4111_v58 = vld [vmem:[%s5208_s17 + $0x1d0] sm:$0xff] }
0x18aa   : > { %4058 = vst [vmem:[%s6428_s10 + $0x178] sm:$0xff] %v4057_v20  ;;  %v4089_v39 = vld [vmem:[%s5208_s17 + $0x178] sm:$0xff]  ;;  %4088 = vst [vmem:[%s6428_s10 + $0x270] sm:$0xff] %v4087_v9  ;;  %v4115_v8 = vld [vmem:[%s5208_s17 + $0x1e0] sm:$0xff] }
0x18ab   : > { %4090 = vst [vmem:[%s6428_s10 + $0x278] sm:$0xff] %v4089_v39  ;;  %4092 = vst [vmem:[%s6428_s10 + $0x300] sm:$0xff] %v4091_v40  ;;  %v4117_v54 = vld [vmem:[%s5208_s17 + $0x1e8] sm:$0xff]  ;;  %v4119_v4 = vld [vmem:[%s5208_s17 + $0x1f0] sm:$0xff] }
0x18ac   : > { %4094 = vst [vmem:[%s6428_s10 + $0x308] sm:$0xff] %v4093_v14  ;;  %4096 = vst [vmem:[%s6428_s10 + $0x310] sm:$0xff] %v4095_v49  ;;  %v4121_v15 = vld [vmem:[%s5208_s17 + $0x1f8] sm:$0xff] }
0x18ad   : > { %4098 = vst [vmem:[%s6428_s10 + $0x318] sm:$0xff] %v4097_v53  ;;  %4100 = vst [vmem:[%s6428_s10 + $0x320] sm:$0xff] %v4099_v60 }
0x18ae   : > { %4102 = vst [vmem:[%s6428_s10 + $0x328] sm:$0xff] %v4101_v5  ;;  %4104 = vst [vmem:[%s6428_s10 + $0x330] sm:$0xff] %v4103_v55 }
0x18af   : > { %4106 = vst [vmem:[%s6428_s10 + $0x338] sm:$0xff] %v4105_v33  ;;  %4108 = vst [vmem:[%s6428_s10 + $0x340] sm:$0xff] %v4107_v1 }
0x18b0   : > { %4110 = vst [vmem:[%s6428_s10 + $0x348] sm:$0xff] %v4109_v21  ;;  %4112 = vst [vmem:[%s6428_s10 + $0x350] sm:$0xff] %v4111_v58 }
0x18b1   : > { %4114 = vst [vmem:[%s6428_s10 + $0x358] sm:$0xff] %v4113_v42  ;;  %4116 = vst [vmem:[%s6428_s10 + $0x360] sm:$0xff] %v4115_v8 }
0x18b2   : > { %4118 = vst [vmem:[%s6428_s10 + $0x368] sm:$0xff] %v4117_v54  ;;  %4120 = vst [vmem:[%s6428_s10 + $0x370] sm:$0xff] %v4119_v4 }
0x18b3   : > { %4122 = vst [vmem:[%s6428_s10 + $0x378] sm:$0xff] %v4121_v15 }
0x18b4 PF: > { %p14_p7 = scmp.ge.s32.totalorder %s4678_s25, 4   ;;  %s7074_s21 = smov %s4616_s22 }
0x18b5   : > { %s7075_s22 = smov %s4686_s28  ;;  %s7076_s23 = smov %s4678_s25 }
0x18b6   :  { %16 = sbr.rel (!%p14_p7) target bundleno = 2 (0x2), region = 102 }
0x18bd   :  { %4138 = vsyncpa [#allocation3], 1 }
0x18be   :  { %4140 = vsyncpa [#allocation3 + $0x1], 1 }

</bundles_post_ra>
